<compile_context>
chip_gen: v7x
topology: tpu7x:2x2x1
jax: 0.10.0
libtpu: 0.0.40
codegen_flags: <defaults>
</compile_context>

<pallas_src>
import jax
import jax.numpy as jnp
import numpy as np
from jax import lax
from jax.experimental import pallas as pl
from jax.experimental.pallas import tpu as pltpu


# ----------------------------------------------------------------------------
# Fused kernel: ConvTranspose2d(k=2,s=2)+bias -> diff-pad -> concat -> DoubleConv
# One grid step per batch element; every intermediate lives only in VMEM.
# ----------------------------------------------------------------------------
def upsample_fused_kernel(x1_ref, x2_ref, wup_ref, bup_ref,
                          w1_ref, b1_ref, w2_ref, b2_ref,
                          o_ref, upsub_ref, xin_ref, hmid_ref):
    # x1_ref   : (H1, W1, Cin)   bf16  low-res feature map (this batch)
    # x2_ref   : (H2, W2, C2)    bf16  skip connection
    # wup_ref  : (Cin, 4*C2)     bf16  convT taps, columns ordered (a, b, co)
    # bup_ref  : (1, 4*C2)       f32   convT bias tiled to the same column order
    # w1_ref   : (9, Ctot, Cout) bf16  conv1 taps (t = 3*dh + dw)
    # b1_ref   : (1, Cout)       f32
    # w2_ref   : (9, Cout, Cout) bf16  conv2 taps
    # b2_ref   : (1, Cout)       f32
    # o_ref    : (H2*W2, Cout)   f32   output (row-major == (H2, W2, Cout))
    # upsub_ref: (H1, 2, W1, 2, C2) bf16 VMEM  sub-pixel staging of the convT
    # xin_ref  : (H2+2, W2+2, Ctot) bf16 VMEM  diff-pad + concat + conv1 halo
    # hmid_ref : (H2+2, W2+2, Cout) bf16 VMEM  conv1 output + conv2 halo
    H1, W1, Cin = x1_ref.shape
    H2, W2, C2 = x2_ref.shape
    Ctot = xin_ref.shape[-1]
    Cout = o_ref.shape[-1]
    Hu, Wu = 2 * H1, 2 * W1
    # torch: F.pad(x1, [dX//2, dX-dX//2, dY//2, dY-dY//2])
    py0, px0 = (H2 - Hu) // 2, (W2 - Wu) // 2
    py1, px1 = (H2 - Hu) - py0, (W2 - Wu) - px0

    # -- zero only what must be zero: 1-px halo rings + diff-pad frame of the
    #    up channels.  Interiors are fully rewritten below; done every step so
    #    grid iterations stay independent (safe with "parallel" semantics).
    def _zero_ring(ref):
        Hp, Wp, C = ref.shape
        zr = jnp.zeros((1, Wp, C), ref.dtype)
        zc = jnp.zeros((Hp, 1, C), ref.dtype)
        ref[0:1, :, :] = zr
        ref[Hp - 1:Hp, :, :] = zr
        ref[:, 0:1, :] = zc
        ref[:, Wp - 1:Wp, :] = zc

    _zero_ring(xin_ref)
    _zero_ring(hmid_ref)
    if py0 > 0:
        xin_ref[1:1 + py0, 1:1 + W2, C2:Ctot] = jnp.zeros(
            (py0, W2, Ctot - C2), xin_ref.dtype)
    if py1 > 0:
        xin_ref[1 + py0 + Hu:1 + H2, 1:1 + W2, C2:Ctot] = jnp.zeros(
            (py1, W2, Ctot - C2), xin_ref.dtype)
    if px0 > 0:
        xin_ref[1 + py0:1 + py0 + Hu, 1:1 + px0, C2:Ctot] = jnp.zeros(
            (Hu, px0, Ctot - C2), xin_ref.dtype)
    if px1 > 0:
        xin_ref[1 + py0:1 + py0 + Hu, 1 + px0 + Wu:1 + W2, C2:Ctot] = jnp.zeros(
            (Hu, px1, Ctot - C2), xin_ref.dtype)

    # -- ConvTranspose2d(k=2, s=2) + bias: ONE MXU matmul per batch (both row
    #    parities merged).  up[2h+a, 2w+b, c] = y_up[h*W1+w, (2a+b)*C2 + c].
    x1_flat = x1_ref[...].reshape(H1 * W1, Cin)
    y_up = jnp.dot(x1_flat, wup_ref[...],
                   preferred_element_type=jnp.float32) + bup_ref[...]
    for a in range(2):
        for b in range(2):
            c0 = (2 * a + b) * C2
            piece = y_up[:, c0:c0 + C2].astype(upsub_ref.dtype)
            upsub_ref[:, a:a + 1, :, b:b + 1, :] = piece.reshape(H1, 1, W1, 1, C2)

    # -- diff-pad + channel concat entirely in VMEM (x2 first, then upsample);
    #    the sub-pixel -> image conversion is a lane-preserving reshape.
    xin_ref[1:1 + H2, 1:1 + W2, 0:C2] = x2_ref[...]
    xin_ref[1 + py0:1 + py0 + Hu, 1 + px0:1 + px0 + Wu, C2:Ctot] = (
        upsub_ref[...].reshape(Hu, Wu, C2))

    # -- 3x3 conv + ReLU as 9 accumulating MXU matmuls (no im2col staging).
    def conv3x3_relu(src_ref, w_ref, b_ref):
        cin = src_ref.shape[-1]
        acc = None
        for dh in range(3):
            for dw in range(3):
                patch = src_ref[dh:dh + H2, dw:dw + W2, :].reshape(H2 * W2, cin)
                part = jnp.dot(patch, w_ref[3 * dh + dw],
                               preferred_element_type=jnp.float32)
                acc = part if acc is None else acc + part
        return jnp.maximum(acc + b_ref[...], 0.0)          # (H2*W2, Cout) f32

    y1 = conv3x3_relu(xin_ref, w1_ref, b1_ref)
    hmid_ref[1:1 + H2, 1:1 + W2, :] = (
        y1.astype(hmid_ref.dtype).reshape(H2, W2, Cout))
    y2 = conv3x3_relu(hmid_ref, w2_ref, b2_ref)
    o_ref[...] = y2.astype(o_ref.dtype)


# ----------------------------------------------------------------------------
# Parameters (deterministic, built in-script; mirror the PyTorch module).
# ----------------------------------------------------------------------------
def init_upsample_params(key, in_channels, out_channels):
    k = jax.random.split(key, 6)
    half = in_channels // 2
    s = 0.1
    return {
        # ConvTranspose2d(in_channels, in_channels//2, k=2, s=2): (Cin,Cout,2,2)
        "up_w": s * jax.random.normal(k[0], (in_channels, half, 2, 2), jnp.float32),
        "up_b": s * jax.random.normal(k[1], (half,), jnp.float32),
        # DoubleConv: Conv2d(in_channels, out_channels, 3, pad=1)
        "c1_w": s * jax.random.normal(k[2], (out_channels, in_channels, 3, 3), jnp.float32),
        "c1_b": s * jax.random.normal(k[3], (out_channels,), jnp.float32),
        # Conv2d(out_channels, out_channels, 3, pad=1)
        "c2_w": s * jax.random.normal(k[4], (out_channels, out_channels, 3, 3), jnp.float32),
        "c2_b": s * jax.random.normal(k[5], (out_channels,), jnp.float32),
    }


def upsample_forward(params, x1_nchw, x2_nchw):
    """Matches UpSample.forward(x1, x2). Inputs/outputs are NCHW like PyTorch."""
    # Boundary-only layout conversion + bf16 cast (f32 accumulation inside).
    x1 = jnp.transpose(x1_nchw, (0, 2, 3, 1)).astype(jnp.bfloat16)   # (N,H1,W1,Cin)
    x2 = jnp.transpose(x2_nchw, (0, 2, 3, 1)).astype(jnp.bfloat16)   # (N,H2,W2,C2)

    N, H1, W1, Cin = x1.shape
    _, H2, W2, C2 = x2.shape
    Cout = params["c1_w"].shape[0]
    Ctot = params["c1_w"].shape[1]            # == C2 (skip) + C2 (upsampled)
    assert Ctot == 2 * C2 and params["up_w"].shape[1] == C2

    # ---- host-side (one-time) weight re-layouts -----------------------------
    # ConvTranspose2d weight (ci, co, a, b) -> (ci, (a,b,co)) matmul weight.
    wup = jnp.transpose(params["up_w"], (0, 2, 3, 1)).reshape(Cin, 4 * C2)
    wup = wup.astype(jnp.bfloat16)
    bup = jnp.tile(params["up_b"], 4).reshape(1, 4 * C2)              # f32
    # Conv2d weights (co, ci, kh, kw) -> per-tap (9, ci, co).
    w1 = jnp.transpose(params["c1_w"], (2, 3, 1, 0)).reshape(9, Ctot, Cout)
    w1 = w1.astype(jnp.bfloat16)
    b1 = params["c1_b"].reshape(1, Cout)
    w2 = jnp.transpose(params["c2_w"], (2, 3, 1, 0)).reshape(9, Cout, Cout)
    w2 = w2.astype(jnp.bfloat16)
    b2 = params["c2_b"].reshape(1, Cout)

    # ---- explicit VMEM budget (scratch + double-buffered blocks + margin) ----
    bf = 2
    scratch_b = bf * (4 * H1 * W1 * C2
                      + (H2 + 2) * (W2 + 2) * Ctot
                      + (H2 + 2) * (W2 + 2) * Cout)
    blk_in_b = (bf * (H1 * W1 * Cin + H2 * W2 * C2
                      + Cin * 4 * C2 + 9 * Ctot * Cout + 9 * Cout * Cout)
                + 4 * (4 * C2 + 2 * Cout))
    blk_out_b = 4 * H2 * W2 * Cout
    vmem_limit = int(min(max(4 * (scratch_b + 2 * (blk_in_b + blk_out_b)),
                             32 * 1024 * 1024),
                         100 * 1024 * 1024))

    flops = (2 * N * H1 * W1 * Cin * 4 * C2
             + 2 * N * H2 * W2 * 9 * Ctot * Cout
             + 2 * N * H2 * W2 * 9 * Cout * Cout)
    bytes_accessed = (2 * (x1.size + x2.size + wup.size + w1.size + w2.size)
                      + 4 * (bup.size + b1.size + b2.size)
                      + 4 * N * H2 * W2 * Cout)

    y = pl.pallas_call(
        upsample_fused_kernel,
        out_shape=jax.ShapeDtypeStruct((N, H2 * W2, Cout), jnp.float32),
        grid=(N,),
        in_specs=[
            pl.BlockSpec((None, H1, W1, Cin), lambda n: (n, 0, 0, 0)),
            pl.BlockSpec((None, H2, W2, C2), lambda n: (n, 0, 0, 0)),
            pl.BlockSpec((Cin, 4 * C2), lambda n: (0, 0)),
            pl.BlockSpec((1, 4 * C2), lambda n: (0, 0)),
            pl.BlockSpec((9, Ctot, Cout), lambda n: (0, 0, 0)),
            pl.BlockSpec((1, Cout), lambda n: (0, 0)),
            pl.BlockSpec((9, Cout, Cout), lambda n: (0, 0, 0)),
            pl.BlockSpec((1, Cout), lambda n: (0, 0)),
        ],
        out_specs=pl.BlockSpec((None, H2 * W2, Cout), lambda n: (n, 0, 0)),
        scratch_shapes=[
            pltpu.VMEM((H1, 2, W1, 2, C2), jnp.bfloat16),        # sub-pixel up
            pltpu.VMEM((H2 + 2, W2 + 2, Ctot), jnp.bfloat16),    # pad+concat
            pltpu.VMEM((H2 + 2, W2 + 2, Cout), jnp.bfloat16),    # conv1 out
        ],
        compiler_params=pltpu.CompilerParams(
            dimension_semantics=("parallel",),
            vmem_limit_bytes=vmem_limit),
        cost_estimate=pl.CostEstimate(
            flops=flops, transcendentals=0, bytes_accessed=bytes_accessed),
    )(x1, x2, wup, bup, w1, b1, w2, b2)

    # Row-major (N, H2*W2, Cout) == (N, H2, W2, Cout): free metadata reshape.
    y_nhwc = y.reshape(N, H2, W2, Cout)
    return jnp.transpose(y_nhwc, (0, 3, 1, 2))                  # -> NCHW


# ----------------------------------------------------------------------------
# Pure-JAX f32 reference (for verification only).
# ----------------------------------------------------------------------------
def _ref_forward(params, x1, x2):
    N, Ci, H, W = x1.shape
    Co = params["up_w"].shape[1]
    t = jnp.einsum("nihw,ioab->nohawb", x1, params["up_w"])
    up = t.reshape(N, Co, 2 * H, 2 * W) + params["up_b"][None, :, None, None]

    diffY = x2.shape[2] - up.shape[2]
    diffX = x2.shape[3] - up.shape[3]
    up = jnp.pad(up, ((0, 0), (0, 0),
                      (diffY // 2, diffY - diffY // 2),
                      (diffX // 2, diffX - diffX // 2)))
    x = jnp.concatenate([x2, up], axis=1)

    def conv(x, w, b):
        y = lax.conv_general_dilated(x, w, (1, 1), ((1, 1), (1, 1)),
                                     dimension_numbers=("NCHW", "OIHW", "NCHW"))
        return jnp.maximum(y + b[None, :, None, None], 0.0)

    x = conv(x, params["c1_w"], params["c1_b"])
    x = conv(x, params["c2_w"], params["c2_b"])
    return x


if __name__ == "__main__":
    in_channels, out_channels = 4, 4
    key = jax.random.PRNGKey(0)
    kp, k1, k2 = jax.random.split(key, 3)

    params = init_upsample_params(kp, in_channels, out_channels)

    # x1: low-res feature map (N, in_channels, 8, 8)
    # x2: skip connection     (N, in_channels//2, 16, 16)
    x1 = jax.random.normal(k1, (2, in_channels, 8, 8), jnp.float32)
    x2 = jax.random.normal(k2, (2, in_channels // 2, 16, 16), jnp.float32)

    fwd = jax.jit(upsample_forward)
    out = jax.block_until_ready(fwd(params, x1, x2))

    ref = jax.block_until_ready(_ref_forward(params, x1, x2))
    # bf16 activations/weights with f32 accumulation -> relaxed tolerance.
    np.testing.assert_allclose(np.asarray(out), np.asarray(ref),
                               rtol=2e-2, atol=2e-2)
    assert out.shape == (2, out_channels, 16, 16)
    print("KERNEL_OK")
</pallas_src>

<mosaic_0001>
module attributes {stable_mosaic.version = 11 : i64} {
  func.func @upsample_fused_kernel(%arg0: i32, %arg1: memref<1x8x8x4xbf16, #tpu.memory_space<vmem>>, %arg2: memref<1x16x16x2xbf16, #tpu.memory_space<vmem>>, %arg3: memref<4x8xbf16, #tpu.memory_space<vmem>>, %arg4: memref<1x8xf32, #tpu.memory_space<vmem>>, %arg5: memref<9x4x4xbf16, #tpu.memory_space<vmem>>, %arg6: memref<1x4xf32, #tpu.memory_space<vmem>>, %arg7: memref<9x4x4xbf16, #tpu.memory_space<vmem>>, %arg8: memref<1x4xf32, #tpu.memory_space<vmem>>, %arg9: memref<1x256x4xf32, #tpu.memory_space<vmem>>, %arg10: memref<8x2x8x2x2xbf16, #tpu.memory_space<vmem>>, %arg11: memref<18x18x4xbf16, #tpu.memory_space<vmem>>, %arg12: memref<18x18x4xbf16, #tpu.memory_space<vmem>>) attributes {dimension_semantics = [#tpu.dimension_semantics<parallel>], iteration_bounds = array<i64: 2>, scalar_prefetch = 0 : i64, scratch_operands = 3 : i64, tpu.core_type = #tpu.core_type<tc>, window_params = [{transform_indices = @transform_0, window_bounds = array<i64: 1, 8, 8, 4>}, {transform_indices = @transform_1, window_bounds = array<i64: 1, 16, 16, 2>}, {pipeline_mode = #tpu.pipeline_mode<synchronous>, transform_indices = @transform_2, window_bounds = array<i64: 4, 8>}, {pipeline_mode = #tpu.pipeline_mode<synchronous>, transform_indices = @transform_3, window_bounds = array<i64: 1, 8>}, {pipeline_mode = #tpu.pipeline_mode<synchronous>, transform_indices = @transform_4, window_bounds = array<i64: 9, 4, 4>}, {pipeline_mode = #tpu.pipeline_mode<synchronous>, transform_indices = @transform_5, window_bounds = array<i64: 1, 4>}, {pipeline_mode = #tpu.pipeline_mode<synchronous>, transform_indices = @transform_6, window_bounds = array<i64: 9, 4, 4>}, {pipeline_mode = #tpu.pipeline_mode<synchronous>, transform_indices = @transform_7, window_bounds = array<i64: 1, 4>}, {transform_indices = @transform_8, window_bounds = array<i64: 1, 256, 4>}]} {
    %cst = arith.constant 0.000000e+00 : bf16
    %0 = vector.broadcast %cst : bf16 to vector<1x18x4xbf16>
    %cst_0 = arith.constant 0.000000e+00 : bf16
    %1 = vector.broadcast %cst_0 : bf16 to vector<18x1x4xbf16>
    %c0 = arith.constant 0 : index
    %c0_1 = arith.constant 0 : index
    %c0_2 = arith.constant 0 : index
    %2 = vector.load %arg11[%c0, %c0_1, %c0_2] : memref<18x18x4xbf16, #tpu.memory_space<vmem>>, vector<1x18x4xbf16>
    tpu.vector_store %arg11[%c0, %c0_1, %c0_2], %0 {strides = array<i32>} : memref<18x18x4xbf16, #tpu.memory_space<vmem>>, vector<1x18x4xbf16>,
    %c17 = arith.constant 17 : index
    %c0_3 = arith.constant 0 : index
    %c0_4 = arith.constant 0 : index
    %3 = vector.load %arg11[%c17, %c0_3, %c0_4] : memref<18x18x4xbf16, #tpu.memory_space<vmem>>, vector<1x18x4xbf16>
    tpu.vector_store %arg11[%c17, %c0_3, %c0_4], %0 {strides = array<i32>} : memref<18x18x4xbf16, #tpu.memory_space<vmem>>, vector<1x18x4xbf16>,
    %c0_5 = arith.constant 0 : index
    %c0_6 = arith.constant 0 : index
    %c0_7 = arith.constant 0 : index
    %4 = vector.load %arg11[%c0_5, %c0_6, %c0_7] : memref<18x18x4xbf16, #tpu.memory_space<vmem>>, vector<18x1x4xbf16>
    tpu.vector_store %arg11[%c0_5, %c0_6, %c0_7], %1 {strides = array<i32>} : memref<18x18x4xbf16, #tpu.memory_space<vmem>>, vector<18x1x4xbf16>,
    %c0_8 = arith.constant 0 : index
    %c17_9 = arith.constant 17 : index
    %c0_10 = arith.constant 0 : index
    %5 = vector.load %arg11[%c0_8, %c17_9, %c0_10] : memref<18x18x4xbf16, #tpu.memory_space<vmem>>, vector<18x1x4xbf16>
    tpu.vector_store %arg11[%c0_8, %c17_9, %c0_10], %1 {strides = array<i32>} : memref<18x18x4xbf16, #tpu.memory_space<vmem>>, vector<18x1x4xbf16>,
    %cst_11 = arith.constant 0.000000e+00 : bf16
    %6 = vector.broadcast %cst_11 : bf16 to vector<1x18x4xbf16>
    %cst_12 = arith.constant 0.000000e+00 : bf16
    %7 = vector.broadcast %cst_12 : bf16 to vector<18x1x4xbf16>
    %c0_13 = arith.constant 0 : index
    %c0_14 = arith.constant 0 : index
    %c0_15 = arith.constant 0 : index
    %8 = vector.load %arg12[%c0_13, %c0_14, %c0_15] : memref<18x18x4xbf16, #tpu.memory_space<vmem>>, vector<1x18x4xbf16>
    tpu.vector_store %arg12[%c0_13, %c0_14, %c0_15], %6 {strides = array<i32>} : memref<18x18x4xbf16, #tpu.memory_space<vmem>>, vector<1x18x4xbf16>,
    %c17_16 = arith.constant 17 : index
    %c0_17 = arith.constant 0 : index
    %c0_18 = arith.constant 0 : index
    %9 = vector.load %arg12[%c17_16, %c0_17, %c0_18] : memref<18x18x4xbf16, #tpu.memory_space<vmem>>, vector<1x18x4xbf16>
    tpu.vector_store %arg12[%c17_16, %c0_17, %c0_18], %6 {strides = array<i32>} : memref<18x18x4xbf16, #tpu.memory_space<vmem>>, vector<1x18x4xbf16>,
    %c0_19 = arith.constant 0 : index
    %c0_20 = arith.constant 0 : index
    %c0_21 = arith.constant 0 : index
    %10 = vector.load %arg12[%c0_19, %c0_20, %c0_21] : memref<18x18x4xbf16, #tpu.memory_space<vmem>>, vector<18x1x4xbf16>
    tpu.vector_store %arg12[%c0_19, %c0_20, %c0_21], %7 {strides = array<i32>} : memref<18x18x4xbf16, #tpu.memory_space<vmem>>, vector<18x1x4xbf16>,
    %c0_22 = arith.constant 0 : index
    %c17_23 = arith.constant 17 : index
    %c0_24 = arith.constant 0 : index
    %11 = vector.load %arg12[%c0_22, %c17_23, %c0_24] : memref<18x18x4xbf16, #tpu.memory_space<vmem>>, vector<18x1x4xbf16>
    tpu.vector_store %arg12[%c0_22, %c17_23, %c0_24], %7 {strides = array<i32>} : memref<18x18x4xbf16, #tpu.memory_space<vmem>>, vector<18x1x4xbf16>,
    %c0_25 = arith.constant 0 : index
    %c0_26 = arith.constant 0 : index
    %c0_27 = arith.constant 0 : index
    %c0_28 = arith.constant 0 : index
    %12 = vector.load %arg1[%c0_25, %c0_26, %c0_27, %c0_28] : memref<1x8x8x4xbf16, #tpu.memory_space<vmem>>, vector<1x8x8x4xbf16>
    %13 = vector.shape_cast %12 : vector<1x8x8x4xbf16> to vector<8x8x4xbf16>
    %14 = vector.shape_cast %13 : vector<8x8x4xbf16> to vector<64x4xbf16>
    %c0_29 = arith.constant 0 : index
    %c0_30 = arith.constant 0 : index
    %15 = vector.load %arg3[%c0_29, %c0_30] : memref<4x8xbf16, #tpu.memory_space<vmem>>, vector<4x8xbf16>
    %cst_31 = arith.constant dense<0.000000e+00> : vector<64x8xf32>
    %16 = tpu.matmul %14, %15, %cst_31 {dimension_numbers = #tpu.dot_dimension_numbers<[1], [0], [0], [1], [0, 0, 1, 1], [], []>} : vector<64x4xbf16>, vector<4x8xbf16>, vector<64x8xf32> -> vector<64x8xf32>
    %c0_32 = arith.constant 0 : index
    %c0_33 = arith.constant 0 : index
    %17 = vector.load %arg4[%c0_32, %c0_33] : memref<1x8xf32, #tpu.memory_space<vmem>>, vector<1x8xf32>
    %18 = vector.broadcast %17 : vector<1x8xf32> to vector<64x8xf32>
    %19 = arith.addf %16, %18 : vector<64x8xf32>
    %20 = vector.extract_strided_slice %19 {offsets = [0, 0], sizes = [64, 2], strides = [1, 1]} : vector<64x8xf32> to vector<64x2xf32>
    %21 = arith.truncf %20 : vector<64x2xf32> to vector<64x2xbf16>
    %22 = vector.shape_cast %21 : vector<64x2xbf16> to vector<8x1x8x1x2xbf16>
    %c0_34 = arith.constant 0 : index
    %c0_35 = arith.constant 0 : index
    %c0_36 = arith.constant 0 : index
    %c0_37 = arith.constant 0 : index
    %c0_38 = arith.constant 0 : index
    %23 = vector.load %arg10[%c0_34, %c0_35, %c0_36, %c0_37, %c0_38] : memref<8x2x8x2x2xbf16, #tpu.memory_space<vmem>>, vector<8x1x8x1x2xbf16>
    tpu.vector_store %arg10[%c0_34, %c0_35, %c0_36, %c0_37, %c0_38], %22 {strides = array<i32>} : memref<8x2x8x2x2xbf16, #tpu.memory_space<vmem>>, vector<8x1x8x1x2xbf16>,
    %24 = vector.extract_strided_slice %19 {offsets = [0, 2], sizes = [64, 2], strides = [1, 1]} : vector<64x8xf32> to vector<64x2xf32>
    %25 = arith.truncf %24 : vector<64x2xf32> to vector<64x2xbf16>
    %26 = vector.shape_cast %25 : vector<64x2xbf16> to vector<8x1x8x1x2xbf16>
    %c0_39 = arith.constant 0 : index
    %c0_40 = arith.constant 0 : index
    %c0_41 = arith.constant 0 : index
    %c1 = arith.constant 1 : index
    %c0_42 = arith.constant 0 : index
    %27 = vector.load %arg10[%c0_39, %c0_40, %c0_41, %c1, %c0_42] : memref<8x2x8x2x2xbf16, #tpu.memory_space<vmem>>, vector<8x1x8x1x2xbf16>
    tpu.vector_store %arg10[%c0_39, %c0_40, %c0_41, %c1, %c0_42], %26 {strides = array<i32>} : memref<8x2x8x2x2xbf16, #tpu.memory_space<vmem>>, vector<8x1x8x1x2xbf16>,
    %28 = vector.extract_strided_slice %19 {offsets = [0, 4], sizes = [64, 2], strides = [1, 1]} : vector<64x8xf32> to vector<64x2xf32>
    %29 = arith.truncf %28 : vector<64x2xf32> to vector<64x2xbf16>
    %30 = vector.shape_cast %29 : vector<64x2xbf16> to vector<8x1x8x1x2xbf16>
    %c0_43 = arith.constant 0 : index
    %c1_44 = arith.constant 1 : index
    %c0_45 = arith.constant 0 : index
    %c0_46 = arith.constant 0 : index
    %c0_47 = arith.constant 0 : index
    %31 = vector.load %arg10[%c0_43, %c1_44, %c0_45, %c0_46, %c0_47] : memref<8x2x8x2x2xbf16, #tpu.memory_space<vmem>>, vector<8x1x8x1x2xbf16>
    tpu.vector_store %arg10[%c0_43, %c1_44, %c0_45, %c0_46, %c0_47], %30 {strides = array<i32>} : memref<8x2x8x2x2xbf16, #tpu.memory_space<vmem>>, vector<8x1x8x1x2xbf16>,
    %32 = vector.extract_strided_slice %19 {offsets = [0, 6], sizes = [64, 2], strides = [1, 1]} : vector<64x8xf32> to vector<64x2xf32>
    %33 = arith.truncf %32 : vector<64x2xf32> to vector<64x2xbf16>
    %34 = vector.shape_cast %33 : vector<64x2xbf16> to vector<8x1x8x1x2xbf16>
    %c0_48 = arith.constant 0 : index
    %c1_49 = arith.constant 1 : index
    %c0_50 = arith.constant 0 : index
    %c1_51 = arith.constant 1 : index
    %c0_52 = arith.constant 0 : index
    %35 = vector.load %arg10[%c0_48, %c1_49, %c0_50, %c1_51, %c0_52] : memref<8x2x8x2x2xbf16, #tpu.memory_space<vmem>>, vector<8x1x8x1x2xbf16>
    tpu.vector_store %arg10[%c0_48, %c1_49, %c0_50, %c1_51, %c0_52], %34 {strides = array<i32>} : memref<8x2x8x2x2xbf16, #tpu.memory_space<vmem>>, vector<8x1x8x1x2xbf16>,
    %c0_53 = arith.constant 0 : index
    %c0_54 = arith.constant 0 : index
    %c0_55 = arith.constant 0 : index
    %c0_56 = arith.constant 0 : index
    %36 = vector.load %arg2[%c0_53, %c0_54, %c0_55, %c0_56] : memref<1x16x16x2xbf16, #tpu.memory_space<vmem>>, vector<1x16x16x2xbf16>
    %37 = vector.shape_cast %36 : vector<1x16x16x2xbf16> to vector<16x16x2xbf16>
    %c1_57 = arith.constant 1 : index
    %c1_58 = arith.constant 1 : index
    %c0_59 = arith.constant 0 : index
    %38 = vector.load %arg11[%c1_57, %c1_58, %c0_59] : memref<18x18x4xbf16, #tpu.memory_space<vmem>>, vector<16x16x2xbf16>
    tpu.vector_store %arg11[%c1_57, %c1_58, %c0_59], %37 {strides = array<i32>} : memref<18x18x4xbf16, #tpu.memory_space<vmem>>, vector<16x16x2xbf16>,
    %c0_60 = arith.constant 0 : index
    %c0_61 = arith.constant 0 : index
    %c0_62 = arith.constant 0 : index
    %c0_63 = arith.constant 0 : index
    %c0_64 = arith.constant 0 : index
    %39 = vector.load %arg10[%c0_60, %c0_61, %c0_62, %c0_63, %c0_64] : memref<8x2x8x2x2xbf16, #tpu.memory_space<vmem>>, vector<8x2x8x2x2xbf16>
    %40 = vector.shape_cast %39 : vector<8x2x8x2x2xbf16> to vector<16x16x2xbf16>
    %c1_65 = arith.constant 1 : index
    %c1_66 = arith.constant 1 : index
    %c2 = arith.constant 2 : index
    %41 = vector.load %arg11[%c1_65, %c1_66, %c2] : memref<18x18x4xbf16, #tpu.memory_space<vmem>>, vector<16x16x2xbf16>
    tpu.vector_store %arg11[%c1_65, %c1_66, %c2], %40 {strides = array<i32>} : memref<18x18x4xbf16, #tpu.memory_space<vmem>>, vector<16x16x2xbf16>,
    %c0_67 = arith.constant 0 : index
    %c0_68 = arith.constant 0 : index
    %c0_69 = arith.constant 0 : index
    %42 = vector.load %arg11[%c0_67, %c0_68, %c0_69] : memref<18x18x4xbf16, #tpu.memory_space<vmem>>, vector<16x16x4xbf16>
    %43 = vector.shape_cast %42 : vector<16x16x4xbf16> to vector<256x4xbf16>
    %c0_70 = arith.constant 0 : index
    %c0_71 = arith.constant 0 : index
    %c0_72 = arith.constant 0 : index
    %44 = vector.load %arg5[%c0_70, %c0_71, %c0_72] : memref<9x4x4xbf16, #tpu.memory_space<vmem>>, vector<1x4x4xbf16>
    %45 = vector.shape_cast %44 : vector<1x4x4xbf16> to vector<4x4xbf16>
    %cst_73 = arith.constant dense<0.000000e+00> : vector<256x4xf32>
    %46 = tpu.matmul %43, %45, %cst_73 {dimension_numbers = #tpu.dot_dimension_numbers<[1], [0], [0], [1], [0, 0, 1, 1], [], []>} : vector<256x4xbf16>, vector<4x4xbf16>, vector<256x4xf32> -> vector<256x4xf32>
    %c0_74 = arith.constant 0 : index
    %c1_75 = arith.constant 1 : index
    %c0_76 = arith.constant 0 : index
    %47 = vector.load %arg11[%c0_74, %c1_75, %c0_76] : memref<18x18x4xbf16, #tpu.memory_space<vmem>>, vector<16x16x4xbf16>
    %48 = vector.shape_cast %47 : vector<16x16x4xbf16> to vector<256x4xbf16>
    %c1_77 = arith.constant 1 : index
    %c0_78 = arith.constant 0 : index
    %c0_79 = arith.constant 0 : index
    %49 = vector.load %arg5[%c1_77, %c0_78, %c0_79] : memref<9x4x4xbf16, #tpu.memory_space<vmem>>, vector<1x4x4xbf16>
    %50 = vector.shape_cast %49 : vector<1x4x4xbf16> to vector<4x4xbf16>
    %cst_80 = arith.constant dense<0.000000e+00> : vector<256x4xf32>
    %51 = tpu.matmul %48, %50, %cst_80 {dimension_numbers = #tpu.dot_dimension_numbers<[1], [0], [0], [1], [0, 0, 1, 1], [], []>} : vector<256x4xbf16>, vector<4x4xbf16>, vector<256x4xf32> -> vector<256x4xf32>
    %52 = arith.addf %46, %51 : vector<256x4xf32>
    %c0_81 = arith.constant 0 : index
    %c2_82 = arith.constant 2 : index
    %c0_83 = arith.constant 0 : index
    %53 = vector.load %arg11[%c0_81, %c2_82, %c0_83] : memref<18x18x4xbf16, #tpu.memory_space<vmem>>, vector<16x16x4xbf16>
    %54 = vector.shape_cast %53 : vector<16x16x4xbf16> to vector<256x4xbf16>
    %c2_84 = arith.constant 2 : index
    %c0_85 = arith.constant 0 : index
    %c0_86 = arith.constant 0 : index
    %55 = vector.load %arg5[%c2_84, %c0_85, %c0_86] : memref<9x4x4xbf16, #tpu.memory_space<vmem>>, vector<1x4x4xbf16>
    %56 = vector.shape_cast %55 : vector<1x4x4xbf16> to vector<4x4xbf16>
    %cst_87 = arith.constant dense<0.000000e+00> : vector<256x4xf32>
    %57 = tpu.matmul %54, %56, %cst_87 {dimension_numbers = #tpu.dot_dimension_numbers<[1], [0], [0], [1], [0, 0, 1, 1], [], []>} : vector<256x4xbf16>, vector<4x4xbf16>, vector<256x4xf32> -> vector<256x4xf32>
    %58 = arith.addf %52, %57 : vector<256x4xf32>
    %c1_88 = arith.constant 1 : index
    %c0_89 = arith.constant 0 : index
    %c0_90 = arith.constant 0 : index
    %59 = vector.load %arg11[%c1_88, %c0_89, %c0_90] : memref<18x18x4xbf16, #tpu.memory_space<vmem>>, vector<16x16x4xbf16>
    %60 = vector.shape_cast %59 : vector<16x16x4xbf16> to vector<256x4xbf16>
    %c3 = arith.constant 3 : index
    %c0_91 = arith.constant 0 : index
    %c0_92 = arith.constant 0 : index
    %61 = vector.load %arg5[%c3, %c0_91, %c0_92] : memref<9x4x4xbf16, #tpu.memory_space<vmem>>, vector<1x4x4xbf16>
    %62 = vector.shape_cast %61 : vector<1x4x4xbf16> to vector<4x4xbf16>
    %cst_93 = arith.constant dense<0.000000e+00> : vector<256x4xf32>
    %63 = tpu.matmul %60, %62, %cst_93 {dimension_numbers = #tpu.dot_dimension_numbers<[1], [0], [0], [1], [0, 0, 1, 1], [], []>} : vector<256x4xbf16>, vector<4x4xbf16>, vector<256x4xf32> -> vector<256x4xf32>
    %64 = arith.addf %58, %63 : vector<256x4xf32>
    %c1_94 = arith.constant 1 : index
    %c1_95 = arith.constant 1 : index
    %c0_96 = arith.constant 0 : index
    %65 = vector.load %arg11[%c1_94, %c1_95, %c0_96] : memref<18x18x4xbf16, #tpu.memory_space<vmem>>, vector<16x16x4xbf16>
    %66 = vector.shape_cast %65 : vector<16x16x4xbf16> to vector<256x4xbf16>
    %c4 = arith.constant 4 : index
    %c0_97 = arith.constant 0 : index
    %c0_98 = arith.constant 0 : index
    %67 = vector.load %arg5[%c4, %c0_97, %c0_98] : memref<9x4x4xbf16, #tpu.memory_space<vmem>>, vector<1x4x4xbf16>
    %68 = vector.shape_cast %67 : vector<1x4x4xbf16> to vector<4x4xbf16>
    %cst_99 = arith.constant dense<0.000000e+00> : vector<256x4xf32>
    %69 = tpu.matmul %66, %68, %cst_99 {dimension_numbers = #tpu.dot_dimension_numbers<[1], [0], [0], [1], [0, 0, 1, 1], [], []>} : vector<256x4xbf16>, vector<4x4xbf16>, vector<256x4xf32> -> vector<256x4xf32>
    %70 = arith.addf %64, %69 : vector<256x4xf32>
    %c1_100 = arith.constant 1 : index
    %c2_101 = arith.constant 2 : index
    %c0_102 = arith.constant 0 : index
    %71 = vector.load %arg11[%c1_100, %c2_101, %c0_102] : memref<18x18x4xbf16, #tpu.memory_space<vmem>>, vector<16x16x4xbf16>
    %72 = vector.shape_cast %71 : vector<16x16x4xbf16> to vector<256x4xbf16>
    %c5 = arith.constant 5 : index
    %c0_103 = arith.constant 0 : index
    %c0_104 = arith.constant 0 : index
    %73 = vector.load %arg5[%c5, %c0_103, %c0_104] : memref<9x4x4xbf16, #tpu.memory_space<vmem>>, vector<1x4x4xbf16>
    %74 = vector.shape_cast %73 : vector<1x4x4xbf16> to vector<4x4xbf16>
    %cst_105 = arith.constant dense<0.000000e+00> : vector<256x4xf32>
    %75 = tpu.matmul %72, %74, %cst_105 {dimension_numbers = #tpu.dot_dimension_numbers<[1], [0], [0], [1], [0, 0, 1, 1], [], []>} : vector<256x4xbf16>, vector<4x4xbf16>, vector<256x4xf32> -> vector<256x4xf32>
    %76 = arith.addf %70, %75 : vector<256x4xf32>
    %c2_106 = arith.constant 2 : index
    %c0_107 = arith.constant 0 : index
    %c0_108 = arith.constant 0 : index
    %77 = vector.load %arg11[%c2_106, %c0_107, %c0_108] : memref<18x18x4xbf16, #tpu.memory_space<vmem>>, vector<16x16x4xbf16>
    %78 = vector.shape_cast %77 : vector<16x16x4xbf16> to vector<256x4xbf16>
    %c6 = arith.constant 6 : index
    %c0_109 = arith.constant 0 : index
    %c0_110 = arith.constant 0 : index
    %79 = vector.load %arg5[%c6, %c0_109, %c0_110] : memref<9x4x4xbf16, #tpu.memory_space<vmem>>, vector<1x4x4xbf16>
    %80 = vector.shape_cast %79 : vector<1x4x4xbf16> to vector<4x4xbf16>
    %cst_111 = arith.constant dense<0.000000e+00> : vector<256x4xf32>
    %81 = tpu.matmul %78, %80, %cst_111 {dimension_numbers = #tpu.dot_dimension_numbers<[1], [0], [0], [1], [0, 0, 1, 1], [], []>} : vector<256x4xbf16>, vector<4x4xbf16>, vector<256x4xf32> -> vector<256x4xf32>
    %82 = arith.addf %76, %81 : vector<256x4xf32>
    %c2_112 = arith.constant 2 : index
    %c1_113 = arith.constant 1 : index
    %c0_114 = arith.constant 0 : index
    %83 = vector.load %arg11[%c2_112, %c1_113, %c0_114] : memref<18x18x4xbf16, #tpu.memory_space<vmem>>, vector<16x16x4xbf16>
    %84 = vector.shape_cast %83 : vector<16x16x4xbf16> to vector<256x4xbf16>
    %c7 = arith.constant 7 : index
    %c0_115 = arith.constant 0 : index
    %c0_116 = arith.constant 0 : index
    %85 = vector.load %arg5[%c7, %c0_115, %c0_116] : memref<9x4x4xbf16, #tpu.memory_space<vmem>>, vector<1x4x4xbf16>
    %86 = vector.shape_cast %85 : vector<1x4x4xbf16> to vector<4x4xbf16>
    %cst_117 = arith.constant dense<0.000000e+00> : vector<256x4xf32>
    %87 = tpu.matmul %84, %86, %cst_117 {dimension_numbers = #tpu.dot_dimension_numbers<[1], [0], [0], [1], [0, 0, 1, 1], [], []>} : vector<256x4xbf16>, vector<4x4xbf16>, vector<256x4xf32> -> vector<256x4xf32>
    %88 = arith.addf %82, %87 : vector<256x4xf32>
    %c2_118 = arith.constant 2 : index
    %c2_119 = arith.constant 2 : index
    %c0_120 = arith.constant 0 : index
    %89 = vector.load %arg11[%c2_118, %c2_119, %c0_120] : memref<18x18x4xbf16, #tpu.memory_space<vmem>>, vector<16x16x4xbf16>
    %90 = vector.shape_cast %89 : vector<16x16x4xbf16> to vector<256x4xbf16>
    %c8 = arith.constant 8 : index
    %c0_121 = arith.constant 0 : index
    %c0_122 = arith.constant 0 : index
    %91 = vector.load %arg5[%c8, %c0_121, %c0_122] : memref<9x4x4xbf16, #tpu.memory_space<vmem>>, vector<1x4x4xbf16>
    %92 = vector.shape_cast %91 : vector<1x4x4xbf16> to vector<4x4xbf16>
    %cst_123 = arith.constant dense<0.000000e+00> : vector<256x4xf32>
    %93 = tpu.matmul %90, %92, %cst_123 {dimension_numbers = #tpu.dot_dimension_numbers<[1], [0], [0], [1], [0, 0, 1, 1], [], []>} : vector<256x4xbf16>, vector<4x4xbf16>, vector<256x4xf32> -> vector<256x4xf32>
    %94 = arith.addf %88, %93 : vector<256x4xf32>
    %c0_124 = arith.constant 0 : index
    %c0_125 = arith.constant 0 : index
    %95 = vector.load %arg6[%c0_124, %c0_125] : memref<1x4xf32, #tpu.memory_space<vmem>>, vector<1x4xf32>
    %96 = vector.broadcast %95 : vector<1x4xf32> to vector<256x4xf32>
    %97 = arith.addf %94, %96 : vector<256x4xf32>
    %cst_126 = arith.constant 0.000000e+00 : f32
    %98 = vector.broadcast %cst_126 : f32 to vector<256x4xf32>
    %99 = arith.maximumf %97, %98 : vector<256x4xf32>
    %100 = arith.truncf %99 : vector<256x4xf32> to vector<256x4xbf16>
    %101 = vector.shape_cast %100 : vector<256x4xbf16> to vector<16x16x4xbf16>
    %c1_127 = arith.constant 1 : index
    %c1_128 = arith.constant 1 : index
    %c0_129 = arith.constant 0 : index
    %102 = vector.load %arg12[%c1_127, %c1_128, %c0_129] : memref<18x18x4xbf16, #tpu.memory_space<vmem>>, vector<16x16x4xbf16>
    tpu.vector_store %arg12[%c1_127, %c1_128, %c0_129], %101 {strides = array<i32>} : memref<18x18x4xbf16, #tpu.memory_space<vmem>>, vector<16x16x4xbf16>,
    %c0_130 = arith.constant 0 : index
    %c0_131 = arith.constant 0 : index
    %c0_132 = arith.constant 0 : index
    %103 = vector.load %arg12[%c0_130, %c0_131, %c0_132] : memref<18x18x4xbf16, #tpu.memory_space<vmem>>, vector<16x16x4xbf16>
    %104 = vector.shape_cast %103 : vector<16x16x4xbf16> to vector<256x4xbf16>
    %c0_133 = arith.constant 0 : index
    %c0_134 = arith.constant 0 : index
    %c0_135 = arith.constant 0 : index
    %105 = vector.load %arg7[%c0_133, %c0_134, %c0_135] : memref<9x4x4xbf16, #tpu.memory_space<vmem>>, vector<1x4x4xbf16>
    %106 = vector.shape_cast %105 : vector<1x4x4xbf16> to vector<4x4xbf16>
    %cst_136 = arith.constant dense<0.000000e+00> : vector<256x4xf32>
    %107 = tpu.matmul %104, %106, %cst_136 {dimension_numbers = #tpu.dot_dimension_numbers<[1], [0], [0], [1], [0, 0, 1, 1], [], []>} : vector<256x4xbf16>, vector<4x4xbf16>, vector<256x4xf32> -> vector<256x4xf32>
    %c0_137 = arith.constant 0 : index
    %c1_138 = arith.constant 1 : index
    %c0_139 = arith.constant 0 : index
    %108 = vector.load %arg12[%c0_137, %c1_138, %c0_139] : memref<18x18x4xbf16, #tpu.memory_space<vmem>>, vector<16x16x4xbf16>
    %109 = vector.shape_cast %108 : vector<16x16x4xbf16> to vector<256x4xbf16>
    %c1_140 = arith.constant 1 : index
    %c0_141 = arith.constant 0 : index
    %c0_142 = arith.constant 0 : index
    %110 = vector.load %arg7[%c1_140, %c0_141, %c0_142] : memref<9x4x4xbf16, #tpu.memory_space<vmem>>, vector<1x4x4xbf16>
    %111 = vector.shape_cast %110 : vector<1x4x4xbf16> to vector<4x4xbf16>
    %cst_143 = arith.constant dense<0.000000e+00> : vector<256x4xf32>
    %112 = tpu.matmul %109, %111, %cst_143 {dimension_numbers = #tpu.dot_dimension_numbers<[1], [0], [0], [1], [0, 0, 1, 1], [], []>} : vector<256x4xbf16>, vector<4x4xbf16>, vector<256x4xf32> -> vector<256x4xf32>
    %113 = arith.addf %107, %112 : vector<256x4xf32>
    %c0_144 = arith.constant 0 : index
    %c2_145 = arith.constant 2 : index
    %c0_146 = arith.constant 0 : index
    %114 = vector.load %arg12[%c0_144, %c2_145, %c0_146] : memref<18x18x4xbf16, #tpu.memory_space<vmem>>, vector<16x16x4xbf16>
    %115 = vector.shape_cast %114 : vector<16x16x4xbf16> to vector<256x4xbf16>
    %c2_147 = arith.constant 2 : index
    %c0_148 = arith.constant 0 : index
    %c0_149 = arith.constant 0 : index
    %116 = vector.load %arg7[%c2_147, %c0_148, %c0_149] : memref<9x4x4xbf16, #tpu.memory_space<vmem>>, vector<1x4x4xbf16>
    %117 = vector.shape_cast %116 : vector<1x4x4xbf16> to vector<4x4xbf16>
    %cst_150 = arith.constant dense<0.000000e+00> : vector<256x4xf32>
    %118 = tpu.matmul %115, %117, %cst_150 {dimension_numbers = #tpu.dot_dimension_numbers<[1], [0], [0], [1], [0, 0, 1, 1], [], []>} : vector<256x4xbf16>, vector<4x4xbf16>, vector<256x4xf32> -> vector<256x4xf32>
    %119 = arith.addf %113, %118 : vector<256x4xf32>
    %c1_151 = arith.constant 1 : index
    %c0_152 = arith.constant 0 : index
    %c0_153 = arith.constant 0 : index
    %120 = vector.load %arg12[%c1_151, %c0_152, %c0_153] : memref<18x18x4xbf16, #tpu.memory_space<vmem>>, vector<16x16x4xbf16>
    %121 = vector.shape_cast %120 : vector<16x16x4xbf16> to vector<256x4xbf16>
    %c3_154 = arith.constant 3 : index
    %c0_155 = arith.constant 0 : index
    %c0_156 = arith.constant 0 : index
    %122 = vector.load %arg7[%c3_154, %c0_155, %c0_156] : memref<9x4x4xbf16, #tpu.memory_space<vmem>>, vector<1x4x4xbf16>
    %123 = vector.shape_cast %122 : vector<1x4x4xbf16> to vector<4x4xbf16>
    %cst_157 = arith.constant dense<0.000000e+00> : vector<256x4xf32>
    %124 = tpu.matmul %121, %123, %cst_157 {dimension_numbers = #tpu.dot_dimension_numbers<[1], [0], [0], [1], [0, 0, 1, 1], [], []>} : vector<256x4xbf16>, vector<4x4xbf16>, vector<256x4xf32> -> vector<256x4xf32>
    %125 = arith.addf %119, %124 : vector<256x4xf32>
    %c1_158 = arith.constant 1 : index
    %c1_159 = arith.constant 1 : index
    %c0_160 = arith.constant 0 : index
    %126 = vector.load %arg12[%c1_158, %c1_159, %c0_160] : memref<18x18x4xbf16, #tpu.memory_space<vmem>>, vector<16x16x4xbf16>
    %127 = vector.shape_cast %126 : vector<16x16x4xbf16> to vector<256x4xbf16>
    %c4_161 = arith.constant 4 : index
    %c0_162 = arith.constant 0 : index
    %c0_163 = arith.constant 0 : index
    %128 = vector.load %arg7[%c4_161, %c0_162, %c0_163] : memref<9x4x4xbf16, #tpu.memory_space<vmem>>, vector<1x4x4xbf16>
    %129 = vector.shape_cast %128 : vector<1x4x4xbf16> to vector<4x4xbf16>
    %cst_164 = arith.constant dense<0.000000e+00> : vector<256x4xf32>
    %130 = tpu.matmul %127, %129, %cst_164 {dimension_numbers = #tpu.dot_dimension_numbers<[1], [0], [0], [1], [0, 0, 1, 1], [], []>} : vector<256x4xbf16>, vector<4x4xbf16>, vector<256x4xf32> -> vector<256x4xf32>
    %131 = arith.addf %125, %130 : vector<256x4xf32>
    %c1_165 = arith.constant 1 : index
    %c2_166 = arith.constant 2 : index
    %c0_167 = arith.constant 0 : index
    %132 = vector.load %arg12[%c1_165, %c2_166, %c0_167] : memref<18x18x4xbf16, #tpu.memory_space<vmem>>, vector<16x16x4xbf16>
    %133 = vector.shape_cast %132 : vector<16x16x4xbf16> to vector<256x4xbf16>
    %c5_168 = arith.constant 5 : index
    %c0_169 = arith.constant 0 : index
    %c0_170 = arith.constant 0 : index
    %134 = vector.load %arg7[%c5_168, %c0_169, %c0_170] : memref<9x4x4xbf16, #tpu.memory_space<vmem>>, vector<1x4x4xbf16>
    %135 = vector.shape_cast %134 : vector<1x4x4xbf16> to vector<4x4xbf16>
    %cst_171 = arith.constant dense<0.000000e+00> : vector<256x4xf32>
    %136 = tpu.matmul %133, %135, %cst_171 {dimension_numbers = #tpu.dot_dimension_numbers<[1], [0], [0], [1], [0, 0, 1, 1], [], []>} : vector<256x4xbf16>, vector<4x4xbf16>, vector<256x4xf32> -> vector<256x4xf32>
    %137 = arith.addf %131, %136 : vector<256x4xf32>
    %c2_172 = arith.constant 2 : index
    %c0_173 = arith.constant 0 : index
    %c0_174 = arith.constant 0 : index
    %138 = vector.load %arg12[%c2_172, %c0_173, %c0_174] : memref<18x18x4xbf16, #tpu.memory_space<vmem>>, vector<16x16x4xbf16>
    %139 = vector.shape_cast %138 : vector<16x16x4xbf16> to vector<256x4xbf16>
    %c6_175 = arith.constant 6 : index
    %c0_176 = arith.constant 0 : index
    %c0_177 = arith.constant 0 : index
    %140 = vector.load %arg7[%c6_175, %c0_176, %c0_177] : memref<9x4x4xbf16, #tpu.memory_space<vmem>>, vector<1x4x4xbf16>
    %141 = vector.shape_cast %140 : vector<1x4x4xbf16> to vector<4x4xbf16>
    %cst_178 = arith.constant dense<0.000000e+00> : vector<256x4xf32>
    %142 = tpu.matmul %139, %141, %cst_178 {dimension_numbers = #tpu.dot_dimension_numbers<[1], [0], [0], [1], [0, 0, 1, 1], [], []>} : vector<256x4xbf16>, vector<4x4xbf16>, vector<256x4xf32> -> vector<256x4xf32>
    %143 = arith.addf %137, %142 : vector<256x4xf32>
    %c2_179 = arith.constant 2 : index
    %c1_180 = arith.constant 1 : index
    %c0_181 = arith.constant 0 : index
    %144 = vector.load %arg12[%c2_179, %c1_180, %c0_181] : memref<18x18x4xbf16, #tpu.memory_space<vmem>>, vector<16x16x4xbf16>
    %145 = vector.shape_cast %144 : vector<16x16x4xbf16> to vector<256x4xbf16>
    %c7_182 = arith.constant 7 : index
    %c0_183 = arith.constant 0 : index
    %c0_184 = arith.constant 0 : index
    %146 = vector.load %arg7[%c7_182, %c0_183, %c0_184] : memref<9x4x4xbf16, #tpu.memory_space<vmem>>, vector<1x4x4xbf16>
    %147 = vector.shape_cast %146 : vector<1x4x4xbf16> to vector<4x4xbf16>
    %cst_185 = arith.constant dense<0.000000e+00> : vector<256x4xf32>
    %148 = tpu.matmul %145, %147, %cst_185 {dimension_numbers = #tpu.dot_dimension_numbers<[1], [0], [0], [1], [0, 0, 1, 1], [], []>} : vector<256x4xbf16>, vector<4x4xbf16>, vector<256x4xf32> -> vector<256x4xf32>
    %149 = arith.addf %143, %148 : vector<256x4xf32>
    %c2_186 = arith.constant 2 : index
    %c2_187 = arith.constant 2 : index
    %c0_188 = arith.constant 0 : index
    %150 = vector.load %arg12[%c2_186, %c2_187, %c0_188] : memref<18x18x4xbf16, #tpu.memory_space<vmem>>, vector<16x16x4xbf16>
    %151 = vector.shape_cast %150 : vector<16x16x4xbf16> to vector<256x4xbf16>
    %c8_189 = arith.constant 8 : index
    %c0_190 = arith.constant 0 : index
    %c0_191 = arith.constant 0 : index
    %152 = vector.load %arg7[%c8_189, %c0_190, %c0_191] : memref<9x4x4xbf16, #tpu.memory_space<vmem>>, vector<1x4x4xbf16>
    %153 = vector.shape_cast %152 : vector<1x4x4xbf16> to vector<4x4xbf16>
    %cst_192 = arith.constant dense<0.000000e+00> : vector<256x4xf32>
    %154 = tpu.matmul %151, %153, %cst_192 {dimension_numbers = #tpu.dot_dimension_numbers<[1], [0], [0], [1], [0, 0, 1, 1], [], []>} : vector<256x4xbf16>, vector<4x4xbf16>, vector<256x4xf32> -> vector<256x4xf32>
    %155 = arith.addf %149, %154 : vector<256x4xf32>
    %c0_193 = arith.constant 0 : index
    %c0_194 = arith.constant 0 : index
    %156 = vector.load %arg8[%c0_193, %c0_194] : memref<1x4xf32, #tpu.memory_space<vmem>>, vector<1x4xf32>
    %157 = vector.broadcast %156 : vector<1x4xf32> to vector<256x4xf32>
    %158 = arith.addf %155, %157 : vector<256x4xf32>
    %cst_195 = arith.constant 0.000000e+00 : f32
    %159 = vector.broadcast %cst_195 : f32 to vector<256x4xf32>
    %160 = arith.maximumf %158, %159 : vector<256x4xf32>
    %c0_196 = arith.constant 0 : index
    %c0_197 = arith.constant 0 : index
    %c0_198 = arith.constant 0 : index
    %161 = vector.load %arg9[%c0_196, %c0_197, %c0_198] : memref<1x256x4xf32, #tpu.memory_space<vmem>>, vector<1x256x4xf32>
    %162 = vector.shape_cast %161 : vector<1x256x4xf32> to vector<256x4xf32>
    %163 = vector.shape_cast %160 : vector<256x4xf32> to vector<1x256x4xf32>
    tpu.vector_store %arg9[%c0_196, %c0_197, %c0_198], %163 {strides = array<i32>} : memref<1x256x4xf32, #tpu.memory_space<vmem>>, vector<1x256x4xf32>,
    return
  }
  func.func @transform_0(%arg0: i32) -> (i32, i32, i32, i32) {
    %c0_i32 = arith.constant 0 : i32
    %c0_i32_0 = arith.constant 0 : i32
    %c0_i32_1 = arith.constant 0 : i32
    %c0_i32_2 = arith.constant 0 : i32
    return %arg0, %c0_i32, %c0_i32_0, %c0_i32_1 : i32, i32, i32, i32
  }
  func.func @transform_1(%arg0: i32) -> (i32, i32, i32, i32) {
    %c0_i32 = arith.constant 0 : i32
    %c0_i32_0 = arith.constant 0 : i32
    %c0_i32_1 = arith.constant 0 : i32
    %c0_i32_2 = arith.constant 0 : i32
    return %arg0, %c0_i32, %c0_i32_0, %c0_i32_1 : i32, i32, i32, i32
  }
  func.func @transform_2(%arg0: i32) -> (i32, i32) {
    %c0_i32 = arith.constant 0 : i32
    %c0_i32_0 = arith.constant 0 : i32
    %c0_i32_1 = arith.constant 0 : i32
    return %c0_i32, %c0_i32_0 : i32, i32
  }
  func.func @transform_3(%arg0: i32) -> (i32, i32) {
    %c0_i32 = arith.constant 0 : i32
    %c0_i32_0 = arith.constant 0 : i32
    %c0_i32_1 = arith.constant 0 : i32
    return %c0_i32, %c0_i32_0 : i32, i32
  }
  func.func @transform_4(%arg0: i32) -> (i32, i32, i32) {
    %c0_i32 = arith.constant 0 : i32
    %c0_i32_0 = arith.constant 0 : i32
    %c0_i32_1 = arith.constant 0 : i32
    %c0_i32_2 = arith.constant 0 : i32
    return %c0_i32, %c0_i32_0, %c0_i32_1 : i32, i32, i32
  }
  func.func @transform_5(%arg0: i32) -> (i32, i32) {
    %c0_i32 = arith.constant 0 : i32
    %c0_i32_0 = arith.constant 0 : i32
    %c0_i32_1 = arith.constant 0 : i32
    return %c0_i32, %c0_i32_0 : i32, i32
  }
  func.func @transform_6(%arg0: i32) -> (i32, i32, i32) {
    %c0_i32 = arith.constant 0 : i32
    %c0_i32_0 = arith.constant 0 : i32
    %c0_i32_1 = arith.constant 0 : i32
    %c0_i32_2 = arith.constant 0 : i32
    return %c0_i32, %c0_i32_0, %c0_i32_1 : i32, i32, i32
  }
  func.func @transform_7(%arg0: i32) -> (i32, i32) {
    %c0_i32 = arith.constant 0 : i32
    %c0_i32_0 = arith.constant 0 : i32
    %c0_i32_1 = arith.constant 0 : i32
    return %c0_i32, %c0_i32_0 : i32, i32
  }
  func.func @transform_8(%arg0: i32) -> (i32, i32, i32) {
    %c0_i32 = arith.constant 0 : i32
    %c0_i32_0 = arith.constant 0 : i32
    %c0_i32_1 = arith.constant 0 : i32
    return %arg0, %c0_i32, %c0_i32_0 : i32, i32, i32
  }
}

</mosaic_0001>

<bundles_post_ra>
// kernel: tile.8
= control target key start
LH: loop header
LB: loop body
LE: loop exit
PB: predicated region body
PF: predicated region fallthrough
CT: control target
= control target key end

     0   :  { %s22_s0 = inlined_call_operand.vmem [shape: f32[2], index: 0, kind: input, shape index: {}]   ;;  %s23_s1 = inlined_call_operand.vmem [shape: f32[4,2], index: 1, kind: output, shape index: {}]  }
   0x1   :  { %v4_v0 = vld [vmem:[%s22_s0] ss:$0 sm:$0xff] }
   0x2   :  { %5 = vst [vmem:[%s23_s1] sm:$0xf] %v4_v0 }

// kernel: tile.9
= control target key start
LH: loop header
LB: loop body
LE: loop exit
PB: predicated region body
PF: predicated region fallthrough
CT: control target
= control target key end

     0   :  { %vm7_vm0 = vcmask 15360   ;;  %s37_s8 = smov 2   ;;  %s38_s9 = smov 4   ;;  %vm13_vm1 = vcmask 64560   ;;  %vm19_vm2 = vcmask 48160   ;;  %vm25_vm3 = vcmask 31760   ;;  %s55_s0 = inlined_call_operand.vmem [shape: f32[4,2], index: 0, kind: input, shape index: {}]   ;;  %s56_s1 = inlined_call_operand.vmem [shape: f32[1,8], index: 1, kind: output, shape index: {}]  }
   0x1   :  { %v4_v0 = vld [vmem:[%s55_s0] sm:$0xf]  ;;  %s36_s0 = smov 6  }
   0x2   :  { %5 = vst [vmem:[#allocation1] sm:$0xf] %v4_v0 }
   0x9   :  { %v10_v1 = vld [vmem:[#allocation1 + $0x3] sm:$0x1]   ;;  %v22_v2 = vld [vmem:[#allocation1 + $0x1] sm:$0x1]   ;;  %v6_v3 = vld [vmem:[#allocation1] sm:$0x1]  }
   0xa   :  { %11 = vrot.lane.b32.xlu0 %v10_v1, %s36_s0  ;;  %23 = vrot.lane.b32.xlu1 %v22_v2, %s37_s8  ;;  %v16_v4 = vld [vmem:[#allocation1 + $0x2] sm:$0x1]   ;;  %8 = vst.msk [vmem:[#allocation0] sm:$0x1] %vm7_vm0, %v6_v3  }
   0xe   :  { %17 = vrot.lane.b32.xlu0 %v16_v4, %s38_s9 }
  0x7c   :  { %v12_v5 = vpop.permute.xlu0 %11   ;;  %v24_v6 = vpop.permute.xlu1 %23  }
  0x7d   :  { %14 = vst.msk [vmem:[#allocation0] sm:$0x1] %vm13_vm1, %v12_v5  }
  0x80   :  { %v18_v7 = vpop.permute.xlu0 %17  }
  0x81   :  { %20 = vst.msk [vmem:[#allocation0] sm:$0x1] %vm19_vm2, %v18_v7  }
  0x82   :  { %26 = vst.msk [vmem:[#allocation0] sm:$0x1] %vm25_vm3, %v24_v6  }
  0x89   :  { %v30_v8 = vld [vmem:[#allocation0] sm:$0x1] }
  0x8a   :  { %32 = vst [vmem:[%s56_s1] sm:$0x1] %v30_v8 }

// kernel: upsample_forward.1
= control target key start
LH: loop header
LB: loop body
LE: loop exit
PB: predicated region body
PF: predicated region fallthrough
CT: control target
= control target key end

     0   :  { %s16820_s27 = smov 0   ;;  %s22616_s0 = inlined_call_operand.vmem [shape: bf16[2,8,8,4], index: 0, kind: input, shape index: {}]   ;;  %s22617_s1 = inlined_call_operand.vmem [shape: bf16[2,16,16,2], index: 1, kind: input, shape index: {}]   ;;  %s22618_s2 = inlined_call_operand.vmem [shape: bf16[4,8], index: 2, kind: input, shape index: {}]   ;;  %s22619_s3 = inlined_call_operand.vmem [shape: f32[1,8], index: 3, kind: input, shape index: {}]   ;;  %s22620_s4 = inlined_call_operand.vmem [shape: bf16[9,4,4], index: 4, kind: input, shape index: {}]   ;;  %s22621_s5 = inlined_call_operand.vmem [shape: f32[1,4], index: 5, kind: input, shape index: {}]   ;;  %s22622_s6 = inlined_call_operand.vmem [shape: bf16[9,4,4], index: 6, kind: input, shape index: {}]   ;;  %s22623_s7 = inlined_call_operand.vmem [shape: f32[1,4], index: 7, kind: input, shape index: {}]   ;;  %s22624_s8 = inlined_call_operand.vmem [shape: f32[2,256,4], index: 8, kind: output, shape index: {}]  }
   0x1 LB: > { %s14331_s28 = sadd.s32 4294967295, %s16766_s27   ;;  %p14335_p0 = scmp.ge.s32.totalorder %s16766_s27, 1  ;;  %s16766_s27 = sphi %s16820_s27, %s18_s27  }
   0x2   : > { %p272_p1 = scmp.lt.s32.totalorder %s16766_s27, 3 }
   0x4   : > { %p273_p2 = pnand %p14335_p0, %p272_p1 }
   0x6   : > { %276 = sbr.rel (%p273_p2) target bundleno = 2454 (0x996), region = 52 }
   0xd   : > { %v572_v0 = vld [vmem:[%s22618_s2] sm:$0x3]  ;;  %vm613_vm0 = vcmask 1041408   ;;  %p311_p3 = scmp.lt.s32.totalorder %s14331_s28, 1  ;;  %vm600_vm1 = vcmask 31744   ;;  %v694_v8 = vlaneseq  ;;  %vm1078_vm3 = vcmask 8192  }
   0xe   : > { %16593 = vmatprep.subr.msk.bf16.mxu0 %vm613_vm0, %v572_v0  ;;  %v615_v1 = vsel %vm613_vm0, %v572_v0, 0  ;;  %16594 = vmatprep.subr.msk.bf16.mxu1 %vm613_vm0, %v572_v0  ;;  %v16768_v6 = vmov 1966171168   ;;  %v14342_v12 = vld [vmem:[%s22619_s3] ss:$0 sm:$0xff]  ;;  %s16769_s15 = smov 124  }
   0xf   : > { %15458 = vmatpush3.bf16.msra.mxu0 %v615_v1  ;;  %s23346_s28 = smov (!%p311_p3, %s14331_s28), 1  ;;  %16080 = vmatpush3.bf16.msra.mxu1 %v615_v1  ;;  %v692_v7 = vunpack.c.l.s4 %v16768_v6  ;;  %v16844_v10 = vshrl.u32 %v694_v8, 7  ;;  %vm337_vm2 = vsmask.f32 256  ;;  %s16770_s16 = smov 126   ;;  %vm330_vm9 = vcmask 24576  }
  0x10   : > { %s15111_s9 = sshll.u32 %s23346_s28, 5  ;;  %vm16964_vm4 = vmand %vm1078_vm3, %vm337_vm2  ;;  %s16771_s17 = smov 122   ;;  %vm22675_vm5 = vsmask.f32 7938  ;;  %vm2458_vm7 = vsmask.f32 4368 }
  0x11   : > { %s315_s12 = scalar_lea.vmem %s22616_s0, %s15111_s9  ;;  %v693_v9 = vunpack.c.0.s8 %v692_v7  ;;  %22839 = vst [vmem:[#allocation5_spill] sm:$0xff] %v16844_v10  ;;  %vm17422_vm6 = vmand %vm1078_vm3, %vm22675_vm5  ;;  %s15112_s18 = sshll.u32 %s23346_s28, 7  ;;  %vm2781_vm12 = vcmask 11264   ;;  %vm22674_vm14 = vcmask 27648   ;;  %vm4502_vm15 = vsmask.f32 3328 }
  0x12   : > { %v16628_v2 = vld [vmem:[%s315_s12] sm:$0xff]   ;;  %v16629_v3 = vld [vmem:[%s315_s12 + $0x8] sm:$0xff]   ;;  %v16630_v4 = vld [vmem:[%s315_s12 + $0x10] sm:$0xff]   ;;  %s18003_s21 = scalar_lea.vmem %s22617_s1, %s15112_s18  ;;  %s16773_s22 = smov 2   ;;  %vm4503_vm3 = vsmask.f32 7440 }
  0x13   : > { %15459 = vmatprep.mubr.msk.bf16.mxu0 %vm600_vm1, %v16628_v2  ;;  %v16631_v5 = vld [vmem:[%s315_s12 + $0x18] sm:$0xff]   ;;  %15463 = vmatprep.mubr.msk.bf16.mxu1 %vm600_vm1, %v16630_v4  ;;  %v16850_v18 = vsub.s32 %v693_v9, %v16844_v10  ;;  %v1173_v10 = vld [vmem:[#allocation2 + $0x37] sm:$0x1]  ;;  %vm18027_vm8 = vmor %vm337_vm2, %vm2458_vm7  ;;  %s15113_s29 = sshll.u32 %s23346_s28, 8 }
  0x14   : > { %15460 = vmatmul.mubr.msk.bf16.vlgmr.msra.gmra.mrb[0].mxu0 %vm600_vm1, %v16629_v3  ;;  %15464 = vmatmul.mubr.msk.bf16.vlgmr.msra.gmra.mrb[0].mxu1 %vm600_vm1, %v16631_v5  ;;  %vm18039_vm10 = vmand %vm330_vm9, %vm337_vm2  ;;  %s22516_s10 = scalar_lea.vmem %s22624_s8, %s15113_s29 }
  0x15   : > { %vm18077_vm11 = vmand %vm330_vm9, %vm22675_vm5 }
  0x16   : > { %vm18117_vm13 = vmand %vm2781_vm12, %vm22675_vm5 }
  0x17   : > { %vm18638_vm7 = vmor %vm4502_vm15, %vm4503_vm3  ;;  %vm4343_vm3 = vcmask 24592  }
  0xe7   : > { %v15461_v11 = vpop.f32.mrb[0].mxu0  ;;  %v15465_v15 = vpop.f32.mrb[0].mxu1 }
  0xe8   : > { %v651_v13 = vpop.f32.mrb[1].mxu0  ;;  %v660_v16 = vadd.f32 %v15461_v11, %v14342_v12  ;;  %v676_v20 = vadd.f32 %v15465_v15, %v14342_v12  ;;  %v667_v21 = vpop.f32.mrb[1].mxu1 }
  0xe9   : > { %v15462_v14 = vpop.f32.mrb[2].mxu0  ;;  %v652_v22 = vadd.f32 %v14342_v12, %v651_v13  ;;  %v668_v24 = vadd.f32 %v14342_v12, %v667_v21  ;;  %v15466_v25 = vpop.f32.mrb[2].mxu1 }
  0xea   : > { %v663_v17 = vadd.f32 %v15462_v14, %v14342_v12  ;;  %v654_v19 = vpop.f32.mrb[3].mxu0  ;;  %v679_v28 = vadd.f32 %v15466_v25, %v14342_v12  ;;  %v670_v29 = vpop.f32.mrb[3].mxu1 }
  0xeb   : > { %v655_v23 = vadd.f32 %v14342_v12, %v654_v19  ;;  %v671_v32 = vadd.f32 %v14342_v12, %v670_v29 }
  0xec   : > { %v683_v26 = vpack.c.bf16 %v663_v17, %v660_v16  ;;  %v14352_v27 = vpack.c.bf16 %v663_v17, %v663_v17  ;;  %v685_v35 = vpack.c.bf16 %v679_v28, %v676_v20  ;;  %v14354_v36 = vpack.c.bf16 %v679_v28, %v679_v28 }
  0xed   : > { %v682_v30 = vpack.c.bf16 %v655_v23, %v652_v22  ;;  %v14351_v31 = vpack.c.bf16 %v655_v23, %v655_v23  ;;  %v684_v39 = vpack.c.bf16 %v671_v32, %v668_v24  ;;  %v14353_v40 = vpack.c.bf16 %v671_v32, %v671_v32  ;;  %v1131_v32 = vld [vmem:[#allocation2 + $0x21] sm:$0x1] }
  0xee   : > { %v746_v33 = vrot.slane %v683_v26, %v16850_v18  ;;  %v753_v34 = vrot.slane %v14352_v27, %v16850_v18  ;;  %v844_v63 = vrot.slane %v685_v35, %v16850_v18  ;;  %v851_v0 = vrot.slane %v14354_v36, %v16850_v18 }
  0xef   : > { %v697_v37 = vrot.slane %v682_v30, %v16850_v18  ;;  %v704_v38 = vrot.slane %v14351_v31, %v16850_v18  ;;  %v795_v2 = vrot.slane %v684_v39, %v16850_v18  ;;  %v802_v3 = vrot.slane %v14353_v40, %v16850_v18  ;;  %v1128_v31 = vld [vmem:[#allocation2 + $0x20] sm:$0x1] }
  0xf0   : > { %v754_v41 = vcombine.high %v746_v33, %v746_v33  ;;  %v755_v42 = vcombine.high %v753_v34, %v753_v34  ;;  %v762_v43 = vrot.slane %v746_v33, %v16850_v18  ;;  %v769_v44 = vrot.slane %v753_v34, %v16850_v18 }
  0xf1   : > { %v705_v45 = vcombine.high %v697_v37, %v697_v37  ;;  %v706_v46 = vcombine.high %v704_v38, %v704_v38  ;;  %v16859_v47 = vrot.slane %v697_v37, %v16850_v18  ;;  %v16862_v48 = vrot.slane %v704_v38, %v16850_v18 }
  0xf2   : > { %v16865_v49 = vrot.slane %v754_v41, %v16850_v18  ;;  %v16868_v50 = vrot.slane %v755_v42, %v16850_v18  ;;  %v16870_v51 = vpack.i.b16 %v762_v43, %v762_v43  ;;  %v903_v52 = vunpack.i.h.s16 %v762_v43  ;;  %v1152_v41 = vld [vmem:[#allocation2 + $0x30] sm:$0x1] }
  0xf3   : > { %v16873_v53 = vrot.slane %v705_v45, %v16850_v18  ;;  %v16876_v54 = vrot.slane %v706_v46, %v16850_v18  ;;  %v16878_v55 = vpack.i.b16 %v769_v44, %v769_v44  ;;  %v911_v56 = vunpack.i.h.s16 %v769_v44  ;;  %v1155_v46 = vld [vmem:[#allocation2 + $0x31] sm:$0x1] }
  0xf4   : > { %1689 = vrot.lane.b32.xlu0 %v16870_v51, %s16769_s15  ;;  %v16882_v57 = vpack.i.b16 %v903_v52, %v903_v52  ;;  %v16886_v58 = vpack.i.b16 %v16859_v47, %v16859_v47  ;;  %v887_v59 = vunpack.i.h.s16 %v16859_v47  ;;  %v16891_v60 = vpack.i.b16 %v16862_v48, %v16862_v48  ;;  %v1080_v52 = vld [vmem:[#allocation2] sm:$0x1] }
  0xf5   : > { %v16893_v61 = vpack.i.b16 %v911_v56, %v911_v56  ;;  %v16897_v62 = vpack.i.b16 %v16873_v53, %v16873_v53  ;;  %v895_v4 = vunpack.i.h.s16 %v16862_v48  ;;  %v852_v5 = vcombine.high %v844_v63, %v844_v63  ;;  %v1083_v56 = vld [vmem:[#allocation2 + $0x1] sm:$0x1] }
  0xf6   : > { %1691 = vrot.lane.b32.xlu1 %v16882_v57, %s16769_s15  ;;  %v16903_v1 = vpack.i.b16 %v887_v59, %v887_v59  ;;  %v853_v6 = vcombine.high %v851_v0, %v851_v0  ;;  %v16909_v7 = vrot.slane %v844_v63, %v16850_v18  ;;  %v16912_v8 = vrot.slane %v851_v0, %v16850_v18 }
  0xf7   : > { %v803_v9 = vcombine.high %v795_v2, %v795_v2  ;;  %v804_v11 = vcombine.high %v802_v3, %v802_v3  ;;  %v16917_v12 = vrot.slane %v795_v2, %v16850_v18  ;;  %v16920_v13 = vrot.slane %v802_v3, %v16850_v18  ;;  %v1104_v2 = vld [vmem:[#allocation2 + $0x10] sm:$0x1] }
  0xf8   : > { %1304 = vrot.lane.b32.xlu0 %v16870_v51, %s16770_s16  ;;  %v16923_v14 = vrot.slane %v852_v5, %v16850_v18  ;;  %v16926_v15 = vrot.slane %v853_v6, %v16850_v18  ;;  %v16928_v16 = vpack.i.b16 %v895_v4, %v895_v4  ;;  %v16932_v17 = vpack.i.b16 %v16865_v49, %v16865_v49  ;;  %v1107_v6 = vld [vmem:[#allocation2 + $0x11] sm:$0x1] }
  0xf9   : > { %v16937_v19 = vrot.slane %v803_v9, %v16850_v18  ;;  %v16940_v20 = vrot.slane %v804_v11, %v16850_v18  ;;  %v16944_v21 = vpack.i.b16 %v16917_v12, %v16917_v12  ;;  %v919_v22 = vunpack.i.h.s16 %v16917_v12 }
  0xfa   : > { %1306 = vrot.lane.b32.xlu1 %v16882_v57, %s16770_s16  ;;  %v16949_v23 = vpack.i.b16 %v16920_v13, %v16920_v13  ;;  %v927_v24 = vunpack.i.h.s16 %v16920_v13  ;;  %v905_v25 = vunpack.i.h.s16 %v16865_v49  ;;  %v784_v26 = vcombine.high %v762_v43, %v762_v43 }
  0xfb   : > { %v16955_v18 = vpack.i.b16 %v919_v22, %v919_v22  ;;  %v16959_v27 = vpack.i.b16 %v16868_v50, %v16868_v50  ;;  %v913_v28 = vunpack.i.h.s16 %v16868_v50  ;;  %v785_v29 = vcombine.high %v769_v44, %v769_v44 }
  0xfc   : > { %1705 = vrot.lane.b32.xlu0 %v16878_v55, %s16769_s15  ;;  %v16968_v33 = vpack.i.b16 %v927_v24, %v927_v24  ;;  %v16970_v34 = vpack.i.b16 %v905_v25, %v905_v25  ;;  %v16972_v35 = vpack.i.b16 %v784_v26, %v784_v26  ;;  %v907_v36 = vunpack.i.h.s16 %v784_v26  ;;  %v1176_v24 = vld [vmem:[#allocation2 + $0x40] sm:$0x1]  ;;  %v1179_v25 = vld [vmem:[#allocation2 + $0x41] sm:$0x1] }
  0xfd   : > { %v16976_v37 = vpack.i.b16 %v913_v28, %v913_v28  ;;  %v16978_v38 = vpack.i.b16 %v785_v29, %v785_v29  ;;  %v915_v39 = vunpack.i.h.s16 %v785_v29  ;;  %v889_v40 = vunpack.i.h.s16 %v16873_v53 }
  0xfe   : > { %1707 = vrot.lane.b32.xlu1 %v16893_v61, %s16769_s15  ;;  %v16981_v42 = vpack.i.b16 %v907_v36, %v907_v36  ;;  %v735_v43 = vcombine.high %v16859_v47, %v16859_v47  ;;  %v1129_v44 = vsel %vm16964_vm4, %v16870_v51, %v1128_v31  ;;  %v1132_v45 = vsel %vm16964_vm4, %v16882_v57, %v1131_v32 }
  0xff   : > { %v16993_v59 = vpack.i.b16 %v915_v39, %v915_v39  ;;  %v16995_v63 = vpack.i.b16 %v889_v40, %v889_v40  ;;  %1130 = vst [vmem:[#allocation2 + $0x20] sm:$0x1] %v1129_v44  ;;  %1133 = vst [vmem:[#allocation2 + $0x21] sm:$0x1] %v1132_v45  ;;  %v16999_v47 = vpack.i.b16 %v16876_v54, %v16876_v54  ;;  %v897_v0 = vunpack.i.h.s16 %v16876_v54  ;;  %v1134_v40 = vld [vmem:[#allocation2 + $0x22] sm:$0x1] }
 0x100   : > { %2074 = vrot.lane.b32.xlu0 %v16870_v51, %s16771_s17  ;;  %v17002_v3 = vpack.i.b16 %v735_v43, %v735_v43  ;;  %v891_v4 = vunpack.i.h.s16 %v735_v43  ;;  %v736_v5 = vcombine.high %v16862_v48, %v16862_v48  ;;  %v1153_v51 = vsel %vm16964_vm4, %v16878_v55, %v1152_v41  ;;  %v1137_v41 = vld [vmem:[#allocation2 + $0x23] sm:$0x1] }
 0x101   : > { %v17011_v9 = vpack.i.b16 %v897_v0, %v897_v0  ;;  %1154 = vst [vmem:[#allocation2 + $0x30] sm:$0x1] %v1153_v51  ;;  %v1156_v11 = vsel %vm16964_vm4, %v16893_v61, %v1155_v46  ;;  %v1081_v22 = vsel %vm16964_vm4, %v16886_v58, %v1080_v52  ;;  %v1084_v48 = vsel %vm16964_vm4, %v16903_v1, %v1083_v56  ;;  %v1140_v52 = vld [vmem:[#allocation2 + $0x24] sm:$0x1] }
 0x102   : > { %2076 = vrot.lane.b32.xlu1 %v16882_v57, %s16771_s17  ;;  %v17022_v26 = vpack.i.b16 %v891_v4, %v891_v4  ;;  %v17024_v57 = vpack.i.b16 %v736_v5, %v736_v5  ;;  %v899_v28 = vunpack.i.h.s16 %v736_v5  ;;  %1157 = vst [vmem:[#allocation2 + $0x31] sm:$0x1] %v1156_v11  ;;  %1082 = vst [vmem:[#allocation2] sm:$0x1] %v1081_v22  ;;  %v921_v36 = vunpack.i.h.s16 %v16937_v19  ;;  %v1143_v11 = vld [vmem:[#allocation2 + $0x25] sm:$0x1] }
 0x103   : > { %22842 = vst [vmem:[#allocation6_spill] sm:$0xff] %v17011_v9  ;;  %1085 = vst [vmem:[#allocation2 + $0x1] sm:$0x1] %v1084_v48  ;;  %v1105_v29 = vsel %vm16964_vm4, %v16891_v60, %v1104_v2  ;;  %v17033_v31 = vpack.i.b16 %v16937_v19, %v16937_v19  ;;  %v1108_v32 = vsel %vm16964_vm4, %v16928_v16, %v1107_v6  ;;  %v929_v2 = vunpack.i.h.s16 %v16940_v20 }
 0x104   : > { %22843 = vst [vmem:[#allocation7_spill] sm:$0xff] %v17024_v57  ;;  %1320 = vrot.lane.b32.xlu0 %v16878_v55, %s16770_s16  ;;  %1106 = vst [vmem:[#allocation2 + $0x10] sm:$0x1] %v1105_v29  ;;  %v833_v39 = vcombine.high %v16917_v12, %v16917_v12  ;;  %v17041_v43 = vpack.i.b16 %v899_v28, %v899_v28  ;;  %v1177_v44 = vsel %vm16964_vm4, %v16944_v21, %v1176_v24  ;;  %v1158_v24 = vld [vmem:[#allocation2 + $0x32] sm:$0x1] }
 0x105   : > { %22844 = vst [vmem:[#allocation8_spill] sm:$0xff] %v17033_v31  ;;  %1109 = vst [vmem:[#allocation2 + $0x11] sm:$0x1] %v1108_v32  ;;  %v1180_v45 = vsel %vm16964_vm4, %v16955_v18, %v1179_v25  ;;  %v17051_v46 = vpack.i.b16 %v16940_v20, %v16940_v20  ;;  %v17055_v12 = vpack.i.b16 %v921_v36, %v921_v36  ;;  %v1161_v25 = vld [vmem:[#allocation2 + $0x33] sm:$0x1] }
 0x106   : > { %22845 = vst [vmem:[#allocation9_spill] sm:$0xff] %v17041_v43  ;;  %1322 = vrot.lane.b32.xlu1 %v16893_v61, %s16770_s16  ;;  %v17057_v56 = vpack.i.b16 %v833_v39, %v833_v39  ;;  %v923_v0 = vunpack.i.h.s16 %v833_v39  ;;  %1178 = vst [vmem:[#allocation2 + $0x40] sm:$0x1] %v1177_v44  ;;  %v834_v4 = vcombine.high %v16920_v13, %v16920_v13  ;;  %v1164_v36 = vld [vmem:[#allocation2 + $0x34] sm:$0x1] }
 0x107   : > { %22846 = vst [vmem:[#allocation10_spill] sm:$0xff] %v17055_v12  ;;  %1181 = vst [vmem:[#allocation2 + $0x41] sm:$0x1] %v1180_v45  ;;  %v786_v5 = vcombine.high %v16865_v49, %v16865_v49  ;;  %v1135_v51 = vsel %vm16964_vm4, %v16932_v17, %v1134_v40  ;;  %v1138_v6 = vsel %vm16964_vm4, %v16970_v34, %v1137_v41  ;;  %v1167_v44 = vld [vmem:[#allocation2 + $0x35] sm:$0x1] }
 0x108   : > { %22847 = vst [vmem:[#allocation11_spill] sm:$0xff] %v17057_v56  ;;  %2090 = vrot.lane.b32.xlu0 %v16878_v55, %s16771_s17  ;;  %v17072_v22 = vpack.i.b16 %v923_v0, %v923_v0  ;;  %v17074_v48 = vpack.i.b16 %v929_v2, %v929_v2  ;;  %1136 = vst [vmem:[#allocation2 + $0x22] sm:$0x1] %v1135_v51  ;;  %v1141_v49 = vsel %vm16964_vm4, %v16972_v35, %v1140_v52  ;;  %v1086_v45 = vld [vmem:[#allocation2 + $0x2] sm:$0x1] }
 0x109   : > { %1139 = vst [vmem:[#allocation2 + $0x23] sm:$0x1] %v1138_v6  ;;  %v787_v13 = vcombine.high %v16868_v50, %v16868_v50  ;;  %v17081_v28 = vpack.i.b16 %v834_v4, %v834_v4  ;;  %v931_v29 = vunpack.i.h.s16 %v834_v4  ;;  %v17083_v32 = vpack.i.b16 %v786_v5, %v786_v5  ;;  %1142 = vst [vmem:[#allocation2 + $0x24] sm:$0x1] %v1141_v49  ;;  %v1089_v4 = vld [vmem:[#allocation2 + $0x3] sm:$0x1] }
 0x10a   : > { %22848 = vst [vmem:[#allocation12_spill] sm:$0xff] %v17072_v22  ;;  %v909_v55 = vunpack.i.h.s16 %v786_v5  ;;  %2092 = vrot.lane.b32.xlu1 %v16893_v61, %s16771_s17  ;;  %v1144_v40 = vsel %vm16964_vm4, %v16981_v42, %v1143_v11  ;;  %v737_v41 = vcombine.high %v16873_v53, %v16873_v53  ;;  %v1159_v61 = vsel %vm16964_vm4, %v16959_v27, %v1158_v24  ;;  %v1092_v5 = vld [vmem:[#allocation2 + $0x4] sm:$0x1]  ;;  %v1095_v51 = vld [vmem:[#allocation2 + $0x5] sm:$0x1] }
 0x10b   : > { %22849 = vst [vmem:[#allocation13_spill] sm:$0xff] %v17081_v28  ;;  %22850 = vst [vmem:[#allocation14_spill] sm:$0xff] %v17083_v32  ;;  %v17087_v39 = vpack.i.b16 %v787_v13, %v787_v13  ;;  %v917_v50 = vunpack.i.h.s16 %v787_v13  ;;  %v17094_v52 = vpack.i.b16 %v931_v29, %v931_v29  ;;  %v1162_v2 = vsel %vm16964_vm4, %v16976_v37, %v1161_v25 }
 0x10c   : > { %v17096_v0 = vpack.i.b16 %v909_v55, %v909_v55  ;;  %1145 = vst [vmem:[#allocation2 + $0x25] sm:$0x1] %v1144_v40  ;;  %1657 = vrot.lane.b32.xlu0 %v16886_v58, %s16769_s15  ;;  %v17108_v6 = vpack.i.b16 %v737_v41, %v737_v41  ;;  %1160 = vst [vmem:[#allocation2 + $0x32] sm:$0x1] %v1159_v61  ;;  %v1165_v11 = vsel %vm16964_vm4, %v16978_v38, %v1164_v36  ;;  %v1110_v55 = vld [vmem:[#allocation2 + $0x12] sm:$0x1] }
 0x10d   : > { %22851 = vst [vmem:[#allocation15_spill] sm:$0xff] %v17087_v39  ;;  %22852 = vst [vmem:[#allocation16_spill] sm:$0xff] %v17094_v52  ;;  %v17106_v53 = vpack.i.b16 %v917_v50, %v917_v50  ;;  %v893_v49 = vunpack.i.h.s16 %v737_v41  ;;  %v1168_v13 = vsel %vm16964_vm4, %v16993_v59, %v1167_v44  ;;  %v738_v24 = vcombine.high %v16876_v54, %v16876_v54  ;;  %v1113_v40 = vld [vmem:[#allocation2 + $0x13] sm:$0x1]  ;;  %v1116_v50 = vld [vmem:[#allocation2 + $0x14] sm:$0x1] }
 0x10e   : > { %22853 = vst [vmem:[#allocation17_spill] sm:$0xff] %v17096_v0  ;;  %22855 = vst [vmem:[#allocation19_spill] sm:$0xff] %v17108_v6  ;;  %v835_v25 = vcombine.high %v16937_v19, %v16937_v19  ;;  %v1087_v29 = vsel %vm16964_vm4, %v16897_v62, %v1086_v45  ;;  %1661 = vrot.lane.b32.xlu1 %v16897_v62, %s16769_s15  ;;  %v1090_v54 = vsel %vm16964_vm4, %v16995_v63, %v1089_v4  ;;  %v1119_v44 = vld [vmem:[#allocation2 + $0x15] sm:$0x1] }
 0x10f   : > { %22854 = vst [vmem:[#allocation18_spill] sm:$0xff] %v17106_v53  ;;  %1163 = vst [vmem:[#allocation2 + $0x33] sm:$0x1] %v1162_v2  ;;  %v17125_v36 = vpack.i.b16 %v893_v49, %v893_v49  ;;  %v1093_v19 = vsel %vm16964_vm4, %v17002_v3, %v1092_v5  ;;  %v1096_v41 = vsel %vm16964_vm4, %v17022_v26, %v1095_v51  ;;  %v901_v61 = vunpack.i.h.s16 %v738_v24 }
 0x110   : > { %1166 = vst [vmem:[#allocation2 + $0x34] sm:$0x1] %v1165_v11  ;;  %1169 = vst [vmem:[#allocation2 + $0x35] sm:$0x1] %v1168_v13  ;;  %v17136_v45 = vpack.i.b16 %v738_v24, %v738_v24  ;;  %v17138_v2 = vpack.i.b16 %v835_v25, %v835_v25  ;;  %v925_v11 = vunpack.i.h.s16 %v835_v25  ;;  %1272 = vrot.lane.b32.xlu0 %v16886_v58, %s16770_s16  ;;  %v1182_v13 = vld [vmem:[#allocation2 + $0x42] sm:$0x1] }
 0x111   : > { %22856 = vst [vmem:[#allocation20_spill] sm:$0xff] %v17125_v36  ;;  %1088 = vst [vmem:[#allocation2 + $0x2] sm:$0x1] %v1087_v29  ;;  %v836_v4 = vcombine.high %v16940_v20, %v16940_v20  ;;  %v1111_v5 = vsel %vm16964_vm4, %v16999_v47, %v1110_v55  ;;  %v1114_v51 = vsel %vm16964_vm4, %v17011_v9, %v1113_v40  ;;  %v1185_v24 = vld [vmem:[#allocation2 + $0x43] sm:$0x1] }
 0x112   : > { %22857 = vst [vmem:[#allocation21_spill] sm:$0xff] %v17136_v45  ;;  %22858 = vst [vmem:[#allocation22_spill] sm:$0xff] %v17138_v2  ;;  %v1117_v49 = vsel %vm16964_vm4, %v17024_v57, %v1116_v50  ;;  %v17153_v25 = vpack.i.b16 %v901_v61, %v901_v61  ;;  %v17155_v29 = vpack.i.b16 %v925_v11, %v925_v11  ;;  %v1188_v40 = vld [vmem:[#allocation2 + $0x44] sm:$0x1]  ;;  %1274 = vrot.lane.b32.xlu1 %v16903_v1, %s16770_s16 }
 0x113   : > { %1091 = vst [vmem:[#allocation2 + $0x3] sm:$0x1] %v1090_v54  ;;  %1094 = vst [vmem:[#allocation2 + $0x4] sm:$0x1] %v1093_v19  ;;  %v1120_v20 = vsel %vm16964_vm4, %v17041_v43, %v1119_v44  ;;  %v17162_v55 = vpack.i.b16 %v16909_v7, %v16909_v7  ;;  %v1191_v54 = vld [vmem:[#allocation2 + $0x45] sm:$0x1]  ;;  %v17166_v50 = vpack.i.b16 %v836_v4, %v836_v4  ;;  %v933_v19 = vunpack.i.h.s16 %v836_v4 }
 0x114   : > { %1097 = vst [vmem:[#allocation2 + $0x5] sm:$0x1] %v1096_v41  ;;  %22859 = vst [vmem:[#allocation23_spill] sm:$0xff] %v17153_v25  ;;  %v935_v41 = vunpack.i.h.s16 %v16909_v7  ;;  %v17171_v61 = vpack.i.b16 %v16923_v14, %v16923_v14  ;;  %v1146_v44 = vld [vmem:[#allocation2 + $0x26] sm:$0x1]  ;;  %v1183_v11 = vsel %vm16964_vm4, %v17033_v31, %v1182_v13  ;;  %v882_v4 = vcombine.high %v16909_v7, %v16909_v7 }
 0x115   : > { %22860 = vst [vmem:[#allocation24_spill] sm:$0xff] %v17155_v29  ;;  %1112 = vst [vmem:[#allocation2 + $0x12] sm:$0x1] %v1111_v5  ;;  %v937_v5 = vunpack.i.h.s16 %v16923_v14  ;;  %1673 = vrot.lane.b32.xlu0 %v16891_v60, %s16769_s15  ;;  %v17184_v43 = vpack.i.b16 %v933_v19, %v933_v19  ;;  %v1189_v13 = vsel %vm16964_vm4, %v17057_v56, %v1188_v40 }
 0x116   : > { %1115 = vst [vmem:[#allocation2 + $0x13] sm:$0x1] %v1114_v51  ;;  %1118 = vst [vmem:[#allocation2 + $0x14] sm:$0x1] %v1117_v49  ;;  %v1186_v51 = vsel %vm16964_vm4, %v17055_v12, %v1185_v24  ;;  %v1149_v49 = vld [vmem:[#allocation2 + $0x27] sm:$0x1]  ;;  %v17186_v57 = vpack.i.b16 %v935_v41, %v935_v41  ;;  %v1192_v7 = vsel %vm16964_vm4, %v17072_v22, %v1191_v54  ;;  %v939_v19 = vunpack.i.h.s16 %v882_v4 }
 0x117   : > { %1121 = vst [vmem:[#allocation2 + $0x15] sm:$0x1] %v1120_v20  ;;  %v1170_v20 = vld [vmem:[#allocation2 + $0x36] sm:$0x1]  ;;  %1184 = vst [vmem:[#allocation2 + $0x42] sm:$0x1] %v1183_v11  ;;  %v17194_v12 = vpack.i.b16 %v937_v5, %v937_v5  ;;  %v17196_v31 = vpack.i.b16 %v882_v4, %v882_v4  ;;  %v884_v41 = vcombine.high %v16923_v14, %v16923_v14  ;;  %1675 = vrot.lane.b32.xlu1 %v16928_v16, %s16769_s15 }
 0x118   : > { %1187 = vst [vmem:[#allocation2 + $0x43] sm:$0x1] %v1186_v51  ;;  %v1098_v24 = vld [vmem:[#allocation2 + $0x6] sm:$0x1]  ;;  %1190 = vst [vmem:[#allocation2 + $0x44] sm:$0x1] %v1189_v13  ;;  %v1147_v40 = vsel %vm16964_vm4, %v17083_v32, %v1146_v44  ;;  %v1150_v54 = vsel %vm16964_vm4, %v17096_v0, %v1149_v49  ;;  %v1171_v5 = vsel %vm16964_vm4, %v17087_v39, %v1170_v20 }
 0x119   : > { %1193 = vst [vmem:[#allocation2 + $0x45] sm:$0x1] %v1192_v7  ;;  %v1101_v11 = vld [vmem:[#allocation2 + $0x7] sm:$0x1]  ;;  %v1122_v51 = vld [vmem:[#allocation2 + $0x16] sm:$0x1]  ;;  %v1174_v14 = vsel %vm16964_vm4, %v17106_v53, %v1173_v10  ;;  %v17214_v13 = vpack.i.b16 %v939_v19, %v939_v19  ;;  %v17216_v7 = vpack.i.b16 %v884_v41, %v884_v41  ;;  %v941_v22 = vunpack.i.h.s16 %v884_v41  ;;  %2042 = vrot.lane.b32.xlu0 %v16886_v58, %s16771_s17 }
 0x11a   : > { %v1125_v4 = vld [vmem:[#allocation2 + $0x17] sm:$0x1]  ;;  %1148 = vst [vmem:[#allocation2 + $0x26] sm:$0x1] %v1147_v40  ;;  %1151 = vst [vmem:[#allocation2 + $0x27] sm:$0x1] %v1150_v54  ;;  %v1099_v44 = vsel %vm16964_vm4, %v17108_v6, %v1098_v24  ;;  %v1102_v10 = vsel %vm16964_vm4, %v17125_v36, %v1101_v11  ;;  %v1123_v20 = vsel %vm16964_vm4, %v17136_v45, %v1122_v51  ;;  %v943_v41 = vunpack.i.h.s16 %v16912_v8 }
 0x11b   : > { %1172 = vst [vmem:[#allocation2 + $0x36] sm:$0x1] %v1171_v5  ;;  %1175 = vst [vmem:[#allocation2 + $0x37] sm:$0x1] %v1174_v14  ;;  %v1194_v49 = vld [vmem:[#allocation2 + $0x46] sm:$0x1]  ;;  %v17231_v19 = vpack.i.b16 %v16912_v8, %v16912_v8  ;;  %v17234_v5 = vpack.i.b16 %v941_v22, %v941_v22  ;;  %v17238_v58 = vpack.i.b16 %v16926_v15, %v16926_v15  ;;  %v945_v51 = vunpack.i.h.s16 %v16926_v15 }
 0x11c   : > { %1100 = vst [vmem:[#allocation2 + $0x6] sm:$0x1] %v1099_v44  ;;  %v1197_v24 = vld [vmem:[#allocation2 + $0x47] sm:$0x1]  ;;  %v1200_v40 = vld [vmem:[#allocation2 + $0x50] sm:$0x1]  ;;  %v1126_v11 = vsel %vm16964_vm4, %v17153_v25, %v1125_v4  ;;  %2044 = vrot.lane.b32.xlu1 %v16903_v1, %s16771_s17  ;;  %v17246_v45 = vpack.i.b16 %v943_v41, %v943_v41  ;;  %v883_v22 = vcombine.high %v16912_v8, %v16912_v8 }
 0x11d   : > { %v1203_v54 = vld [vmem:[#allocation2 + $0x51] sm:$0x1]  ;;  %1103 = vst [vmem:[#allocation2 + $0x7] sm:$0x1] %v1102_v10  ;;  %1124 = vst [vmem:[#allocation2 + $0x16] sm:$0x1] %v1123_v20  ;;  %v1195_v10 = vsel %vm16964_vm4, %v17138_v2, %v1194_v49  ;;  %v885_v4 = vcombine.high %v16926_v15, %v16926_v15  ;;  %v17255_v53 = vpack.i.b16 %v945_v51, %v945_v51  ;;  %1288 = vrot.lane.b32.xlu0 %v16891_v60, %s16770_s16 }
 0x11e   : > { %v1206_v14 = vld [vmem:[#allocation2 + $0x52] sm:$0x1]  ;;  %v1212_v44 = vld [vmem:[#allocation2 + $0x54] sm:$0x1]  ;;  %22861 = vst [vmem:[#allocation25_spill] sm:$0xff] %v17246_v45  ;;  %v1198_v41 = vsel %vm16964_vm4, %v17155_v29, %v1197_v24  ;;  %v1201_v8 = vsel %vm16964_vm4, %v16949_v23, %v1200_v40  ;;  %v1204_v49 = vsel %vm16964_vm4, %v16968_v33, %v1203_v54  ;;  %v17268_v51 = vpack.i.b16 %v883_v22, %v883_v22 }
 0x11f   : > { %1127 = vst [vmem:[#allocation2 + $0x17] sm:$0x1] %v1126_v11  ;;  %v1209_v20 = vld [vmem:[#allocation2 + $0x53] sm:$0x1]  ;;  %v1215_v25 = vld [vmem:[#allocation2 + $0x55] sm:$0x1]  ;;  %v17270_v39 = vpack.i.b16 %v885_v4, %v885_v4  ;;  %v949_v24 = vunpack.i.h.s16 %v885_v4  ;;  %v1207_v54 = vsel %vm16964_vm4, %v17051_v46, %v1206_v14 }
 0x120   : > { %v1224_v36 = vld [vmem:[#allocation2 + $0x60] sm:$0x1]  ;;  %v1227_v6 = vld [vmem:[#allocation2 + $0x61] sm:$0x1]  ;;  %22862 = vst [vmem:[#allocation26_spill] sm:$0xff] %v17255_v53  ;;  %v1210_v56 = vsel %vm16964_vm4, %v17074_v48, %v1209_v20  ;;  %v1216_v4 = vsel %vm16964_vm4, %v17094_v52, %v1215_v25  ;;  %1290 = vrot.lane.b32.xlu1 %v16928_v16, %s16770_s16 }
 0x121   : > { %1196 = vst [vmem:[#allocation2 + $0x46] sm:$0x1] %v1195_v10  ;;  %v1218_v15 = vld [vmem:[#allocation2 + $0x56] sm:$0x1]  ;;  %v1221_v11 = vld [vmem:[#allocation2 + $0x57] sm:$0x1]  ;;  %v947_v10 = vunpack.i.h.s16 %v883_v22  ;;  %v1213_v22 = vsel %vm16964_vm4, %v17081_v28, %v1212_v44  ;;  %v17288_v14 = vpack.i.b16 %v949_v24, %v949_v24  ;;  %2058 = vrot.lane.b32.xlu0 %v16891_v60, %s16771_s17 }
 0x122   : > { %v1230_v2 = vld [vmem:[#allocation2 + $0x62] sm:$0x1]  ;;  %22863 = vst [vmem:[#allocation27_spill] sm:$0xff] %v17270_v39  ;;  %1199 = vst [vmem:[#allocation2 + $0x47] sm:$0x1] %v1198_v41  ;;  %v1219_v44 = vsel %vm16964_vm4, %v17166_v50, %v1218_v15  ;;  %v1222_v25 = vsel %vm16964_vm4, %v17184_v43, %v1221_v11 }
 0x123   : > { %1202 = vst [vmem:[#allocation2 + $0x50] sm:$0x1] %v1201_v8  ;;  %1205 = vst [vmem:[#allocation2 + $0x51] sm:$0x1] %v1204_v49  ;;  %v1233_v40 = vld [vmem:[#allocation2 + $0x63] sm:$0x1]  ;;  %v17286_v9 = vpack.i.b16 %v947_v10, %v947_v10  ;;  %v1225_v10 = vsel %vm16964_vm4, %v17162_v55, %v1224_v36  ;;  %v1231_v15 = vsel %vm16964_vm4, %v17171_v61, %v1230_v2 }
 0x124   : > { %v1236_v29 = vld [vmem:[#allocation2 + $0x64] sm:$0x1]  ;;  %v1239_v0 = vld [vmem:[#allocation2 + $0x65] sm:$0x1]  ;;  %v1248_v32 = vld [vmem:[#allocation2 + $0x70] sm:$0x1]  ;;  %v1234_v11 = vsel %vm16964_vm4, %v17194_v12, %v1233_v40  ;;  %2060 = vrot.lane.b32.xlu1 %v16928_v16, %s16771_s17 }
 0x125   : > { %v1242_v41 = vld [vmem:[#allocation2 + $0x66] sm:$0x1]  ;;  %v1245_v8 = vld [vmem:[#allocation2 + $0x67] sm:$0x1]  ;;  %v1251_v49 = vld [vmem:[#allocation2 + $0x71] sm:$0x1]  ;;  %v1240_v36 = vsel %vm16964_vm4, %v17214_v13, %v1239_v0  ;;  %1721 = vrot.lane.b32.xlu0 %v16944_v21, %s16769_s15 }
 0x126   : > { %22864 = vst [vmem:[#allocation28_spill] sm:$0xff] %v17286_v9  ;;  %22865 = vst [vmem:[#allocation29_spill] sm:$0xff] %v17288_v14  ;;  %v1254_v20 = vld [vmem:[#allocation2 + $0x72] sm:$0x1]  ;;  %v1257_v52 = vld [vmem:[#allocation2 + $0x73] sm:$0x1]  ;;  %v1243_v2 = vsel %vm16964_vm4, %v17216_v7, %v1242_v41  ;;  %v1246_v60 = vsel %vm16964_vm4, %v17234_v5, %v1245_v8  ;;  %v1252_v0 = vsel %vm16964_vm4, %v17246_v45, %v1251_v49 }
 0x127   : > { %1208 = vst [vmem:[#allocation2 + $0x52] sm:$0x1] %v1207_v54  ;;  %1211 = vst [vmem:[#allocation2 + $0x53] sm:$0x1] %v1210_v56  ;;  %v1260_v28 = vld [vmem:[#allocation2 + $0x74] sm:$0x1]  ;;  %v1228_v56 = vsel %vm16964_vm4, %v17186_v57, %v1227_v6  ;;  %v1237_v6 = vsel %vm16964_vm4, %v17196_v31, %v1236_v29  ;;  %v1249_v29 = vsel %vm16964_vm4, %v17231_v19, %v1248_v32 }
 0x128   : > { %1214 = vst [vmem:[#allocation2 + $0x54] sm:$0x1] %v1213_v22  ;;  %1217 = vst [vmem:[#allocation2 + $0x55] sm:$0x1] %v1216_v4  ;;  %v1263_v24 = vld [vmem:[#allocation2 + $0x75] sm:$0x1]  ;;  %v1255_v40 = vsel %vm16964_vm4, %v17238_v58, %v1254_v20  ;;  %v1258_v4 = vsel %vm16964_vm4, %v17255_v53, %v1257_v52  ;;  %v1261_v32 = vsel %vm16964_vm4, %v17268_v51, %v1260_v28  ;;  %1723 = vrot.lane.b32.xlu1 %v16955_v18, %s16769_s15 }
 0x129   : > { %1220 = vst [vmem:[#allocation2 + $0x56] sm:$0x1] %v1219_v44  ;;  %1223 = vst [vmem:[#allocation2 + $0x57] sm:$0x1] %v1222_v25  ;;  %v1266_v54 = vld [vmem:[#allocation2 + $0x76] sm:$0x1]  ;;  %v1264_v41 = vsel %vm16964_vm4, %v17286_v9, %v1263_v24  ;;  %1336 = vrot.lane.b32.xlu0 %v16944_v21, %s16770_s16 }
 0x12a   : > { %v1269_v22 = vld [vmem:[#allocation2 + $0x77] sm:$0x1]  ;;  %1226 = vst [vmem:[#allocation2 + $0x60] sm:$0x1] %v1225_v10  ;;  %1229 = vst [vmem:[#allocation2 + $0x61] sm:$0x1] %v1228_v56  ;;  %v1267_v8 = vsel %vm16964_vm4, %v17270_v39, %v1266_v54 }
 0x12b   : > { %1232 = vst [vmem:[#allocation2 + $0x62] sm:$0x1] %v1231_v15  ;;  %1235 = vst [vmem:[#allocation2 + $0x63] sm:$0x1] %v1234_v11  ;;  %v1270_v16 = vsel %vm16964_vm4, %v17288_v14, %v1269_v22  ;;  %v1516_v49 = vld [vmem:[#allocation2 + $0x21] sm:$0x1] }
 0x12c   : > { %1238 = vst [vmem:[#allocation2 + $0x64] sm:$0x1] %v1237_v6  ;;  %1241 = vst [vmem:[#allocation2 + $0x65] sm:$0x1] %v1240_v36  ;;  %1338 = vrot.lane.b32.xlu1 %v16955_v18, %s16770_s16  ;;  %v1922_v44 = vld [vmem:[#allocation2 + $0x38] sm:$0x1] }
 0x12d   : > { %1244 = vst [vmem:[#allocation2 + $0x66] sm:$0x1] %v1243_v2  ;;  %1247 = vst [vmem:[#allocation2 + $0x67] sm:$0x1] %v1246_v60  ;;  %1737 = vrot.lane.b32.xlu0 %v16949_v23, %s16769_s15  ;;  %v1925_v10 = vld [vmem:[#allocation2 + $0x39] sm:$0x1] }
 0x12e   : > { %1250 = vst [vmem:[#allocation2 + $0x70] sm:$0x1] %v1249_v29  ;;  %1253 = vst [vmem:[#allocation2 + $0x71] sm:$0x1] %v1252_v0  ;;  %v22868_v22 = vld [vmem:[#allocation6_spill] sm:$0xff]  ;;  %v22869_v60 = vld [vmem:[#allocation7_spill] sm:$0xff] }
 0x12f   : > { %1256 = vst [vmem:[#allocation2 + $0x72] sm:$0x1] %v1255_v40  ;;  %1259 = vst [vmem:[#allocation2 + $0x73] sm:$0x1] %v1258_v4  ;;  %v1537_v0 = vld [vmem:[#allocation2 + $0x30] sm:$0x1] }
 0x130   : > { %1262 = vst [vmem:[#allocation2 + $0x74] sm:$0x1] %v1261_v32  ;;  %1265 = vst [vmem:[#allocation2 + $0x75] sm:$0x1] %v1264_v41  ;;  %1739 = vrot.lane.b32.xlu1 %v16968_v33, %s16769_s15  ;;  %v22870_v4 = vld [vmem:[#allocation9_spill] sm:$0xff] }
 0x131   : > { %1268 = vst [vmem:[#allocation2 + $0x76] sm:$0x1] %v1267_v8  ;;  %1271 = vst [vmem:[#allocation2 + $0x77] sm:$0x1] %v1270_v16  ;;  %1693 = vrot.lane.b32.xlu0 %v16932_v17, %s16769_s15  ;;  %v1540_v41 = vld [vmem:[#allocation2 + $0x31] sm:$0x1] }
 0x134   : > { %1695 = vrot.lane.b32.xlu1 %v16970_v34, %s16769_s15 }
 0x135   : > { %1697 = vrot.lane.b32.xlu0 %v16972_v35, %s16769_s15 }
 0x138   : > { %1699 = vrot.lane.b32.xlu1 %v16981_v42, %s16769_s15 }
 0x139   : > { %1308 = vrot.lane.b32.xlu0 %v16932_v17, %s16770_s16 }
 0x13c   : > { %1310 = vrot.lane.b32.xlu1 %v16970_v34, %s16770_s16 }
 0x13d   : > { %1312 = vrot.lane.b32.xlu0 %v16972_v35, %s16770_s16 }
 0x140   : > { %1314 = vrot.lane.b32.xlu1 %v16981_v42, %s16770_s16 }
 0x141   : > { %1709 = vrot.lane.b32.xlu0 %v16959_v27, %s16769_s15 }
 0x144   : > { %1711 = vrot.lane.b32.xlu1 %v16976_v37, %s16769_s15 }
 0x145   : > { %1713 = vrot.lane.b32.xlu0 %v16978_v38, %s16769_s15 }
 0x148   : > { %1715 = vrot.lane.b32.xlu1 %v16993_v59, %s16769_s15 }
 0x149   : > { %2078 = vrot.lane.b32.xlu0 %v16932_v17, %s16771_s17  ;;  %v1898_v17 = vld [vmem:[#allocation2 + $0x28] sm:$0x1] }
 0x14c   : > { %2080 = vrot.lane.b32.xlu1 %v16970_v34, %s16771_s17  ;;  %v1901_v34 = vld [vmem:[#allocation2 + $0x29] sm:$0x1] }
 0x14d   : > { %2082 = vrot.lane.b32.xlu0 %v16972_v35, %s16771_s17 }
 0x150   : > { %2084 = vrot.lane.b32.xlu1 %v16981_v42, %s16771_s17 }
 0x151   : > { %1324 = vrot.lane.b32.xlu0 %v16959_v27, %s16770_s16 }
 0x154   : > { %1326 = vrot.lane.b32.xlu1 %v16976_v37, %s16770_s16 }
 0x155   : > { %1328 = vrot.lane.b32.xlu0 %v16978_v38, %s16770_s16 }
 0x158   : > { %1330 = vrot.lane.b32.xlu1 %v16993_v59, %s16770_s16 }
 0x159   : > { %2094 = vrot.lane.b32.xlu0 %v16959_v27, %s16771_s17 }
 0x15c   : > { %2096 = vrot.lane.b32.xlu1 %v16976_v37, %s16771_s17 }
 0x15d   : > { %2098 = vrot.lane.b32.xlu0 %v16978_v38, %s16771_s17 }
 0x160   : > { %2100 = vrot.lane.b32.xlu1 %v16993_v59, %s16771_s17  ;;  %v1513_v59 = vld [vmem:[#allocation2 + $0x20] sm:$0x1] }
 0x161   : > { %1659 = vrot.lane.b32.xlu0 %v16903_v1, %s16769_s15 }
 0x164   : > { %1663 = vrot.lane.b32.xlu1 %v16995_v63, %s16769_s15 }
 0x165   : > { %1665 = vrot.lane.b32.xlu0 %v17002_v3, %s16769_s15 }
 0x166   : > { %v1690_v27 = vpop.permute.xlu0 %1689 }
 0x167   : > { %v1899_v35 = vsel %vm16964_vm4, %v1690_v27, %v1898_v17 }
 0x168   : > { %1667 = vrot.lane.b32.xlu1 %v17022_v26, %s16769_s15  ;;  %1900 = vst [vmem:[#allocation2 + $0x28] sm:$0x1] %v1899_v35  ;;  %v1692_v37 = vpop.permute.xlu1 %1691 }
 0x169   : > { %1276 = vrot.lane.b32.xlu0 %v16897_v62, %s16770_s16  ;;  %v1902_v38 = vsel %vm16964_vm4, %v1692_v37, %v1901_v34 }
 0x16a   : > { %1903 = vst [vmem:[#allocation2 + $0x29] sm:$0x1] %v1902_v38  ;;  %v1305_v42 = vpop.permute.xlu0 %1304  ;;  %v1850_v38 = vld [vmem:[#allocation2 + $0x8] sm:$0x1] }
 0x16b   : > { %v1514_v28 = vsel %vm17422_vm6, %v1305_v42, %v1513_v59  ;;  %v1856_v59 = vld [vmem:[#allocation2 + $0xa] sm:$0x1] }
 0x16c   : > { %1278 = vrot.lane.b32.xlu1 %v16995_v63, %s16770_s16  ;;  %1515 = vst [vmem:[#allocation2 + $0x20] sm:$0x1] %v1514_v28  ;;  %v1307_v52 = vpop.permute.xlu1 %1306 }
 0x16d   : > { %1280 = vrot.lane.b32.xlu0 %v17002_v3, %s16770_s16  ;;  %v1517_v25 = vsel %vm17422_vm6, %v1307_v52, %v1516_v49  ;;  %v1465_v49 = vld [vmem:[#allocation2] sm:$0x1] }
 0x16e   : > { %1518 = vst [vmem:[#allocation2 + $0x21] sm:$0x1] %v1517_v25  ;;  %v1706_v20 = vpop.permute.xlu0 %1705 }
 0x16f   : > { %v1923_v56 = vsel %vm16964_vm4, %v1706_v20, %v1922_v44  ;;  %v2282_v24 = vld [vmem:[#allocation2 + $0x28] sm:$0x1]  ;;  %v1468_v44 = vld [vmem:[#allocation2 + $0x1] sm:$0x1]  ;;  %v1874_v20 = vld [vmem:[#allocation2 + $0x18] sm:$0x1] }
 0x170   : > { %1282 = vrot.lane.b32.xlu1 %v17022_v26, %s16770_s16  ;;  %1924 = vst [vmem:[#allocation2 + $0x38] sm:$0x1] %v1923_v56  ;;  %v1708_v15 = vpop.permute.xlu1 %1707 }
 0x171   : > { %1677 = vrot.lane.b32.xlu0 %v16999_v47, %s16769_s15  ;;  %v1926_v11 = vsel %vm16964_vm4, %v1708_v15, %v1925_v10  ;;  %v2285_v36 = vld [vmem:[#allocation2 + $0x29] sm:$0x1]  ;;  %v1877_v15 = vld [vmem:[#allocation2 + $0x19] sm:$0x1] }
 0x172   : > { %1927 = vst [vmem:[#allocation2 + $0x39] sm:$0x1] %v1926_v11  ;;  %v2075_v54 = vpop.permute.xlu0 %2074 }
 0x173   : > { %v2283_v6 = vsel %vm17422_vm6, %v2075_v54, %v2282_v24 }
 0x174   : > { %1679 = vrot.lane.b32.xlu1 %v22868_v22, %s16769_s15  ;;  %2284 = vst [vmem:[#allocation2 + $0x28] sm:$0x1] %v2283_v6  ;;  %v2077_v2 = vpop.permute.xlu1 %2076 }
 0x175   : > { %1681 = vrot.lane.b32.xlu0 %v22869_v60, %s16769_s15  ;;  %v2286_v29 = vsel %vm17422_vm6, %v2077_v2, %v2285_v36 }
 0x176   : > { %2287 = vst [vmem:[#allocation2 + $0x29] sm:$0x1] %v2286_v29  ;;  %v1321_v40 = vpop.permute.xlu0 %1320 }
 0x177   : > { %v1538_v32 = vsel %vm17422_vm6, %v1321_v40, %v1537_v0  ;;  %v2306_v17 = vld [vmem:[#allocation2 + $0x38] sm:$0x1] }
 0x178   : > { %1683 = vrot.lane.b32.xlu1 %v22870_v4, %s16769_s15  ;;  %1539 = vst [vmem:[#allocation2 + $0x30] sm:$0x1] %v1538_v32  ;;  %v1323_v8 = vpop.permute.xlu1 %1322  ;;  %v1492_v32 = vld [vmem:[#allocation2 + $0x11] sm:$0x1] }
 0x179   : > { %2046 = vrot.lane.b32.xlu0 %v16897_v62, %s16771_s17  ;;  %v1541_v16 = vsel %vm17422_vm6, %v1323_v8, %v1540_v41  ;;  %v2309_v35 = vld [vmem:[#allocation2 + $0x39] sm:$0x1] }
 0x17a   : > { %1542 = vst [vmem:[#allocation2 + $0x31] sm:$0x1] %v1541_v16  ;;  %v2091_v27 = vpop.permute.xlu0 %2090 }
 0x17b   : > { %v2307_v34 = vsel %vm17422_vm6, %v2091_v27, %v2306_v17  ;;  %v22872_v17 = vld [vmem:[#allocation10_spill] sm:$0xff]  ;;  %v22873_v27 = vld [vmem:[#allocation11_spill] sm:$0xff] }
 0x17c   : > { %2048 = vrot.lane.b32.xlu1 %v16995_v63, %s16771_s17  ;;  %2308 = vst [vmem:[#allocation2 + $0x38] sm:$0x1] %v2307_v34  ;;  %v2093_v37 = vpop.permute.xlu1 %2092 }
 0x17d   : > { %2050 = vrot.lane.b32.xlu0 %v17002_v3, %s16771_s17  ;;  %v2310_v62 = vsel %vm17422_vm6, %v2093_v37, %v2309_v35  ;;  %v1946_v37 = vld [vmem:[#allocation2 + $0x48] sm:$0x1] }
 0x17e   : > { %2311 = vst [vmem:[#allocation2 + $0x39] sm:$0x1] %v2310_v62  ;;  %v1658_v42 = vpop.permute.xlu0 %1657 }
 0x17f   : > { %v1851_v63 = vsel %vm16964_vm4, %v1658_v42, %v1850_v38  ;;  %v22874_v42 = vld [vmem:[#allocation12_spill] sm:$0xff] }
 0x180   : > { %2052 = vrot.lane.b32.xlu1 %v17022_v26, %s16771_s17  ;;  %1852 = vst [vmem:[#allocation2 + $0x8] sm:$0x1] %v1851_v63  ;;  %v1662_v28 = vpop.permute.xlu1 %1661 }
 0x181   : > { %1292 = vrot.lane.b32.xlu0 %v16999_v47, %s16770_s16  ;;  %v1857_v3 = vsel %vm16964_vm4, %v1662_v28, %v1856_v59  ;;  %v1949_v59 = vld [vmem:[#allocation2 + $0x49] sm:$0x1] }
 0x182   : > { %1858 = vst [vmem:[#allocation2 + $0xa] sm:$0x1] %v1857_v3  ;;  %v1273_v52 = vpop.permute.xlu0 %1272 }
 0x183   : > { %v1466_v26 = vsel %vm17422_vm6, %v1273_v52, %v1465_v49  ;;  %v1561_v52 = vld [vmem:[#allocation2 + $0x40] sm:$0x1] }
 0x184   : > { %1294 = vrot.lane.b32.xlu1 %v22868_v22, %s16770_s16  ;;  %1467 = vst [vmem:[#allocation2] sm:$0x1] %v1466_v26  ;;  %v1275_v25 = vpop.permute.xlu1 %1274 }
 0x185   : > { %1296 = vrot.lane.b32.xlu0 %v22869_v60, %s16770_s16  ;;  %v1469_v10 = vsel %vm17422_vm6, %v1275_v25, %v1468_v44  ;;  %v1564_v44 = vld [vmem:[#allocation2 + $0x41] sm:$0x1] }
 0x186   : > { %1470 = vst [vmem:[#allocation2 + $0x1] sm:$0x1] %v1469_v10 }
 0x187   : > { %v1674_v56 = vpop.permute.xlu0 %1673  ;;  %v2234_v6 = vld [vmem:[#allocation2 + $0x8] sm:$0x1] }
 0x188   : > { %1298 = vrot.lane.b32.xlu1 %v22870_v4, %s16770_s16  ;;  %v1875_v11 = vsel %vm16964_vm4, %v1674_v56, %v1874_v20  ;;  %v1970_v20 = vld [vmem:[#allocation2 + $0x58] sm:$0x1] }
 0x189   : > { %1876 = vst [vmem:[#allocation2 + $0x18] sm:$0x1] %v1875_v11  ;;  %2062 = vrot.lane.b32.xlu0 %v16999_v47, %s16771_s17  ;;  %v1676_v24 = vpop.permute.xlu1 %1675  ;;  %v1489_v47 = vld [vmem:[#allocation2 + $0x10] sm:$0x1] }
 0x18a   : > { %v1878_v54 = vsel %vm16964_vm4, %v1676_v24, %v1877_v15  ;;  %v1973_v15 = vld [vmem:[#allocation2 + $0x59] sm:$0x1] }
 0x18b   : > { %1879 = vst [vmem:[#allocation2 + $0x19] sm:$0x1] %v1878_v54  ;;  %v2043_v36 = vpop.permute.xlu0 %2042  ;;  %v1904_v54 = vld [vmem:[#allocation2 + $0x2a] sm:$0x1] }
 0x18c   : > { %2064 = vrot.lane.b32.xlu1 %v22868_v22, %s16771_s17  ;;  %v2235_v2 = vsel %vm17422_vm6, %v2043_v36, %v2234_v6  ;;  %v22871_v22 = vld [vmem:[#allocation8_spill] sm:$0xff] }
 0x18d   : > { %2236 = vst [vmem:[#allocation2 + $0x8] sm:$0x1] %v2235_v2  ;;  %2066 = vrot.lane.b32.xlu0 %v22869_v60, %s16771_s17  ;;  %v1907_v2 = vld [vmem:[#allocation2 + $0x2b] sm:$0x1] }
 0x18e   : > { %v17498_v29 = vpop.permute.xlu1 %2044 }
 0x18f   : > { %v1289_v0 = vpop.permute.xlu0 %1288 }
 0x190   : > { %2068 = vrot.lane.b32.xlu1 %v22870_v4, %s16771_s17  ;;  %v1490_v40 = vsel %vm17422_vm6, %v1289_v0, %v1489_v47  ;;  %v2258_v60 = vld [vmem:[#allocation2 + $0x18] sm:$0x1]  ;;  %v22875_v0 = vld [vmem:[#allocation13_spill] sm:$0xff] }
 0x191   : > { %1491 = vst [vmem:[#allocation2 + $0x10] sm:$0x1] %v1490_v40  ;;  %1725 = vrot.lane.b32.xlu0 %v22871_v22, %s16769_s15 }
 0x192   : > { %v1291_v41 = vpop.permute.xlu1 %1290  ;;  %v2261_v34 = vld [vmem:[#allocation2 + $0x19] sm:$0x1] }
 0x193   : > { %v1493_v8 = vsel %vm17422_vm6, %v1291_v41, %v1492_v32  ;;  %v2059_v16 = vpop.permute.xlu0 %2058  ;;  %v1910_v32 = vld [vmem:[#allocation2 + $0x2c] sm:$0x1] }
 0x194   : > { %1494 = vst [vmem:[#allocation2 + $0x11] sm:$0x1] %v1493_v8  ;;  %1727 = vrot.lane.b32.xlu1 %v22872_v17, %s16769_s15  ;;  %v2259_v4 = vsel %vm17422_vm6, %v2059_v16, %v2258_v60  ;;  %v22876_v60 = vld [vmem:[#allocation16_spill] sm:$0xff] }
 0x195   : > { %2260 = vst [vmem:[#allocation2 + $0x18] sm:$0x1] %v2259_v4  ;;  %1729 = vrot.lane.b32.xlu0 %v22873_v27, %s16769_s15  ;;  %v1913_v16 = vld [vmem:[#allocation2 + $0x2d] sm:$0x1] }
 0x196   : > { %v2061_v35 = vpop.permute.xlu1 %2060 }
 0x197   : > { %v2262_v38 = vsel %vm17422_vm6, %v2061_v35, %v2261_v34  ;;  %v1722_v62 = vpop.permute.xlu0 %1721  ;;  %v22877_v34 = vld [vmem:[#allocation14_spill] sm:$0xff] }
 0x198   : > { %2263 = vst [vmem:[#allocation2 + $0x19] sm:$0x1] %v2262_v38  ;;  %1731 = vrot.lane.b32.xlu1 %v22874_v42, %s16769_s15  ;;  %v1947_v63 = vsel %vm16964_vm4, %v1722_v62, %v1946_v37  ;;  %v1519_v38 = vld [vmem:[#allocation2 + $0x22] sm:$0x1] }
 0x199   : > { %1948 = vst [vmem:[#allocation2 + $0x48] sm:$0x1] %v1947_v63  ;;  %1340 = vrot.lane.b32.xlu0 %v22871_v22, %s16770_s16  ;;  %v1522_v63 = vld [vmem:[#allocation2 + $0x23] sm:$0x1] }
 0x19a   : > { %v1724_v28 = vpop.permute.xlu1 %1723 }
 0x19b   : > { %v1950_v3 = vsel %vm16964_vm4, %v1724_v28, %v1949_v59  ;;  %v1337_v49 = vpop.permute.xlu0 %1336 }
 0x19c   : > { %1951 = vst [vmem:[#allocation2 + $0x49] sm:$0x1] %v1950_v3  ;;  %1342 = vrot.lane.b32.xlu1 %v22872_v17, %s16770_s16  ;;  %v1562_v26 = vsel %vm17422_vm6, %v1337_v49, %v1561_v52  ;;  %v1525_v52 = vld [vmem:[#allocation2 + $0x24] sm:$0x1] }
 0x19d   : > { %1563 = vst [vmem:[#allocation2 + $0x40] sm:$0x1] %v1562_v26  ;;  %1344 = vrot.lane.b32.xlu0 %v22873_v27, %s16770_s16  ;;  %v22878_v26 = vld [vmem:[#allocation17_spill] sm:$0xff] }
 0x19e   : > { %v1339_v25 = vpop.permute.xlu1 %1338 }
 0x19f   : > { %v1565_v10 = vsel %vm17422_vm6, %v1339_v25, %v1564_v44  ;;  %v1738_v56 = vpop.permute.xlu0 %1737  ;;  %v22879_v44 = vld [vmem:[#allocation15_spill] sm:$0xff] }
 0x1a0   : > { %1566 = vst [vmem:[#allocation2 + $0x41] sm:$0x1] %v1565_v10  ;;  %1346 = vrot.lane.b32.xlu1 %v22874_v42, %s16770_s16  ;;  %v1971_v11 = vsel %vm16964_vm4, %v1738_v56, %v1970_v20  ;;  %v1528_v25 = vld [vmem:[#allocation2 + $0x25] sm:$0x1]  ;;  %v1928_v10 = vld [vmem:[#allocation2 + $0x3a] sm:$0x1] }
 0x1a1   : > { %1972 = vst [vmem:[#allocation2 + $0x58] sm:$0x1] %v1971_v11  ;;  %1741 = vrot.lane.b32.xlu0 %v17051_v46, %s16769_s15  ;;  %v1931_v11 = vld [vmem:[#allocation2 + $0x3b] sm:$0x1] }
 0x1a2   : > { %v1740_v24 = vpop.permute.xlu1 %1739 }
 0x1a3   : > { %v1974_v6 = vsel %vm16964_vm4, %v1740_v24, %v1973_v15  ;;  %v1694_v36 = vpop.permute.xlu0 %1693 }
 0x1a4   : > { %1975 = vst [vmem:[#allocation2 + $0x59] sm:$0x1] %v1974_v6  ;;  %1743 = vrot.lane.b32.xlu1 %v17074_v48, %s16769_s15  ;;  %v1905_v47 = vsel %vm16964_vm4, %v1694_v36, %v1904_v54  ;;  %v1934_v6 = vld [vmem:[#allocation2 + $0x3c] sm:$0x1] }
 0x1a5   : > { %1906 = vst [vmem:[#allocation2 + $0x2a] sm:$0x1] %v1905_v47  ;;  %1745 = vrot.lane.b32.xlu0 %v22875_v0, %s16769_s15  ;;  %v22880_v47 = vld [vmem:[#allocation18_spill] sm:$0xff] }
 0x1a6   : > { %v1696_v40 = vpop.permute.xlu1 %1695 }
 0x1a7   : > { %v1908_v41 = vsel %vm16964_vm4, %v1696_v40, %v1907_v2  ;;  %v1698_v8 = vpop.permute.xlu0 %1697  ;;  %v1937_v40 = vld [vmem:[#allocation2 + $0x3d] sm:$0x1] }
 0x1a8   : > { %1909 = vst [vmem:[#allocation2 + $0x2b] sm:$0x1] %v1908_v41  ;;  %1747 = vrot.lane.b32.xlu1 %v22876_v60, %s16769_s15  ;;  %v1911_v4 = vsel %vm16964_vm4, %v1698_v8, %v1910_v32 }
 0x1a9   : > { %1912 = vst [vmem:[#allocation2 + $0x2c] sm:$0x1] %v1911_v4  ;;  %1701 = vrot.lane.b32.xlu0 %v22877_v34, %s16769_s15 }
 0x1aa   : > { %v1700_v35 = vpop.permute.xlu1 %1699 }
 0x1ab   : > { %v1914_v37 = vsel %vm16964_vm4, %v1700_v35, %v1913_v16  ;;  %v1309_v62 = vpop.permute.xlu0 %1308 }
 0x1ac   : > { %1915 = vst [vmem:[#allocation2 + $0x2d] sm:$0x1] %v1914_v37  ;;  %2108 = vrot.lane.b32.xlu1 %v16955_v18, %s16771_s17  ;;  %v1520_v59 = vsel %vm17422_vm6, %v1309_v62, %v1519_v38  ;;  %v2288_v16 = vld [vmem:[#allocation2 + $0x2a] sm:$0x1] }
 0x1ad   : > { %1521 = vst [vmem:[#allocation2 + $0x22] sm:$0x1] %v1520_v59  ;;  %1316 = vrot.lane.b32.xlu0 %v22877_v34, %s16770_s16 }
 0x1ae   : > { %v1311_v28 = vpop.permute.xlu1 %1310 }
 0x1af   : > { %v1523_v3 = vsel %vm17422_vm6, %v1311_v28, %v1522_v63  ;;  %v1313_v49 = vpop.permute.xlu0 %1312  ;;  %v2291_v35 = vld [vmem:[#allocation2 + $0x2b] sm:$0x1] }
 0x1b0   : > { %1524 = vst [vmem:[#allocation2 + $0x23] sm:$0x1] %v1523_v3  ;;  %1703 = vrot.lane.b32.xlu1 %v22878_v26, %s16769_s15  ;;  %v1526_v18 = vsel %vm17422_vm6, %v1313_v49, %v1525_v52  ;;  %v2294_v62 = vld [vmem:[#allocation2 + $0x2c] sm:$0x1]  ;;  %v22881_v52 = vld [vmem:[#allocation19_spill] sm:$0xff] }
 0x1b1   : > { %1527 = vst [vmem:[#allocation2 + $0x24] sm:$0x1] %v1526_v18  ;;  %1717 = vrot.lane.b32.xlu0 %v22879_v44, %s16769_s15 }
 0x1b2   : > { %v1315_v20 = vpop.permute.xlu1 %1314 }
 0x1b3   : > { %v1529_v56 = vsel %vm17422_vm6, %v1315_v20, %v1528_v25  ;;  %v1710_v15 = vpop.permute.xlu0 %1709  ;;  %v2297_v28 = vld [vmem:[#allocation2 + $0x2d] sm:$0x1]  ;;  %v1546_v25 = vld [vmem:[#allocation2 + $0x33] sm:$0x1] }
 0x1b4   : > { %1530 = vst [vmem:[#allocation2 + $0x25] sm:$0x1] %v1529_v56  ;;  %1318 = vrot.lane.b32.xlu1 %v22878_v26, %s16770_s16  ;;  %v1929_v24 = vsel %vm16964_vm4, %v1710_v15, %v1928_v10  ;;  %v1549_v56 = vld [vmem:[#allocation2 + $0x34] sm:$0x1] }
 0x1b5   : > { %1930 = vst [vmem:[#allocation2 + $0x3a] sm:$0x1] %v1929_v24  ;;  %2086 = vrot.lane.b32.xlu0 %v22877_v34, %s16771_s17 }
 0x1b6   : > { %v1712_v54 = vpop.permute.xlu1 %1711 }
 0x1b7   : > { %v1932_v36 = vsel %vm16964_vm4, %v1712_v54, %v1931_v11  ;;  %v1714_v2 = vpop.permute.xlu0 %1713  ;;  %v22882_v11 = vld [vmem:[#allocation20_spill] sm:$0xff]  ;;  %v1552_v54 = vld [vmem:[#allocation2 + $0x35] sm:$0x1] }
 0x1b8   : > { %1933 = vst [vmem:[#allocation2 + $0x3b] sm:$0x1] %v1932_v36  ;;  %1719 = vrot.lane.b32.xlu1 %v22880_v47, %s16769_s15  ;;  %v1935_v32 = vsel %vm16964_vm4, %v1714_v2, %v1934_v6  ;;  %v22883_v36 = vld [vmem:[#allocation21_spill] sm:$0xff] }
 0x1b9   : > { %1936 = vst [vmem:[#allocation2 + $0x3c] sm:$0x1] %v1935_v32  ;;  %1332 = vrot.lane.b32.xlu0 %v22879_v44, %s16770_s16 }
 0x1ba   : > { %v1716_v41 = vpop.permute.xlu1 %1715 }
 0x1bb   : > { %v1938_v8 = vsel %vm16964_vm4, %v1716_v41, %v1937_v40  ;;  %v2079_v4 = vpop.permute.xlu0 %2078 }
 0x1bc   : > { %1939 = vst [vmem:[#allocation2 + $0x3d] sm:$0x1] %v1938_v8  ;;  %2088 = vrot.lane.b32.xlu1 %v22878_v26, %s16771_s17  ;;  %v2289_v34 = vsel %vm17422_vm6, %v2079_v4, %v2288_v16  ;;  %v1543_v26 = vld [vmem:[#allocation2 + $0x32] sm:$0x1] }
 0x1bd   : > { %2290 = vst [vmem:[#allocation2 + $0x2a] sm:$0x1] %v2289_v34  ;;  %2102 = vrot.lane.b32.xlu0 %v22879_v44, %s16771_s17 }
 0x1be   : > { %v2081_v37 = vpop.permute.xlu1 %2080 }
 0x1bf   : > { %v2292_v38 = vsel %vm17422_vm6, %v2081_v37, %v2291_v35  ;;  %v2083_v59 = vpop.permute.xlu0 %2082  ;;  %v2315_v41 = vld [vmem:[#allocation2 + $0x3b] sm:$0x1]  ;;  %v22884_v35 = vld [vmem:[#allocation23_spill] sm:$0xff] }
 0x1c0   : > { %2293 = vst [vmem:[#allocation2 + $0x2b] sm:$0x1] %v2292_v38  ;;  %1334 = vrot.lane.b32.xlu1 %v22880_v47, %s16770_s16  ;;  %v2295_v63 = vsel %vm17422_vm6, %v2083_v59, %v2294_v62  ;;  %v2318_v4 = vld [vmem:[#allocation2 + $0x3c] sm:$0x1]  ;;  %v1853_v59 = vld [vmem:[#allocation2 + $0x9] sm:$0x1] }
 0x1c1   : > { %2296 = vst [vmem:[#allocation2 + $0x2c] sm:$0x1] %v2295_v63  ;;  %1669 = vrot.lane.b32.xlu0 %v22881_v52, %s16769_s15 }
 0x1c2   : > { %v2085_v3 = vpop.permute.xlu1 %2084 }
 0x1c3   : > { %v2298_v49 = vsel %vm17422_vm6, %v2085_v3, %v2297_v28  ;;  %v1325_v18 = vpop.permute.xlu0 %1324  ;;  %v2321_v38 = vld [vmem:[#allocation2 + $0x3d] sm:$0x1]  ;;  %v1859_v3 = vld [vmem:[#allocation2 + $0xb] sm:$0x1] }
 0x1c4   : > { %2299 = vst [vmem:[#allocation2 + $0x2d] sm:$0x1] %v2298_v49  ;;  %2104 = vrot.lane.b32.xlu1 %v22880_v47, %s16771_s17  ;;  %v1544_v44 = vsel %vm17422_vm6, %v1325_v18, %v1543_v26  ;;  %v2312_v47 = vld [vmem:[#allocation2 + $0x3a] sm:$0x1]  ;;  %v1862_v26 = vld [vmem:[#allocation2 + $0xc] sm:$0x1] }
 0x1c5   : > { %1545 = vst [vmem:[#allocation2 + $0x32] sm:$0x1] %v1544_v44  ;;  %1284 = vrot.lane.b32.xlu0 %v22881_v52, %s16770_s16 }
 0x1c6   : > { %v1327_v20 = vpop.permute.xlu1 %1326 }
 0x1c7   : > { %v1547_v10 = vsel %vm17422_vm6, %v1327_v20, %v1546_v25  ;;  %v1329_v15 = vpop.permute.xlu0 %1328  ;;  %v1865_v25 = vld [vmem:[#allocation2 + $0xd] sm:$0x1] }
 0x1c8   : > { %1548 = vst [vmem:[#allocation2 + $0x33] sm:$0x1] %v1547_v10  ;;  %1671 = vrot.lane.b32.xlu1 %v22882_v11, %s16769_s15  ;;  %v1550_v24 = vsel %vm17422_vm6, %v1329_v15, %v1549_v56  ;;  %v22885_v56 = vld [vmem:[#allocation22_spill] sm:$0xff] }
 0x1c9   : > { %1551 = vst [vmem:[#allocation2 + $0x34] sm:$0x1] %v1550_v24  ;;  %1685 = vrot.lane.b32.xlu0 %v22883_v36, %s16769_s15  ;;  %v1471_v24 = vld [vmem:[#allocation2 + $0x2] sm:$0x1] }
 0x1ca   : > { %v1331_v6 = vpop.permute.xlu1 %1330 }
 0x1cb   : > { %v1553_v2 = vsel %vm17422_vm6, %v1331_v6, %v1552_v54  ;;  %v2095_v40 = vpop.permute.xlu0 %2094 }
 0x1cc   : > { %1554 = vst [vmem:[#allocation2 + $0x35] sm:$0x1] %v1553_v2  ;;  %1286 = vrot.lane.b32.xlu1 %v22882_v11, %s16770_s16  ;;  %v2313_v32 = vsel %vm17422_vm6, %v2095_v40, %v2312_v47  ;;  %v1474_v47 = vld [vmem:[#allocation2 + $0x3] sm:$0x1] }
 0x1cd   : > { %2314 = vst [vmem:[#allocation2 + $0x3a] sm:$0x1] %v2313_v32  ;;  %2054 = vrot.lane.b32.xlu0 %v22881_v52, %s16771_s17  ;;  %v1477_v32 = vld [vmem:[#allocation2 + $0x4] sm:$0x1] }
 0x1ce   : > { %v2097_v8 = vpop.permute.xlu1 %2096 }
 0x1cf   : > { %v2316_v16 = vsel %vm17422_vm6, %v2097_v8, %v2315_v41  ;;  %v2099_v34 = vpop.permute.xlu0 %2098  ;;  %v22886_v8 = vld [vmem:[#allocation24_spill] sm:$0xff] }
 0x1d0   : > { %2317 = vst [vmem:[#allocation2 + $0x3b] sm:$0x1] %v2316_v16  ;;  %1687 = vrot.lane.b32.xlu1 %v22884_v35, %s16769_s15  ;;  %v2319_v37 = vsel %vm17422_vm6, %v2099_v34, %v2318_v4  ;;  %v1880_v34 = vld [vmem:[#allocation2 + $0x1a] sm:$0x1] }
 0x1d1   : > { %2320 = vst [vmem:[#allocation2 + $0x3c] sm:$0x1] %v2319_v37  ;;  %1300 = vrot.lane.b32.xlu0 %v22883_v36, %s16770_s16 }
 0x1d2   : > { %v2101_v62 = vpop.permute.xlu1 %2100 }
 0x1d3   : > { %v2322_v63 = vsel %vm17422_vm6, %v2101_v62, %v2321_v38  ;;  %v1660_v28 = vpop.permute.xlu0 %1659  ;;  %v1883_v38 = vld [vmem:[#allocation2 + $0x1b] sm:$0x1] }
 0x1d4   : > { %2323 = vst [vmem:[#allocation2 + $0x3d] sm:$0x1] %v2322_v63  ;;  %2056 = vrot.lane.b32.xlu1 %v22882_v11, %s16771_s17  ;;  %v1854_v52 = vsel %vm16964_vm4, %v1660_v28, %v1853_v59  ;;  %v1886_v63 = vld [vmem:[#allocation2 + $0x1c] sm:$0x1] }
 0x1d5   : > { %1855 = vst [vmem:[#allocation2 + $0x9] sm:$0x1] %v1854_v52  ;;  %2070 = vrot.lane.b32.xlu0 %v22883_v36, %s16771_s17  ;;  %v1889_v52 = vld [vmem:[#allocation2 + $0x1d] sm:$0x1] }
 0x1d6   : > { %v1664_v49 = vpop.permute.xlu1 %1663 }
 0x1d7   : > { %v1860_v18 = vsel %vm16964_vm4, %v1664_v49, %v1859_v3  ;;  %v1666_v44 = vpop.permute.xlu0 %1665 }
 0x1d8   : > { %1861 = vst [vmem:[#allocation2 + $0xb] sm:$0x1] %v1860_v18  ;;  %1302 = vrot.lane.b32.xlu1 %v22884_v35, %s16770_s16  ;;  %v1863_v20 = vsel %vm16964_vm4, %v1666_v44, %v1862_v26  ;;  %v2240_v44 = vld [vmem:[#allocation2 + $0xa] sm:$0x1] }
 0x1d9   : > { %1864 = vst [vmem:[#allocation2 + $0xc] sm:$0x1] %v1863_v20  ;;  %1733 = vrot.lane.b32.xlu0 %v22885_v56, %s16769_s15 }
 0x1da   : > { %v1668_v10 = vpop.permute.xlu1 %1667 }
 0x1db   : > { %v1866_v15 = vsel %vm16964_vm4, %v1668_v10, %v1865_v25  ;;  %v1277_v11 = vpop.permute.xlu0 %1276 }
 0x1dc   : > { %1867 = vst [vmem:[#allocation2 + $0xd] sm:$0x1] %v1866_v15  ;;  %2072 = vrot.lane.b32.xlu1 %v22884_v35, %s16771_s17  ;;  %v2237_v54 = vld [vmem:[#allocation2 + $0x9] sm:$0x1]  ;;  %v1472_v6 = vsel %vm17422_vm6, %v1277_v11, %v1471_v24 }
 0x1dd   : > { %v2238_v36 = vsel %vm17422_vm6, %v17498_v29, %v2237_v54  ;;  %1473 = vst [vmem:[#allocation2 + $0x2] sm:$0x1] %v1472_v6  ;;  %1348 = vrot.lane.b32.xlu0 %v22885_v56, %s16770_s16  ;;  %v1480_v29 = vld [vmem:[#allocation2 + $0x5] sm:$0x1]  ;;  %v1495_v6 = vld [vmem:[#allocation2 + $0x12] sm:$0x1] }
 0x1de   : > { %v1279_v2 = vpop.permute.xlu1 %1278  ;;  %2239 = vst [vmem:[#allocation2 + $0x9] sm:$0x1] %v2238_v36 }
 0x1df   : > { %v1475_v40 = vsel %vm17422_vm6, %v1279_v2, %v1474_v47  ;;  %v1281_v41 = vpop.permute.xlu0 %1280  ;;  %v2243_v20 = vld [vmem:[#allocation2 + $0xb] sm:$0x1]  ;;  %v1498_v2 = vld [vmem:[#allocation2 + $0x13] sm:$0x1] }
 0x1e0   : > { %1476 = vst [vmem:[#allocation2 + $0x3] sm:$0x1] %v1475_v40  ;;  %1735 = vrot.lane.b32.xlu1 %v22886_v8, %s16769_s15  ;;  %v1478_v16 = vsel %vm17422_vm6, %v1281_v41, %v1477_v32  ;;  %v2246_v15 = vld [vmem:[#allocation2 + $0xc] sm:$0x1]  ;;  %v1501_v40 = vld [vmem:[#allocation2 + $0x14] sm:$0x1] }
 0x1e1   : > { %1479 = vst [vmem:[#allocation2 + $0x4] sm:$0x1] %v1478_v16  ;;  %1749 = vrot.lane.b32.xlu0 %v17166_v50, %s16769_s15 }
 0x1e2   : > { %v1283_v4 = vpop.permute.xlu1 %1282 }
 0x1e3   : > { %v1481_v35 = vsel %vm17422_vm6, %v1283_v4, %v1480_v29  ;;  %v1678_v37 = vpop.permute.xlu0 %1677  ;;  %v2249_v24 = vld [vmem:[#allocation2 + $0xd] sm:$0x1] }
 0x1e4   : > { %1482 = vst [vmem:[#allocation2 + $0x5] sm:$0x1] %v1481_v35  ;;  %1350 = vrot.lane.b32.xlu1 %v22886_v8, %s16770_s16  ;;  %v1881_v62 = vsel %vm16964_vm4, %v1678_v37, %v1880_v34 }
 0x1e5   : > { %1882 = vst [vmem:[#allocation2 + $0x1a] sm:$0x1] %v1881_v62  ;;  %2106 = vrot.lane.b32.xlu0 %v16944_v21, %s16771_s17 }
 0x1e6   : > { %v1680_v59 = vpop.permute.xlu1 %1679 }
 0x1e7   : > { %v1884_v28 = vsel %vm16964_vm4, %v1680_v59, %v1883_v38  ;;  %v1682_v3 = vpop.permute.xlu0 %1681 }
 0x1e8   : > { %1885 = vst [vmem:[#allocation2 + $0x1b] sm:$0x1] %v1884_v28  ;;  %1751 = vrot.lane.b32.xlu1 %v17184_v43, %s16769_s15  ;;  %v1887_v49 = vsel %vm16964_vm4, %v1682_v3, %v1886_v63 }
 0x1e9   : > { %1888 = vst [vmem:[#allocation2 + $0x1c] sm:$0x1] %v1887_v49  ;;  %2110 = vrot.lane.b32.xlu0 %v22871_v22, %s16771_s17  ;;  %v1952_v49 = vld [vmem:[#allocation2 + $0x4a] sm:$0x1] }
 0x1ea   : > { %v1684_v26 = vpop.permute.xlu1 %1683 }
 0x1eb   : > { %v1890_v21 = vsel %vm16964_vm4, %v1684_v26, %v1889_v52  ;;  %v2047_v18 = vpop.permute.xlu0 %2046 }
 0x1ec   : > { %1891 = vst [vmem:[#allocation2 + $0x1d] sm:$0x1] %v1890_v21  ;;  %2112 = vrot.lane.b32.xlu1 %v22872_v17, %s16771_s17  ;;  %v2241_v25 = vsel %vm17422_vm6, %v2047_v18, %v2240_v44  ;;  %v2264_v4 = vld [vmem:[#allocation2 + $0x1a] sm:$0x1]  ;;  %v1955_v18 = vld [vmem:[#allocation2 + $0x4b] sm:$0x1] }
 0x1ed   : > { %2242 = vst [vmem:[#allocation2 + $0xa] sm:$0x1] %v2241_v25  ;;  %2114 = vrot.lane.b32.xlu0 %v22873_v27, %s16771_s17 }
 0x1ee   : > { %v2049_v10 = vpop.permute.xlu1 %2048 }
 0x1ef   : > { %v2244_v22 = vsel %vm17422_vm6, %v2049_v10, %v2243_v20  ;;  %v2051_v11 = vpop.permute.xlu0 %2050  ;;  %v2267_v37 = vld [vmem:[#allocation2 + $0x1b] sm:$0x1]  ;;  %v1958_v20 = vld [vmem:[#allocation2 + $0x4c] sm:$0x1] }
 0x1f0   : > { %2245 = vst [vmem:[#allocation2 + $0xb] sm:$0x1] %v2244_v22  ;;  %2116 = vrot.lane.b32.xlu1 %v22874_v42, %s16771_s17  ;;  %v2247_v17 = vsel %vm17422_vm6, %v2051_v11, %v2246_v15  ;;  %v2270_v59 = vld [vmem:[#allocation2 + $0x1c] sm:$0x1]  ;;  %v1961_v15 = vld [vmem:[#allocation2 + $0x4d] sm:$0x1] }
 0x1f1   : > { %2248 = vst [vmem:[#allocation2 + $0xc] sm:$0x1] %v2247_v17  ;;  %2118 = vrot.lane.b32.xlu0 %v22885_v56, %s16771_s17 }
 0x1f2   : > { %v2053_v54 = vpop.permute.xlu1 %2052 }
 0x1f3   : > { %v2250_v27 = vsel %vm17422_vm6, %v2053_v54, %v2249_v24  ;;  %v1293_v36 = vpop.permute.xlu0 %1292  ;;  %v2273_v3 = vld [vmem:[#allocation2 + $0x1d] sm:$0x1]  ;;  %v1567_v54 = vld [vmem:[#allocation2 + $0x42] sm:$0x1] }
 0x1f4   : > { %2251 = vst [vmem:[#allocation2 + $0xd] sm:$0x1] %v2250_v27  ;;  %2120 = vrot.lane.b32.xlu1 %v22886_v8, %s16771_s17  ;;  %v1496_v42 = vsel %vm17422_vm6, %v1293_v36, %v1495_v6  ;;  %v1504_v8 = vld [vmem:[#allocation2 + $0x15] sm:$0x1]  ;;  %v1570_v36 = vld [vmem:[#allocation2 + $0x43] sm:$0x1] }
 0x1f5   : > { %1497 = vst [vmem:[#allocation2 + $0x12] sm:$0x1] %v1496_v42  ;;  %1352 = vrot.lane.b32.xlu0 %v16949_v23, %s16770_s16 }
 0x1f6   : > { %v1295_v47 = vpop.permute.xlu1 %1294 }
 0x1f7   : > { %v1499_v56 = vsel %vm17422_vm6, %v1295_v47, %v1498_v2  ;;  %v1297_v32 = vpop.permute.xlu0 %1296  ;;  %v16772_v2 = vmov 1935823168  }
 0x1f8   : > { %1500 = vst [vmem:[#allocation2 + $0x13] sm:$0x1] %v1499_v56  ;;  %1354 = vrot.lane.b32.xlu1 %v16968_v33, %s16770_s16  ;;  %v1502_v41 = vsel %vm17422_vm6, %v1297_v32, %v1501_v40  ;;  %v3155_v47 = vunpack.c.l.s4 %v16772_v2  ;;  %v1573_v40 = vld [vmem:[#allocation2 + $0x44] sm:$0x1] }
 0x1f9   : > { %1503 = vst [vmem:[#allocation2 + $0x14] sm:$0x1] %v1502_v41  ;;  %1356 = vrot.lane.b32.xlu0 %v17051_v46, %s16770_s16 }
 0x1fa   : > { %v1299_v16 = vpop.permute.xlu1 %1298 }
 0x1fb   : > { %v1505_v29 = vsel %vm17422_vm6, %v1299_v16, %v1504_v8  ;;  %v2063_v34 = vpop.permute.xlu0 %2062  ;;  %v1576_v8 = vld [vmem:[#allocation2 + $0x45] sm:$0x1] }
 0x1fc   : > { %1506 = vst [vmem:[#allocation2 + $0x15] sm:$0x1] %v1505_v29  ;;  %1358 = vrot.lane.b32.xlu1 %v17074_v48, %s16770_s16  ;;  %v2265_v35 = vsel %vm17422_vm6, %v2063_v34, %v2264_v4  ;;  %v1976_v29 = vld [vmem:[#allocation2 + $0x5a] sm:$0x1]  ;;  %v2931_v4 = vld [vmem:[#allocation2 + $0x23] sm:$0x1]  ;;  %v3156_v34 = vunpack.c.0.s8 %v3155_v47 }
 0x1fd   : > { %2266 = vst [vmem:[#allocation2 + $0x1a] sm:$0x1] %v2265_v35  ;;  %1360 = vrot.lane.b32.xlu0 %v22875_v0, %s16770_s16 }
 0x1fe   : > { %v2065_v38 = vpop.permute.xlu1 %2064 }
 0x1ff   : > { %v2268_v62 = vsel %vm17422_vm6, %v2065_v38, %v2267_v37  ;;  %v2067_v63 = vpop.permute.xlu0 %2066  ;;  %v1979_v38 = vld [vmem:[#allocation2 + $0x5b] sm:$0x1] }
 0x200   : > { %2269 = vst [vmem:[#allocation2 + $0x1b] sm:$0x1] %v2268_v62  ;;  %1362 = vrot.lane.b32.xlu1 %v22876_v60, %s16770_s16  ;;  %v2271_v28 = vsel %vm17422_vm6, %v2067_v63, %v2270_v59  ;;  %v2929_v62 = vld [vmem:[#allocation2 + $0x21] sm:$0x1]  ;;  %v2930_v59 = vld [vmem:[#allocation2 + $0x22] sm:$0x1] }
 0x201   : > { %2272 = vst [vmem:[#allocation2 + $0x1c] sm:$0x1] %v2271_v28  ;;  %1364 = vrot.lane.b32.xlu0 %v17166_v50, %s16770_s16  ;;  %v3345_v28 = vcombine.low %v2929_v62, %v2931_v4  ;;  %v1919_v4 = vld [vmem:[#allocation2 + $0x2f] sm:$0x1]  ;;  %v2955_v62 = vld [vmem:[#allocation2 + $0x3b] sm:$0x1] }
 0x202   : > { %v2069_v52 = vpop.permute.xlu1 %2068 }
 0x203   : > { %v2274_v26 = vsel %vm17422_vm6, %v2069_v52, %v2273_v3  ;;  %v1726_v21 = vpop.permute.xlu0 %1725  ;;  %v1982_v52 = vld [vmem:[#allocation2 + $0x5c] sm:$0x1] }
 0x204   : > { %2275 = vst [vmem:[#allocation2 + $0x1d] sm:$0x1] %v2274_v26  ;;  %1366 = vrot.lane.b32.xlu1 %v17184_v43, %s16770_s16  ;;  %v1953_v44 = vsel %vm16964_vm4, %v1726_v21, %v1952_v49  ;;  %v2928_v49 = vld [vmem:[#allocation2 + $0x20] sm:$0x1]  ;;  %v22887_v26 = vld [vmem:[#allocation5_spill] sm:$0xff] }
 0x205   : > { %1954 = vst [vmem:[#allocation2 + $0x4a] sm:$0x1] %v1953_v44  ;;  %1753 = vrot.lane.b32.xlu0 %v17162_v55, %s16769_s15  ;;  %v17774_v21 = vsub.s32 %v3156_v34, %v22887_v26  ;;  %v3344_v44 = vcombine.low %v2928_v49, %v2930_v59  ;;  %v2953_v49 = vld [vmem:[#allocation2 + $0x39] sm:$0x1]  ;;  %v2954_v26 = vld [vmem:[#allocation2 + $0x3a] sm:$0x1] }
 0x206   : > { %v1728_v25 = vpop.permute.xlu1 %1727 }
 0x207   : > { %v1956_v10 = vsel %vm16964_vm4, %v1728_v25, %v1955_v18  ;;  %v1730_v22 = vpop.permute.xlu0 %1729  ;;  %v2939_v25 = vld [vmem:[#allocation2 + $0x2b] sm:$0x1] }
 0x208   : > { %1957 = vst [vmem:[#allocation2 + $0x4b] sm:$0x1] %v1956_v10  ;;  %1755 = vrot.lane.b32.xlu1 %v17186_v57, %s16769_s15  ;;  %v1959_v11 = vsel %vm16964_vm4, %v1730_v22, %v1958_v20  ;;  %v1985_v10 = vld [vmem:[#allocation2 + $0x5d] sm:$0x1] }
 0x209   : > { %1960 = vst [vmem:[#allocation2 + $0x4c] sm:$0x1] %v1959_v11  ;;  %1757 = vrot.lane.b32.xlu0 %v17171_v61, %s16769_s15  ;;  %v2938_v11 = vld [vmem:[#allocation2 + $0x2a] sm:$0x1] }
 0x20a   : > { %v1732_v17 = vpop.permute.xlu1 %1731 }
 0x20b   : > { %v1962_v24 = vsel %vm16964_vm4, %v1732_v17, %v1961_v15  ;;  %v1341_v27 = vpop.permute.xlu0 %1340  ;;  %v2937_v15 = vld [vmem:[#allocation2 + $0x29] sm:$0x1] }
 0x20c   : > { %1963 = vst [vmem:[#allocation2 + $0x4d] sm:$0x1] %v1962_v24  ;;  %1759 = vrot.lane.b32.xlu1 %v17194_v12, %s16769_s15  ;;  %v1568_v6 = vsel %vm17422_vm6, %v1341_v27, %v1567_v54  ;;  %v1916_v24 = vld [vmem:[#allocation2 + $0x2e] sm:$0x1]  ;;  %v3393_v54 = vcombine.low %v2937_v15, %v2939_v25  ;;  %v2952_v25 = vld [vmem:[#allocation2 + $0x38] sm:$0x1] }
 0x20d   : > { %1569 = vst [vmem:[#allocation2 + $0x42] sm:$0x1] %v1568_v6  ;;  %1761 = vrot.lane.b32.xlu0 %v17196_v31, %s16769_s15  ;;  %v2936_v6 = vld [vmem:[#allocation2 + $0x28] sm:$0x1]  ;;  %v1534_v15 = vld [vmem:[#allocation2 + $0x27] sm:$0x1] }
 0x20e   : > { %v1343_v42 = vpop.permute.xlu1 %1342 }
 0x20f   : > { %v1571_v56 = vsel %vm17422_vm6, %v1343_v42, %v1570_v36  ;;  %v1345_v32 = vpop.permute.xlu0 %1344  ;;  %v3392_v42 = vcombine.low %v2936_v6, %v2938_v11  ;;  %v2907_v6 = vld [vmem:[#allocation2 + $0xb] sm:$0x1] }
 0x210   : > { %1572 = vst [vmem:[#allocation2 + $0x43] sm:$0x1] %v1571_v56  ;;  %1763 = vrot.lane.b32.xlu1 %v17214_v13, %s16769_s15  ;;  %v1574_v41 = vsel %vm17422_vm6, %v1345_v32, %v1573_v40  ;;  %v2947_v56 = vld [vmem:[#allocation2 + $0x33] sm:$0x1]  ;;  %v3407_v32 = vrot.slane %v3393_v54, %v17774_v21  ;;  %v3488_v54 = vcombine.low %v2952_v25, %v2954_v26  ;;  %v2921_v25 = vld [vmem:[#allocation2 + $0x19] sm:$0x1] }
 0x211   : > { %1575 = vst [vmem:[#allocation2 + $0x44] sm:$0x1] %v1574_v41  ;;  %1765 = vrot.lane.b32.xlu0 %v17216_v7, %s16769_s15 }
 0x212   : > { %v1347_v16 = vpop.permute.xlu1 %1346 }
 0x213   : > { %v1577_v35 = vsel %vm17422_vm6, %v1347_v16, %v1576_v8  ;;  %v1742_v37 = vpop.permute.xlu0 %1741  ;;  %v2945_v8 = vld [vmem:[#allocation2 + $0x31] sm:$0x1]  ;;  %v2946_v16 = vld [vmem:[#allocation2 + $0x32] sm:$0x1] }
 0x214   : > { %1578 = vst [vmem:[#allocation2 + $0x45] sm:$0x1] %v1577_v35  ;;  %1767 = vrot.lane.b32.xlu1 %v17234_v5, %s16769_s15  ;;  %v1977_v63 = vsel %vm16964_vm4, %v1742_v37, %v1976_v29  ;;  %v3441_v34 = vcombine.low %v2945_v8, %v2947_v56  ;;  %v3400_v35 = vrot.slane %v3392_v42, %v17774_v21 }
 0x215   : > { %1978 = vst [vmem:[#allocation2 + $0x5a] sm:$0x1] %v1977_v63  ;;  %2122 = vrot.lane.b32.xlu0 %v16949_v23, %s16771_s17  ;;  %v3359_v23 = vrot.slane %v3345_v28, %v17774_v21  ;;  %v1940_v63 = vld [vmem:[#allocation2 + $0x3e] sm:$0x1] }
 0x216   : > { %v1744_v3 = vpop.permute.xlu1 %1743 }
 0x217   : > { %v1980_v18 = vsel %vm16964_vm4, %v1744_v3, %v1979_v38  ;;  %v1746_v20 = vpop.permute.xlu0 %1745  ;;  %v2944_v38 = vld [vmem:[#allocation2 + $0x30] sm:$0x1] }
 0x218   : > { %1981 = vst [vmem:[#allocation2 + $0x5b] sm:$0x1] %v1980_v18  ;;  %2124 = vrot.lane.b32.xlu1 %v16968_v33, %s16771_s17  ;;  %v1983_v22 = vsel %vm16964_vm4, %v1746_v20, %v1982_v52  ;;  %v3352_v33 = vrot.slane %v3344_v44, %v17774_v21  ;;  %v3440_v28 = vcombine.low %v2944_v38, %v2946_v16  ;;  %v2899_v52 = vld [vmem:[#allocation2 + $0x3] sm:$0x1]  ;;  %v2905_v16 = vld [vmem:[#allocation2 + $0x9] sm:$0x1] }
 0x219   : > { %1984 = vst [vmem:[#allocation2 + $0x5c] sm:$0x1] %v1983_v22  ;;  %2126 = vrot.lane.b32.xlu0 %v17051_v46, %s16771_s17  ;;  %v2333_v46 = vld [vmem:[#allocation2 + $0x49] sm:$0x1]  ;;  %v3455_v44 = vrot.slane %v3441_v34, %v17774_v21  ;;  %v3489_v20 = vcombine.low %v2953_v49, %v2955_v62  ;;  %v2898_v22 = vld [vmem:[#allocation2 + $0x2] sm:$0x1]  ;;  %v3201_v38 = vcombine.low %v2905_v16, %v2907_v6 }
 0x21a   : > { %v1748_v17 = vpop.permute.xlu1 %1747  ;;  %v3360_v47 = vcombine.low %v3352_v33, %v3359_v23  ;;  %v2896_v33 = vld [vmem:[#allocation2] sm:$0x1]  ;;  %v2923_v62 = vld [vmem:[#allocation2 + $0x1b] sm:$0x1] }
 0x21b   : > { %v1986_v27 = vsel %vm16964_vm4, %v1748_v17, %v1985_v10  ;;  %v1702_v36 = vpop.permute.xlu0 %1701  ;;  %v2897_v10 = vld [vmem:[#allocation2 + $0x1] sm:$0x1] }
 0x21c   : > { %1987 = vst [vmem:[#allocation2 + $0x5d] sm:$0x1] %v1986_v27  ;;  %2128 = vrot.lane.b32.xlu1 %v17074_v48, %s16771_s17  ;;  %v1917_v2 = vsel %vm16964_vm4, %v1702_v36, %v1916_v24  ;;  %v1531_v48 = vld [vmem:[#allocation2 + $0x26] sm:$0x1]  ;;  %v17803_v37 = vrot.slane %v3360_v47, %v17774_v21  ;;  %v3153_v17 = vcombine.low %v2897_v10, %v2899_v52  ;;  %v2904_v52 = vld [vmem:[#allocation2 + $0x8] sm:$0x1] }
 0x21d   : > { %1918 = vst [vmem:[#allocation2 + $0x2e] sm:$0x1] %v1917_v2  ;;  %2130 = vrot.lane.b32.xlu0 %v22875_v0, %s16771_s17  ;;  %v1943_v2 = vld [vmem:[#allocation2 + $0x3f] sm:$0x1]  ;;  %v3152_v47 = vcombine.low %v2896_v33, %v2898_v22  ;;  %v2963_v10 = vld [vmem:[#allocation2 + $0x43] sm:$0x1] }
 0x21e   : > { %v2109_v40 = vpop.permute.xlu1 %2108  ;;  %v3989_v23 = vshrl.u32 %v17803_v37, 16  ;;  %v17833_v34 = vrot.slane %v3153_v17, %v17774_v21  ;;  %v2961_v17 = vld [vmem:[#allocation2 + $0x41] sm:$0x1] }
 0x21f   : > { %v2334_v41 = vsel %vm17422_vm6, %v2109_v40, %v2333_v46  ;;  %v1317_v29 = vpop.permute.xlu0 %1316  ;;  %v2913_v46 = vld [vmem:[#allocation2 + $0x11] sm:$0x1]  ;;  %v2915_v40 = vld [vmem:[#allocation2 + $0x13] sm:$0x1]  ;;  %v3160_v26 = vrot.slane %v3152_v47, %v17774_v21  ;;  %v2933_v47 = vld [vmem:[#allocation2 + $0x25] sm:$0x1] }
 0x220   : > { %2335 = vst [vmem:[#allocation2 + $0x49] sm:$0x1] %v2334_v41  ;;  %2132 = vrot.lane.b32.xlu1 %v22876_v60, %s16771_s17  ;;  %v1532_v0 = vsel %vm17422_vm6, %v1317_v29, %v1531_v48  ;;  %v3408_v60 = vcombine.low %v3400_v35, %v3407_v32  ;;  %v3503_v32 = vrot.slane %v3489_v20, %v17774_v21  ;;  %v17828_v8 = vrot.slane %v3989_v23, 7  ;;  %v2906_v48 = vld [vmem:[#allocation2 + $0xa] sm:$0x1] }
 0x221   : > { %1533 = vst [vmem:[#allocation2 + $0x26] sm:$0x1] %v1532_v0  ;;  %2134 = vrot.lane.b32.xlu0 %v17166_v50, %s16771_s17  ;;  %v2914_v35 = vld [vmem:[#allocation2 + $0x12] sm:$0x1]  ;;  %v2922_v20 = vld [vmem:[#allocation2 + $0x1a] sm:$0x1] }
 0x222   : > { %v1704_v59 = vpop.permute.xlu1 %1703  ;;  %v17819_v24 = vrot.slane %v3408_v60, %v17774_v21  ;;  %v2912_v60 = vld [vmem:[#allocation2 + $0x10] sm:$0x1]  ;;  %v3995_v33 = vrot.slane %v17828_v8, 4 }
 0x223   : > { %v1920_v3 = vsel %vm16964_vm4, %v1704_v59, %v1919_v4  ;;  %v1718_v18 = vpop.permute.xlu0 %1717  ;;  %v1555_v4 = vld [vmem:[#allocation2 + $0x36] sm:$0x1]  ;;  %v3496_v59 = vrot.slane %v3488_v54, %v17774_v21  ;;  %v3248_v23 = vcombine.low %v2912_v60, %v2914_v35  ;;  %v1558_v60 = vld [vmem:[#allocation2 + $0x37] sm:$0x1] }
 0x224   : > { %1921 = vst [vmem:[#allocation2 + $0x2f] sm:$0x1] %v1920_v3  ;;  %2136 = vrot.lane.b32.xlu1 %v17184_v43, %s16771_s17  ;;  %v1941_v50 = vsel %vm16964_vm4, %v1718_v18, %v1940_v63  ;;  %v3448_v43 = vrot.slane %v3440_v28, %v17774_v21  ;;  %v2300_v36 = vld [vmem:[#allocation2 + $0x2e] sm:$0x1]  ;;  %v4006_v0 = vshrl.u32 %v17819_v24, 16  ;;  %v3992_v28 = vshll.u32 %v17803_v37, 16 }
 0x225   : > { %1942 = vst [vmem:[#allocation2 + $0x3e] sm:$0x1] %v1941_v50  ;;  %1368 = vrot.lane.b32.xlu0 %v17162_v55, %s16770_s16  ;;  %v3249_v3 = vcombine.low %v2913_v46, %v2915_v40  ;;  %v3504_v50 = vcombine.low %v3496_v59, %v3503_v32  ;;  %v3256_v59 = vrot.slane %v3248_v23, %v17774_v21 }
 0x226   : > { %v1319_v11 = vpop.permute.xlu1 %1318  ;;  %v3456_v56 = vcombine.low %v3448_v43, %v3455_v44  ;;  %v3200_v44 = vcombine.low %v2904_v52, %v2906_v48  ;;  %v17849_v22 = vor.u32 %v3992_v28, %v17828_v8  ;;  %v17855_v6 = vrot.slane %v4006_v0, 7  ;;  %v2960_v0 = vld [vmem:[#allocation2 + $0x40] sm:$0x1]  ;;  %v1868_v52 = vld [vmem:[#allocation2 + $0xe] sm:$0x1] }
 0x227   : > { %v1535_v27 = vsel %vm17422_vm6, %v1319_v11, %v1534_v15  ;;  %v2087_v42 = vpop.permute.xlu0 %2086  ;;  %v2920_v15 = vld [vmem:[#allocation2 + $0x18] sm:$0x1]  ;;  %v3297_v11 = vcombine.low %v2921_v25, %v2923_v62  ;;  %v3263_v40 = vrot.slane %v3249_v3, %v17774_v21  ;;  %v17866_v35 = vrot.slane %v3504_v50, %v17774_v21  ;;  %v2932_v62 = vld [vmem:[#allocation2 + $0x24] sm:$0x1] }
 0x228   : > { %1536 = vst [vmem:[#allocation2 + $0x27] sm:$0x1] %v1535_v27  ;;  %1370 = vrot.lane.b32.xlu1 %v17186_v57, %s16770_s16  ;;  %v2301_v41 = vsel %vm17422_vm6, %v2087_v42, %v2300_v36  ;;  %v17844_v18 = vrot.slane %v3456_v56, %v17774_v21  ;;  %v3168_v27 = vcombine.low %v3160_v26, %v17833_v34  ;;  %v2962_v42 = vld [vmem:[#allocation2 + $0x42] sm:$0x1]  ;;  %v2934_v56 = vld [vmem:[#allocation2 + $0x26] sm:$0x1] }
 0x229   : > { %2302 = vst [vmem:[#allocation2 + $0x2e] sm:$0x1] %v2301_v41  ;;  %1372 = vrot.lane.b32.xlu0 %v17171_v61, %s16770_s16  ;;  %v3215_v36 = vrot.slane %v3201_v38, %v17774_v21  ;;  %v3296_v32 = vcombine.low %v2920_v15, %v2922_v20  ;;  %v3537_v41 = vcombine.low %v2961_v17, %v2963_v10 }
 0x22a   : > { %v1720_v29 = vpop.permute.xlu1 %1719  ;;  %v3208_v34 = vrot.slane %v3200_v44, %v17774_v21  ;;  %v3536_v28 = vcombine.low %v2960_v0, %v2962_v42  ;;  %v3368_v26 = vcombine.low %v2932_v62, %v2934_v56  ;;  %v4009_v44 = vshll.u32 %v17819_v24, 16  ;;  %v1483_v62 = vld [vmem:[#allocation2 + $0x6] sm:$0x1] }
 0x22b   : > { %v1944_v63 = vsel %vm16964_vm4, %v1720_v29, %v1943_v2  ;;  %v1333_v49 = vpop.permute.xlu0 %1332  ;;  %v2303_v43 = vld [vmem:[#allocation2 + $0x2f] sm:$0x1]  ;;  %v3264_v50 = vcombine.low %v3256_v59, %v3263_v40  ;;  %v3304_v10 = vrot.slane %v3296_v32, %v17774_v21  ;;  %v3551_v23 = vrot.slane %v3537_v41, %v17774_v21  ;;  %v2941_v41 = vld [vmem:[#allocation2 + $0x2d] sm:$0x1] }
 0x22c   : > { %1945 = vst [vmem:[#allocation2 + $0x3f] sm:$0x1] %v1944_v63  ;;  %1374 = vrot.lane.b32.xlu1 %v17194_v12, %s16770_s16  ;;  %v1556_v37 = vsel %vm17422_vm6, %v1333_v49, %v1555_v4  ;;  %v2324_v16 = vld [vmem:[#allocation2 + $0x3e] sm:$0x1]  ;;  %v4023_v4 = vshrl.u32 %v17844_v18, 16  ;;  %v3311_v63 = vrot.slane %v3297_v11, %v17774_v21  ;;  %v17875_v49 = vrot.slane %v3168_v27, %v17774_v21 }
 0x22d   : > { %1557 = vst [vmem:[#allocation2 + $0x36] sm:$0x1] %v1556_v37  ;;  %1376 = vrot.lane.b32.xlu0 %v17196_v31, %s16770_s16  ;;  %v3216_v25 = vcombine.low %v3208_v34, %v3215_v36  ;;  %v17888_v24 = vor.u32 %v4009_v44, %v17855_v6  ;;  %v2940_v36 = vld [vmem:[#allocation2 + $0x2c] sm:$0x1]  ;;  %v4012_v42 = vrot.slane %v17855_v6, 4  ;;  %v4026_v40 = vshll.u32 %v17844_v18, 16 }
 0x22e   : > { %v2089_v54 = vpop.permute.xlu1 %2088  ;;  %v17885_v17 = vrot.slane %v4023_v4, 7  ;;  %v3312_v27 = vcombine.low %v3304_v10, %v3311_v63  ;;  %v17906_v4 = vrot.slane %v3264_v50, %v17774_v21  ;;  %v1871_v18 = vld [vmem:[#allocation2 + $0xf] sm:$0x1] }
 0x22f   : > { %v2304_v2 = vsel %vm17422_vm6, %v2089_v54, %v2303_v43  ;;  %v2935_v46 = vld [vmem:[#allocation2 + $0x27] sm:$0x1]  ;;  %v2103_v48 = vpop.permute.xlu0 %2102  ;;  %v4040_v43 = vshrl.u32 %v17866_v35, 16  ;;  %v17900_v32 = vrot.slane %v3216_v25, %v17774_v21  ;;  %v4043_v25 = vshll.u32 %v17866_v35, 16 }
 0x230   : > { %2305 = vst [vmem:[#allocation2 + $0x2f] sm:$0x1] %v2304_v2  ;;  %1378 = vrot.lane.b32.xlu1 %v17214_v13, %s16770_s16  ;;  %v3369_v29 = vcombine.low %v2933_v47, %v2935_v46  ;;  %v2325_v38 = vsel %vm17422_vm6, %v2103_v48, %v2324_v16  ;;  %v2942_v37 = vld [vmem:[#allocation2 + $0x2e] sm:$0x1]  ;;  %v3544_v2 = vrot.slane %v3536_v28, %v17774_v21  ;;  %v3955_v35 = vshrl.u32 %v17906_v4, 16 }
 0x231   : > { %2326 = vst [vmem:[#allocation2 + $0x3e] sm:$0x1] %v2325_v38  ;;  %1380 = vrot.lane.b32.xlu0 %v17216_v7, %s16770_s16  ;;  %v3376_v46 = vrot.slane %v3368_v26, %v17774_v21  ;;  %v3416_v16 = vcombine.low %v2940_v36, %v2942_v37  ;;  %v17911_v63 = vor.u32 %v4026_v40, %v17885_v17  ;;  %v3938_v10 = vshrl.u32 %v17900_v32, 16 }
 0x232   : > { %v1335_v3 = vpop.permute.xlu1 %1334  ;;  %v3383_v11 = vrot.slane %v3369_v29, %v17774_v21  ;;  %v3921_v29 = vshrl.u32 %v17875_v49, 16  ;;  %v17919_v44 = vrot.slane %v3312_v27, %v17774_v21  ;;  %v3924_v40 = vshll.u32 %v17875_v49, 16  ;;  %v2957_v49 = vld [vmem:[#allocation2 + $0x3d] sm:$0x1] }
 0x233   : > { %v1559_v20 = vsel %vm17422_vm6, %v1335_v3, %v1558_v60  ;;  %v1670_v15 = vpop.permute.xlu0 %1669  ;;  %v2327_v47 = vld [vmem:[#allocation2 + $0x3f] sm:$0x1]  ;;  %v17913_v60 = vrot.slane %v4040_v43, 7  ;;  %v3424_v37 = vrot.slane %v3416_v16, %v17774_v21  ;;  %v2949_v43 = vld [vmem:[#allocation2 + $0x35] sm:$0x1] }
 0x234   : > { %1560 = vst [vmem:[#allocation2 + $0x37] sm:$0x1] %v1559_v20  ;;  %1382 = vrot.lane.b32.xlu1 %v17234_v5, %s16770_s16  ;;  %v1869_v54 = vsel %vm16964_vm4, %v1670_v15, %v1868_v52  ;;  %v2950_v34 = vld [vmem:[#allocation2 + $0x36] sm:$0x1]  ;;  %v3384_v59 = vcombine.low %v3376_v46, %v3383_v11  ;;  %v2948_v52 = vld [vmem:[#allocation2 + $0x34] sm:$0x1] }
 0x235   : > { %1870 = vst [vmem:[#allocation2 + $0xe] sm:$0x1] %v1869_v54  ;;  %2138 = vrot.lane.b32.xlu0 %v17162_v55, %s16771_s17  ;;  %v3552_v55 = vcombine.low %v3544_v2, %v3551_v23  ;;  %v1892_v20 = vld [vmem:[#allocation2 + $0x1e] sm:$0x1]  ;;  %v3464_v50 = vcombine.low %v2948_v52, %v2950_v34  ;;  %v17929_v11 = vrot.slane %v3921_v29, 7 }
 0x236   : > { %v2105_v56 = vpop.permute.xlu1 %2104  ;;  %v17938_v36 = vrot.slane %v3384_v59, %v17774_v21 }
 0x237   : > { %v2328_v48 = vsel %vm17422_vm6, %v2105_v56, %v2327_v47  ;;  %v2943_v0 = vld [vmem:[#allocation2 + $0x2f] sm:$0x1]  ;;  %v1285_v38 = vpop.permute.xlu0 %1284  ;;  %v17941_v56 = vor.u32 %v4043_v25, %v17913_v60  ;;  %v3472_v29 = vrot.slane %v3464_v50, %v17774_v21  ;;  %v1895_v25 = vld [vmem:[#allocation2 + $0x1f] sm:$0x1]  ;;  %v3941_v50 = vshll.u32 %v17900_v32, 16 }
 0x238   : > { %2329 = vst [vmem:[#allocation2 + $0x3f] sm:$0x1] %v2328_v48  ;;  %2140 = vrot.lane.b32.xlu1 %v17186_v57, %s16771_s17  ;;  %v3417_v28 = vcombine.low %v2941_v41, %v2943_v0  ;;  %v1484_v3 = vsel %vm17422_vm6, %v1285_v38, %v1483_v62  ;;  %v3972_v41 = vshrl.u32 %v17919_v44, 16  ;;  %v1486_v48 = vld [vmem:[#allocation2 + $0x7] sm:$0x1]  ;;  %v17952_v0 = vrot.slane %v3938_v10, 7 }
 0x239   : > { %1485 = vst [vmem:[#allocation2 + $0x6] sm:$0x1] %v1484_v3  ;;  %2142 = vrot.lane.b32.xlu0 %v17171_v61, %s16771_s17  ;;  %v17933_v61 = vrot.slane %v3552_v55, %v17774_v21  ;;  %v17960_v62 = vor.u32 %v3924_v40, %v17929_v11 }
 0x23a   : > { %v1672_v57 = vpop.permute.xlu1 %1671  ;;  %v3431_v23 = vrot.slane %v3417_v28, %v17774_v21 }
 0x23b   : > { %v1872_v15 = vsel %vm16964_vm4, %v1672_v57, %v1871_v18  ;;  %v2951_v54 = vld [vmem:[#allocation2 + $0x37] sm:$0x1]  ;;  %v1686_v27 = vpop.permute.xlu0 %1685  ;;  %v17962_v18 = vrot.slane %v3955_v35, 7  ;;  %v4057_v28 = vshrl.u32 %v17933_v61, 16  ;;  %v3997_v57 = vshrl.u32 %v17938_v36, 16 }
 0x23c   : > { %1873 = vst [vmem:[#allocation2 + $0xf] sm:$0x1] %v1872_v15  ;;  %2144 = vrot.lane.b32.xlu1 %v17194_v12, %s16771_s17  ;;  %v3465_v2 = vcombine.low %v2949_v43, %v2951_v54  ;;  %v3432_v47 = vcombine.low %v3424_v37, %v3431_v23  ;;  %v1893_v46 = vsel %vm16964_vm4, %v1686_v27, %v1892_v20  ;;  %v2252_v3 = vld [vmem:[#allocation2 + $0xe] sm:$0x1]  ;;  %v3958_v23 = vshll.u32 %v17906_v4, 16 }
 0x23d   : > { %1894 = vst [vmem:[#allocation2 + $0x1e] sm:$0x1] %v1893_v46  ;;  %2146 = vrot.lane.b32.xlu0 %v17196_v31, %s16771_s17  ;;  %v2958_v31 = vld [vmem:[#allocation2 + $0x3e] sm:$0x1]  ;;  %v17972_v15 = vrot.slane %v3972_v41, 7  ;;  %v17983_v27 = vor.u32 %v3941_v50, %v17952_v0 }
 0x23e   : > { %v1287_v12 = vpop.permute.xlu1 %1286  ;;  %v3479_v34 = vrot.slane %v3465_v2, %v17774_v21  ;;  %v17955_v55 = vrot.slane %v3432_v47, %v17774_v21  ;;  %v2956_v43 = vld [vmem:[#allocation2 + $0x3c] sm:$0x1]  ;;  %v17988_v46 = vor.u32 %v3958_v23, %v17962_v18  ;;  %v1507_v41 = vld [vmem:[#allocation2 + $0x16] sm:$0x1] }
 0x23f   : > { %v1487_v38 = vsel %vm17422_vm6, %v1287_v12, %v1486_v48  ;;  %v2959_v59 = vld [vmem:[#allocation2 + $0x3f] sm:$0x1]  ;;  %v2055_v52 = vpop.permute.xlu0 %2054  ;;  %v3512_v4 = vcombine.low %v2956_v43, %v2958_v31  ;;  %v17995_v48 = vrot.slane %v3997_v57, 7  ;;  %v2900_v31 = vld [vmem:[#allocation2 + $0x4] sm:$0x1]  ;;  %v4000_v57 = vshll.u32 %v17938_v36, 16 }
 0x240   : > { %1488 = vst [vmem:[#allocation2 + $0x7] sm:$0x1] %v1487_v38  ;;  %2148 = vrot.lane.b32.xlu1 %v17214_v13, %s16771_s17  ;;  %v3480_v20 = vcombine.low %v3472_v29, %v3479_v34  ;;  %v3513_v10 = vcombine.low %v2957_v49, %v2959_v59  ;;  %v2253_v37 = vsel %vm17422_vm6, %v2055_v52, %v2252_v3  ;;  %v4014_v35 = vshrl.u32 %v17955_v55, 16  ;;  %v2902_v47 = vld [vmem:[#allocation2 + $0x6] sm:$0x1] }
 0x241   : > { %2254 = vst [vmem:[#allocation2 + $0xe] sm:$0x1] %v2253_v37  ;;  %2150 = vrot.lane.b32.xlu0 %v17216_v7, %s16771_s17  ;;  %v17991_v7 = vrot.slane %v4057_v28, 7  ;;  %v3975_v34 = vshll.u32 %v17919_v44, 16  ;;  %v4060_v28 = vshll.u32 %v17933_v61, 16  ;;  %v3520_v50 = vrot.slane %v3512_v4, %v17774_v21 }
 0x242   : > { %v1688_v13 = vpop.permute.xlu1 %1687  ;;  %v17980_v32 = vrot.slane %v3480_v20, %v17774_v21  ;;  %v3527_v49 = vrot.slane %v3513_v10, %v17774_v21  ;;  %v18007_v59 = vrot.slane %v4014_v35, 7  ;;  %v2901_v52 = vld [vmem:[#allocation2 + $0x5] sm:$0x1]  ;;  %v4017_v35 = vshll.u32 %v17955_v55, 16  ;;  %v2426_v55 = vld [vmem:[%s18003_s21] sm:$0xf] }
 0x243   : > { %v1896_v2 = vsel %vm16964_vm4, %v1688_v13, %v1895_v25  ;;  %v1301_v12 = vpop.permute.xlu0 %1300  ;;  %v2255_v44 = vld [vmem:[#allocation2 + $0xf] sm:$0x1]  ;;  %v3176_v25 = vcombine.low %v2900_v31, %v2902_v47  ;;  %v18019_v23 = vor.u32 %v3975_v34, %v17972_v15  ;;  %v22888_v4 = vmov 0  ;;  %v1510_v34 = vld [vmem:[#allocation2 + $0x17] sm:$0x1] }
 0x244   : > { %1897 = vst [vmem:[#allocation2 + $0x1f] sm:$0x1] %v1896_v2  ;;  %2152 = vrot.lane.b32.xlu1 %v17234_v5, %s16771_s17  ;;  %v1508_v38 = vsel %vm17422_vm6, %v1301_v12, %v1507_v41  ;;  %v4031_v20 = vshrl.u32 %v17980_v32, 16  ;;  %v2276_v37 = vld [vmem:[#allocation2 + $0x1e] sm:$0x1]  ;;  %v22889_v4 = vsel %vm18027_vm8, 4294967295, %v22888_v4  ;;  %v4002_v2 = vor.u32 %v4000_v57, %v17995_v48 }
 0x245   : > { %1509 = vst [vmem:[#allocation2 + $0x16] sm:$0x1] %v1508_v38  ;;  %1384 = vrot.lane.b32.xlu0 %v17231_v19, %s16770_s16  ;;  %22890 = vst [vmem:[#allocation6_spill] sm:$0xff] %v22889_v4  ;;  %v3528_v47 = vcombine.low %v3520_v50, %v3527_v49  ;;  %v342_v41 = vld [vmem:[#allocation3 + $0xc] sm:$0x1]  ;;  %v4019_v31 = vor.u32 %v4017_v35, %v18007_v59  ;;  %v3184_v57 = vrot.slane %v3176_v25, %v17774_v21 }
 0x246   : > { %v2057_v3 = vpop.permute.xlu1 %2056  ;;  %v2464_v43 = vshll.u32 %v2426_v55, 16  ;;  %v354_v25 = vld [vmem:[#allocation3 + $0x3c] sm:$0x1]  ;;  %v18061_v5 = vld [vmem:[%s18003_s21 + $0x20] sm:$0xf] }
 0x247   : > { %v2256_v10 = vsel %vm17422_vm6, %v2057_v3, %v2255_v44  ;;  %v2903_v61 = vld [vmem:[#allocation2 + $0x7] sm:$0x1]  ;;  %v2071_v13 = vpop.permute.xlu0 %2070  ;;  %v2461_v3 = vshrl.u32 %v2426_v55, 16  ;;  %v18073_v55 = vrot.slane %v3528_v47, %v17774_v21  ;;  %v2532_v29 = vshll.u32 %v18061_v5, 16 }
 0x248   : > { %2257 = vst [vmem:[#allocation2 + $0xf] sm:$0x1] %v2256_v10  ;;  %1386 = vrot.lane.b32.xlu1 %v17246_v45, %s16770_s16  ;;  %v3177_v36 = vcombine.low %v2901_v52, %v2903_v61  ;;  %v2277_v12 = vsel %vm17422_vm6, %v2071_v13, %v2276_v37  ;;  %v1964_v52 = vld [vmem:[#allocation2 + $0x4e] sm:$0x1]  ;;  %v18047_v10 = vrot.slane %v4031_v20, 7  ;;  %v343_v61 = vsel %vm18039_vm10, 0, %v342_v41 }
 0x249   : > { %2278 = vst [vmem:[#allocation2 + $0x1e] sm:$0x1] %v2277_v12  ;;  %1388 = vrot.lane.b32.xlu0 %v17238_v58, %s16770_s16  ;;  %v18049_v37 = vld [vmem:[#allocation2 + $0xe] sm:$0x1]  ;;  %v18056_v13 = vor.u32 %v4060_v28, %v17991_v7  ;;  %344 = vst [vmem:[#allocation3 + $0xc] sm:$0x1] %v343_v61  ;;  %v18069_v41 = vsel %vm18027_vm8, %v3995_v33, %v4002_v2  ;;  %v18087_v33 = vsel %vm18027_vm8, %v4012_v42, %v4019_v31 }
 0x24a   : > { %v1303_v49 = vpop.permute.xlu1 %1302  ;;  %v3191_v50 = vrot.slane %v3177_v36, %v17774_v21  ;;  %v18058_v12 = vrot.slane %v2461_v3, 7  ;;  %v4034_v28 = vshll.u32 %v17980_v32, 16  ;;  %v22893_v3 = vmov 0  ;;  %v2909_v2 = vld [vmem:[#allocation2 + $0xd] sm:$0x1] }
 0x24b   : > { %v1511_v35 = vsel %vm17422_vm6, %v1303_v49, %v1510_v34  ;;  %v1734_v20 = vpop.permute.xlu0 %1733  ;;  %v2908_v34 = vld [vmem:[#allocation2 + $0xc] sm:$0x1]  ;;  %v22894_v3 = vsel %vm18077_vm11, 4294967295, %v22893_v3  ;;  %v410_v49 = vld [vmem:[#allocation3 + $0x44] sm:$0x1]  ;;  %v355_v42 = vsel %vm18039_vm10, 0, %v354_v25 }
 0x24c   : > { %1512 = vst [vmem:[#allocation2 + $0x17] sm:$0x1] %v1511_v35  ;;  %1390 = vrot.lane.b32.xlu1 %v17255_v53, %s16770_s16  ;;  %v3192_v36 = vcombine.low %v3184_v57, %v3191_v50  ;;  %22895 = vst [vmem:[#allocation7_spill] sm:$0xff] %v22894_v3  ;;  %v1965_v8 = vsel %vm16964_vm4, %v1734_v20, %v1964_v52  ;;  %v2279_v57 = vld [vmem:[#allocation2 + $0x1f] sm:$0x1]  ;;  %v18093_v52 = vor.u32 %v4034_v28, %v18047_v10 }
 0x24d   : > { %1966 = vst [vmem:[#allocation2 + $0x4e] sm:$0x1] %v1965_v8  ;;  %1392 = vrot.lane.b32.xlu0 %v17268_v51, %s16770_s16  ;;  %v1579_v50 = vld [vmem:[#allocation2 + $0x46] sm:$0x1]  ;;  %v2918_v61 = vld [vmem:[#allocation2 + $0x16] sm:$0x1]  ;;  %v3224_v6 = vcombine.low %v2908_v34, %v18049_v37  ;;  %v2466_v32 = vor.u32 %v2464_v43, %v18058_v12 }
 0x24e   : > { %v2073_v47 = vpop.permute.xlu1 %2072  ;;  %v2529_v31 = vshrl.u32 %v18061_v5, 16  ;;  %v18100_v35 = vld [vmem:[%s18003_s21 + $0x24] sm:$0xf]  ;;  %356 = vst [vmem:[#allocation3 + $0x3c] sm:$0x1] %v355_v42  ;;  %v411_v28 = vsel %vm18077_vm11, 0, %v410_v49  ;;  %v18111_v40 = vrot.slane %v3192_v36, %v17774_v21 }
 0x24f   : > { %v2280_v20 = vsel %vm17422_vm6, %v2073_v47, %v2279_v57  ;;  %v2911_v8 = vld [vmem:[#allocation2 + $0xf] sm:$0x1]  ;;  %v360_v37 = vld [vmem:[#allocation3 + $0x54] sm:$0x1]  ;;  %v1349_v34 = vpop.permute.xlu0 %1348  ;;  %v4048_v42 = vshrl.u32 %v18073_v55, 16  ;;  %v3232_v43 = vrot.slane %v3224_v6, %v17774_v21 }
 0x250   : > { %2281 = vst [vmem:[#allocation2 + $0x1f] sm:$0x1] %v2280_v20  ;;  %1394 = vrot.lane.b32.xlu1 %v17286_v9, %s16770_s16  ;;  %v1967_v25 = vld [vmem:[#allocation2 + $0x4f] sm:$0x1]  ;;  %v2916_v57 = vld [vmem:[#allocation2 + $0x14] sm:$0x1]  ;;  %v3225_v47 = vcombine.low %v2909_v2, %v2911_v8  ;;  %v1580_v49 = vsel %vm17422_vm6, %v1349_v34, %v1579_v50 }
 0x251   : > { %412 = vst [vmem:[#allocation3 + $0x44] sm:$0x1] %v411_v28  ;;  %v1988_v20 = vld [vmem:[#allocation2 + $0x5e] sm:$0x1]  ;;  %v2917_v36 = vld [vmem:[#allocation2 + $0x15] sm:$0x1]  ;;  %v3272_v16 = vcombine.low %v2916_v57, %v2918_v61  ;;  %1396 = vrot.lane.b32.xlu0 %v17270_v39, %s16770_s16 }
 0x252   : > { %v18123_v54 = vrot.slane %v2529_v31, 7  ;;  %v2537_v2 = vshrl.u32 %v18100_v35, 16  ;;  %1581 = vst [vmem:[#allocation2 + $0x46] sm:$0x1] %v1580_v49  ;;  %v1736_v8 = vpop.permute.xlu1 %1735  ;;  %v3239_v26 = vrot.slane %v3225_v47, %v17774_v21  ;;  %v2783_v38 = vld [vmem:[#allocation3 + $0xc] sm:$0xf] }
 0x253   : > { %v361_v50 = vsel %vm18039_vm10, 0, %v360_v37  ;;  %v2438_v61 = vld [vmem:[%s18003_s21 + $0x30] sm:$0xf]  ;;  %v1968_v31 = vsel %vm16964_vm4, %v1736_v8, %v1967_v25  ;;  %v2919_v34 = vld [vmem:[#allocation2 + $0x17] sm:$0x1]  ;;  %v2784_v49 = vsel %vm18117_vm13, %v2466_v32, %v2783_v38  ;;  %v1750_v47 = vpop.permute.xlu0 %1749  ;;  %v3929_v28 = vshrl.u32 %v18111_v40, 16 }
 0x254   : > { %v2926_v57 = vld [vmem:[#allocation2 + $0x1e] sm:$0x1]  ;;  %v2534_v9 = vor.u32 %v2532_v29, %v18123_v54  ;;  %v18139_v6 = vrot.slane %v2537_v2, 7  ;;  %362 = vst [vmem:[#allocation3 + $0x54] sm:$0x1] %v361_v50  ;;  %1398 = vrot.lane.b32.xlu1 %v17288_v14, %s16770_s16  ;;  %v3273_v53 = vcombine.low %v2917_v36, %v2919_v34  ;;  %v3240_v25 = vcombine.low %v3232_v43, %v3239_v26 }
 0x255   : > { %1969 = vst [vmem:[#allocation2 + $0x4f] sm:$0x1] %v1968_v31  ;;  %v1582_v37 = vld [vmem:[#allocation2 + $0x47] sm:$0x1]  ;;  %v18144_v8 = vrot.slane %v4048_v42, 7  ;;  %v1989_v29 = vsel %vm16964_vm4, %v1750_v47, %v1988_v20  ;;  %v3280_v38 = vrot.slane %v3272_v16, %v17774_v21  ;;  %v2563_v31 = vshrl.u32 %v2438_v61, 16  ;;  %4192 = vrot.lane.b32.xlu0 %v17960_v62, %s16773_s22 }
 0x256   : > { %2785 = vst [vmem:[#allocation3 + $0xc] sm:$0xf] %v2784_v49  ;;  %v398_v39 = vld [vmem:[#allocation3 + $0x14] sm:$0x1]  ;;  %v2924_v32 = vld [vmem:[#allocation2 + $0x1c] sm:$0x1]  ;;  %v1351_v26 = vpop.permute.xlu1 %1350  ;;  %v3287_v42 = vrot.slane %v3273_v53, %v17774_v21  ;;  %v18154_v36 = vrot.slane %v3240_v25, %v17774_v21 }
 0x257   : > { %v2925_v2 = vld [vmem:[#allocation2 + $0x1d] sm:$0x1]  ;;  %v2544_v50 = vrot.slane %v18139_v6, 4  ;;  %1990 = vst [vmem:[#allocation2 + $0x5e] sm:$0x1] %v1989_v29  ;;  %v3320_v20 = vcombine.low %v2924_v32, %v2926_v57  ;;  %v2566_v16 = vshll.u32 %v2438_v61, 16  ;;  %v1583_v47 = vsel %vm17422_vm6, %v1351_v26, %v1582_v37  ;;  %v2107_v25 = vpop.permute.xlu0 %2106 }
 0x258   : > { %v2330_v43 = vld [vmem:[#allocation2 + $0x48] sm:$0x1]  ;;  %v2812_v34 = vld [vmem:[#allocation3 + $0x3c] sm:$0xf]  ;;  %v18157_v49 = vld [vmem:[%s18003_s21 + $0x4] sm:$0xf]  ;;  %4216 = vrot.lane.b32.xlu1 %v17849_v22, %s16773_s22  ;;  %v3288_v32 = vcombine.low %v3280_v38, %v3287_v42 }
 0x259   : > { %v2927_v29 = vld [vmem:[#allocation2 + $0x1f] sm:$0x1]  ;;  %v2813_v14 = vsel %vm18117_vm13, %v2534_v9, %v2812_v34  ;;  %v2816_v62 = vld [vmem:[#allocation3 + $0x44] sm:$0x1]  ;;  %v18163_v45 = vrot.slane %v2563_v31, 7  ;;  %v399_v53 = vsel %vm18077_vm11, 0, %v398_v39  ;;  %v2331_v31 = vsel %vm17422_vm6, %v2107_v25, %v2330_v43 }
 0x25a   : > { %1584 = vst [vmem:[#allocation2 + $0x47] sm:$0x1] %v1583_v47  ;;  %v1991_v61 = vld [vmem:[#allocation2 + $0x5f] sm:$0x1]  ;;  %v3931_v57 = vrot.slane %v3929_v28, 7  ;;  %v3946_v37 = vshrl.u32 %v18154_v36, 16  ;;  %v3321_v26 = vcombine.low %v2925_v2, %v2927_v29  ;;  %v2817_v39 = vsel %vm16964_vm4, %v2544_v50, %v2816_v62  ;;  %v1752_v38 = vpop.permute.xlu1 %1751 }
 0x25b   : > { %2814 = vst [vmem:[#allocation3 + $0x3c] sm:$0xf] %v2813_v14  ;;  %400 = vst [vmem:[#allocation3 + $0x14] sm:$0x1] %v399_v53  ;;  %v348_v9 = vld [vmem:[#allocation3 + $0x24] sm:$0x1]  ;;  %v2568_v34 = vor.u32 %v2566_v16, %v18163_v45  ;;  %v18180_v14 = vrot.slane %v3288_v32, %v17774_v21  ;;  %v3328_v43 = vrot.slane %v3320_v20, %v17774_v21  ;;  %v2111_v20 = vpop.permute.xlu0 %2110 }
 0x25c   : > { %v2469_v22 = vshrl.u32 %v18157_v49, 16  ;;  %2332 = vst [vmem:[#allocation2 + $0x48] sm:$0x1] %v2331_v31  ;;  %v22898_v28 = vrot.slane %v17995_v48, 4  ;;  %v3932_v2 = vshll.u32 %v18111_v40, 16  ;;  %v3335_v50 = vrot.slane %v3321_v26, %v17774_v21  ;;  %4228 = vrot.lane.b32.xlu1 %v17911_v63, %s16773_s22 }
 0x25d   : > { %2818 = vst [vmem:[#allocation3 + $0x44] sm:$0x1] %v2817_v39  ;;  %v2826_v42 = vld [vmem:[#allocation3 + $0x54] sm:$0xf]  ;;  %v1992_v16 = vsel %vm16964_vm4, %v1752_v38, %v1991_v61  ;;  %v2966_v47 = vld [vmem:[#allocation2 + $0x46] sm:$0x1] }
 0x25e   : > { %4220 = vrot.lane.b32.xlu0 %v22898_v28, %s16773_s22  ;;  %v2827_v48 = vsel %vm18117_vm13, %v2568_v34, %v2826_v42  ;;  %v18189_v29 = vrot.slane %v2469_v22, 7  ;;  %v349_v62 = vsel %vm18039_vm10, 0, %v348_v9  ;;  %v18194_v53 = vld [vmem:[%s18003_s21 + $0x10] sm:$0xf]  ;;  %1993 = vst [vmem:[#allocation2 + $0x5f] sm:$0x1] %v1992_v16  ;;  %v3934_v26 = vor.u32 %v3932_v2, %v3931_v57  ;;  %v2113_v42 = vpop.permute.xlu1 %2112 }
 0x25f   : > { %v2336_v40 = vld [vmem:[#allocation2 + $0x4a] sm:$0x1]  ;;  %v2339_v25 = vld [vmem:[#allocation2 + $0x4b] sm:$0x1]  ;;  %v3936_v32 = vrot.slane %v3931_v57, 4  ;;  %v3963_v61 = vshrl.u32 %v18180_v14, 16  ;;  %v3336_v22 = vcombine.low %v3328_v43, %v3335_v50 }
 0x260   : > { %v22899_v31 = vshll.u32 %v18073_v55, 16  ;;  %2828 = vst [vmem:[#allocation3 + $0x54] sm:$0xf] %v2827_v48  ;;  %350 = vst [vmem:[#allocation3 + $0x24] sm:$0x1] %v349_v62  ;;  %v2337_v9 = vsel %vm17422_vm6, %v2111_v20, %v2336_v40  ;;  %v18204_v34 = vrot.slane %v3946_v37, 7  ;;  %v2340_v37 = vsel %vm17422_vm6, %v2113_v42, %v2339_v25  ;;  %4204 = vrot.lane.b32.xlu1 %v17988_v46, %s16773_s22 }
 0x261   : > { %v2964_v28 = vld [vmem:[#allocation2 + $0x44] sm:$0x1]  ;;  %v2965_v38 = vld [vmem:[#allocation2 + $0x45] sm:$0x1]  ;;  %v2476_v63 = vrot.slane %v18189_v29, 4  ;;  %v18208_v57 = vrot.slane %v3963_v61, 7  ;;  %v2115_v61 = vpop.permute.xlu0 %2114 }
 0x262   : > { %v4053_v39 = vor.u32 %v22899_v31, %v18144_v8  ;;  %2338 = vst [vmem:[#allocation2 + $0x4a] sm:$0x1] %v2337_v9  ;;  %4196 = vrot.lane.b32.xlu0 %v3936_v32, %s16773_s22  ;;  %v3560_v55 = vcombine.low %v2964_v28, %v2966_v47  ;;  %v4055_v2 = vrot.slane %v18144_v8, 4  ;;  %v2495_v16 = vshrl.u32 %v18194_v53, 16  ;;  %v404_v48 = vld [vmem:[#allocation3 + $0x2c] sm:$0x1] }
 0x263   : > { %v22900_v43 = vrot.slane %v17885_v17, 4  ;;  %v3949_v62 = vshll.u32 %v18154_v36, 16  ;;  %v2967_v40 = vld [vmem:[#allocation2 + $0x47] sm:$0x1]  ;;  %v2788_v47 = vld [vmem:[#allocation3 + $0x14] sm:$0x1]  ;;  %v18227_v17 = vrot.slane %v3336_v22, %v17774_v21 }
 0x264   : > { %v2498_v20 = vshll.u32 %v18194_v53, 16  ;;  %2341 = vst [vmem:[#allocation2 + $0x4b] sm:$0x1] %v2340_v37  ;;  %v2342_v32 = vld [vmem:[#allocation2 + $0x4c] sm:$0x1]  ;;  %v3970_v25 = vrot.slane %v18208_v57, 4  ;;  %v3561_v31 = vcombine.low %v2965_v38, %v2967_v40  ;;  %v3568_v37 = vrot.slane %v3560_v55, %v17774_v21 }
 0x265   : > { %v18219_v50 = vsel %vm18027_vm8, %v22900_v43, %v18093_v52  ;;  %v2789_v52 = vsel %vm16964_vm4, %v2476_v63, %v2788_v47  ;;  %v18232_v36 = vld [vmem:[%s18003_s21 + $0x14] sm:$0xf]  ;;  %v2343_v53 = vsel %vm17422_vm6, %v2115_v61, %v2342_v32  ;;  %v22901_v9 = vrot.slane %v17929_v11, 4  ;;  %v2345_v38 = vld [vmem:[#allocation2 + $0x4d] sm:$0x1]  ;;  %v2117_v63 = vpop.permute.xlu1 %2116  ;;  %v2119_v55 = vpop.permute.xlu0 %2118 }
 0x266   : > { %v3951_v46 = vor.u32 %v3949_v62, %v18204_v34  ;;  %v22902_v42 = vrot.slane %v17913_v60, 4  ;;  %2790 = vst [vmem:[#allocation3 + $0x14] sm:$0x1] %v2789_v52  ;;  %2344 = vst [vmem:[#allocation2 + $0x4c] sm:$0x1] %v2343_v53  ;;  %4208 = vrot.lane.b32.xlu0 %v3970_v25, %s16773_s22  ;;  %v3575_v11 = vrot.slane %v3561_v31, %v17774_v21  ;;  %v18250_v43 = vrot.slane %v2495_v16, 7 }
 0x267   : > { %v3935_v28 = vsel %vm18027_vm8, %v22901_v9, %v3934_v26  ;;  %v405_v26 = vsel %vm18077_vm11, 0, %v404_v48  ;;  %v2346_v60 = vsel %vm17422_vm6, %v2117_v63, %v2345_v38  ;;  %v3966_v62 = vshll.u32 %v18180_v14, 16  ;;  %v2968_v61 = vld [vmem:[#allocation2 + $0x48] sm:$0x1]  ;;  %v2798_v25 = vld [vmem:[#allocation3 + $0x24] sm:$0xf] }
 0x268   : > { %v18245_v22 = vsel %vm18027_vm8, %v22902_v42, %v4053_v39  ;;  %v2348_v39 = vld [vmem:[#allocation2 + $0x4e] sm:$0x1]  ;;  %v3953_v40 = vrot.slane %v18204_v34, 4  ;;  %406 = vst [vmem:[#allocation3 + $0x2c] sm:$0x1] %v405_v26  ;;  %v2503_v47 = vshrl.u32 %v18232_v36, 16  ;;  %4194 = vrot.lane.b32.xlu1 %v3935_v28, %s16773_s22  ;;  %v3576_v32 = vcombine.low %v3568_v37, %v3575_v11 }
 0x269   : > { %2347 = vst [vmem:[#allocation2 + $0x4d] sm:$0x1] %v2346_v60  ;;  %v3980_v16 = vshrl.u32 %v18227_v17, 16  ;;  %v2500_v48 = vor.u32 %v2498_v20, %v18250_v43  ;;  %v2472_v31 = vshll.u32 %v18157_v49, 16  ;;  %v2349_v14 = vsel %vm17422_vm6, %v2119_v55, %v2348_v39  ;;  %v2970_v9 = vld [vmem:[#allocation2 + $0x4a] sm:$0x1]  ;;  %v2121_v38 = vpop.permute.xlu1 %2120 }
 0x26a   : > { %v22903_v52 = vrot.slane %v17952_v0, 4  ;;  %v18271_v28 = vrot.slane %v2503_v47, 7  ;;  %v2467_v42 = vrot.slane %v18058_v12, 4  ;;  %v18277_v20 = vld [vmem:[%s22620_s4 + $0x2] sm:$0x3]  ;;  %4218 = vrot.lane.b32.xlu0 %v18069_v41, %s16773_s22  ;;  %v18282_v0 = vrot.slane %v3576_v32, %v17774_v21 }
 0x26b   : > { %2350 = vst [vmem:[#allocation2 + $0x4e] sm:$0x1] %v2349_v14  ;;  %v2351_v49 = vld [vmem:[#allocation2 + $0x4f] sm:$0x1]  ;;  %v3584_v63 = vcombine.low %v2968_v61, %v2970_v9  ;;  %v2799_v12 = vsel %vm18117_vm13, %v2500_v48, %v2798_v25  ;;  %v2474_v37 = vor.u32 %v2472_v31, %v18189_v29  ;;  %v357_v11 = vld [vmem:[#allocation3 + $0x48] sm:$0x1]  ;;  %v3968_v60 = vor.u32 %v3966_v62, %v18208_v57  ;;  %v1353_v61 = vpop.permute.xlu0 %1352 }
 0x26c   : > { %v18269_v53 = vsel %vm18027_vm8, %v22903_v52, %v3951_v46  ;;  %v2969_v46 = vld [vmem:[#allocation2 + $0x49] sm:$0x1]  ;;  %v2352_v26 = vsel %vm17422_vm6, %v2121_v38, %v2351_v49  ;;  %v3983_v39 = vshll.u32 %v18227_v17, 16  ;;  %v2971_v47 = vld [vmem:[#allocation2 + $0x4b] sm:$0x1]  ;;  %v2510_v41 = vrot.slane %v18271_v28, 4  ;;  %16595 = vmatprep.subr.msk.bf16.mxu1 %vm613_vm0, %v18277_v20  ;;  %4222 = vrot.lane.b32.xlu1 %v17888_v24, %s16773_s22 }
 0x26d   : > { %2800 = vst [vmem:[#allocation3 + $0x24] sm:$0xf] %v2799_v12  ;;  %v2436_v55 = vld [vmem:[%s18003_s21 + $0x28] sm:$0xf]  ;;  %2353 = vst [vmem:[#allocation2 + $0x4f] sm:$0x1] %v2352_v26  ;;  %v3585_v62 = vcombine.low %v2969_v46, %v2971_v47  ;;  %v2475_v31 = vsel %vm18027_vm8, %v2467_v42, %v2474_v37 }
 0x26e   : > { %v1585_v32 = vld [vmem:[#allocation2 + $0x50] sm:$0x1]  ;;  %v18297_v29 = vrot.slane %v3980_v16, 7  ;;  %v4065_v57 = vshrl.u32 %v18282_v0, 16  ;;  %v2535_v17 = vrot.slane %v18123_v54, 4  ;;  %v2540_v14 = vshll.u32 %v18100_v35, 16  ;;  %v1355_v16 = vpop.permute.xlu1 %1354  ;;  %4230 = vrot.lane.b32.xlu0 %v18219_v50, %s16773_s22 }
 0x26f   : > { %v1586_v48 = vsel %vm17422_vm6, %v1353_v61, %v1585_v32  ;;  %v1588_v25 = vld [vmem:[#allocation2 + $0x51] sm:$0x1]  ;;  %v358_v24 = vsel %vm18039_vm10, 0, %v357_v11  ;;  %v3592_v54 = vrot.slane %v3584_v63, %v17774_v21  ;;  %v3599_v52 = vrot.slane %v3585_v62, %v17774_v21  ;;  %v2802_v9 = vld [vmem:[#allocation3 + $0x2c] sm:$0x1]  ;;  %v1357_v11 = vpop.permute.xlu0 %1356 }
 0x270   : > { %1587 = vst [vmem:[#allocation2 + $0x50] sm:$0x1] %v1586_v48  ;;  %2787 = vst.msk [vmem:[#allocation3 + $0x10] sm:$0xf] %vm2781_vm12, %v2475_v31  ;;  %v2546_v49 = vshrl.u32 %v2436_v55, 16  ;;  %v2549_v42 = vshll.u32 %v2436_v55, 16  ;;  %v1589_v38 = vsel %vm17422_vm6, %v1355_v16, %v1588_v25  ;;  %v2803_v63 = vsel %vm16964_vm4, %v2510_v41, %v2802_v9  ;;  %4198 = vrot.lane.b32.xlu1 %v17983_v27, %s16773_s22 }
 0x271   : > { %359 = vst [vmem:[#allocation3 + $0x48] sm:$0x1] %v358_v24  ;;  %v2439_v35 = vld [vmem:[%s18003_s21 + $0x34] sm:$0xf]  ;;  %v1591_v46 = vld [vmem:[#allocation2 + $0x52] sm:$0x1]  ;;  %v2542_v37 = vor.u32 %v2540_v14, %v18139_v6  ;;  %v3985_v26 = vor.u32 %v3983_v39, %v18297_v29  ;;  %v3600_v55 = vcombine.low %v3592_v54, %v3599_v52 }
 0x272   : > { %v22904_v12 = vrot.slane %v17962_v18, 4  ;;  %1590 = vst [vmem:[#allocation2 + $0x51] sm:$0x1] %v1589_v38  ;;  %v18326_v47 = vrot.slane %v4065_v57, 7  ;;  %2804 = vst [vmem:[#allocation3 + $0x2c] sm:$0x1] %v2803_v63  ;;  %v1592_v41 = vsel %vm17422_vm6, %v1357_v11, %v1591_v46  ;;  %v1359_v57 = vpop.permute.xlu1 %1358 }
 0x273   : > { %v18328_v18 = vrot.slane %v2546_v49, 7  ;;  %v345_v32 = vld [vmem:[#allocation3 + $0x18] sm:$0x1]  ;;  %v2972_v61 = vld [vmem:[#allocation2 + $0x4c] sm:$0x1]  ;;  %v2543_v62 = vsel %vm18027_vm8, %v2535_v17, %v2542_v37  ;;  %v2571_v48 = vshrl.u32 %v2439_v35, 16  ;;  %v18356_v46 = vrot.slane %v3600_v55, %v17774_v21 }
 0x274   : > { %v3969_v50 = vsel %vm18027_vm8, %v22904_v12, %v3968_v60  ;;  %v2428_v60 = vld [vmem:[%s18003_s21 + $0x8] sm:$0xf]  ;;  %v2974_v6 = vld [vmem:[#allocation2 + $0x4e] sm:$0x1]  ;;  %v2574_v27 = vshll.u32 %v2439_v35, 16  ;;  %v4068_v25 = vshll.u32 %v18282_v0, 16  ;;  %v1361_v35 = vpop.permute.xlu0 %1360  ;;  %4210 = vrot.lane.b32.xlu1 %v18019_v23, %s16773_s22 }
 0x275   : > { %1593 = vst [vmem:[#allocation2 + $0x52] sm:$0x1] %v1592_v41  ;;  %v1594_v39 = vld [vmem:[#allocation2 + $0x53] sm:$0x1]  ;;  %4206 = vrot.lane.b32.xlu0 %v3969_v50, %s16773_s22  ;;  %v2973_v31 = vld [vmem:[#allocation2 + $0x4d] sm:$0x1]  ;;  %v3608_v14 = vcombine.low %v2972_v61, %v2974_v6  ;;  %v2551_v24 = vor.u32 %v2549_v42, %v18328_v18 }
 0x276   : > { %2815 = vst.msk [vmem:[#allocation3 + $0x40] sm:$0xf] %vm2781_vm12, %v2543_v62  ;;  %v2569_v16 = vrot.slane %v18163_v45, 4  ;;  %v1595_v17 = vsel %vm17422_vm6, %v1359_v57, %v1594_v39  ;;  %v2975_v54 = vld [vmem:[#allocation2 + $0x4f] sm:$0x1]  ;;  %v18342_v52 = vrot.slane %v2571_v48, 7  ;;  %v18361_v23 = vor.u32 %v4068_v25, %v18326_v47 }
 0x277   : > { %v346_v9 = vsel %vm18039_vm10, 0, %v345_v32  ;;  %v2478_v49 = vshrl.u32 %v2428_v60, 16  ;;  %1596 = vst [vmem:[#allocation2 + $0x53] sm:$0x1] %v1595_v17  ;;  %v1597_v0 = vld [vmem:[#allocation2 + $0x54] sm:$0x1]  ;;  %v3609_v12 = vcombine.low %v2973_v31, %v2975_v54  ;;  %v3616_v55 = vrot.slane %v3608_v14, %v17774_v21 }
 0x278   : > { %v22905_v42 = vrot.slane %v17972_v15, 4  ;;  %v3987_v38 = vrot.slane %v18297_v29, 4  ;;  %347 = vst [vmem:[#allocation3 + $0x18] sm:$0x1] %v346_v9  ;;  %v1598_v50 = vsel %vm17422_vm6, %v1361_v35, %v1597_v0  ;;  %v1600_v63 = vld [vmem:[#allocation2 + $0x55] sm:$0x1]  ;;  %v2576_v37 = vor.u32 %v2574_v27, %v18342_v52  ;;  %v1365_v25 = vpop.permute.xlu0 %1364 }
 0x279   : > { %v2819_v15 = vld [vmem:[#allocation3 + $0x48] sm:$0xf]  ;;  %v18364_v11 = vrot.slane %v2478_v49, 7  ;;  %1599 = vst [vmem:[#allocation2 + $0x54] sm:$0x1] %v1598_v50  ;;  %4224 = vrot.lane.b32.xlu0 %v18087_v33, %s16773_s22  ;;  %v3623_v32 = vrot.slane %v3609_v12, %v17774_v21  ;;  %v2481_v61 = vshll.u32 %v2428_v60, 16 }
 0x27a   : > { %v18352_v45 = vsel %vm18027_vm8, %v22905_v42, %v3985_v26  ;;  %v1363_v26 = vpop.permute.xlu1 %1362  ;;  %v2820_v41 = vsel %vm18117_vm13, %v2551_v24, %v2819_v15  ;;  %v351_v6 = vld [vmem:[#allocation3 + $0x30] sm:$0x1]  ;;  %v2432_v62 = vld [vmem:[%s18003_s21 + $0x18] sm:$0xf]  ;;  %v1603_v27 = vld [vmem:[#allocation2 + $0x56] sm:$0x1]  ;;  %v2577_v39 = vsel %vm18027_vm8, %v2569_v16, %v2576_v37 }
 0x27b   : > { %v1601_v48 = vsel %vm17422_vm6, %v1363_v26, %v1600_v63  ;;  %2821 = vst [vmem:[#allocation3 + $0x48] sm:$0xf] %v2820_v41  ;;  %v2501_v33 = vrot.slane %v18250_v43, 4  ;;  %v2506_v57 = vshll.u32 %v18232_v36, 16  ;;  %v22906_v60 = vrot.slane %v18007_v59, 4 }
 0x27c   : > { %1602 = vst [vmem:[#allocation2 + $0x55] sm:$0x1] %v1601_v48  ;;  %v1606_v31 = vld [vmem:[#allocation2 + $0x57] sm:$0x1]  ;;  %v1994_v14 = vld [vmem:[#allocation2 + $0x68] sm:$0x1]  ;;  %v3624_v54 = vcombine.low %v3616_v55, %v3623_v32  ;;  %v2483_v16 = vor.u32 %v2481_v61, %v18364_v11  ;;  %v1604_v36 = vsel %vm17422_vm6, %v1365_v25, %v1603_v27 }
 0x27d   : > { %4226 = vrot.lane.b32.xlu1 %v22906_v60, %s16773_s22  ;;  %v4072_v24 = vrot.slane %v18326_v47, 4  ;;  %v4074_v17 = vshrl.u32 %v18356_v46, 16  ;;  %2829 = vst.msk [vmem:[#allocation3 + $0x58] sm:$0xf] %vm2781_vm12, %v2577_v39  ;;  %v2437_v43 = vld [vmem:[%s18003_s21 + $0x2c] sm:$0xf]  ;;  %v2508_v59 = vor.u32 %v2506_v57, %v18271_v28  ;;  %4200 = vrot.lane.b32.xlu0 %v18269_v53, %s16773_s22 }
 0x27e   : > { %v2976_v9 = vld [vmem:[#allocation2 + $0x50] sm:$0x1]  ;;  %v2978_v49 = vld [vmem:[#allocation2 + $0x52] sm:$0x1]  ;;  %v352_v0 = vsel %vm18039_vm10, 0, %v351_v6  ;;  %v2512_v35 = vshrl.u32 %v2432_v62, 16  ;;  %v1367_v42 = vpop.permute.xlu1 %1366  ;;  %v18396_v50 = vrot.slane %v3624_v54, %v17774_v21  ;;  %v1754_v6 = vpop.permute.xlu0 %1753 }
 0x27f   : > { %1605 = vst [vmem:[#allocation2 + $0x56] sm:$0x1] %v1604_v36  ;;  %v4077_v12 = vshll.u32 %v18356_v46, 16  ;;  %v2977_v63 = vld [vmem:[#allocation2 + $0x51] sm:$0x1]  ;;  %v3632_v15 = vcombine.low %v2976_v9, %v2978_v49  ;;  %v2515_v37 = vshll.u32 %v2432_v62, 16  ;;  %v1607_v28 = vsel %vm17422_vm6, %v1367_v42, %v1606_v31 }
 0x280   : > { %353 = vst [vmem:[#allocation3 + $0x30] sm:$0x1] %v352_v0  ;;  %v413_v26 = vld [vmem:[#allocation3 + $0x50] sm:$0x1]  ;;  %v2979_v55 = vld [vmem:[#allocation2 + $0x53] sm:$0x1]  ;;  %v2509_v41 = vsel %vm18027_vm8, %v2501_v33, %v2508_v59  ;;  %v1995_v33 = vsel %vm16964_vm4, %v1754_v6, %v1994_v14 }
 0x281   : > { %v2791_v32 = vld [vmem:[#allocation3 + $0x18] sm:$0xf]  ;;  %v18402_v61 = vrot.slane %v2512_v35, 7  ;;  %v2554_v53 = vshrl.u32 %v2437_v43, 16  ;;  %1608 = vst [vmem:[#allocation2 + $0x57] sm:$0x1] %v1607_v28  ;;  %4202 = vrot.lane.b32.xlu1 %v3953_v40, %s16773_s22  ;;  %v3633_v39 = vcombine.low %v2977_v63, %v2979_v55  ;;  %v3640_v25 = vrot.slane %v3632_v15, %v17774_v21  ;;  %4212 = vrot.lane.b32.xlu0 %v18352_v45, %s16773_s22 }
 0x282   : > { %v1997_v48 = vld [vmem:[#allocation2 + $0x69] sm:$0x1]  ;;  %v18407_v62 = vrot.slane %v4074_v17, 7  ;;  %v4082_v27 = vshrl.u32 %v18396_v50, 16  ;;  %v2578_v57 = vrot.slane %v18342_v52, 4  ;;  %v2792_v34 = vsel %vm18117_vm13, %v2483_v16, %v2791_v32  ;;  %v1756_v60 = vpop.permute.xlu1 %1755  ;;  %v1758_v0 = vpop.permute.xlu0 %1757 }
 0x283   : > { %2801 = vst.msk [vmem:[#allocation3 + $0x28] sm:$0xf] %vm2781_vm12, %v2509_v41  ;;  %v18417_v40 = vrot.slane %v2554_v53, 7  ;;  %1996 = vst [vmem:[#allocation2 + $0x68] sm:$0x1] %v1995_v33  ;;  %v3647_v17 = vrot.slane %v3633_v39, %v17774_v21  ;;  %v2517_v54 = vor.u32 %v2515_v37, %v18402_v61  ;;  %v2557_v36 = vshll.u32 %v2437_v43, 16 }
 0x284   : > { %v2000_v31 = vld [vmem:[#allocation2 + $0x6a] sm:$0x1]  ;;  %2793 = vst [vmem:[#allocation3 + $0x18] sm:$0xf] %v2792_v34  ;;  %v414_v14 = vsel %vm18077_vm11, 0, %v413_v26  ;;  %v1998_v16 = vsel %vm16964_vm4, %v1756_v60, %v1997_v48  ;;  %v4085_v49 = vshll.u32 %v18396_v50, 16 }
 0x285   : > { %v2429_v9 = vld [vmem:[%s18003_s21 + $0xc] sm:$0xf]  ;;  %v2552_v59 = vrot.slane %v18328_v18, 4  ;;  %415 = vst [vmem:[#allocation3 + $0x50] sm:$0x1] %v414_v14  ;;  %v4988_v45 = vsel %vm613_vm0, %v18277_v20, 0  ;;  %4214 = vrot.lane.b32.xlu1 %v3987_v38, %s16773_s22  ;;  %v3648_v42 = vcombine.low %v3640_v25, %v3647_v17  ;;  %v2559_v15 = vor.u32 %v2557_v36, %v18417_v40 }
 0x286   : > { %1999 = vst [vmem:[#allocation2 + $0x69] sm:$0x1] %v1998_v16  ;;  %v2003_v43 = vld [vmem:[#allocation2 + $0x6b] sm:$0x1]  ;;  %v18435_v35 = vrot.slane %v4082_v27, 7  ;;  %v2561_v50 = vrot.slane %v18417_v40, 4  ;;  %15468 = vmatpush3.bf16.msra.mxu1 %v4988_v45  ;;  %v2001_v18 = vsel %vm16964_vm4, %v1758_v0, %v2000_v31  ;;  %v1760_v55 = vpop.permute.xlu1 %1759  ;;  %v1762_v34 = vpop.permute.xlu0 %1761  ;;  %v18468_v31 = vor.u32 %v4077_v12, %v18407_v62 }
 0x287   : > { %v2980_v63 = vld [vmem:[#allocation2 + $0x54] sm:$0x1]  ;;  %v22907_v20 = vrot.slane %v17991_v7, 4  ;;  %v2982_v38 = vld [vmem:[#allocation2 + $0x56] sm:$0x1]  ;;  %v2486_v26 = vshrl.u32 %v2429_v9, 16  ;;  %v18452_v53 = vrot.slane %v3648_v42, %v17774_v21  ;;  %v2004_v27 = vsel %vm16964_vm4, %v1760_v55, %v2003_v43 }
 0x288   : > { %v2805_v37 = vld [vmem:[#allocation3 + $0x30] sm:$0xf]  ;;  %v2489_v28 = vshll.u32 %v2429_v9, 16  ;;  %2002 = vst [vmem:[#allocation2 + $0x6a] sm:$0x1] %v2001_v18  ;;  %v22908_v32 = vrot.slane %v18047_v10, 4  ;;  %v3656_v6 = vcombine.low %v2980_v63, %v2982_v38  ;;  %v2560_v10 = vsel %vm18027_vm8, %v2552_v59, %v2559_v15 }
 0x289   : > { %v18446_v29 = vsel %vm18027_vm8, %v22907_v20, %v18361_v23  ;;  %v2006_v41 = vld [vmem:[#allocation2 + $0x6c] sm:$0x1]  ;;  %v2806_v7 = vsel %vm18117_vm13, %v2517_v54, %v2805_v37  ;;  %v2484_v23 = vrot.slane %v18364_v11, 4  ;;  %v401_v48 = vld [vmem:[#allocation3 + $0x20] sm:$0x1]  ;;  %v18461_v25 = vrot.slane %v2486_v26, 7  ;;  %4234 = vrot.lane.b32.xlu1 %v17941_v56, %s16773_s22 }
 0x28a   : > { %4232 = vrot.lane.b32.xlu0 %v22908_v32, %s16773_s22  ;;  %v2981_v39 = vld [vmem:[#allocation2 + $0x55] sm:$0x1]  ;;  %v2983_v33 = vld [vmem:[#allocation2 + $0x57] sm:$0x1]  ;;  %2807 = vst [vmem:[#allocation3 + $0x30] sm:$0xf] %v2806_v7  ;;  %v4087_v17 = vor.u32 %v4085_v49, %v18435_v35  ;;  %v2007_v14 = vsel %vm16964_vm4, %v1762_v34, %v2006_v41  ;;  %v1764_v46 = vpop.permute.xlu1 %1763  ;;  %v3664_v12 = vrot.slane %v3656_v6, %v17774_v21  ;;  %v1766_v37 = vpop.permute.xlu0 %1765 }
 0x28b   : > { %2005 = vst [vmem:[#allocation2 + $0x6b] sm:$0x1] %v2004_v27  ;;  %v2009_v11 = vld [vmem:[#allocation2 + $0x6d] sm:$0x1]  ;;  %v2012_v60 = vld [vmem:[#allocation2 + $0x6e] sm:$0x1]  ;;  %v3657_v36 = vcombine.low %v2981_v39, %v2983_v33  ;;  %v2491_v56 = vor.u32 %v2489_v28, %v18461_v25 }
 0x28c   : > { %v4091_v54 = vshrl.u32 %v18452_v53, 16  ;;  %2822 = vst.msk [vmem:[#allocation3 + $0x4c] sm:$0xf] %vm2781_vm12, %v2560_v10  ;;  %v4080_v9 = vrot.slane %v18407_v62, 4  ;;  %v18478_v16 = vld [vmem:[%s18003_s21 + $0x1c] sm:$0xf]  ;;  %v2010_v42 = vsel %vm16964_vm4, %v1764_v46, %v2009_v11  ;;  %v2013_v32 = vsel %vm16964_vm4, %v1766_v37, %v2012_v60 }
 0x28d   : > { %v407_v59 = vld [vmem:[#allocation3 + $0x38] sm:$0x1]  ;;  %2008 = vst [vmem:[#allocation2 + $0x6c] sm:$0x1] %v2007_v14  ;;  %v3671_v49 = vrot.slane %v3657_v36, %v17774_v21  ;;  %v4089_v45 = vrot.slane %v18435_v35, 4  ;;  %v16774_v43 = vmov 0   ;;  %v2492_v18 = vsel %vm18027_vm8, %v2484_v23, %v2491_v56  ;;  %4240 = vrot.lane.b32.xlu1 %v18056_v13, %s16773_s22 }
 0x28e   : > { %4236 = vrot.lane.b32.xlu0 %v18245_v22, %s16773_s22  ;;  %v2823_v0 = vld [vmem:[#allocation3 + $0x50] sm:$0x1]  ;;  %328 = vst.msk [vmem:[#allocation3] sm:$0xf] %vm22674_vm14, %v16774_v43  ;;  %329 = vst.msk [vmem:[#allocation3 + $0x4] sm:$0xf] %vm22674_vm14, %v16774_v43  ;;  %v18516_v40 = vsel %vm18027_vm8, %v4080_v9, %v4087_v17  ;;  %v1768_v23 = vpop.permute.xlu1 %1767  ;;  %v2123_v17 = vpop.permute.xlu0 %2122 }
 0x28f   : > { %331 = vst.msk [vmem:[#allocation3 + $0x8] sm:$0x1] %vm330_vm9, %v16774_v43  ;;  %335 = vst.msk [vmem:[#allocation3 + $0xd4] sm:$0x1] %vm330_vm9, %v16774_v43  ;;  %v402_v22 = vsel %vm18077_vm11, 0, %v401_v48  ;;  %v18501_v63 = vrot.slane %v4091_v54, 7  ;;  %v2824_v15 = vsel %vm16964_vm4, %v2561_v50, %v2823_v0  ;;  %v3672_v28 = vcombine.low %v3664_v12, %v3671_v49 }
 0x290   : > { %333 = vst.msk [vmem:[#allocation3 + $0xcc] sm:$0xf] %vm22674_vm14, %v16774_v43  ;;  %334 = vst.msk [vmem:[#allocation3 + $0xd0] sm:$0xf] %vm22674_vm14, %v16774_v43  ;;  %v416_v62 = vld [vmem:[#allocation3 + $0x5c] sm:$0x1] }
 0x291   : > { %449 = vst.msk [vmem:[#allocation4] sm:$0xf] %vm22674_vm14, %v16774_v43  ;;  %450 = vst.msk [vmem:[#allocation4 + $0x4] sm:$0xf] %vm22674_vm14, %v16774_v43  ;;  %v363_v20 = vld [vmem:[#allocation3 + $0x60] sm:$0x1]  ;;  %v3679_v48 = vrot.slane %v3672_v28, %v17774_v21  ;;  %4238 = vrot.lane.b32.xlu1 %v4055_v2, %s16773_s22 }
 0x292   : > { %451 = vst.msk [vmem:[#allocation4 + $0x8] sm:$0x1] %vm330_vm9, %v16774_v43  ;;  %455 = vst.msk [vmem:[#allocation4 + $0xd4] sm:$0x1] %vm330_vm9, %v16774_v43  ;;  %v18510_v38 = vld [vmem:[%s18003_s21 + $0x38] sm:$0xf]  ;;  %4242 = vrot.lane.b32.xlu0 %v18446_v29, %s16773_s22  ;;  %v2125_v8 = vpop.permute.xlu1 %2124 }
 0x293   : > { %453 = vst.msk [vmem:[#allocation4 + $0xcc] sm:$0xf] %vm22674_vm14, %v16774_v43  ;;  %454 = vst.msk [vmem:[#allocation4 + $0xd0] sm:$0xf] %vm22674_vm14, %v16774_v43  ;;  %v2015_v26 = vld [vmem:[#allocation2 + $0x6f] sm:$0x1] }
 0x294   : > { %403 = vst [vmem:[#allocation3 + $0x20] sm:$0x1] %v402_v22  ;;  %2011 = vst [vmem:[#allocation2 + $0x6d] sm:$0x1] %v2010_v42  ;;  %v4094_v50 = vshll.u32 %v18452_v53, 16  ;;  %v2493_v55 = vrot.slane %v18461_v25, 4  ;;  %v2016_v10 = vsel %vm16964_vm4, %v1768_v23, %v2015_v26 }
 0x295   : > { %2825 = vst [vmem:[#allocation3 + $0x50] sm:$0x1] %v2824_v15  ;;  %2794 = vst.msk [vmem:[#allocation3 + $0x1c] sm:$0xf] %vm2781_vm12, %v2492_v18  ;;  %v2520_v41 = vshrl.u32 %v18478_v16, 16  ;;  %v2523_v13 = vshll.u32 %v18478_v16, 16  ;;  %4246 = vrot.lane.b32.xlu1 %v18468_v31, %s16773_s22 }
 0x296   : > { %v408_v6 = vsel %vm18077_vm11, 0, %v407_v59  ;;  %v18528_v7 = vld [vmem:[%s18003_s21 + $0x3c] sm:$0xf]  ;;  %2014 = vst [vmem:[#allocation2 + $0x6e] sm:$0x1] %v2013_v32  ;;  %v417_v27 = vsel %vm18077_vm11, 0, %v416_v62  ;;  %4244 = vrot.lane.b32.xlu0 %v4072_v24, %s16773_s22  ;;  %vm18877_vm14 = vmand %vm4343_vm3, %vm337_vm2 }
 0x297   : > { %409 = vst [vmem:[#allocation3 + $0x38] sm:$0x1] %v408_v6  ;;  %v364_v39 = vsel %vm18039_vm10, 0, %v363_v20  ;;  %v2580_v33 = vshrl.u32 %v18510_v38, 16  ;;  %v2354_v34 = vld [vmem:[#allocation2 + $0x58] sm:$0x1] }
 0x298   : > { %v4097_v11 = vrot.slane %v18501_v63, 4  ;;  %v2518_v60 = vrot.slane %v18402_v61, 4  ;;  %v2522_v29 = vrot.slane %v2520_v41, 7  ;;  %418 = vst [vmem:[#allocation3 + $0x5c] sm:$0x1] %v417_v27  ;;  %v4099_v36 = vshrl.u32 %v3679_v48, 16 }
 0x299   : > { %365 = vst [vmem:[#allocation3 + $0x60] sm:$0x1] %v364_v39  ;;  %2017 = vst [vmem:[#allocation2 + $0x6f] sm:$0x1] %v2016_v10  ;;  %v2357_v54 = vld [vmem:[#allocation2 + $0x59] sm:$0x1]  ;;  %v2355_v61 = vsel %vm17422_vm6, %v2123_v17, %v2354_v34  ;;  %v4096_v10 = vor.u32 %v4094_v50, %v18501_v63 }
 0x29a   : > { %v18545_v14 = vrot.slane %v2580_v33, 7  ;;  %v2583_v9 = vshll.u32 %v18510_v38, 16  ;;  %v2588_v56 = vshrl.u32 %v18528_v7, 16  ;;  %v4102_v16 = vshll.u32 %v3679_v48, 16  ;;  %v339_v59 = vld [vmem:[#allocation3] sm:$0x1]  ;;  %v2127_v38 = vpop.permute.xlu0 %2126  ;;  %v2129_v33 = vpop.permute.xlu1 %2128  ;;  %4248 = vrot.lane.b32.xlu0 %v18516_v40, %s16773_s22 }
 0x29b   : > { %v395_v46 = vld [vmem:[#allocation3 + $0x8] sm:$0x1]  ;;  %v2525_v12 = vor.u32 %v2523_v13, %v2522_v29  ;;  %v2591_v49 = vshll.u32 %v18528_v7, 16  ;;  %2356 = vst [vmem:[#allocation2 + $0x58] sm:$0x1] %v2355_v61  ;;  %v18555_v2 = vrot.slane %v4099_v36, 7  ;;  %v2358_v42 = vsel %vm17422_vm6, %v2125_v8, %v2357_v54  ;;  %4252 = vrot.lane.b32.xlu1 %v4096_v10, %s16773_s22 }
 0x29c   : > { %v340_v0 = vsel %vm18039_vm10, 0, %v339_v59  ;;  %v396_v43 = vsel %vm18077_vm11, 0, %v395_v46  ;;  %v4454_v22 = vld [vmem:[#allocation3 + $0x4] sm:$0xf]  ;;  %v2527_v62 = vrot.slane %v2522_v29, 4  ;;  %v2585_v41 = vor.u32 %v2583_v9, %v18545_v14 }
 0x29d   : > { %v2360_v15 = vld [vmem:[#allocation2 + $0x5a] sm:$0x1]  ;;  %341 = vst [vmem:[#allocation3] sm:$0x1] %v340_v0  ;;  %397 = vst [vmem:[#allocation3 + $0x8] sm:$0x1] %v396_v43  ;;  %v2526_v18 = vsel %vm18027_vm8, %v2518_v60, %v2525_v12  ;;  %v4104_v26 = vor.u32 %v4102_v16, %v18555_v2 }
 0x29e   : > { %v4515_v47 = vshll.u32 %v4454_v22, 16  ;;  %v4519_v24 = vshrl.u32 %v4454_v22, 16  ;;  %v366_v20 = vld [vmem:[#allocation3 + $0x6c] sm:$0x1]  ;;  %2359 = vst [vmem:[#allocation2 + $0x59] sm:$0x1] %v2358_v42  ;;  %v2361_v7 = vsel %vm17422_vm6, %v2127_v38, %v2360_v15  ;;  %v2133_v63 = vpop.permute.xlu1 %2132 }
 0x29f   : > { %v2363_v37 = vld [vmem:[#allocation2 + $0x5b] sm:$0x1]  ;;  %v4106_v28 = vrot.slane %v18555_v2, 4  ;;  %v2795_v32 = vld [vmem:[#allocation3 + $0x20] sm:$0x1]  ;;  %v2586_v13 = vrot.slane %v18545_v14, 4  ;;  %v2131_v14 = vpop.permute.xlu0 %2130  ;;  %4250 = vrot.lane.b32.xlu1 %v4089_v45, %s16773_s22 }
 0x2a0   : > { %2808 = vst.msk [vmem:[#allocation3 + $0x34] sm:$0xf] %vm2781_vm12, %v2526_v18  ;;  %v2442_v6 = vld [vmem:[%s18003_s21 + $0x40] sm:$0xf]  ;;  %v18575_v23 = vrot.slane %v4515_v47, 5  ;;  %v4521_v48 = vrot.slane %v4519_v24, 4  ;;  %v2796_v31 = vsel %vm16964_vm4, %v2493_v55, %v2795_v32  ;;  %v2364_v17 = vsel %vm17422_vm6, %v2129_v33, %v2363_v37 }
 0x2a1   : > { %v2809_v27 = vld [vmem:[#allocation3 + $0x38] sm:$0x1]  ;;  %v18582_v39 = vld [vmem:[%s18003_s21 + $0x44] sm:$0xf]  ;;  %2362 = vst [vmem:[#allocation2 + $0x5a] sm:$0x1] %v2361_v7 }
 0x2a2   : > { %2797 = vst [vmem:[#allocation3 + $0x20] sm:$0x1] %v2796_v31  ;;  %v2810_v34 = vsel %vm16964_vm4, %v2527_v62, %v2809_v27  ;;  %v2830_v25 = vld [vmem:[#allocation3 + $0x5c] sm:$0x1]  ;;  %v2833_v60 = vld [vmem:[#allocation3 + $0x60] sm:$0xf]  ;;  %v4522_v40 = vor.u32 %v4521_v48, %v18575_v23  ;;  %v2137_v35 = vpop.permute.xlu1 %2136 }
 0x2a3   : > { %v18591_v29 = vrot.slane %v2588_v56, 7  ;;  %v367_v55 = vsel %vm18039_vm10, 0, %v366_v20  ;;  %2811 = vst [vmem:[#allocation3 + $0x38] sm:$0x1] %v2810_v34  ;;  %v2831_v53 = vsel %vm16964_vm4, %v2578_v57, %v2830_v25  ;;  %v2834_v50 = vsel %vm18117_vm13, %v2585_v41, %v2833_v60  ;;  %v419_v54 = vld [vmem:[#allocation3 + $0x68] sm:$0x1]  ;;  %v2135_v18 = vpop.permute.xlu0 %2134 }
 0x2a4   : > { %368 = vst [vmem:[#allocation3 + $0x6c] sm:$0x1] %v367_v55  ;;  %2365 = vst [vmem:[#allocation2 + $0x5b] sm:$0x1] %v2364_v17  ;;  %v2366_v36 = vld [vmem:[#allocation2 + $0x5c] sm:$0x1]  ;;  %v4105_v56 = vsel %vm18027_vm8, %v4097_v11, %v4104_v26 }
 0x2a5   : > { %v2369_v9 = vld [vmem:[#allocation2 + $0x5d] sm:$0x1]  ;;  %2832 = vst [vmem:[#allocation3 + $0x5c] sm:$0x1] %v2831_v53  ;;  %2835 = vst [vmem:[#allocation3 + $0x60] sm:$0xf] %v2834_v50  ;;  %v2593_v52 = vor.u32 %v2591_v49, %v18591_v29  ;;  %v2367_v16 = vsel %vm17422_vm6, %v2131_v14, %v2366_v36  ;;  %4254 = vrot.lane.b32.xlu0 %v4105_v56, %s16773_s22 }
 0x2a6   : > { %v2597_v57 = vshrl.u32 %v2442_v6, 16  ;;  %v2600_v61 = vshll.u32 %v2442_v6, 16  ;;  %v18612_v59 = vrot.slane %v4522_v40, 4  ;;  %v2605_v46 = vshrl.u32 %v18582_v39, 16  ;;  %v422_v8 = vld [vmem:[#allocation3 + $0x74] sm:$0x1] }
 0x2a7   : > { %v2608_v12 = vshll.u32 %v18582_v39, 16  ;;  %2368 = vst [vmem:[#allocation2 + $0x5c] sm:$0x1] %v2367_v16  ;;  %v4453_v11 = vld [vmem:[#allocation3] sm:$0xf]  ;;  %v2594_v49 = vsel %vm18027_vm8, %v2586_v13, %v2593_v52  ;;  %v420_v22 = vsel %vm18077_vm11, 0, %v419_v54  ;;  %v2370_v62 = vsel %vm17422_vm6, %v2133_v63, %v2369_v9  ;;  %v1369_v50 = vpop.permute.xlu0 %1368 }
 0x2a8   : > { %v4486_v0 = vld [vmem:[#allocation3 + $0x8] sm:$0x1]  ;;  %v2599_v43 = vrot.slane %v2597_v57, 7  ;;  %v2372_v42 = vld [vmem:[#allocation2 + $0x5e] sm:$0x1]  ;;  %v4506_v15 = vshrl.u32 %v4453_v11, 16 }
 0x2a9   : > { %v4509_v47 = vshll.u32 %v4453_v11, 16  ;;  %v4525_v24 = vshll.u32 %v4486_v0, 16  ;;  %2836 = vst.msk [vmem:[#allocation3 + $0x64] sm:$0xf] %vm2781_vm12, %v2594_v49  ;;  %421 = vst [vmem:[#allocation3 + $0x68] sm:$0x1] %v420_v22  ;;  %v2373_v6 = vsel %vm17422_vm6, %v2135_v18, %v2372_v42  ;;  %4256 = vrot.lane.b32.xlu0 %v4106_v28, %s16773_s22 }
 0x2aa   : > { %2371 = vst [vmem:[#allocation2 + $0x5d] sm:$0x1] %v2370_v62  ;;  %v2375_v20 = vld [vmem:[#allocation2 + $0x5f] sm:$0x1]  ;;  %v2984_v38 = vld [vmem:[#allocation2 + $0x58] sm:$0x1]  ;;  %v2602_v37 = vor.u32 %v2600_v61, %v2599_v43 }
 0x2ab   : > { %v2603_v26 = vrot.slane %v2599_v43, 4  ;;  %v18627_v32 = vrot.slane %v2605_v46, 7  ;;  %v423_v41 = vsel %vm18077_vm11, 0, %v422_v8  ;;  %v369_v13 = vld [vmem:[#allocation3 + $0x78] sm:$0x1]  ;;  %v4508_v48 = vrot.slane %v4506_v15, 4  ;;  %v1371_v46 = vpop.permute.xlu1 %1370  ;;  %v1373_v15 = vpop.permute.xlu0 %1372 }
 0x2ac   : > { %v2986_v7 = vld [vmem:[#allocation2 + $0x5a] sm:$0x1]  ;;  %v4511_v31 = vrot.slane %v4509_v47, 5  ;;  %v4527_v27 = vrot.slane %v4525_v24, 5  ;;  %424 = vst [vmem:[#allocation3 + $0x74] sm:$0x1] %v423_v41  ;;  %v2376_v60 = vsel %vm17422_vm6, %v2137_v35, %v2375_v20 }
 0x2ad   : > { %2374 = vst [vmem:[#allocation2 + $0x5e] sm:$0x1] %v2373_v6  ;;  %v3680_v45 = vcombine.low %v2984_v38, %v2986_v7  ;;  %v2595_v33 = vrot.slane %v18591_v29, 4  ;;  %v2840_v10 = vld [vmem:[#allocation3 + $0x6c] sm:$0xf]  ;;  %v2610_v34 = vor.u32 %v2608_v12, %v18627_v32  ;;  %v2612_v56 = vrot.slane %v18627_v32, 4 }
 0x2ae   : > { %v2444_v25 = vld [vmem:[%s18003_s21 + $0x48] sm:$0xf]  ;;  %v2985_v55 = vld [vmem:[#allocation2 + $0x59] sm:$0x1]  ;;  %v2987_v17 = vld [vmem:[#allocation2 + $0x5b] sm:$0x1]  ;;  %v4512_v2 = vor.u32 %v4511_v31, %v4508_v48  ;;  %v4528_v28 = vsel %vm18638_vm7, %v18612_v59, %v4527_v27  ;;  %v2841_v40 = vsel %vm18117_vm13, %v2602_v37, %v2840_v10 }
 0x2af   : > { %v2445_v53 = vld [vmem:[%s18003_s21 + $0x4c] sm:$0xf]  ;;  %2377 = vst [vmem:[#allocation2 + $0x5f] sm:$0x1] %v2376_v60  ;;  %v1609_v29 = vld [vmem:[#allocation2 + $0x60] sm:$0x1]  ;;  %v3681_v36 = vcombine.low %v2985_v55, %v2987_v17  ;;  %v3688_v14 = vrot.slane %v3680_v45, %v17774_v21  ;;  %v2611_v9 = vsel %vm18027_vm8, %v2603_v26, %v2610_v34  ;;  %v1375_v7 = vpop.permute.xlu1 %1374  ;;  %v1377_v17 = vpop.permute.xlu0 %1376 }
 0x2b0   : > { %v1612_v54 = vld [vmem:[#allocation2 + $0x61] sm:$0x1]  ;;  %2842 = vst [vmem:[#allocation3 + $0x6c] sm:$0xf] %v2841_v40  ;;  %v1610_v52 = vsel %vm17422_vm6, %v1369_v50, %v1609_v29  ;;  %v4513_v57 = vrot.slane %v4512_v2, 4  ;;  %v370_v61 = vsel %vm18039_vm10, 0, %v369_v13 }
 0x2b1   : > { %2843 = vst.msk [vmem:[#allocation3 + $0x70] sm:$0xf] %vm2781_vm12, %v2611_v9  ;;  %v2614_v16 = vshrl.u32 %v2444_v25, 16  ;;  %v372_v59 = vld [vmem:[#allocation3 + $0x84] sm:$0x1]  ;;  %v3695_v12 = vrot.slane %v3681_v36, %v17774_v21  ;;  %v2617_v63 = vshll.u32 %v2444_v25, 16  ;;  %v1613_v49 = vsel %vm17422_vm6, %v1371_v46, %v1612_v54 }
 0x2b2   : > { %1611 = vst [vmem:[#allocation2 + $0x60] sm:$0x1] %v1610_v52  ;;  %v2837_v8 = vld [vmem:[#allocation3 + $0x68] sm:$0x1]  ;;  %371 = vst [vmem:[#allocation3 + $0x78] sm:$0x1] %v370_v61  ;;  %v4518_v22 = vsel %vm18638_vm7, %v4513_v57, %v18575_v23 }
 0x2b3   : > { %v2622_v11 = vshrl.u32 %v2445_v53, 16  ;;  %v2625_v0 = vshll.u32 %v2445_v53, 16  ;;  %v1615_v43 = vld [vmem:[#allocation2 + $0x62] sm:$0x1]  ;;  %v2838_v62 = vsel %vm16964_vm4, %v2595_v33, %v2837_v8  ;;  %v2616_v42 = vrot.slane %v2614_v16, 7  ;;  %v1379_v52 = vpop.permute.xlu1 %1378 }
 0x2b4   : > { %1614 = vst [vmem:[#allocation2 + $0x61] sm:$0x1] %v1613_v49  ;;  %v3696_v47 = vcombine.low %v3688_v14, %v3695_v12  ;;  %v14388_v24 = vcombine.low %v4518_v22, %v4528_v28  ;;  %2839 = vst [vmem:[#allocation3 + $0x68] sm:$0x1] %v2838_v62  ;;  %v2844_v18 = vld [vmem:[#allocation3 + $0x74] sm:$0x1]  ;;  %v1616_v23 = vsel %vm17422_vm6, %v1373_v15, %v1615_v43  ;;  %v1381_v22 = vpop.permute.xlu0 %1380 }
 0x2b5   : > { %v18670_v20 = vrot.slane %v2622_v11, 7  ;;  %v373_v38 = vsel %vm18039_vm10, 0, %v372_v59  ;;  %v2446_v37 = vld [vmem:[%s18003_s21 + $0x50] sm:$0xf]  ;;  %v2988_v26 = vld [vmem:[#allocation2 + $0x5c] sm:$0x1]  ;;  %v2845_v41 = vsel %vm16964_vm4, %v2612_v56, %v2844_v18  ;;  %v2619_v27 = vor.u32 %v2617_v63, %v2616_v42 }
 0x2b6   : > { %v2990_v32 = vld [vmem:[#allocation2 + $0x5e] sm:$0x1]  ;;  %v2620_v13 = vrot.slane %v2616_v42, 4  ;;  %374 = vst [vmem:[#allocation3 + $0x84] sm:$0x1] %v373_v38  ;;  %v3703_v48 = vrot.slane %v3696_v47, %v17774_v21  ;;  %15469 = vmatprep.mubr.msk.bf16.mxu1 %vm600_vm1, %v14388_v24  ;;  %v2631_v25 = vshrl.u32 %v2446_v37, 16 }
 0x2b7   : > { %1617 = vst [vmem:[#allocation2 + $0x62] sm:$0x1] %v1616_v23  ;;  %v1618_v6 = vld [vmem:[#allocation2 + $0x63] sm:$0x1]  ;;  %v3704_v31 = vcombine.low %v2988_v26, %v2990_v32  ;;  %2846 = vst [vmem:[#allocation3 + $0x74] sm:$0x1] %v2845_v41  ;;  %v2627_v35 = vor.u32 %v2625_v0, %v18670_v20 }
 0x2b8   : > { %v2447_v45 = vld [vmem:[%s18003_s21 + $0x54] sm:$0xf]  ;;  %v1619_v33 = vsel %vm17422_vm6, %v1375_v7, %v1618_v6  ;;  %v2989_v10 = vld [vmem:[#allocation2 + $0x5d] sm:$0x1]  ;;  %v2991_v34 = vld [vmem:[#allocation2 + $0x5f] sm:$0x1]  ;;  %v1383_v6 = vpop.permute.xlu1 %1382 }
 0x2b9   : > { %v2634_v60 = vshll.u32 %v2446_v37, 16  ;;  %1620 = vst [vmem:[#allocation2 + $0x63] sm:$0x1] %v1619_v33  ;;  %v1621_v55 = vld [vmem:[#allocation2 + $0x64] sm:$0x1]  ;;  %v4108_v28 = vshrl.u32 %v3703_v48, 16  ;;  %v3705_v53 = vcombine.low %v2989_v10, %v2991_v34  ;;  %v3712_v29 = vrot.slane %v3704_v31, %v17774_v21 }
 0x2ba   : > { %v1624_v2 = vld [vmem:[#allocation2 + $0x65] sm:$0x1]  ;;  %v4111_v40 = vshll.u32 %v3703_v48, 16  ;;  %v1622_v50 = vsel %vm17422_vm6, %v1377_v17, %v1621_v55  ;;  %v2847_v54 = vld [vmem:[#allocation3 + $0x78] sm:$0xf]  ;;  %v2628_v36 = vsel %vm18027_vm8, %v2620_v13, %v2627_v35  ;;  %v2633_v14 = vrot.slane %v2631_v25, 7 }
 0x2bb   : > { %v2639_v9 = vshrl.u32 %v2447_v45, 16  ;;  %v425_v56 = vld [vmem:[#allocation3 + $0x80] sm:$0x1]  ;;  %1623 = vst [vmem:[#allocation2 + $0x64] sm:$0x1] %v1622_v50  ;;  %v18690_v61 = vrot.slane %v4108_v28, 7  ;;  %v3719_v16 = vrot.slane %v3705_v53, %v17774_v21  ;;  %v2848_v59 = vsel %vm18117_vm13, %v2619_v27, %v2847_v54 }
 0x2bc   : > { %v1627_v57 = vld [vmem:[#allocation2 + $0x66] sm:$0x1]  ;;  %2850 = vst.msk [vmem:[#allocation3 + $0x7c] sm:$0xf] %vm2781_vm12, %v2628_v36  ;;  %v2642_v46 = vshll.u32 %v2447_v45, 16  ;;  %v1625_v8 = vsel %vm17422_vm6, %v1379_v52, %v1624_v2  ;;  %v2636_v63 = vor.u32 %v2634_v60, %v2633_v14  ;;  %v2637_v11 = vrot.slane %v2633_v14, 4  ;;  %v2139_v2 = vpop.permute.xlu0 %2138 }
 0x2bd   : > { %v428_v12 = vld [vmem:[#allocation3 + $0x8c] sm:$0x1]  ;;  %2849 = vst [vmem:[#allocation3 + $0x78] sm:$0xf] %v2848_v59  ;;  %v18698_v0 = vrot.slane %v2639_v9, 7  ;;  %v4113_v42 = vor.u32 %v4111_v40, %v18690_v61  ;;  %v3720_v15 = vcombine.low %v3712_v29, %v3719_v16  ;;  %v2629_v47 = vrot.slane %v18670_v20, 4 }
 0x2be   : > { %v375_v49 = vld [vmem:[#allocation3 + $0x90] sm:$0x1]  ;;  %v2448_v43 = vld [vmem:[%s18003_s21 + $0x58] sm:$0xf]  ;;  %1626 = vst [vmem:[#allocation2 + $0x65] sm:$0x1] %v1625_v8  ;;  %v1628_v37 = vsel %vm17422_vm6, %v1381_v22, %v1627_v57 }
 0x2bf   : > { %v1630_v62 = vld [vmem:[#allocation2 + $0x67] sm:$0x1]  ;;  %v426_v18 = vsel %vm18077_vm11, 0, %v425_v56  ;;  %v18706_v38 = vld [vmem:[%s18003_s21 + $0x5c] sm:$0xf]  ;;  %v2644_v41 = vor.u32 %v2642_v46, %v18698_v0  ;;  %v2646_v13 = vrot.slane %v18698_v0, 4  ;;  %4258 = vrot.lane.b32.xlu1 %v4113_v42, %s16773_s22  ;;  %v3727_v7 = vrot.slane %v3720_v15, %v17774_v21  ;;  %v2141_v56 = vpop.permute.xlu1 %2140 }
 0x2c0   : > { %v2854_v24 = vld [vmem:[#allocation3 + $0x84] sm:$0xf]  ;;  %v2992_v23 = vld [vmem:[#allocation2 + $0x60] sm:$0x1]  ;;  %v2994_v26 = vld [vmem:[#allocation2 + $0x62] sm:$0x1]  ;;  %v1631_v33 = vsel %vm17422_vm6, %v1383_v6, %v1630_v62 }
 0x2c1   : > { %v2855_v32 = vsel %vm18117_vm13, %v2636_v63, %v2854_v24  ;;  %427 = vst [vmem:[#allocation3 + $0x80] sm:$0x1] %v426_v18  ;;  %1629 = vst [vmem:[#allocation2 + $0x66] sm:$0x1] %v1628_v37  ;;  %v3728_v48 = vcombine.low %v2992_v23, %v2994_v26  ;;  %v429_v31 = vsel %vm18077_vm11, 0, %v428_v12  ;;  %v376_v27 = vsel %vm18039_vm10, 0, %v375_v49  ;;  %v2143_v49 = vpop.permute.xlu0 %2142 }
 0x2c2   : > { %2856 = vst [vmem:[#allocation3 + $0x84] sm:$0xf] %v2855_v32  ;;  %v378_v35 = vld [vmem:[#allocation3 + $0x9c] sm:$0x1]  ;;  %v18721_v45 = vld [vmem:[%s18003_s21 + $0x60] sm:$0xf]  ;;  %v2645_v25 = vsel %vm18027_vm8, %v2637_v11, %v2644_v41 }
 0x2c3   : > { %v2993_v10 = vld [vmem:[#allocation2 + $0x61] sm:$0x1]  ;;  %v2995_v34 = vld [vmem:[#allocation2 + $0x63] sm:$0x1]  ;;  %430 = vst [vmem:[#allocation3 + $0x8c] sm:$0x1] %v429_v31  ;;  %v3736_v29 = vrot.slane %v3728_v48, %v17774_v21  ;;  %v2145_v41 = vpop.permute.xlu1 %2144 }
 0x2c4   : > { %377 = vst [vmem:[#allocation3 + $0x90] sm:$0x1] %v376_v27  ;;  %v2648_v60 = vshrl.u32 %v2448_v43, 16  ;;  %v2651_v55 = vshll.u32 %v2448_v43, 16  ;;  %1632 = vst [vmem:[#allocation2 + $0x67] sm:$0x1] %v1631_v33  ;;  %v3729_v53 = vcombine.low %v2993_v10, %v2995_v34 }
 0x2c5   : > { %v2378_v17 = vld [vmem:[#allocation2 + $0x68] sm:$0x1]  ;;  %v4116_v28 = vshrl.u32 %v3727_v7, 16  ;;  %v4119_v40 = vshll.u32 %v3727_v7, 16  ;;  %2857 = vst.msk [vmem:[#allocation3 + $0x88] sm:$0xf] %vm2781_vm12, %v2645_v25 }
 0x2c6   : > { %v2379_v50 = vsel %vm17422_vm6, %v2139_v2, %v2378_v17  ;;  %v2650_v54 = vrot.slane %v2648_v60, 7  ;;  %v2656_v36 = vshrl.u32 %v18706_v38, 16  ;;  %v2659_v14 = vshll.u32 %v18706_v38, 16  ;;  %v2381_v9 = vld [vmem:[#allocation2 + $0x69] sm:$0x1] }
 0x2c7   : > { %2380 = vst [vmem:[#allocation2 + $0x68] sm:$0x1] %v2379_v50  ;;  %v18733_v52 = vrot.slane %v4116_v28, 7  ;;  %v3743_v57 = vrot.slane %v3729_v53, %v17774_v21  ;;  %v379_v16 = vsel %vm18039_vm10, 0, %v378_v35  ;;  %v2665_v59 = vshrl.u32 %v18721_v45, 16 }
 0x2c8   : > { %v2382_v46 = vsel %vm17422_vm6, %v2141_v56, %v2381_v9  ;;  %v2384_v12 = vld [vmem:[#allocation2 + $0x6a] sm:$0x1]  ;;  %v2653_v8 = vor.u32 %v2651_v55, %v2650_v54  ;;  %v2654_v63 = vrot.slane %v2650_v54, 4  ;;  %v18741_v11 = vrot.slane %v2656_v36, 7  ;;  %380 = vst [vmem:[#allocation3 + $0x9c] sm:$0x1] %v379_v16  ;;  %v2147_v55 = vpop.permute.xlu0 %2146 }
 0x2c9   : > { %2383 = vst [vmem:[#allocation2 + $0x69] sm:$0x1] %v2382_v46  ;;  %v2387_v43 = vld [vmem:[#allocation2 + $0x6b] sm:$0x1]  ;;  %v4114_v22 = vrot.slane %v18690_v61, 4  ;;  %v4121_v62 = vor.u32 %v4119_v40, %v18733_v52  ;;  %v3744_v42 = vcombine.low %v3736_v29, %v3743_v57  ;;  %v2385_v18 = vsel %vm17422_vm6, %v2143_v49, %v2384_v12  ;;  %v2149_v29 = vpop.permute.xlu1 %2148 }
 0x2ca   : > { %v2996_v15 = vld [vmem:[#allocation2 + $0x64] sm:$0x1]  ;;  %v2851_v24 = vld [vmem:[#allocation3 + $0x80] sm:$0x1]  ;;  %v2997_v38 = vld [vmem:[#allocation2 + $0x65] sm:$0x1]  ;;  %v2661_v26 = vor.u32 %v2659_v14, %v18741_v11 }
 0x2cb   : > { %v2998_v37 = vld [vmem:[#allocation2 + $0x66] sm:$0x1]  ;;  %v2852_v23 = vsel %vm16964_vm4, %v2629_v47, %v2851_v24  ;;  %v18752_v32 = vrot.slane %v2665_v59, 7  ;;  %v431_v61 = vld [vmem:[#allocation3 + $0x98] sm:$0x1]  ;;  %v4122_v6 = vsel %vm18027_vm8, %v4114_v22, %v4121_v62  ;;  %v3751_v7 = vrot.slane %v3744_v42, %v17774_v21 }
 0x2cc   : > { %2386 = vst [vmem:[#allocation2 + $0x6a] sm:$0x1] %v2385_v18  ;;  %v3752_v48 = vcombine.low %v2996_v15, %v2998_v37  ;;  %2853 = vst [vmem:[#allocation3 + $0x80] sm:$0x1] %v2852_v23  ;;  %v2858_v31 = vld [vmem:[#allocation3 + $0x8c] sm:$0x1]  ;;  %v2388_v47 = vsel %vm17422_vm6, %v2145_v41, %v2387_v43  ;;  %4260 = vrot.lane.b32.xlu0 %v4122_v6, %s16773_s22  ;;  %v2662_v34 = vsel %vm18027_vm8, %v2654_v63, %v2661_v26  ;;  %v2151_v12 = vpop.permute.xlu0 %2150 }
 0x2cd   : > { %v2861_v20 = vld [vmem:[#allocation3 + $0x90] sm:$0xf]  ;;  %v2668_v27 = vshll.u32 %v18721_v45, 16  ;;  %v2999_v35 = vld [vmem:[#allocation2 + $0x67] sm:$0x1]  ;;  %v2859_v33 = vsel %vm16964_vm4, %v2646_v13, %v2858_v31  ;;  %v4125_v17 = vshrl.u32 %v3751_v7, 16  ;;  %v2153_v18 = vpop.permute.xlu1 %2152 }
 0x2ce   : > { %v2862_v10 = vsel %vm18117_vm13, %v2653_v8, %v2861_v20  ;;  %v18772_v45 = vld [vmem:[%s22620_s4] sm:$0x3]  ;;  %v2451_v25 = vld [vmem:[%s18003_s21 + $0x64] sm:$0xf]  ;;  %2389 = vst [vmem:[#allocation2 + $0x6b] sm:$0x1] %v2388_v47  ;;  %v3753_v0 = vcombine.low %v2997_v38, %v2999_v35  ;;  %v3760_v54 = vrot.slane %v3752_v48, %v17774_v21 }
 0x2cf   : > { %v2390_v60 = vld [vmem:[#allocation2 + $0x6c] sm:$0x1]  ;;  %2860 = vst [vmem:[#allocation3 + $0x8c] sm:$0x1] %v2859_v33  ;;  %2863 = vst [vmem:[#allocation3 + $0x90] sm:$0xf] %v2862_v10  ;;  %16596 = vmatprep.subr.msk.bf16.mxu1 %vm613_vm0, %v18772_v45  ;;  %v2670_v28 = vor.u32 %v2668_v27, %v18752_v32 }
 0x2d0   : > { %2864 = vst.msk [vmem:[#allocation3 + $0x94] sm:$0xf] %vm2781_vm12, %v2662_v34  ;;  %v2391_v13 = vsel %vm17422_vm6, %v2147_v55, %v2390_v60  ;;  %v4128_v2 = vshll.u32 %v3751_v7, 16  ;;  %v432_v40 = vsel %vm18077_vm11, 0, %v431_v61  ;;  %v2393_v53 = vld [vmem:[#allocation2 + $0x6d] sm:$0x1]  ;;  %v3767_v36 = vrot.slane %v3753_v0, %v17774_v21  ;;  %v1385_v31 = vpop.permute.xlu0 %1384 }
 0x2d1   : > { %2392 = vst [vmem:[#allocation2 + $0x6c] sm:$0x1] %v2391_v13  ;;  %v18783_v50 = vrot.slane %v4125_v17, 7  ;;  %v2868_v14 = vld [vmem:[#allocation3 + $0x9c] sm:$0xf]  ;;  %v2673_v9 = vshrl.u32 %v2451_v25, 16  ;;  %v2394_v56 = vsel %vm17422_vm6, %v2149_v29, %v2393_v53  ;;  %v1387_v17 = vpop.permute.xlu1 %1386 }
 0x2d2   : > { %433 = vst [vmem:[#allocation3 + $0x98] sm:$0x1] %v432_v40  ;;  %v2869_v57 = vsel %vm18117_vm13, %v2670_v28, %v2868_v14  ;;  %v2676_v16 = vshll.u32 %v2451_v25, 16  ;;  %v434_v59 = vld [vmem:[#allocation3 + $0xa4] sm:$0x1]  ;;  %v3768_v63 = vcombine.low %v3760_v54, %v3767_v36  ;;  %v2671_v42 = vrot.slane %v18752_v32, 4 }
 0x2d3   : > { %2395 = vst [vmem:[#allocation2 + $0x6d] sm:$0x1] %v2394_v56  ;;  %v2396_v46 = vld [vmem:[#allocation2 + $0x6e] sm:$0x1]  ;;  %v4130_v8 = vor.u32 %v4128_v2, %v18783_v50  ;;  %2870 = vst [vmem:[#allocation3 + $0x9c] sm:$0xf] %v2869_v57 }
 0x2d4   : > { %v18792_v49 = vrot.slane %v2673_v9, 7  ;;  %v2397_v43 = vsel %vm17422_vm6, %v2151_v12, %v2396_v46  ;;  %v3000_v22 = vld [vmem:[#allocation2 + $0x68] sm:$0x1]  ;;  %v3002_v62 = vld [vmem:[#allocation2 + $0x6a] sm:$0x1]  ;;  %v435_v15 = vsel %vm18077_vm11, 0, %v434_v59  ;;  %v3775_v37 = vrot.slane %v3768_v63, %v17774_v21  ;;  %v1389_v54 = vpop.permute.xlu0 %1388 }
 0x2d5   : > { %2398 = vst [vmem:[#allocation2 + $0x6e] sm:$0x1] %v2397_v43  ;;  %v2399_v24 = vld [vmem:[#allocation2 + $0x6f] sm:$0x1]  ;;  %4264 = vrot.lane.b32.xlu1 %v4130_v8, %s16773_s22  ;;  %v1633_v38 = vld [vmem:[#allocation2 + $0x70] sm:$0x1]  ;;  %v3776_v23 = vcombine.low %v3000_v22, %v3002_v62  ;;  %v1391_v63 = vpop.permute.xlu1 %1390 }
 0x2d6   : > { %v2663_v26 = vrot.slane %v18741_v11, 4  ;;  %v2678_v61 = vor.u32 %v2676_v16, %v18792_v49  ;;  %436 = vst [vmem:[#allocation3 + $0xa4] sm:$0x1] %v435_v15  ;;  %v2400_v32 = vsel %vm17422_vm6, %v2153_v18, %v2399_v24  ;;  %v4123_v41 = vrot.slane %v18733_v52, 4  ;;  %v3001_v6 = vld [vmem:[#allocation2 + $0x69] sm:$0x1] }
 0x2d7   : > { %v3003_v7 = vld [vmem:[#allocation2 + $0x6b] sm:$0x1]  ;;  %v2680_v48 = vrot.slane %v18792_v49, 4  ;;  %2401 = vst [vmem:[#allocation2 + $0x6f] sm:$0x1] %v2400_v32  ;;  %v4133_v20 = vshrl.u32 %v3775_v37, 16  ;;  %v3784_v35 = vrot.slane %v3776_v23, %v17774_v21  ;;  %v1634_v10 = vsel %vm17422_vm6, %v1385_v31, %v1633_v38 }
 0x2d8   : > { %v4136_v27 = vshll.u32 %v3775_v37, 16  ;;  %v3777_v47 = vcombine.low %v3001_v6, %v3003_v7  ;;  %v381_v11 = vld [vmem:[#allocation3 + $0xa8] sm:$0x1]  ;;  %v2679_v52 = vsel %vm18027_vm8, %v2671_v42, %v2678_v61  ;;  %1635 = vst [vmem:[#allocation2 + $0x70] sm:$0x1] %v1634_v10  ;;  %v4131_v36 = vrot.slane %v18783_v50, 4  ;;  %v1393_v37 = vpop.permute.xlu0 %1392 }
 0x2d9   : > { %v2452_v33 = vld [vmem:[%s18003_s21 + $0x68] sm:$0xf]  ;;  %v2865_v34 = vld [vmem:[#allocation3 + $0x98] sm:$0x1]  ;;  %v382_v25 = vsel %vm18039_vm10, 0, %v381_v11  ;;  %4262 = vrot.lane.b32.xlu1 %v4123_v41, %s16773_s22  ;;  %v4135_v0 = vrot.slane %v4133_v20, 7  ;;  %v1395_v20 = vpop.permute.xlu1 %1394 }
 0x2da   : > { %v2682_v60 = vshrl.u32 %v2452_v33, 16  ;;  %v1636_v55 = vld [vmem:[#allocation2 + $0x71] sm:$0x1]  ;;  %v3791_v13 = vrot.slane %v3777_v47, %v17774_v21  ;;  %v2866_v2 = vsel %vm16964_vm4, %v2663_v26, %v2865_v34  ;;  %2871 = vst.msk [vmem:[#allocation3 + $0xa0] sm:$0xf] %vm2781_vm12, %v2679_v52  ;;  %v2685_v28 = vshll.u32 %v2452_v33, 16 }
 0x2db   : > { %383 = vst [vmem:[#allocation3 + $0xa8] sm:$0x1] %v382_v25  ;;  %v1637_v40 = vsel %vm17422_vm6, %v1387_v17, %v1636_v55  ;;  %2867 = vst [vmem:[#allocation3 + $0x98] sm:$0x1] %v2866_v2  ;;  %v1639_v29 = vld [vmem:[#allocation2 + $0x72] sm:$0x1]  ;;  %v4138_v14 = vor.u32 %v4136_v27, %v4135_v0 }
 0x2dc   : > { %v18822_v53 = vrot.slane %v2682_v60, 7  ;;  %1638 = vst [vmem:[#allocation2 + $0x71] sm:$0x1] %v1637_v40  ;;  %v3792_v9 = vcombine.low %v3784_v35, %v3791_v13  ;;  %v3004_v56 = vld [vmem:[#allocation2 + $0x6c] sm:$0x1]  ;;  %v1640_v57 = vsel %vm17422_vm6, %v1389_v54, %v1639_v29  ;;  %v4140_v23 = vrot.slane %v4135_v0, 4  ;;  %v1397_v52 = vpop.permute.xlu0 %1396 }
 0x2dd   : > { %v3006_v16 = vld [vmem:[#allocation2 + $0x6e] sm:$0x1]  ;;  %v2872_v59 = vld [vmem:[#allocation3 + $0xa4] sm:$0x1]  ;;  %1641 = vst [vmem:[#allocation2 + $0x72] sm:$0x1] %v1640_v57  ;;  %v4139_v49 = vsel %vm18027_vm8, %v4131_v36, %v4138_v14  ;;  %v1399_v40 = vpop.permute.xlu1 %1398 }
 0x2de   : > { %v2687_v46 = vor.u32 %v2685_v28, %v18822_v53  ;;  %v2453_v12 = vld [vmem:[%s18003_s21 + $0x6c] sm:$0xf]  ;;  %v1642_v8 = vld [vmem:[#allocation2 + $0x73] sm:$0x1]  ;;  %v3799_v43 = vrot.slane %v3792_v9, %v17774_v21  ;;  %v3800_v50 = vcombine.low %v3004_v56, %v3006_v16  ;;  %v2873_v22 = vsel %vm16964_vm4, %v2680_v48, %v2872_v59  ;;  %4266 = vrot.lane.b32.xlu0 %v4139_v49, %s16773_s22  ;;  %v1645_v38 = vld [vmem:[#allocation2 + $0x74] sm:$0x1] }
 0x2df   : > { %v1643_v62 = vsel %vm17422_vm6, %v1391_v63, %v1642_v8  ;;  %v3005_v42 = vld [vmem:[#allocation2 + $0x6d] sm:$0x1]  ;;  %v3007_v15 = vld [vmem:[#allocation2 + $0x6f] sm:$0x1]  ;;  %2874 = vst [vmem:[#allocation3 + $0xa4] sm:$0x1] %v2873_v22  ;;  %v1646_v32 = vsel %vm17422_vm6, %v1393_v37, %v1645_v38 }
 0x2e0   : > { %v2690_v24 = vshrl.u32 %v2453_v12, 16  ;;  %v2693_v18 = vshll.u32 %v2453_v12, 16  ;;  %1644 = vst [vmem:[#allocation2 + $0x73] sm:$0x1] %v1643_v62  ;;  %v4142_v26 = vshrl.u32 %v3799_v43, 16  ;;  %vm4336_vm9 = vcmask 27664  }
 0x2e1   : > { %v3801_v61 = vcombine.low %v3005_v42, %v3007_v15  ;;  %v4145_v41 = vshll.u32 %v3799_v43, 16  ;;  %v2688_v7 = vrot.slane %v18822_v53, 4  ;;  %1647 = vst [vmem:[#allocation2 + $0x74] sm:$0x1] %v1646_v32  ;;  %v1648_v31 = vld [vmem:[#allocation2 + $0x75] sm:$0x1]  ;;  %v3808_v47 = vrot.slane %v3800_v50, %v17774_v21  ;;  %vm18857_vm15 = vmand %vm4336_vm9, %vm22675_vm5  ;;  %v4217_v22 = vpop.permute.xlu1 %4216 }
 0x2e2   : > { %v2875_v6 = vld [vmem:[#allocation3 + $0xa8] sm:$0xf]  ;;  %v18840_v48 = vrot.slane %v2690_v24, 7  ;;  %v18842_v27 = vrot.slane %v4142_v26, 7  ;;  %v1649_v33 = vsel %vm17422_vm6, %v1395_v20, %v1648_v31  ;;  %4268 = vrot.lane.b32.xlu0 %v4140_v23, %s16773_s22  ;;  %v1651_v34 = vld [vmem:[#allocation2 + $0x76] sm:$0x1] }
 0x2e3   : > { %v3815_v35 = vrot.slane %v3801_v61, %v17774_v21  ;;  %v2876_v11 = vsel %vm18117_vm13, %v2687_v46, %v2875_v6  ;;  %1650 = vst [vmem:[#allocation2 + $0x75] sm:$0x1] %v1649_v33  ;;  %v1654_v25 = vld [vmem:[#allocation2 + $0x77] sm:$0x1]  ;;  %v1652_v17 = vsel %vm17422_vm6, %v1397_v52, %v1651_v34  ;;  %v22911_v0 = vmov 0  ;;  %v4193_v46 = vpop.permute.xlu0 %4192 }
 0x2e4   : > { %2877 = vst [vmem:[#allocation3 + $0xa8] sm:$0xf] %v2876_v11  ;;  %v2695_v10 = vor.u32 %v2693_v18, %v18840_v48  ;;  %v4147_v60 = vor.u32 %v4145_v41, %v18842_v27  ;;  %v22912_v0 = vsel %vm18857_vm15, 4294967295, %v22911_v0  ;;  %v3008_v13 = vld [vmem:[#allocation2 + $0x70] sm:$0x1]  ;;  %v1655_v9 = vsel %vm17422_vm6, %v1399_v40, %v1654_v25 }
 0x2e5   : > { %v3816_v55 = vcombine.low %v3808_v47, %v3815_v35  ;;  %22913 = vst [vmem:[#allocation9_spill] sm:$0xff] %v22912_v0  ;;  %v3010_v2 = vld [vmem:[#allocation2 + $0x72] sm:$0x1]  ;;  %1653 = vst [vmem:[#allocation2 + $0x76] sm:$0x1] %v1652_v17  ;;  %v22914_v62 = vmov 0  ;;  %v4229_v11 = vpop.permute.xlu1 %4228 }
 0x2e6   : > { %v2696_v28 = vsel %vm18027_vm8, %v2688_v7, %v2695_v10  ;;  %4270 = vrot.lane.b32.xlu1 %v4147_v60, %s16773_s22  ;;  %v4338_v53 = vld [vmem:[#allocation3 + $0xc] sm:$0xf]  ;;  %v3824_v54 = vcombine.low %v3008_v13, %v3010_v2  ;;  %v384_v36 = vld [vmem:[#allocation3 + $0xb4] sm:$0x1]  ;;  %v2454_v14 = vld [vmem:[%s18003_s21 + $0x70] sm:$0xf] }
 0x2e7   : > { %v3823_v29 = vrot.slane %v3816_v55, %v17774_v21  ;;  %2878 = vst.msk [vmem:[#allocation3 + $0xac] sm:$0xf] %vm2781_vm12, %v2696_v28  ;;  %v3009_v56 = vld [vmem:[#allocation2 + $0x71] sm:$0x1]  ;;  %v3011_v57 = vld [vmem:[#allocation2 + $0x73] sm:$0x1]  ;;  %v4339_v49 = vsel %vm18857_vm15, %v4193_v46, %v4338_v53  ;;  %v4221_v61 = vpop.permute.xlu0 %4220 }
 0x2e8   : > { %v385_v16 = vsel %vm18039_vm10, 0, %v384_v36  ;;  %v2699_v59 = vshrl.u32 %v2454_v14, 16  ;;  %1656 = vst [vmem:[#allocation2 + $0x77] sm:$0x1] %v1655_v9  ;;  %v4369_v12 = vld [vmem:[#allocation3 + $0x3c] sm:$0xf]  ;;  %v3825_v63 = vcombine.low %v3009_v56, %v3011_v57  ;;  %v3832_v18 = vrot.slane %v3824_v54, %v17774_v21 }
 0x2e9   : > { %v4150_v8 = vshrl.u32 %v3823_v29, 16  ;;  %386 = vst [vmem:[#allocation3 + $0xb4] sm:$0x1] %v385_v16  ;;  %v2702_v50 = vshll.u32 %v2454_v14, 16  ;;  %4340 = vst [vmem:[#allocation3 + $0xc] sm:$0xf] %v4339_v49  ;;  %v4370_v23 = vsel %vm18857_vm15, %v4217_v22, %v4369_v12  ;;  %v4205_v56 = vpop.permute.xlu1 %4204 }
 0x2ea   : > { %v18873_v43 = vrot.slane %v2699_v59, 7  ;;  %v22915_v62 = vsel %vm18877_vm14, 4294967295, %v22914_v62  ;;  %v4373_v42 = vld [vmem:[#allocation3 + $0x44] sm:$0x1]  ;;  %v4153_v24 = vshll.u32 %v3823_v29, 16  ;;  %v3839_v38 = vrot.slane %v3825_v63, %v17774_v21 }
 0x2eb   : > { %22916 = vst [vmem:[#allocation8_spill] sm:$0xff] %v22915_v62  ;;  %v18881_v15 = vrot.slane %v4150_v8, 7  ;;  %v437_v37 = vld [vmem:[#allocation3 + $0xb0] sm:$0x1]  ;;  %4371 = vst [vmem:[#allocation3 + $0x3c] sm:$0xf] %v4370_v23  ;;  %v4374_v31 = vsel %vm18877_vm14, %v4221_v61, %v4373_v42  ;;  %v4197_v17 = vpop.permute.xlu0 %4196 }
 0x2ec   : > { %v438_v26 = vsel %vm18077_vm11, 0, %v437_v37  ;;  %v4383_v32 = vld [vmem:[#allocation3 + $0x54] sm:$0xf]  ;;  %v4148_v41 = vrot.slane %v18842_v27, 4  ;;  %v3840_v7 = vcombine.low %v3832_v18, %v3839_v38  ;;  %v2704_v35 = vor.u32 %v2702_v50, %v18873_v43  ;;  %4375 = vst [vmem:[#allocation3 + $0x44] sm:$0x1] %v4374_v31 }
 0x2ed   : > { %v4155_v6 = vor.u32 %v4153_v24, %v18881_v15  ;;  %439 = vst [vmem:[#allocation3 + $0xb0] sm:$0x1] %v438_v26  ;;  %v3012_v20 = vld [vmem:[#allocation2 + $0x74] sm:$0x1]  ;;  %v3014_v47 = vld [vmem:[#allocation2 + $0x76] sm:$0x1]  ;;  %v4384_v52 = vsel %vm18857_vm15, %v4229_v11, %v4383_v32  ;;  %v4195_v32 = vpop.permute.xlu1 %4194 }
 0x2ee   : > { %v4345_v10 = vld [vmem:[#allocation3 + $0x14] sm:$0x1]  ;;  %v3847_v34 = vrot.slane %v3840_v7, %v17774_v21  ;;  %v3848_v27 = vcombine.low %v3012_v20, %v3014_v47  ;;  %v3013_v25 = vld [vmem:[#allocation2 + $0x75] sm:$0x1]  ;;  %4385 = vst [vmem:[#allocation3 + $0x54] sm:$0xf] %v4384_v52 }
 0x2ef   : > { %v4156_v33 = vsel %vm18027_vm8, %v4148_v41, %v4155_v6  ;;  %v3015_v60 = vld [vmem:[#allocation2 + $0x77] sm:$0x1]  ;;  %v4355_v13 = vld [vmem:[#allocation3 + $0x24] sm:$0xf]  ;;  %v4359_v2 = vld [vmem:[#allocation3 + $0x2c] sm:$0x1]  ;;  %v4346_v29 = vsel %vm18877_vm14, %v4197_v17, %v4345_v10  ;;  %v4209_v22 = vpop.permute.xlu0 %4208 }
 0x2f0   : > { %4272 = vrot.lane.b32.xlu0 %v4156_v33, %s16773_s22  ;;  %v2882_v55 = vld [vmem:[#allocation3 + $0xb4] sm:$0xf]  ;;  %v4159_v28 = vshrl.u32 %v3847_v34, 16  ;;  %v3849_v40 = vcombine.low %v3013_v25, %v3015_v60  ;;  %v2697_v53 = vrot.slane %v18840_v48, 4  ;;  %v4162_v54 = vshll.u32 %v3847_v34, 16 }
 0x2f1   : > { %v3856_v36 = vrot.slane %v3848_v27, %v17774_v21  ;;  %v18904_v14 = vld [vmem:[#allocation3 + $0xc] sm:$0xf]  ;;  %v2883_v9 = vsel %vm18117_vm13, %v2704_v35, %v2882_v55  ;;  %4347 = vst [vmem:[#allocation3 + $0x14] sm:$0x1] %v4346_v29  ;;  %v2455_v46 = vld [vmem:[%s18003_s21 + $0x74] sm:$0xf]  ;;  %v4356_v12 = vsel %vm18857_vm15, %v4205_v56, %v4355_v13  ;;  %v4360_v37 = vsel %vm18877_vm14, %v4209_v22, %v4359_v2 }
 0x2f2   : > { %v18908_v57 = vrot.slane %v4159_v28, 7  ;;  %v3863_v16 = vrot.slane %v3849_v40, %v17774_v21  ;;  %v4530_v59 = vshrl.u32 %v18904_v14, 16  ;;  %v4533_v48 = vshll.u32 %v18904_v14, 16  ;;  %2884 = vst [vmem:[#allocation3 + $0xb4] sm:$0xf] %v2883_v9  ;;  %v4223_v28 = vpop.permute.xlu1 %4222 }
 0x2f3   : > { %v18916_v8 = vld [vmem:[#allocation3 + $0x3c] sm:$0xf]  ;;  %v18920_v63 = vsel %vm613_vm0, %v18772_v45, 0  ;;  %v2707_v50 = vshrl.u32 %v2455_v46, 16  ;;  %4357 = vst [vmem:[#allocation3 + $0x24] sm:$0xf] %v4356_v12  ;;  %v4219_v33 = vpop.permute.xlu0 %4218 }
 0x2f4   : > { %v2879_v49 = vld [vmem:[#allocation3 + $0xb0] sm:$0x1]  ;;  %v4164_v42 = vor.u32 %v4162_v54, %v18908_v57  ;;  %v3864_v24 = vcombine.low %v3856_v36, %v3863_v16  ;;  %v4532_v18 = vrot.slane %v4530_v59, 4  ;;  %v2705_v38 = vrot.slane %v18873_v43, 4  ;;  %v18926_v26 = vld [vmem:[#allocation3 + $0x44] sm:$0x1] }
 0x2f5   : > { %v4535_v23 = vrot.slane %v4533_v48, 5  ;;  %v4626_v61 = vshrl.u32 %v18916_v8, 16  ;;  %v4629_v45 = vshll.u32 %v18916_v8, 16  ;;  %4361 = vst [vmem:[#allocation3 + $0x2c] sm:$0x1] %v4360_v37  ;;  %v4645_v6 = vshll.u32 %v18926_v26, 16 }
 0x2f6   : > { %4276 = vrot.lane.b32.xlu1 %v4164_v42, %s16773_s22  ;;  %v3871_v41 = vrot.slane %v3864_v24, %v17774_v21  ;;  %v2880_v43 = vsel %vm16964_vm4, %v2697_v53, %v2879_v49  ;;  %v18935_v7 = vrot.slane %v2707_v50, 7  ;;  %4342 = vst.msk [vmem:[#allocation3 + $0x10] sm:$0xf] %vm4336_vm9, %v4195_v32  ;;  %v18938_v35 = vld [vmem:[#allocation3 + $0x54] sm:$0xf]  ;;  %v2710_v11 = vshll.u32 %v2455_v46, 16 }
 0x2f7   : > { %v4536_v31 = vor.u32 %v4535_v23, %v4532_v18  ;;  %v4628_v20 = vrot.slane %v4626_v61, 4  ;;  %v4631_v47 = vrot.slane %v4629_v45, 5  ;;  %2881 = vst [vmem:[#allocation3 + $0xb0] sm:$0x1] %v2880_v43  ;;  %v4157_v10 = vrot.slane %v18881_v15, 4  ;;  %v4231_v48 = vpop.permute.xlu0 %4230  ;;  %v4199_v23 = vpop.permute.xlu1 %4198 }
 0x2f8   : > { %v4376_v34 = vld [vmem:[#allocation3 + $0x48] sm:$0xf]  ;;  %v4165_v27 = vrot.slane %v18908_v57, 4  ;;  %v4167_v52 = vshrl.u32 %v3871_v41, 16  ;;  %v4674_v25 = vshrl.u32 %v18938_v35, 16  ;;  %v4170_v60 = vshll.u32 %v3871_v41, 16 }
 0x2f9   : > { %4372 = vst.msk [vmem:[#allocation3 + $0x40] sm:$0xf] %vm4336_vm9, %v4219_v33  ;;  %v18944_v55 = vld [vmem:[#allocation3 + $0x14] sm:$0x1]  ;;  %v4632_v17 = vor.u32 %v4631_v47, %v4628_v20  ;;  %v4677_v13 = vshll.u32 %v18938_v35, 16  ;;  %v2712_v2 = vor.u32 %v2710_v11, %v18935_v7  ;;  %v18950_v53 = vrot.slane %v4645_v6, 5 }
 0x2fa   : > { %4274 = vrot.lane.b32.xlu1 %v4157_v10, %s16773_s22  ;;  %v4169_v15 = vrot.slane %v4167_v52, 7  ;;  %v4549_v40 = vshll.u32 %v18944_v55, 16  ;;  %v4676_v29 = vrot.slane %v4674_v25, 4  ;;  %v440_v54 = vld [vmem:[#allocation3 + $0xbc] sm:$0x1]  ;;  %v4377_v36 = vsel %vm18857_vm15, %v4223_v28, %v4376_v34 }
 0x2fb   : > { %v4348_v9 = vld [vmem:[#allocation3 + $0x18] sm:$0xf]  ;;  %v18954_v56 = vrot.slane %v4536_v31, 4  ;;  %v18956_v57 = vld [vmem:[#allocation3 + $0x24] sm:$0xf]  ;;  %v4679_v16 = vrot.slane %v4677_v13, 5  ;;  %v2713_v59 = vsel %vm18027_vm8, %v2705_v38, %v2712_v2  ;;  %v4207_v10 = vpop.permute.xlu0 %4206 }
 0x2fc   : > { %4378 = vst [vmem:[#allocation3 + $0x48] sm:$0xf] %v4377_v36  ;;  %v4172_v46 = vor.u32 %v4170_v60, %v4169_v15  ;;  %v4578_v49 = vshrl.u32 %v18956_v57, 16  ;;  %v18962_v50 = vrot.slane %v4632_v17, 4  ;;  %2885 = vst.msk [vmem:[#allocation3 + $0xb8] sm:$0xf] %vm2781_vm12, %v2713_v59  ;;  %v4349_v31 = vsel %vm18857_vm15, %v4199_v23, %v4348_v9 }
 0x2fd   : > { %v18965_v22 = vld [vmem:[#allocation3 + $0xc] sm:$0xe]  ;;  %4386 = vst.msk [vmem:[#allocation3 + $0x58] sm:$0xf] %vm4336_vm9, %v4231_v48  ;;  %v4174_v42 = vrot.slane %v4169_v15, 4  ;;  %v4581_v18 = vshll.u32 %v18956_v57, 16  ;;  %v4680_v38 = vor.u32 %v4679_v16, %v4676_v29  ;;  %v4211_v15 = vpop.permute.xlu1 %4210 }
 0x2fe   : > { %v18968_v24 = vld [vmem:[#allocation3 + $0x2c] sm:$0x1]  ;;  %v441_v37 = vsel %vm18077_vm11, 0, %v440_v54  ;;  %1769 = vrot.lane.b32.xlu1 %v17231_v19, %s16769_s15  ;;  %v4173_v61 = vsel %vm18027_vm8, %v4165_v27, %v4172_v46  ;;  %v4362_v45 = vld [vmem:[#allocation3 + $0x30] sm:$0xf]  ;;  %v18979_v41 = vrot.slane %v4549_v40, 5 }
 0x2ff   : > { %v18977_v32 = vld [vmem:[#allocation3 + $0x10] sm:$0xf]  ;;  %v4580_v6 = vrot.slane %v4578_v49, 4  ;;  %v4597_v43 = vshll.u32 %v18968_v24, 16  ;;  %442 = vst [vmem:[#allocation3 + $0xbc] sm:$0x1] %v441_v37  ;;  %4278 = vrot.lane.b32.xlu0 %v4173_v61, %s16773_s22  ;;  %v4363_v9 = vsel %vm18857_vm15, %v4211_v15, %v4362_v45 }
 0x300   : > { %v4539_v20 = vshll.u32 %v18977_v32, 16  ;;  %v4543_v47 = vshrl.u32 %v18977_v32, 16  ;;  %v4583_v11 = vrot.slane %v4581_v18, 5  ;;  %v18987_v33 = vld [vmem:[#allocation3 + $0x24] sm:$0xe]  ;;  %v18993_v52 = vrot.slane %v4680_v38, 4  ;;  %v4225_v18 = vpop.permute.xlu0 %4224 }
 0x301   : > { %4350 = vst [vmem:[#allocation3 + $0x18] sm:$0xf] %v4349_v31  ;;  %v18989_v34 = vrot.slane %v4597_v43, 5  ;;  %v18991_v27 = vld [vmem:[#allocation3 + $0x40] sm:$0xf]  ;;  %v4227_v31 = vpop.permute.xlu1 %4226  ;;  %vm5491_vm2 = vcmask 1042432  }
 0x302   : > { %4358 = vst.msk [vmem:[#allocation3 + $0x28] sm:$0xf] %vm4336_vm9, %v4207_v10  ;;  %v4541_v17 = vrot.slane %v4539_v20, 5  ;;  %v4545_v13 = vrot.slane %v4543_v47, 4  ;;  %v4635_v2 = vshll.u32 %v18991_v27, 16  ;;  %1773 = vrot.lane.b32.xlu1 %v17238_v58, %s16769_s15  ;;  %v4584_v40 = vor.u32 %v4583_v11, %v4580_v6 }
 0x303   : > { %v4639_v29 = vshrl.u32 %v18991_v27, 16  ;;  %4280 = vrot.lane.b32.xlu0 %v4174_v42, %s16773_s22  ;;  %v4380_v16 = vld [vmem:[#allocation3 + $0x50] sm:$0x1]  ;;  %v19013_v46 = vld [vmem:[#allocation3 + $0x48] sm:$0xf]  ;;  %vm5492_vm3 = vcmask 1046532  }
 0x304   : > { %v4542_v59 = vsel %vm18638_vm7, %v18954_v56, %v4541_v17  ;;  %v4546_v48 = vor.u32 %v4545_v13, %v4541_v17  ;;  %4364 = vst [vmem:[#allocation3 + $0x30] sm:$0xf] %v4363_v9  ;;  %v19016_v38 = vrot.slane %v4635_v2, 5  ;;  %v4650_v23 = vshrl.u32 %v19013_v46, 16  ;;  %v19020_v42 = vld [vmem:[#allocation3 + $0x58] sm:$0xf]  ;;  %vm19147_vm5 = vmor %vm5491_vm2, %vm5492_vm3 }
 0x305   : > { %v4641_v37 = vrot.slane %v4639_v29, 4  ;;  %v4653_v61 = vshll.u32 %v19013_v46, 16  ;;  %4379 = vst.msk [vmem:[#allocation3 + $0x4c] sm:$0xf] %vm4336_vm9, %v4225_v18  ;;  %v4683_v56 = vshll.u32 %v19020_v42, 16  ;;  %v4687_v6 = vshrl.u32 %v19020_v42, 16 }
 0x306   : > { %v4547_v45 = vrot.slane %v4546_v48, 4  ;;  %1777 = vrot.lane.b32.xlu1 %v17268_v51, %s16769_s15  ;;  %v19029_v20 = vrot.slane %v4584_v40, 4  ;;  %v4652_v11 = vrot.slane %v4650_v23, 4  ;;  %v4381_v17 = vsel %vm18877_vm14, %v4227_v31, %v4380_v16  ;;  %v22917_v13 = vld [vmem:[#allocation25_spill] sm:$0xff]  ;;  %v4352_v15 = vld [vmem:[#allocation3 + $0x20] sm:$0x1]  ;;  %v4201_v48 = vpop.permute.xlu0 %4200 }
 0x307   : > { %v4642_v47 = vor.u32 %v4641_v37, %v19016_v38  ;;  %v4655_v10 = vrot.slane %v4653_v61, 5  ;;  %1771 = vrot.lane.b32.xlu0 %v22917_v13, %s16769_s15  ;;  %v19041_v9 = vrot.slane %v4683_v56, 5  ;;  %v19043_v40 = vrot.slane %v4687_v6, 4  ;;  %4382 = vst [vmem:[#allocation3 + $0x50] sm:$0x1] %v4381_v17  ;;  %v4203_v6 = vpop.permute.xlu1 %4202 }
 0x308   : > { %v4552_v2 = vsel %vm18638_vm7, %v4547_v45, %v18979_v41  ;;  %v19039_v29 = vld [vmem:[#allocation3 + $0x18] sm:$0xf]  ;;  %4351 = vst.msk [vmem:[#allocation3 + $0x1c] sm:$0xf] %vm4336_vm9, %v4201_v48  ;;  %v4638_v56 = vsel %vm18638_vm7, %v18962_v50, %v19016_v38  ;;  %v4353_v48 = vsel %vm18877_vm14, %v4203_v6, %v4352_v15  ;;  %v2030_v0 = vld [vmem:[#allocation2 + $0x7c] sm:$0x1] }
 0x309   : > { %v14389_v18 = vcombine.low %v4542_v59, %v4552_v2  ;;  %v4554_v37 = vshrl.u32 %v19039_v29, 16  ;;  %v4557_v16 = vshll.u32 %v19039_v29, 16  ;;  %v19047_v23 = vld [vmem:[#allocation3 + $0x28] sm:$0xf]  ;;  %v4643_v61 = vrot.slane %v4642_v47, 4  ;;  %v22918_v59 = vld [vmem:[#allocation27_spill] sm:$0xff] }
 0x30a   : > { %v4587_v41 = vshll.u32 %v19047_v23, 16  ;;  %v4591_v45 = vshrl.u32 %v19047_v23, 16  ;;  %1781 = vrot.lane.b32.xlu1 %v22918_v59, %s16769_s15  ;;  %v4656_v2 = vor.u32 %v4655_v10, %v4652_v11  ;;  %v22919_v50 = vld [vmem:[#allocation26_spill] sm:$0xff]  ;;  %4354 = vst [vmem:[#allocation3 + $0x20] sm:$0x1] %v4353_v48 }
 0x30b   : > { %15470 = vmatmul.mubr.msk.bf16.vlgmr.msra.gmra.mrb[4].mxu1 %vm600_vm1, %v14389_v18  ;;  %v4556_v31 = vrot.slane %v4554_v37, 4  ;;  %v4559_v17 = vrot.slane %v4557_v16, 5  ;;  %v4648_v47 = vsel %vm18638_vm7, %v4643_v61, %v18950_v53  ;;  %1775 = vrot.lane.b32.xlu0 %v22919_v50, %s16769_s15  ;;  %v4366_v38 = vld [vmem:[#allocation3 + $0x38] sm:$0x1]  ;;  %v19066_v18 = vld [vmem:[#allocation3 + $0x30] sm:$0xf]  ;;  %v4213_v53 = vpop.permute.xlu0 %4212 }
 0x30c   : > { %v4589_v43 = vrot.slane %v4587_v41, 5  ;;  %v4593_v54 = vrot.slane %v4591_v45, 4  ;;  %15502 = vmatpush3.bf16.msra.mxu1 %v18920_v63  ;;  %v4387_v11 = vld [vmem:[#allocation3 + $0x5c] sm:$0x1]  ;;  %v4602_v15 = vshrl.u32 %v19066_v18, 16  ;;  %v4605_v16 = vshll.u32 %v19066_v18, 16 }
 0x30d   : > { %v4560_v10 = vor.u32 %v4559_v17, %v4556_v31  ;;  %v19075_v61 = vld [vmem:[#allocation3 + $0x4c] sm:$0xf]  ;;  %v4690_v41 = vor.u32 %v19043_v40, %v19041_v9  ;;  %v2886_v45 = vld [vmem:[#allocation3 + $0xbc] sm:$0x1]  ;;  %4365 = vst.msk [vmem:[#allocation3 + $0x34] sm:$0xf] %vm4336_vm9, %v4213_v53  ;;  %v19080_v60 = vcombine.low %v4638_v56, %v4648_v47  ;;  %v4215_v31 = vpop.permute.xlu1 %4214 }
 0x30e   : > { %v4594_v6 = vor.u32 %v4593_v54, %v4589_v43  ;;  %v4659_v63 = vshll.u32 %v19075_v61, 16  ;;  %v4663_v48 = vshrl.u32 %v19075_v61, 16  ;;  %2154 = vrot.lane.b32.xlu1 %v17231_v19, %s16771_s17  ;;  %v4390_v17 = vld [vmem:[#allocation3 + $0x60] sm:$0xf]  ;;  %v4590_v49 = vsel %vm18638_vm7, %v19029_v20, %v4589_v43  ;;  %v22920_v56 = vld [vmem:[#allocation28_spill] sm:$0xff] }
 0x30f   : > { %v4604_v40 = vrot.slane %v4602_v15, 4  ;;  %v4607_v37 = vrot.slane %v4605_v16, 5  ;;  %v19089_v12 = vrot.slane %v4656_v2, 4  ;;  %v4367_v54 = vsel %vm18877_vm14, %v4215_v31, %v4366_v38  ;;  %1779 = vrot.lane.b32.xlu0 %v22920_v56, %s16769_s15  ;;  %v19095_v53 = vld [vmem:[#allocation3 + $0x50] sm:$0x1]  ;;  %v4233_v36 = vpop.permute.xlu0 %4232 }
 0x310   : > { %v4595_v47 = vrot.slane %v4594_v6, 4  ;;  %v4661_v19 = vrot.slane %v4659_v63, 5  ;;  %v4665_v28 = vrot.slane %v4663_v48, 4  ;;  %4368 = vst [vmem:[#allocation3 + $0x38] sm:$0x1] %v4367_v54  ;;  %v19099_v43 = vrot.slane %v4560_v10, 4 }
 0x311   : > { %v19097_v25 = vld [vmem:[#allocation3 + $0x1c] sm:$0xf]  ;;  %v4608_v20 = vor.u32 %v4607_v37, %v4604_v40  ;;  %v4669_v2 = vshll.u32 %v19095_v53, 16  ;;  %v22921_v15 = vrot.slane %v18935_v7, 4  ;;  %v14468_v16 = vld [vmem:[%s22620_s4 + $0x4] sm:$0x3]  ;;  %v4388_v6 = vsel %vm18877_vm14, %v4233_v36, %v4387_v11  ;;  %v4235_v7 = vpop.permute.xlu1 %4234 }
 0x312   : > { %v4563_v63 = vshll.u32 %v19097_v25, 16  ;;  %v4567_v10 = vshrl.u32 %v19097_v25, 16  ;;  %v4600_v37 = vsel %vm18638_vm7, %v4595_v47, %v18989_v34  ;;  %16597 = vmatprep.subr.msk.bf16.mxu1 %vm613_vm0, %v14468_v16  ;;  %4389 = vst [vmem:[#allocation3 + $0x5c] sm:$0x1] %v4388_v6  ;;  %2158 = vrot.lane.b32.xlu1 %v17238_v58, %s16771_s17  ;;  %v4666_v36 = vor.u32 %v4665_v28, %v4661_v19  ;;  %v22922_v34 = vld [vmem:[#allocation29_spill] sm:$0xff] }
 0x313   : > { %v2887_v38 = vsel %vm16964_vm4, %v22921_v15, %v2886_v45  ;;  %v19119_v45 = vcombine.low %v4590_v49, %v4600_v37  ;;  %v19121_v48 = vrot.slane %v4608_v20, 4  ;;  %v19123_v11 = vrot.slane %v4690_v41, 4  ;;  %1783 = vrot.lane.b32.xlu0 %v22922_v34, %s16769_s15  ;;  %v19129_v40 = vld [vmem:[#allocation3 + $0x20] sm:$0x1]  ;;  %v4237_v58 = vpop.permute.xlu0 %4236  ;;  %v4397_v49 = vld [vmem:[#allocation3 + $0x6c] sm:$0xf] }
 0x314   : > { %2888 = vst [vmem:[#allocation3 + $0xbc] sm:$0x1] %v2887_v38  ;;  %v4391_v31 = vsel %vm18857_vm15, %v4235_v7, %v4390_v17  ;;  %v4565_v54 = vrot.slane %v4563_v63, 5  ;;  %v4569_v47 = vrot.slane %v4567_v10, 4  ;;  %v4671_v15 = vrot.slane %v4669_v2, 5 }
 0x315   : > { %4392 = vst [vmem:[#allocation3 + $0x60] sm:$0xf] %v4391_v31  ;;  %v4573_v20 = vshll.u32 %v19129_v40, 16  ;;  %v19132_v38 = vld [vmem:[#allocation3 + $0x34] sm:$0xf]  ;;  %v4662_v28 = vsel %vm18638_vm7, %v19089_v12, %v4661_v19  ;;  %v4667_v41 = vrot.slane %v4666_v36, 4  ;;  %v4241_v12 = vpop.permute.xlu1 %4240 }
 0x316   : > { %4393 = vst.msk [vmem:[#allocation3 + $0x64] sm:$0xf] %vm4336_vm9, %v4237_v58  ;;  %v4566_v2 = vsel %vm18638_vm7, %v19099_v43, %v4565_v54  ;;  %v4570_v16 = vor.u32 %v4569_v47, %v4565_v54  ;;  %v4611_v6 = vshll.u32 %v19132_v38, 16  ;;  %v4615_v63 = vshrl.u32 %v19132_v38, 16  ;;  %2162 = vrot.lane.b32.xlu1 %v17268_v51, %s16771_s17  ;;  %v19159_v36 = vld [vmem:[#allocation3 + $0x18] sm:$0xe] }
 0x317   : > { %v4575_v19 = vrot.slane %v4573_v20, 5  ;;  %v4672_v37 = vsel %vm18638_vm7, %v4667_v41, %v4671_v15  ;;  %v4398_v31 = vsel %vm18857_vm15, %v4241_v12, %v4397_v49  ;;  %2156 = vrot.lane.b32.xlu0 %v22917_v13, %s16771_s17  ;;  %v19165_v54 = vld [vmem:[#allocation3 + $0x38] sm:$0x1]  ;;  %v4243_v15 = vpop.permute.xlu0 %4242  ;;  %v4394_v20 = vld [vmem:[#allocation3 + $0x68] sm:$0x1]  ;;  %v22925_v49 = vrot.slane %v18977_v32, 5 }
 0x318   : > { %v4571_v51 = vrot.slane %v4570_v16, 4  ;;  %v4613_v47 = vrot.slane %v4611_v6, 5  ;;  %v4617_v58 = vrot.slane %v4615_v63, 4  ;;  %4399 = vst [vmem:[#allocation3 + $0x6c] sm:$0xf] %v4398_v31  ;;  %v4621_v41 = vshll.u32 %v19165_v54, 16 }
 0x319   : > { %v19168_v43 = vcombine.low %v4662_v28, %v4672_v37  ;;  %v22926_v12 = vrot.slane %v18965_v22, 9  ;;  %4400 = vst.msk [vmem:[#allocation3 + $0x70] sm:$0xf] %vm4336_vm9, %v4243_v15  ;;  %v19186_v63 = vld [vmem:[#allocation3 + $0x5c] sm:$0x1]  ;;  %v22928_v37 = vmov %v22925_v49  ;;  %v4239_v22 = vpop.permute.xlu1 %4238 }
 0x31a   : > { %v4576_v16 = vsel %vm18638_vm7, %v4571_v51, %v4575_v19  ;;  %v4614_v28 = vsel %vm18638_vm7, %v19121_v48, %v4613_v47  ;;  %v4618_v6 = vor.u32 %v4617_v58, %v4613_v47  ;;  %v5505_v31 = vrot.slane %v22928_v37, 4  ;;  %2166 = vrot.lane.b32.xlu1 %v22918_v59, %s16771_s17  ;;  %v4404_v51 = vld [vmem:[#allocation3 + $0x78] sm:$0xf] }
 0x31b   : > { %v19178_v13 = vsel %vm19147_vm5, %v22926_v12, %v22925_v49  ;;  %v4401_v49 = vld [vmem:[#allocation3 + $0x74] sm:$0x1]  ;;  %v14390_v12 = vcombine.low %v4566_v2, %v4576_v16  ;;  %v4623_v15 = vrot.slane %v4621_v41, 5  ;;  %v4693_v7 = vshll.u32 %v19186_v63, 16  ;;  %2160 = vrot.lane.b32.xlu0 %v22919_v50, %s16771_s17 }
 0x31c   : > { %22927 = vst [vmem:[#allocation10_spill] sm:$0xff] %v19178_v13  ;;  %v14454_v19 = vrot.slane %v19159_v36, 9  ;;  %v4395_v48 = vsel %vm18877_vm14, %v4239_v22, %v4394_v20  ;;  %v4619_v47 = vrot.slane %v4618_v6, 4  ;;  %v19198_v58 = vld [vmem:[#allocation3 + $0x60] sm:$0xf]  ;;  %v22929_v59 = vrot.slane %v18944_v55, 5  ;;  %v4245_v36 = vpop.permute.xlu0 %4244 }
 0x31d   : > { %v5510_v41 = vrot.slane %v19097_v25, 5  ;;  %4396 = vst [vmem:[#allocation3 + $0x68] sm:$0x1] %v4395_v48  ;;  %15473 = vmatprep.mubr.msk.bf16.mxu1 %vm600_vm1, %v14390_v12  ;;  %v4695_v20 = vrot.slane %v4693_v7, 5  ;;  %v19208_v16 = vld [vmem:[#allocation3 + $0x64] sm:$0xf]  ;;  %v4402_v37 = vsel %vm18877_vm14, %v4245_v36, %v4401_v49  ;;  %v4247_v12 = vpop.permute.xlu1 %4246 }
 0x31e   : > { %v19204_v2 = vsel %vm19147_vm5, %v5505_v31, %v22929_v59  ;;  %v4698_v50 = vshrl.u32 %v19198_v58, 16  ;;  %v4701_v6 = vshll.u32 %v19198_v58, 16  ;;  %15474 = vmatmul.mubr.msk.bf16.gmra.mrb[8].mxu1 %vm600_vm1, %v19119_v45  ;;  %v4624_v31 = vsel %vm18638_vm7, %v4619_v47, %v4623_v15  ;;  %4403 = vst [vmem:[#allocation3 + $0x74] sm:$0x1] %v4402_v37  ;;  %v4411_v45 = vld [vmem:[#allocation3 + $0x84] sm:$0xf] }
 0x31f   : > { %22930 = vst [vmem:[#allocation11_spill] sm:$0xff] %v19204_v2  ;;  %v4707_v7 = vshll.u32 %v19208_v16, 16  ;;  %v4711_v22 = vshrl.u32 %v19208_v16, 16  ;;  %v14392_v48 = vcombine.low %v4614_v28, %v4624_v31  ;;  %v4696_v59 = vsel %vm18638_vm7, %v19123_v11, %v4695_v20  ;;  %2164 = vrot.lane.b32.xlu0 %v22920_v56, %s16771_s17  ;;  %v19238_v11 = vld [vmem:[#allocation3 + $0x6c] sm:$0xf] }
 0x320   : > { %v4700_v55 = vrot.slane %v4698_v50, 4  ;;  %v4703_v17 = vrot.slane %v4701_v6, 5  ;;  %v4405_v49 = vsel %vm18857_vm15, %v4247_v12, %v4404_v51  ;;  %v22931_v15 = vsel %vm18638_vm7, %v18993_v52, %v19041_v9  ;;  %v4249_v20 = vpop.permute.xlu0 %4248  ;;  %v19241_v50 = vld [vmem:[#allocation3 + $0x70] sm:$0xf] }
 0x321   : > { %v19234_v47 = vcombine.low %v22931_v15, %v4696_v59  ;;  %v19236_v28 = vrot.slane %v4707_v7, 5  ;;  %v4713_v36 = vrot.slane %v4711_v22, 4  ;;  %4406 = vst [vmem:[#allocation3 + $0x78] sm:$0xf] %v4405_v49  ;;  %15477 = vmatprep.mubr.msk.bf16.mxu1 %vm600_vm1, %v14392_v48  ;;  %v4722_v56 = vshrl.u32 %v19238_v11, 16 }
 0x322   : > { %v4704_v51 = vor.u32 %v4703_v17, %v4700_v55  ;;  %v4725_v6 = vshll.u32 %v19238_v11, 16  ;;  %4407 = vst.msk [vmem:[#allocation3 + $0x7c] sm:$0xf] %vm4336_vm9, %v4249_v20  ;;  %v4731_v37 = vshll.u32 %v19241_v50, 16  ;;  %v4735_v31 = vshrl.u32 %v19241_v50, 16  ;;  %v4253_v55 = vpop.permute.xlu1 %4252 }
 0x323   : > { %v4714_v9 = vor.u32 %v4713_v36, %v19236_v28  ;;  %v4724_v22 = vrot.slane %v4722_v56, 4  ;;  %v19255_v48 = vsel %vm19147_vm5, %v14454_v19, %v5510_v41  ;;  %v19257_v59 = vld [vmem:[#allocation3 + $0x30] sm:$0xe]  ;;  %v4412_v49 = vsel %vm18857_vm15, %v4253_v55, %v4411_v45  ;;  %2168 = vrot.lane.b32.xlu0 %v22922_v34, %s16771_s17  ;;  %v4408_v56 = vld [vmem:[#allocation3 + $0x80] sm:$0x1] }
 0x324   : > { %v4705_v7 = vrot.slane %v4704_v51, 4  ;;  %v4727_v12 = vrot.slane %v4725_v6, 5  ;;  %22932 = vst [vmem:[#allocation12_spill] sm:$0xff] %v19255_v48  ;;  %v19263_v15 = vld [vmem:[#allocation3 + $0x68] sm:$0x1]  ;;  %v4733_v20 = vrot.slane %v4731_v37, 5  ;;  %v4255_v51 = vpop.permute.xlu0 %4254 }
 0x325   : > { %v4715_v36 = vrot.slane %v4714_v9, 4  ;;  %v4737_v17 = vrot.slane %v4735_v31, 4  ;;  %4413 = vst [vmem:[#allocation3 + $0x84] sm:$0xf] %v4412_v49  ;;  %v4717_v6 = vshll.u32 %v19263_v15, 16  ;;  %v5512_v2 = vrot.slane %v5510_v41, 4 }
 0x326   : > { %v4710_v19 = vsel %vm18638_vm7, %v4705_v7, %v19236_v28  ;;  %v4728_v52 = vor.u32 %v4727_v12, %v4724_v22  ;;  %4414 = vst.msk [vmem:[#allocation3 + $0x88] sm:$0xf] %vm4336_vm9, %v4255_v51  ;;  %15478 = vmatmul.mubr.msk.bf16.gmra.mrb[12].mxu1 %vm600_vm1, %v19080_v60  ;;  %v19272_v34 = vld [vmem:[#allocation3 + $0x74] sm:$0x1]  ;;  %v5513_v9 = vrot.slane %v19129_v40, 5  ;;  %v5517_v37 = vrot.slane %v19047_v23, 5  ;;  %v4251_v28 = vpop.permute.xlu1 %4250 }
 0x327   : > { %v4738_v45 = vor.u32 %v4737_v17, %v4733_v20  ;;  %v5520_v31 = vrot.slane %v18968_v24, 5  ;;  %15481 = vmatprep.mubr.msk.bf16.mxu1 %vm600_vm1, %v19168_v43  ;;  %v4415_v55 = vld [vmem:[#allocation3 + $0x8c] sm:$0x1]  ;;  %v4719_v41 = vrot.slane %v4717_v6, 5  ;;  %v4741_v22 = vshll.u32 %v19272_v34, 16 }
 0x328   : > { %v4729_v7 = vrot.slane %v4728_v52, 4  ;;  %v14456_v60 = vrot.slane %v19257_v59, 9  ;;  %v4409_v17 = vsel %vm18877_vm14, %v4251_v28, %v4408_v56  ;;  %v19283_v40 = vld [vmem:[#allocation3 + $0x78] sm:$0xf]  ;;  %v19287_v24 = vsel %vm19147_vm5, %v5512_v2, %v5513_v9  ;;  %v4257_v52 = vpop.permute.xlu0 %4256 }
 0x329   : > { %v4739_v12 = vrot.slane %v4738_v45, 4  ;;  %22933 = vst [vmem:[#allocation13_spill] sm:$0xff] %v19287_v24  ;;  %v22934_v43 = vrot.slane %v18987_v33, 9  ;;  %4410 = vst [vmem:[#allocation3 + $0x80] sm:$0x1] %v4409_v17  ;;  %v4720_v59 = vsel %vm18638_vm7, %v4715_v36, %v4719_v41  ;;  %v4743_v56 = vrot.slane %v4741_v22, 5 }
 0x32a   : > { %v4734_v51 = vsel %vm18638_vm7, %v4729_v7, %v4733_v20  ;;  %v19299_v6 = vld [vmem:[#allocation3 + $0x7c] sm:$0xf]  ;;  %v4746_v2 = vshrl.u32 %v19283_v40, 16  ;;  %v4416_v33 = vsel %vm18877_vm14, %v4257_v52, %v4415_v55  ;;  %v14396_v45 = vcombine.low %v4710_v19, %v4720_v59 }
 0x32b   : > { %v19293_v49 = vsel %vm19147_vm5, %v22934_v43, %v5517_v37  ;;  %v4749_v9 = vshll.u32 %v19283_v40, 16  ;;  %v4755_v28 = vshll.u32 %v19299_v6, 16  ;;  %4417 = vst [vmem:[#allocation3 + $0x8c] sm:$0x1] %v4416_v33  ;;  %v4744_v36 = vsel %vm18638_vm7, %v4739_v12, %v4743_v56 }
 0x32c   : > { %v4748_v41 = vrot.slane %v4746_v2, 4  ;;  %v4759_v20 = vshrl.u32 %v19299_v6, 16  ;;  %v14397_v22 = vcombine.low %v4734_v51, %v4744_v36  ;;  %v19311_v13 = vld [vmem:[#allocation3 + $0x84] sm:$0xf]  ;;  %v5519_v56 = vrot.slane %v5517_v37, 4 }
 0x32d   : > { %v4751_v17 = vrot.slane %v4749_v9, 5  ;;  %v4757_v43 = vrot.slane %v4755_v28, 5  ;;  %22935 = vst [vmem:[#allocation16_spill] sm:$0xff] %v19311_v13  ;;  %v19315_v52 = vld [vmem:[#allocation3 + $0x88] sm:$0xf]  ;;  %v4770_v59 = vshrl.u32 %v19311_v13, 16  ;;  %v22966_v30 = vcombine.low %v19283_v40, %v19299_v6 }
 0x32e   : > { %v4761_v55 = vrot.slane %v4759_v20, 4  ;;  %v4773_v12 = vshll.u32 %v19311_v13, 16  ;;  %15482 = vmatmul.mubr.msk.bf16.gmra.mrb[16].mxu1 %vm600_vm1, %v19234_v47  ;;  %v4779_v51 = vshll.u32 %v19315_v52, 16  ;;  %v4783_v33 = vshrl.u32 %v19315_v52, 16  ;;  %v5448_v37 = vld [vmem:[#allocation3 + $0x3c] sm:$0xe] }
 0x32f   : > { %v4752_v2 = vor.u32 %v4751_v17, %v4748_v41  ;;  %15485 = vmatprep.mubr.msk.bf16.mxu1 %vm600_vm1, %v14396_v45  ;;  %v4772_v36 = vrot.slane %v4770_v59, 4  ;;  %v19328_v19 = vsel %vm19147_vm5, %v5519_v56, %v5520_v31  ;;  %v5527_v56 = vrot.slane %v19165_v54, 5  ;;  %v19693_v40 = vld [vmem:[#allocation3 + $0x70] sm:$0xf] }
 0x330   : > { %v4762_v28 = vor.u32 %v4761_v55, %v4757_v43  ;;  %v4775_v20 = vrot.slane %v4773_v12, 5  ;;  %22936 = vst [vmem:[#allocation14_spill] sm:$0xff] %v19328_v19  ;;  %v19330_v7 = vld [vmem:[#allocation3 + $0x80] sm:$0x1]  ;;  %v4781_v41 = vrot.slane %v4779_v51, 5  ;;  %v4785_v17 = vrot.slane %v4783_v33, 4 }
 0x331   : > { %v4753_v47 = vrot.slane %v4752_v2, 4  ;;  %v4765_v9 = vshll.u32 %v19330_v7, 16  ;;  %v5524_v55 = vrot.slane %v19132_v38, 5  ;;  %v14457_v2 = vrot.slane %v5448_v37, 9  ;;  %v5449_v51 = vld [vmem:[#allocation3 + $0x48] sm:$0xe] }
 0x332   : > { %v4763_v48 = vrot.slane %v4762_v28, 4  ;;  %v4776_v45 = vor.u32 %v4775_v20, %v4772_v36  ;;  %v19338_v31 = vld [vmem:[#allocation3 + $0x8c] sm:$0x1]  ;;  %v4786_v12 = vor.u32 %v4785_v17, %v4781_v41  ;;  %v5531_v19 = vrot.slane %v18991_v27, 5  ;;  %v5450_v17 = vld [vmem:[#allocation3 + $0x54] sm:$0xe] }
 0x333   : > { %v4758_v59 = vsel %vm18638_vm7, %v4753_v47, %v4757_v43  ;;  %v4767_v33 = vrot.slane %v4765_v9, 5  ;;  %v4789_v24 = vshll.u32 %v19338_v31, 16  ;;  %v19344_v28 = vsel %vm19147_vm5, %v14456_v60, %v5524_v55 }
 0x334   : > { %v4777_v13 = vrot.slane %v4776_v45, 4  ;;  %v4787_v36 = vrot.slane %v4786_v12, 4  ;;  %v5526_v20 = vrot.slane %v5524_v55, 4  ;;  %v5534_v43 = vrot.slane %v18926_v26, 5  ;;  %v4418_v12 = vld [vmem:[#allocation3 + $0x90] sm:$0xf] }
 0x335   : > { %v4768_v47 = vsel %vm18638_vm7, %v4763_v48, %v4767_v33  ;;  %v4791_v9 = vrot.slane %v4789_v24, 5  ;;  %v14458_v37 = vrot.slane %v5449_v51, 9  ;;  %v19359_v55 = vsel %vm19147_vm5, %v14457_v2, %v5531_v19  ;;  %v5452_v51 = vld [vmem:[#allocation3 + $0x6c] sm:$0xe]  ;;  %v4259_v33 = vpop.permute.xlu1 %4258 }
 0x336   : > { %v4782_v54 = vsel %vm18638_vm7, %v4777_v13, %v4781_v41  ;;  %15486 = vmatmul.mubr.msk.bf16.gmra.mrb[20].mxu1 %vm600_vm1, %v14397_v22  ;;  %v14398_v45 = vcombine.low %v4758_v59, %v4768_v47  ;;  %v19355_v60 = vsel %vm19147_vm5, %v5526_v20, %v5527_v56  ;;  %22938 = vst [vmem:[#allocation15_spill] sm:$0xff] %v19359_v55  ;;  %v5533_v26 = vrot.slane %v5531_v19, 4  ;;  %v5451_v41 = vld [vmem:[#allocation3 + $0x60] sm:$0xe] }
 0x337   : > { %22937 = vst [vmem:[#allocation17_spill] sm:$0xff] %v19355_v60  ;;  %v4792_v48 = vsel %vm18638_vm7, %v4787_v36, %v4791_v9  ;;  %v5538_v24 = vrot.slane %v19075_v61, 5  ;;  %v5541_v22 = vrot.slane %v19095_v53, 5  ;;  %v14459_v19 = vrot.slane %v5450_v17, 9 }
 0x338   : > { %15489 = vmatprep.mubr.msk.bf16.mxu1 %vm600_vm1, %v14398_v45  ;;  %v14399_v59 = vcombine.low %v4782_v54, %v4792_v48  ;;  %v19370_v56 = vsel %vm19147_vm5, %v5533_v26, %v5534_v43  ;;  %v5545_v2 = vrot.slane %v19020_v42, 5  ;;  %v5548_v47 = vrot.slane %v19186_v63, 5  ;;  %v5453_v63 = vld [vmem:[#allocation3 + $0x78] sm:$0xe] }
 0x339   : > { %22939 = vst [vmem:[#allocation18_spill] sm:$0xff] %v19370_v56  ;;  %v19377_v20 = vsel %vm19147_vm5, %v14458_v37, %v5538_v24  ;;  %v5540_v53 = vrot.slane %v5538_v24, 4  ;;  %v4419_v54 = vsel %vm18857_vm15, %v4259_v33, %v4418_v12  ;;  %v14460_v17 = vrot.slane %v5451_v41, 9 }
 0x33a   : > { %22940 = vst [vmem:[#allocation19_spill] sm:$0xff] %v19377_v20  ;;  %v19384_v43 = vsel %vm19147_vm5, %v14459_v19, %v5545_v2  ;;  %v5547_v9 = vrot.slane %v5545_v2, 4  ;;  %4420 = vst [vmem:[#allocation3 + $0x90] sm:$0xf] %v4419_v54  ;;  %v5552_v37 = vrot.slane %v19208_v16, 5  ;;  %v5555_v26 = vrot.slane %v19263_v15, 5 }
 0x33b   : > { %22941 = vst [vmem:[#allocation20_spill] sm:$0xff] %v19384_v43  ;;  %v19388_v45 = vsel %vm19147_vm5, %v5540_v53, %v5541_v22  ;;  %v14461_v48 = vrot.slane %v5452_v51, 9  ;;  %v5559_v41 = vrot.slane %v19241_v50, 5  ;;  %v5562_v19 = vrot.slane %v19272_v34, 5  ;;  %v5454_v2 = vld [vmem:[#allocation3 + $0x84] sm:$0xe] }
 0x33c   : > { %22942 = vst [vmem:[#allocation21_spill] sm:$0xff] %v19388_v45  ;;  %v19396_v24 = vsel %vm19147_vm5, %v5547_v9, %v5548_v47  ;;  %v19404_v15 = vsel %vm19147_vm5, %v14460_v17, %v5552_v37  ;;  %v5554_v51 = vrot.slane %v5552_v37, 4  ;;  %v14462_v53 = vrot.slane %v5453_v63, 9 }
 0x33d   : > { %22943 = vst [vmem:[#allocation23_spill] sm:$0xff] %v19396_v24  ;;  %22944 = vst [vmem:[#allocation22_spill] sm:$0xff] %v19404_v15  ;;  %v5561_v33 = vrot.slane %v5559_v41, 4  ;;  %v5566_v47 = vrot.slane %v19299_v6, 5  ;;  %v5569_v54 = vrot.slane %v19330_v7, 5  ;;  %v14463_v9 = vrot.slane %v5454_v2, 9 }
 0x33e   : > { %15490 = vmatmul.mubr.msk.bf16.gmra.mrb[24].mxu1 %vm600_vm1, %v14399_v59  ;;  %v19411_v34 = vsel %vm19147_vm5, %v5554_v51, %v5555_v26  ;;  %v5573_v22 = vrot.slane %v19315_v52, 5  ;;  %v5576_v12 = vrot.slane %v19338_v31, 5  ;;  %v19419_v59 = vsel %vm19147_vm5, %v14461_v48, %v5559_v41  ;;  %v4261_v2 = vpop.permute.xlu0 %4260 }
 0x33f   : > { %22945 = vst [vmem:[#allocation24_spill] sm:$0xff] %v19411_v34  ;;  %22946 = vst [vmem:[#allocation5_spill] sm:$0xff] %v19419_v59  ;;  %v19423_v37 = vsel %vm19147_vm5, %v5561_v33, %v5562_v19  ;;  %v5568_v7 = vrot.slane %v5566_v47, 4  ;;  %v19429_v31 = vsel %vm19147_vm5, %v14462_v53, %v5566_v47  ;;  %v4425_v53 = vld [vmem:[#allocation3 + $0x9c] sm:$0xf] }
 0x340   : > { %22947 = vst [vmem:[#allocation25_spill] sm:$0xff] %v19423_v37  ;;  %v5575_v63 = vrot.slane %v5573_v22, 4  ;;  %22948 = vst [vmem:[#allocation27_spill] sm:$0xff] %v19429_v31  ;;  %v19440_v41 = vsel %vm19147_vm5, %v14463_v9, %v5573_v22  ;;  %v4422_v9 = vld [vmem:[#allocation3 + $0x98] sm:$0x1] }
 0x341   : > { %v19433_v51 = vsel %vm19147_vm5, %v5568_v7, %v5569_v54  ;;  %4421 = vst.msk [vmem:[#allocation3 + $0x94] sm:$0xf] %vm4336_vm9, %v4261_v2  ;;  %22950 = vst [vmem:[#allocation28_spill] sm:$0xff] %v19440_v41  ;;  %v19448_v47 = vld [vmem:[#allocation3 + $0x90] sm:$0xf] }
 0x342   : > { %22949 = vst [vmem:[#allocation26_spill] sm:$0xff] %v19433_v51  ;;  %v19444_v19 = vsel %vm19147_vm5, %v5575_v63, %v5576_v12  ;;  %v4794_v48 = vshrl.u32 %v19448_v47, 16  ;;  %v4797_v22 = vshll.u32 %v19448_v47, 16  ;;  %v5455_v12 = vld [vmem:[#allocation3 + $0x90] sm:$0xe] }
 0x343   : > { %22951 = vst [vmem:[#allocation29_spill] sm:$0xff] %v19444_v19  ;;  %v4429_v31 = vld [vmem:[#allocation3 + $0xa4] sm:$0x1]  ;;  %v4432_v37 = vld [vmem:[#allocation3 + $0xa8] sm:$0xf] }
 0x347   : > { %v4265_v54 = vpop.permute.xlu1 %4264 }
 0x348   : > { %v4426_v7 = vsel %vm18857_vm15, %v4265_v54, %v4425_v53  ;;  %v19452_v2 = vld [vmem:[#allocation3 + $0x94] sm:$0xf]  ;;  %v4796_v53 = vrot.slane %v4794_v48, 4  ;;  %v4799_v54 = vrot.slane %v4797_v22, 5 }
 0x349   : > { %4427 = vst [vmem:[#allocation3 + $0x9c] sm:$0xf] %v4426_v7  ;;  %v4803_v33 = vshll.u32 %v19452_v2, 16  ;;  %v4807_v26 = vshrl.u32 %v19452_v2, 16  ;;  %v5580_v51 = vrot.slane %v19452_v2, 5 }
 0x34a   : > { %v4800_v41 = vor.u32 %v4799_v54, %v4796_v53 }
 0x34b   : > { %v4263_v63 = vpop.permute.xlu1 %4262  ;;  %v4805_v36 = vrot.slane %v4803_v33, 5  ;;  %v4809_v13 = vrot.slane %v4807_v26, 4  ;;  %v14464_v26 = vrot.slane %v5455_v12, 9  ;;  %v5582_v22 = vrot.slane %v5580_v51, 4 }
 0x34c   : > { %v4423_v17 = vsel %vm18877_vm14, %v4263_v63, %v4422_v9  ;;  %v4801_v9 = vrot.slane %v4800_v41, 4 }
 0x34d   : > { %4424 = vst [vmem:[#allocation3 + $0x98] sm:$0x1] %v4423_v17  ;;  %v4810_v59 = vor.u32 %v4809_v13, %v4805_v36  ;;  %v19472_v53 = vsel %vm19147_vm5, %v14464_v26, %v5580_v51 }
 0x34e   : > { %22952 = vst [vmem:[#allocation30_spill] sm:$0xff] %v19472_v53  ;;  %v4806_v41 = vsel %vm18638_vm7, %v4801_v9, %v4805_v36 }
 0x34f   : > { %v4811_v54 = vrot.slane %v4810_v59, 4 }
 0x350   : > { %v4267_v19 = vpop.permute.xlu0 %4266  ;;  %v19463_v7 = vld [vmem:[#allocation3 + $0x9c] sm:$0xf] }
 0x351   : > { %4428 = vst.msk [vmem:[#allocation3 + $0xa0] sm:$0xf] %vm4336_vm9, %v4267_v19  ;;  %v4818_v48 = vshrl.u32 %v19463_v7, 16  ;;  %v4821_v17 = vshll.u32 %v19463_v7, 16 }
 0x354   : > { %v4269_v34 = vpop.permute.xlu0 %4268  ;;  %v4498_v15 = vld [vmem:[#allocation3 + $0x98] sm:$0x1] }
 0x355   : > { %v4430_v33 = vsel %vm18877_vm14, %v4269_v34, %v4429_v31  ;;  %v4813_v19 = vshll.u32 %v4498_v15, 16  ;;  %v5583_v63 = vrot.slane %v4498_v15, 5  ;;  %v4820_v15 = vrot.slane %v4818_v48, 4 }
 0x356   : > { %4431 = vst [vmem:[#allocation3 + $0xa4] sm:$0x1] %v4430_v33  ;;  %v4823_v33 = vrot.slane %v4821_v17, 5  ;;  %v5456_v17 = vld [vmem:[#allocation3 + $0x9c] sm:$0xe] }
 0x357   : > { %v4815_v24 = vrot.slane %v4813_v19, 5  ;;  %v19478_v12 = vsel %vm19147_vm5, %v5582_v22, %v5583_v63 }
 0x358   : > { %v4271_v13 = vpop.permute.xlu1 %4270  ;;  %22953 = vst [vmem:[#allocation31_spill] sm:$0xff] %v19478_v12  ;;  %v19482_v31 = vld [vmem:[#allocation3 + $0xa0] sm:$0xf]  ;;  %v4824_v63 = vor.u32 %v4823_v33, %v4820_v15  ;;  %v2024_v15 = vld [vmem:[#allocation2 + $0x7a] sm:$0x1] }
 0x359   : > { %v4433_v34 = vsel %vm18857_vm15, %v4271_v13, %v4432_v37  ;;  %v4816_v36 = vsel %vm18638_vm7, %v4811_v54, %v4815_v24  ;;  %v4827_v59 = vshll.u32 %v19482_v31, 16  ;;  %v4831_v9 = vshrl.u32 %v19482_v31, 16 }
 0x35a   : > { %4434 = vst [vmem:[#allocation3 + $0xa8] sm:$0xf] %v4433_v34  ;;  %v14400_v19 = vcombine.low %v4806_v41, %v4816_v36  ;;  %v5587_v37 = vrot.slane %v19482_v31, 5  ;;  %v14465_v24 = vrot.slane %v5456_v17, 9  ;;  %v4825_v45 = vrot.slane %v4824_v63, 4 }
 0x35b   : > { %v4829_v22 = vrot.slane %v4827_v59, 5  ;;  %v4833_v48 = vrot.slane %v4831_v9, 4  ;;  %v4439_v9 = vld [vmem:[#allocation3 + $0xb4] sm:$0xf] }
 0x35c   : > { %15493 = vmatprep.mubr.msk.bf16.mxu1 %vm600_vm1, %v14400_v19  ;;  %v5589_v54 = vrot.slane %v5587_v37, 4  ;;  %v19496_v41 = vsel %vm19147_vm5, %v14465_v24, %v5587_v37 }
 0x35d   : > { %v4499_v13 = vld [vmem:[#allocation3 + $0xa4] sm:$0x1]  ;;  %v4834_v34 = vor.u32 %v4833_v48, %v4829_v22  ;;  %22954 = vst [vmem:[#allocation32_spill] sm:$0xff] %v19496_v41  ;;  %v4830_v33 = vsel %vm18638_vm7, %v4825_v45, %v4829_v22  ;;  %v4436_v48 = vld [vmem:[#allocation3 + $0xb0] sm:$0x1] }
 0x35e   : > { %v4837_v51 = vshll.u32 %v4499_v13, 16  ;;  %v5590_v12 = vrot.slane %v4499_v13, 5 }
 0x35f   : > { %v4835_v53 = vrot.slane %v4834_v34, 4  ;;  %v2018_v34 = vld [vmem:[#allocation2 + $0x78] sm:$0x1] }
 0x360   : > { %v4839_v20 = vrot.slane %v4837_v51, 5  ;;  %v19500_v36 = vsel %vm19147_vm5, %v5589_v54, %v5590_v12 }
 0x361   : > { %22955 = vst [vmem:[#allocation33_spill] sm:$0xff] %v19500_v36  ;;  %v19510_v37 = vld [vmem:[#allocation3 + $0xa8] sm:$0xf] }
 0x362   : > { %v4273_v43 = vpop.permute.xlu0 %4272  ;;  %v4840_v59 = vsel %vm18638_vm7, %v4835_v53, %v4839_v20  ;;  %v4842_v22 = vshrl.u32 %v19510_v37, 16  ;;  %v4845_v20 = vshll.u32 %v19510_v37, 16  ;;  %v5457_v45 = vld [vmem:[#allocation3 + $0xa8] sm:$0xe] }
 0x363   : > { %4435 = vst.msk [vmem:[#allocation3 + $0xac] sm:$0xf] %vm4336_vm9, %v4273_v43  ;;  %v14401_v51 = vcombine.low %v4830_v33, %v4840_v59 }
 0x364   : > { %v4844_v24 = vrot.slane %v4842_v22, 4  ;;  %v4847_v54 = vrot.slane %v4845_v20, 5 }
 0x365   : > { %15494 = vmatmul.mubr.msk.bf16.gmra.mrb[28].mxu1 %vm600_vm1, %v14401_v51 }
 0x368   : > { %v4277_v19 = vpop.permute.xlu1 %4276 }
 0x369   : > { %v4440_v12 = vsel %vm18857_vm15, %v4277_v19, %v4439_v9 }
 0x36a   : > { %v19514_v43 = vld [vmem:[#allocation3 + $0xac] sm:$0xf]  ;;  %4441 = vst [vmem:[#allocation3 + $0xb4] sm:$0xf] %v4440_v12 }
 0x36b   : > { %v4851_v53 = vshll.u32 %v19514_v43, 16  ;;  %v4855_v17 = vshrl.u32 %v19514_v43, 16 }
 0x36c   : > { %v4275_v63 = vpop.permute.xlu1 %4274 }
 0x36d   : > { %v4437_v13 = vsel %vm18877_vm14, %v4275_v63, %v4436_v48  ;;  %v4853_v33 = vrot.slane %v4851_v53, 5  ;;  %v4857_v59 = vrot.slane %v4855_v17, 4  ;;  %v5594_v48 = vrot.slane %v19514_v43, 5  ;;  %v4443_v63 = vld [vmem:[#allocation3 + $0xbc] sm:$0x1] }
 0x36e   : > { %4438 = vst [vmem:[#allocation3 + $0xb0] sm:$0x1] %v4437_v13  ;;  %v4848_v13 = vor.u32 %v4847_v54, %v4844_v24  ;;  %v2021_v54 = vld [vmem:[#allocation2 + $0x79] sm:$0x1] }
 0x36f   : > { %v4858_v22 = vor.u32 %v4857_v59, %v4853_v33  ;;  %v5596_v41 = vrot.slane %v5594_v48, 4 }
 0x370   : > { %v1770_v51 = vpop.permute.xlu1 %1769  ;;  %v4849_v59 = vrot.slane %v4848_v13, 4 }
 0x371   : > { %v2019_v9 = vsel %vm16964_vm4, %v1770_v51, %v2018_v34  ;;  %v4279_v19 = vpop.permute.xlu0 %4278  ;;  %v19526_v12 = vld [vmem:[#allocation3 + $0xb4] sm:$0xf]  ;;  %v4859_v56 = vrot.slane %v4858_v22, 4 }
 0x372   : > { %2020 = vst [vmem:[#allocation2 + $0x78] sm:$0x1] %v2019_v9  ;;  %4442 = vst.msk [vmem:[#allocation3 + $0xb8] sm:$0xf] %vm4336_vm9, %v4279_v19  ;;  %v4866_v53 = vshrl.u32 %v19526_v12, 16  ;;  %v4869_v17 = vshll.u32 %v19526_v12, 16  ;;  %v4854_v13 = vsel %vm18638_vm7, %v4849_v59, %v4853_v33 }
 0x373   : > { %v14466_v9 = vrot.slane %v5457_v45, 9 }
 0x374   : > { %v1774_v20 = vpop.permute.xlu1 %1773  ;;  %v4868_v60 = vrot.slane %v4866_v53, 4  ;;  %v4871_v45 = vrot.slane %v4869_v17, 5  ;;  %v2036_v53 = vld [vmem:[#allocation2 + $0x7e] sm:$0x1] }
 0x375   : > { %v2025_v34 = vsel %vm16964_vm4, %v1774_v20, %v2024_v15  ;;  %v4281_v51 = vpop.permute.xlu0 %4280  ;;  %v4500_v26 = vld [vmem:[#allocation3 + $0xb0] sm:$0x1]  ;;  %v19538_v55 = vsel %vm19147_vm5, %v14466_v9, %v5594_v48 }
 0x376   : > { %2026 = vst [vmem:[#allocation2 + $0x7a] sm:$0x1] %v2025_v34  ;;  %v4444_v19 = vsel %vm18877_vm14, %v4281_v51, %v4443_v63  ;;  %v4861_v36 = vshll.u32 %v4500_v26, 16  ;;  %v5597_v24 = vrot.slane %v4500_v26, 5  ;;  %v2027_v51 = vld [vmem:[#allocation2 + $0x7b] sm:$0x1]  ;;  %v4872_v59 = vor.u32 %v4871_v45, %v4868_v60 }
 0x377   : > { %4445 = vst [vmem:[#allocation3 + $0xbc] sm:$0x1] %v4444_v19 }
 0x378   : > { %v1778_v15 = vpop.permute.xlu1 %1777  ;;  %v4863_v20 = vrot.slane %v4861_v36, 5  ;;  %v19542_v34 = vsel %vm19147_vm5, %v5596_v41, %v5597_v24  ;;  %v4873_v62 = vrot.slane %v4872_v59, 4 }
 0x379   : > { %22956 = vst [vmem:[#allocation34_spill] sm:$0xff] %v19542_v34  ;;  %v2031_v63 = vsel %vm16964_vm4, %v1778_v15, %v2030_v0  ;;  %v1772_v26 = vpop.permute.xlu0 %1771  ;;  %v19548_v22 = vld [vmem:[#allocation3 + $0xb8] sm:$0xf] }
 0x37a   : > { %2032 = vst [vmem:[#allocation2 + $0x7c] sm:$0x1] %v2031_v63  ;;  %v2022_v36 = vsel %vm16964_vm4, %v1772_v26, %v2021_v54  ;;  %v4864_v41 = vsel %vm18638_vm7, %v4859_v56, %v4863_v20  ;;  %v4875_v17 = vshll.u32 %v19548_v22, 16  ;;  %v4879_v0 = vshrl.u32 %v19548_v22, 16  ;;  %v5458_v63 = vld [vmem:[#allocation3 + $0xb4] sm:$0xe] }
 0x37b   : > { %2023 = vst [vmem:[#allocation2 + $0x79] sm:$0x1] %v2022_v36  ;;  %v14402_v33 = vcombine.low %v4854_v13, %v4864_v41  ;;  %v5601_v19 = vrot.slane %v19548_v22, 5  ;;  %v2033_v41 = vld [vmem:[#allocation2 + $0x7d] sm:$0x1]  ;;  %v14467_v9 = vrot.slane %v5458_v63, 9 }
 0x37c   : > { %v1782_v24 = vpop.permute.xlu1 %1781  ;;  %v4877_v15 = vrot.slane %v4875_v17, 5  ;;  %v4881_v54 = vrot.slane %v4879_v0, 4  ;;  %v2402_v17 = vld [vmem:[#allocation2 + $0x78] sm:$0x1] }
 0x37d   : > { %v2037_v56 = vsel %vm16964_vm4, %v1782_v24, %v2036_v53  ;;  %v1776_v20 = vpop.permute.xlu0 %1775  ;;  %15497 = vmatprep.mubr.msk.bf16.mxu1 %vm600_vm1, %v14402_v33  ;;  %v5603_v60 = vrot.slane %v5601_v19, 4 }
 0x37e   : > { %2038 = vst [vmem:[#allocation2 + $0x7e] sm:$0x1] %v2037_v56  ;;  %v2028_v26 = vsel %vm16964_vm4, %v1776_v20, %v2027_v51  ;;  %v4501_v13 = vld [vmem:[#allocation3 + $0xbc] sm:$0x1]  ;;  %v4882_v36 = vor.u32 %v4881_v54, %v4877_v15  ;;  %v19570_v51 = vsel %vm19147_vm5, %v14467_v9, %v5601_v19  ;;  %v2039_v56 = vld [vmem:[#allocation2 + $0x7f] sm:$0x1] }
 0x37f   : > { %2029 = vst [vmem:[#allocation2 + $0x7b] sm:$0x1] %v2028_v26  ;;  %v4885_v48 = vshll.u32 %v4501_v13, 16  ;;  %v5604_v45 = vrot.slane %v4501_v13, 5  ;;  %v19584_v19 = vld [vmem:[#allocation3 + $0x4] sm:$0xf] }
 0x380   : > { %v2155_v0 = vpop.permute.xlu1 %2154  ;;  %v4883_v34 = vrot.slane %v4882_v36, 4  ;;  %v16708_v20 = vld [vmem:[#allocation3] sm:$0xf]  ;;  %v2408_v13 = vld [vmem:[#allocation2 + $0x7a] sm:$0x1] }
 0x381   : > { %v2403_v53 = vsel %vm17422_vm6, %v2155_v0, %v2402_v17  ;;  %v1780_v33 = vpop.permute.xlu0 %1779  ;;  %v4887_v24 = vrot.slane %v4885_v48, 5  ;;  %v19574_v54 = vsel %vm19147_vm5, %v5603_v60, %v5604_v45  ;;  %v4878_v48 = vsel %vm18638_vm7, %v4873_v62, %v4877_v15  ;;  %v2414_v62 = vld [vmem:[#allocation2 + $0x7c] sm:$0x1] }
 0x382   : > { %2404 = vst [vmem:[#allocation2 + $0x78] sm:$0x1] %v2403_v53  ;;  %v2034_v63 = vsel %vm16964_vm4, %v1780_v33, %v2033_v41  ;;  %v14484_v59 = vcombine.low %v19570_v51, %v19574_v54  ;;  %v14420_v26 = vcombine.low %v16708_v20, %v19584_v19  ;;  %v2405_v0 = vld [vmem:[#allocation2 + $0x79] sm:$0x1] }
 0x383   : > { %2035 = vst [vmem:[#allocation2 + $0x7d] sm:$0x1] %v2034_v63  ;;  %v4888_v9 = vsel %vm18638_vm7, %v4883_v34, %v4887_v24 }
 0x384   : > { %v2159_v36 = vpop.permute.xlu1 %2158  ;;  %v14403_v60 = vcombine.low %v4878_v48, %v4888_v9 }
 0x385   : > { %v2409_v41 = vsel %vm17422_vm6, %v2159_v36, %v2408_v13  ;;  %v1784_v45 = vpop.permute.xlu0 %1783  ;;  %v2420_v24 = vld [vmem:[#allocation2 + $0x7e] sm:$0x1]  ;;  %v19606_v13 = vld [vmem:[%s22620_s4 + $0x6] sm:$0x3] }
 0x386   : > { %2410 = vst [vmem:[#allocation2 + $0x7a] sm:$0x1] %v2409_v41  ;;  %v2040_v17 = vsel %vm16964_vm4, %v1784_v45, %v2039_v56  ;;  %15498 = vmatmul.mubr.msk.bf16.gmra.mrb[32].mxu1 %vm600_vm1, %v14403_v60  ;;  %v16709_v56 = vld [vmem:[%s22620_s4 + $0x4] sm:$0x3]  ;;  %v2411_v20 = vld [vmem:[#allocation2 + $0x7b] sm:$0x1]  ;;  %v22957_v60 = vcombine.low %v18904_v14, %v18977_v32  ;;  %v22958_v41 = vcombine.low %v19039_v29, %v19097_v25 }
 0x387   : > { %2041 = vst [vmem:[#allocation2 + $0x7f] sm:$0x1] %v2040_v17  ;;  %15503 = vmatprep.mubr.msk.bf16.mxu1 %vm600_vm1, %v14420_v26  ;;  %v5705_v48 = vsel %vm613_vm0, %v16709_v56, 0  ;;  %v22959_v29 = vcombine.low %v18956_v57, %v19047_v23  ;;  %v387_v56 = vld [vmem:[#allocation3 + $0xc0] sm:$0x1] }
 0x388   : > { %v2163_v34 = vpop.permute.xlu1 %2162  ;;  %v388_v1 = vsel %vm18039_vm10, 0, %v387_v56 }
 0x389   : > { %v2415_v15 = vsel %vm17422_vm6, %v2163_v34, %v2414_v62  ;;  %v2157_v53 = vpop.permute.xlu0 %2156  ;;  %v3016_v14 = vld [vmem:[#allocation2 + $0x78] sm:$0x1]  ;;  %389 = vst [vmem:[#allocation3 + $0xc0] sm:$0x1] %v388_v1 }
 0x38a   : > { %2416 = vst [vmem:[#allocation2 + $0x7c] sm:$0x1] %v2415_v15  ;;  %v2406_v33 = vsel %vm17422_vm6, %v2157_v53, %v2405_v0  ;;  %v2417_v45 = vld [vmem:[#allocation2 + $0x7d] sm:$0x1] }
 0x38b   : > { %2407 = vst [vmem:[#allocation2 + $0x79] sm:$0x1] %v2406_v33 }
 0x38c   : > { %v2167_v63 = vpop.permute.xlu1 %2166 }
 0x38d   : > { %v2421_v9 = vsel %vm17422_vm6, %v2167_v63, %v2420_v24  ;;  %v2161_v26 = vpop.permute.xlu0 %2160  ;;  %v3018_v34 = vld [vmem:[#allocation2 + $0x7a] sm:$0x1]  ;;  %v22960_v24 = vcombine.low %v19066_v18, %v19132_v38 }
 0x38e   : > { %2422 = vst [vmem:[#allocation2 + $0x7e] sm:$0x1] %v2421_v9  ;;  %v2412_v36 = vsel %vm17422_vm6, %v2161_v26, %v2411_v20  ;;  %15504 = vmatmul.mubr.msk.bf16.vlgmr.msra.gmra.mrb[4].mxu1 %vm600_vm1, %v22957_v60  ;;  %v2423_v32 = vld [vmem:[#allocation2 + $0x7f] sm:$0x1]  ;;  %v3872_v0 = vcombine.low %v3016_v14, %v3018_v34  ;;  %v22962_v14 = vcombine.low %v19013_v46, %v19075_v61 }
 0x38f   : > { %2413 = vst [vmem:[#allocation2 + $0x7b] sm:$0x1] %v2412_v36  ;;  %15536 = vmatpush3.bf16.msra.mxu1 %v5705_v48  ;;  %15507 = vmatprep.mubr.msk.bf16.mxu1 %vm600_vm1, %v22958_v41  ;;  %v2456_v48 = vld [vmem:[%s18003_s21 + $0x78] sm:$0xf] }
 0x390   : > { %16598 = vmatprep.subr.msk.bf16.mxu1 %vm613_vm0, %v19606_v13  ;;  %v2716_v9 = vshrl.u32 %v2456_v48, 16  ;;  %v3880_v20 = vrot.slane %v3872_v0, %v17774_v21  ;;  %v2719_v26 = vshll.u32 %v2456_v48, 16  ;;  %v443_v0 = vld [vmem:[#allocation3 + $0xc8] sm:$0x1] }
 0x391   : > { %v2165_v17 = vpop.permute.xlu0 %2164  ;;  %v3020_v18 = vld [vmem:[#allocation2 + $0x7c] sm:$0x1] }
 0x392   : > { %v2418_v62 = vsel %vm17422_vm6, %v2165_v17, %v2417_v45  ;;  %v3017_v53 = vld [vmem:[#allocation2 + $0x79] sm:$0x1]  ;;  %v2718_v36 = vrot.slane %v2716_v9, 7  ;;  %v22961_v17 = vcombine.low %v18916_v8, %v18991_v27 }
 0x393   : > { %2419 = vst [vmem:[#allocation2 + $0x7d] sm:$0x1] %v2418_v62 }
 0x394   : > { %v2721_v45 = vor.u32 %v2719_v26, %v2718_v36  ;;  %v2722_v56 = vrot.slane %v2718_v36, 4  ;;  %v22963_v26 = vcombine.low %v18938_v35, %v19020_v42  ;;  %v22964_v36 = vcombine.low %v19198_v58, %v19208_v16 }
 0x395   : > { %v2169_v15 = vpop.permute.xlu0 %2168  ;;  %v3022_v23 = vld [vmem:[#allocation2 + $0x7e] sm:$0x1]  ;;  %v22965_v16 = vcombine.low %v19238_v11, %v19241_v50  ;;  %v22969_v11 = vcombine.low %v19448_v47, %v19452_v2  ;;  %v5496_v50 = vrot.slane %v19584_v19, 5  ;;  %v19702_v47 = vld [vmem:[#allocation3 + $0x88] sm:$0xf] }
 0x396   : > { %v2424_v25 = vsel %vm17422_vm6, %v2169_v15, %v2423_v32  ;;  %15508 = vmatmul.mubr.msk.bf16.gmra.mrb[8].mxu1 %vm600_vm1, %v22959_v29  ;;  %v3019_v33 = vld [vmem:[#allocation2 + $0x7b] sm:$0x1]  ;;  %v3896_v38 = vcombine.low %v3020_v18, %v3022_v23  ;;  %vm23135_vm6 = vcmask 27648  }
 0x397   : > { %2425 = vst [vmem:[#allocation2 + $0x7f] sm:$0x1] %v2424_v25  ;;  %15511 = vmatprep.mubr.msk.bf16.mxu1 %vm600_vm1, %v22960_v24  ;;  %v3873_v63 = vcombine.low %v3017_v53, %v3019_v33  ;;  %v2457_v25 = vld [vmem:[%s18003_s21 + $0x7c] sm:$0xf]  ;;  %v2889_v53 = vld [vmem:[#allocation3 + $0xc0] sm:$0xf]  ;;  %vm23143_vm2 = vmmov %vm23135_vm6 }
 0x398   : > { %v3904_v29 = vrot.slane %v3896_v38, %v17774_v21  ;;  %v444_v33 = vsel %vm18077_vm11, 0, %v443_v0  ;;  %v2724_v8 = vshrl.u32 %v2457_v25, 16  ;;  %v2890_v46 = vsel %vm18117_vm13, %v2721_v45, %v2889_v53  ;;  %v19695_v0 = vld [vmem:[#allocation3 + $0x74] sm:$0x1]  ;;  %vm23139_vm13 = vmmov %vm23135_vm6 }
 0x399   : > { %v3887_v57 = vrot.slane %v3873_v63, %v17774_v21  ;;  %445 = vst [vmem:[#allocation3 + $0xc8] sm:$0x1] %v444_v33  ;;  %2891 = vst [vmem:[#allocation3 + $0xc0] sm:$0xf] %v2890_v46  ;;  %v2727_v48 = vshll.u32 %v2457_v25, 16  ;;  %v5498_v19 = vrot.slane %v5496_v50, 4 }
 0x39a   : > { %v3021_v62 = vld [vmem:[#allocation2 + $0x7d] sm:$0x1]  ;;  %v2726_v61 = vrot.slane %v2724_v8, 7  ;;  %v6993_v33 = vld [vmem:[#allocation3 + $0x78] sm:$0xe]  ;;  %vm23144_vm3 = vmmov %vm23143_vm2 }
 0x39b   : > { %v3888_v60 = vcombine.low %v3880_v20, %v3887_v57  ;;  %v19697_v25 = vld [vmem:[#allocation3 + $0x7c] sm:$0xf]  ;;  %v19700_v8 = vld [vmem:[#allocation3 + $0x80] sm:$0x1] }
 0x39c   : > { %v2729_v20 = vor.u32 %v2727_v48, %v2726_v61  ;;  %v2731_v23 = vrot.slane %v2726_v61, 4  ;;  %v6994_v61 = vld [vmem:[#allocation3 + $0x84] sm:$0xe]  ;;  %v19707_v48 = vld [vmem:[#allocation3 + $0x8c] sm:$0x1] }
 0x39d   : > { %v3895_v41 = vrot.slane %v3888_v60, %v17774_v21 }
 0x39e   : > { %15512 = vmatmul.mubr.msk.bf16.gmra.mrb[12].mxu1 %vm600_vm1, %v22961_v17  ;;  %v3023_v34 = vld [vmem:[#allocation2 + $0x7f] sm:$0x1]  ;;  %v2730_v5 = vsel %vm18027_vm8, %v2722_v56, %v2729_v20  ;;  %v5443_v17 = vld [vmem:[#allocation3] sm:$0xe]  ;;  %v14576_v20 = vrot.slane %v6993_v33, 9 }
 0x39f   : > { %15515 = vmatprep.mubr.msk.bf16.mxu1 %vm600_vm1, %v22962_v14  ;;  %v4176_v32 = vshrl.u32 %v3895_v41, 16  ;;  %v3897_v15 = vcombine.low %v3021_v62, %v3023_v34  ;;  %v4179_v24 = vshll.u32 %v3895_v41, 16  ;;  %2892 = vst.msk [vmem:[#allocation3 + $0xc4] sm:$0xf] %vm2781_vm12, %v2730_v5  ;;  %v22967_v62 = vld [vmem:[#allocation16_spill] sm:$0xff]  ;;  %v14452_v6 = vrot.slane %v5443_v17, 9 }
 0x3a0   : > { %v2893_v18 = vld [vmem:[#allocation3 + $0xc8] sm:$0x1]  ;;  %v22968_v34 = vcombine.low %v22967_v62, %v19315_v52  ;;  %v19684_v14 = vld [vmem:[#allocation3 + $0x64] sm:$0xf]  ;;  %v6992_v52 = vld [vmem:[#allocation3 + $0x6c] sm:$0xe] }
 0x3a1   : > { %v4178_v27 = vrot.slane %v4176_v32, 7  ;;  %v3911_v63 = vrot.slane %v3897_v15, %v17774_v21  ;;  %v2894_v41 = vsel %vm16964_vm4, %v2731_v23, %v2893_v18  ;;  %v6991_v32 = vld [vmem:[#allocation3 + $0x60] sm:$0xe]  ;;  %v19691_v15 = vld [vmem:[#allocation3 + $0x68] sm:$0x1]  ;;  %v7099_v53 = vrot.slane %v19684_v14, 5 }
 0x3a2   : > { %2895 = vst [vmem:[#allocation3 + $0xc8] sm:$0x1] %v2894_v41  ;;  %v7102_v2 = vrot.slane %v19691_v15, 5  ;;  %v14575_v46 = vrot.slane %v6992_v52, 9  ;;  %v5497_v56 = vsel %vm19147_vm5, %v14452_v6, %v5496_v50  ;;  %v6293_v23 = vld [vmem:[#allocation3 + $0x98] sm:$0x1]  ;;  %v22972_v18 = vcombine.low %v19463_v7, %v19482_v31 }
 0x3a3   : > { %v4181_v1 = vor.u32 %v4179_v24, %v4178_v27  ;;  %v3912_v9 = vcombine.low %v3904_v29, %v3911_v63  ;;  %v4182_v42 = vrot.slane %v4178_v27, 4  ;;  %v14574_v29 = vrot.slane %v6991_v32, 9  ;;  %v16710_v27 = vld [vmem:[#allocation3 + $0x8] sm:$0x1]  ;;  %v19743_v17 = vld [vmem:[#allocation3 + $0xa4] sm:$0x1] }
 0x3a4   : > { %v5499_v24 = vrot.slane %v16710_v27, 5  ;;  %v7101_v63 = vrot.slane %v7099_v53, 4  ;;  %v14577_v41 = vrot.slane %v6994_v61, 9  ;;  %v6298_v32 = vld [vmem:[#allocation3 + $0xac] sm:$0xf] }
 0x3a5   : > { %4282 = vrot.lane.b32.xlu1 %v4181_v1, %s16773_s22  ;;  %v3919_v57 = vrot.slane %v3912_v9, %v17774_v21  ;;  %v7106_v1 = vrot.slane %v19693_v40, 5  ;;  %v7109_v9 = vrot.slane %v19695_v0, 5  ;;  %v8544_v33 = vld [vmem:[#allocation3 + $0x54] sm:$0xe]  ;;  %v7830_v50 = vld [vmem:[#allocation3 + $0x5c] sm:$0x1] }
 0x3a6   : > { %15516 = vmatmul.mubr.msk.bf16.gmra.mrb[16].mxu1 %vm600_vm1, %v22963_v26  ;;  %v19715_v26 = vsel %vm19147_vm5, %v14574_v29, %v7099_v53  ;;  %v19719_v5 = vsel %vm19147_vm5, %v7101_v63, %v7102_v2  ;;  %v7130_v29 = vrot.slane %v6293_v23, 5  ;;  %v19760_v53 = vld [vmem:[#allocation3 + $0xb8] sm:$0xf]  ;;  %vm23134_vm4 = vsmask.f32 7938 }
 0x3a7   : > { %15519 = vmatprep.mubr.msk.bf16.mxu1 %vm600_vm1, %v22964_v36  ;;  %v4184_v60 = vshrl.u32 %v3919_v57, 16  ;;  %v4187_v21 = vshll.u32 %v3919_v57, 16  ;;  %v19711_v57 = vld [vmem:[#allocation3 + $0x94] sm:$0xf]  ;;  %22970 = vst [vmem:[#allocation16_spill] sm:$0xff] %v19715_v26  ;;  %22971 = vst [vmem:[#allocation35_spill] sm:$0xff] %v19719_v5  ;;  %v19738_v7 = vsel %vm19147_vm5, %v14575_v46, %v7106_v1 }
 0x3a8   : > { %v7113_v36 = vrot.slane %v19697_v25, 5  ;;  %22974 = vst [vmem:[#allocation36_spill] sm:$0xff] %v19738_v7  ;;  %v6302_v46 = vld [vmem:[#allocation3 + $0xbc] sm:$0x1]  ;;  %v6276_v5 = vld [vmem:[#allocation3 + $0x54] sm:$0xf]  ;;  %vm20730_vm12 = vmand %vm23135_vm6, %vm23134_vm4 }
 0x3a9   : > { %v4186_v38 = vrot.slane %v4184_v60, 7  ;;  %v7116_v60 = vrot.slane %v19700_v8, 5  ;;  %vm23145_vm4 = vmmov %vm23143_vm2 }
 0x3aa   : > { %v7115_v31 = vrot.slane %v7113_v36, 4 }
 0x3ab   : > { %v4191_v35 = vrot.slane %v4186_v38, 4  ;;  %v4189_v45 = vor.u32 %v4187_v21, %v4186_v38  ;;  %v7108_v21 = vrot.slane %v7106_v1, 4  ;;  %v16635_v38 = vld [vmem:[#allocation3 + $0x18] sm:$0xff]  }
 0x3ac   : > { %v19758_v6 = vsel %vm19147_vm5, %v7115_v31, %v7116_v60  ;;  %v7141_v60 = vrot.slane %v6298_v32, 5 }
 0x3ad   : > { %4286 = vrot.lane.b32.xlu1 %v4191_v35, %s16773_s22  ;;  %v4190_v58 = vsel %vm18027_vm8, %v4182_v42, %v4189_v45  ;;  %v7120_v35 = vrot.slane %v19702_v47, 5  ;;  %v6995_v42 = vld [vmem:[#allocation3 + $0x90] sm:$0xe]  ;;  %v22973_v45 = vcombine.low %v19510_v37, %v19514_v43  ;;  %v19747_v62 = vsel %vm19147_vm5, %v7108_v21, %v7109_v9  ;;  %22977 = vst [vmem:[#allocation39_spill] sm:$0xff] %v19758_v6 }
 0x3ae   : > { %15520 = vmatmul.mubr.msk.bf16.gmra.mrb[20].mxu1 %vm600_vm1, %v22965_v16  ;;  %4284 = vrot.lane.b32.xlu0 %v4190_v58, %s16773_s22  ;;  %v5500_v58 = vsel %vm19147_vm5, %v5498_v19, %v5499_v24  ;;  %v7123_v16 = vrot.slane %v19707_v48, 5  ;;  %22975 = vst [vmem:[#allocation37_spill] sm:$0xff] %v19747_v62  ;;  %v19751_v37 = vsel %vm19147_vm5, %v14576_v20, %v7113_v36  ;;  %v14578_v52 = vrot.slane %v6995_v42, 9  ;;  %v6996_v24 = vld [vmem:[#allocation3 + $0x9c] sm:$0xe] }
 0x3af   : > { %15523 = vmatprep.mubr.msk.bf16.mxu1 %vm600_vm1, %v22966_v30  ;;  %v19741_v30 = vld [vmem:[#allocation3 + $0xa0] sm:$0xf]  ;;  %22976 = vst [vmem:[#allocation38_spill] sm:$0xff] %v19751_v37  ;;  %v7122_v43 = vrot.slane %v7120_v35, 4  ;;  %v19766_v2 = vsel %vm19147_vm5, %v14577_v41, %v7120_v35  ;;  %v14469_v63 = vcombine.low %v5497_v56, %v5500_v58  ;;  %v7137_v9 = vrot.slane %v19743_v17, 5 }
 0x3b0   : > { %22978 = vst [vmem:[#allocation40_spill] sm:$0xff] %v19766_v2  ;;  %v7134_v1 = vrot.slane %v19741_v30, 5  ;;  %v6997_v20 = vld [vmem:[#allocation3 + $0xa8] sm:$0xe]  ;;  %v6998_v56 = vld [vmem:[#allocation3 + $0xb4] sm:$0xe] }
 0x3b1   : > { %v19770_v19 = vsel %vm19147_vm5, %v7122_v43, %v7123_v16  ;;  %v14579_v41 = vrot.slane %v6996_v24, 9  ;;  %v7148_v42 = vrot.slane %v19760_v53, 5  ;;  %v14580_v58 = vrot.slane %v6997_v20, 9  ;;  %v22990_v20 = vld [vmem:[#allocation11_spill] sm:$0xff] }
 0x3b2   : > { %22979 = vst [vmem:[#allocation41_spill] sm:$0xff] %v19770_v19  ;;  %v7136_v35 = vrot.slane %v7134_v1, 4  ;;  %v7143_v31 = vrot.slane %v7141_v60, 4  ;;  %v7151_v16 = vrot.slane %v6302_v46, 5  ;;  %v14581_v32 = vrot.slane %v6998_v56, 9  ;;  %v22993_v56 = vld [vmem:[#allocation13_spill] sm:$0xff] }
 0x3b3   : > { %v19794_v43 = vsel %vm19147_vm5, %v14579_v41, %v7134_v1  ;;  %v6063_v46 = vsel %vm613_vm0, %v19606_v13, 0  ;;  %v14534_v1 = vld [vmem:[%s22620_s4 + $0x8] sm:$0x3] }
 0x3b4   : > { %22983 = vst [vmem:[#allocation44_spill] sm:$0xff] %v19794_v43 }
 0x3b6   : > { %15524 = vmatmul.mubr.msk.bf16.gmra.mrb[24].mxu1 %vm600_vm1, %v22968_v34  ;;  %v7127_v34 = vrot.slane %v19711_v57, 5 }
 0x3b7   : > { %15527 = vmatprep.mubr.msk.bf16.mxu1 %vm600_vm1, %v22969_v11  ;;  %v6299_v11 = vld [vmem:[#allocation3 + $0xb0] sm:$0x1] }
 0x3b8   : > { %v7129_v27 = vrot.slane %v7127_v34, 4  ;;  %v19778_v23 = vsel %vm19147_vm5, %v14578_v52, %v7127_v34  ;;  %v19798_v34 = vsel %vm19147_vm5, %v7136_v35, %v7137_v9  ;;  %v22989_v9 = vld [vmem:[#allocation10_spill] sm:$0xff] }
 0x3b9   : > { %22980 = vst [vmem:[#allocation42_spill] sm:$0xff] %v19778_v23  ;;  %22984 = vst [vmem:[#allocation45_spill] sm:$0xff] %v19798_v34  ;;  %v22995_v35 = vld [vmem:[#allocation14_spill] sm:$0xff] }
 0x3ba   : > { %v19782_v36 = vsel %vm19147_vm5, %v7129_v27, %v7130_v29  ;;  %v19814_v27 = vsel %vm19147_vm5, %v14581_v32, %v7148_v42  ;;  %v22996_v13 = vcombine.low %v19293_v49, %v22995_v35  ;;  %v23002_v32 = vld [vmem:[#allocation19_spill] sm:$0xff]  ;;  %v14687_v29 = vrot.slane %v8544_v33, 9 }
 0x3bb   : > { %22981 = vst [vmem:[#allocation43_spill] sm:$0xff] %v19782_v36  ;;  %22987 = vst [vmem:[#allocation48_spill] sm:$0xff] %v19814_v27 }
 0x3be   : > { %15528 = vmatmul.mubr.msk.bf16.gmra.mrb[28].mxu1 %vm600_vm1, %v22972_v18  ;;  %v7144_v18 = vrot.slane %v6299_v11, 5  ;;  %v7150_v11 = vrot.slane %v7148_v42, 4  ;;  %v22997_v42 = vld [vmem:[#allocation17_spill] sm:$0xff] }
 0x3bf   : > { %15531 = vmatprep.mubr.msk.bf16.mxu1 %vm600_vm1, %v22973_v45  ;;  %v22982_v45 = vcombine.low %v19526_v12, %v19548_v22  ;;  %v19804_v22 = vsel %vm19147_vm5, %v14580_v58, %v7141_v60  ;;  %v22991_v60 = vcombine.low %v22989_v9, %v22990_v20  ;;  %v22999_v58 = vld [vmem:[#allocation15_spill] sm:$0xff]  ;;  %v23005_v9 = vld [vmem:[#allocation20_spill] sm:$0xff] }
 0x3c0   : > { %22985 = vst [vmem:[#allocation46_spill] sm:$0xff] %v19804_v22  ;;  %v19808_v52 = vsel %vm19147_vm5, %v7143_v31, %v7144_v18  ;;  %v19818_v24 = vsel %vm19147_vm5, %v7150_v11, %v7151_v16  ;;  %v22992_v18 = vld [vmem:[#allocation12_spill] sm:$0xff]  ;;  %v23000_v31 = vld [vmem:[#allocation18_spill] sm:$0xff]  ;;  %v23003_v11 = vld [vmem:[#allocation21_spill] sm:$0xff] }
 0x3c1   : > { %22986 = vst [vmem:[#allocation47_spill] sm:$0xff] %v19808_v52  ;;  %22988 = vst [vmem:[#allocation49_spill] sm:$0xff] %v19818_v24  ;;  %v22994_v41 = vcombine.low %v22992_v18, %v22993_v56  ;;  %v23001_v16 = vcombine.low %v22999_v58, %v23000_v31  ;;  %v23006_v20 = vld [vmem:[#allocation23_spill] sm:$0xff]  ;;  %v23009_v18 = vld [vmem:[#allocation24_spill] sm:$0xff] }
 0x3c2   : > { %v23007_v49 = vcombine.low %v23005_v9, %v23006_v20  ;;  %v23011_v56 = vld [vmem:[#allocation5_spill] sm:$0xff]  ;;  %v23017_v58 = vld [vmem:[#allocation28_spill] sm:$0xff]  ;;  %v6270_v24 = vld [vmem:[#allocation3 + $0x3c] sm:$0xf] }
 0x3c3   : > { %v23018_v31 = vld [vmem:[#allocation29_spill] sm:$0xff]  ;;  %v23023_v9 = vld [vmem:[#allocation32_spill] sm:$0xff] }
 0x3c4   : > { %v23024_v20 = vld [vmem:[#allocation33_spill] sm:$0xff]  ;;  %v8543_v12 = vld [vmem:[#allocation3 + $0x48] sm:$0xe]  ;;  %v20097_v52 = vld [vmem:[#allocation3 + $0x4c] sm:$0xf] }
 0x3c5   : > { %23058 = vst [vmem:[#allocation8_spill] sm:$0xff] %v20097_v52 }
 0x3c6   : > { %15532 = vmatmul.mubr.msk.bf16.gmra.mrb[32].mxu1 %vm600_vm1, %v22982_v45  ;;  %v22998_v45 = vcombine.low %v19344_v28, %v22997_v42  ;;  %v23015_v42 = vld [vmem:[#allocation26_spill] sm:$0xff] }
 0x3c7   : > { %15537 = vmatprep.mubr.msk.bf16.mxu1 %vm600_vm1, %v14469_v63  ;;  %v7827_v63 = vld [vmem:[#allocation3 + $0x50] sm:$0x1] }
 0x3ce   : > { %15538 = vmatmul.mubr.msk.bf16.vlgmr.msra.gmra.mrb[4].mxu1 %vm600_vm1, %v22991_v60  ;;  %v23008_v60 = vld [vmem:[#allocation22_spill] sm:$0xff] }
 0x3cf   : > { %15570 = vmatpush3.bf16.msra.mxu1 %v6063_v46  ;;  %15541 = vmatprep.mubr.msk.bf16.mxu1 %vm600_vm1, %v22994_v41  ;;  %v23004_v46 = vcombine.low %v23002_v32, %v23003_v11  ;;  %v23010_v28 = vcombine.low %v23008_v60, %v23009_v18  ;;  %v23012_v41 = vld [vmem:[#allocation25_spill] sm:$0xff]  ;;  %v23020_v32 = vld [vmem:[#allocation30_spill] sm:$0xff]  ;;  %v23021_v11 = vld [vmem:[#allocation31_spill] sm:$0xff] }
 0x3d0   : > { %16599 = vmatprep.subr.msk.bf16.mxu1 %vm613_vm0, %v14534_v1  ;;  %v23013_v35 = vcombine.low %v23011_v56, %v23012_v41  ;;  %v7814_v60 = vld [vmem:[#allocation3 + $0x1c] sm:$0xf]  ;;  %v7815_v56 = vld [vmem:[#allocation3 + $0x20] sm:$0x1]  ;;  %v8539_v41 = vld [vmem:[#allocation3 + $0x18] sm:$0xe] }
 0x3d1   : > { %v23026_v18 = vld [vmem:[#allocation34_spill] sm:$0xff] }
 0x3d6   : > { %15542 = vmatmul.mubr.msk.bf16.gmra.mrb[8].mxu1 %vm600_vm1, %v22996_v13  ;;  %v23014_v13 = vld [vmem:[#allocation27_spill] sm:$0xff] }
 0x3d7   : > { %15545 = vmatprep.mubr.msk.bf16.mxu1 %vm600_vm1, %v22998_v45  ;;  %v23016_v45 = vcombine.low %v23014_v13, %v23015_v42  ;;  %v7817_v13 = vld [vmem:[#allocation3 + $0x28] sm:$0xf]  ;;  %v7818_v42 = vld [vmem:[#allocation3 + $0x2c] sm:$0x1] }
 0x3de   : > { %15546 = vmatmul.mubr.msk.bf16.gmra.mrb[12].mxu1 %vm600_vm1, %v23001_v16  ;;  %v23019_v16 = vcombine.low %v23017_v58, %v23018_v31  ;;  %v7820_v58 = vld [vmem:[#allocation3 + $0x34] sm:$0xf]  ;;  %v14682_v31 = vrot.slane %v8539_v41, 9  ;;  %v7826_v41 = vld [vmem:[#allocation3 + $0x4c] sm:$0xf] }
 0x3df   : > { %15549 = vmatprep.mubr.msk.bf16.mxu1 %vm600_vm1, %v23004_v46  ;;  %v23022_v46 = vcombine.low %v23020_v32, %v23021_v11  ;;  %v8540_v32 = vld [vmem:[#allocation3 + $0x24] sm:$0xe]  ;;  %v7821_v11 = vld [vmem:[#allocation3 + $0x38] sm:$0x1] }
 0x3e0   : > { %v8622_v61 = vrot.slane %v7821_v11, 5  ;;  %v8545_v11 = vld [vmem:[#allocation3 + $0x60] sm:$0xe] }
 0x3e1   : > { %v14688_v4 = vrot.slane %v8545_v11, 9 }
 0x3e6   : > { %15550 = vmatmul.mubr.msk.bf16.gmra.mrb[16].mxu1 %vm600_vm1, %v23007_v49  ;;  %v23025_v49 = vcombine.low %v23023_v9, %v23024_v20  ;;  %v8541_v9 = vld [vmem:[#allocation3 + $0x30] sm:$0xe] }
 0x3e7   : > { %15553 = vmatprep.mubr.msk.bf16.mxu1 %vm600_vm1, %v23010_v28  ;;  %v23027_v28 = vcombine.low %v19538_v55, %v23026_v18  ;;  %v16634_v20 = vld [vmem:[#allocation3 + $0xc] sm:$0xff]   ;;  %v14684_v21 = vrot.slane %v8541_v9, 9  ;;  %v14686_v9 = vrot.slane %v8543_v12, 9  ;;  %v7838_v12 = vld [vmem:[#allocation3 + $0x7c] sm:$0xf] }
 0x3ee   : > { %15554 = vmatmul.mubr.msk.bf16.gmra.mrb[20].mxu1 %vm600_vm1, %v23013_v35  ;;  %v8605_v35 = vrot.slane %v7814_v60, 5  ;;  %v8612_v60 = vrot.slane %v7817_v13, 5 }
 0x3ef   : > { %15557 = vmatprep.mubr.msk.bf16.mxu1 %vm600_vm1, %v23016_v45  ;;  %v8608_v45 = vrot.slane %v7815_v56, 5  ;;  %v6789_v56 = vsel %vm613_vm0, %v14534_v1, 0 }
 0x3f0   : > { %v19886_v55 = vsel %vm19147_vm5, %v14682_v31, %v8605_v35  ;;  %v8619_v31 = vrot.slane %v7820_v58, 5  ;;  %v8614_v13 = vrot.slane %v8612_v60, 4 }
 0x3f1   : > { %23028 = vst [vmem:[#allocation10_spill] sm:$0xff] %v19886_v55 }
 0x3f2   : > { %v8621_v54 = vrot.slane %v8619_v31, 4 }
 0x3f6   : > { %15558 = vmatmul.mubr.msk.bf16.gmra.mrb[24].mxu1 %vm600_vm1, %v23019_v16  ;;  %v8607_v16 = vrot.slane %v8605_v35, 4  ;;  %v14683_v35 = vrot.slane %v8540_v32, 9  ;;  %v19910_v32 = vsel %vm19147_vm5, %v14684_v21, %v8619_v31  ;;  %v7835_v21 = vld [vmem:[#allocation3 + $0x70] sm:$0xf]  ;;  %v8636_v31 = vrot.slane %v7827_v63, 5 }
 0x3f7   : > { %15561 = vmatprep.mubr.msk.bf16.mxu1 %vm600_vm1, %v23022_v46  ;;  %v7823_v46 = vld [vmem:[#allocation3 + $0x40] sm:$0xf]  ;;  %23032 = vst [vmem:[#allocation14_spill] sm:$0xff] %v19910_v32 }
 0x3f8   : > { %v19890_v18 = vsel %vm19147_vm5, %v8607_v16, %v8608_v45  ;;  %v7829_v45 = vld [vmem:[#allocation3 + $0x58] sm:$0xf]  ;;  %v8615_v16 = vrot.slane %v7818_v42, 5  ;;  %v19902_v51 = vsel %vm19147_vm5, %v14683_v35, %v8612_v60  ;;  %v8626_v1 = vrot.slane %v7823_v46, 5 }
 0x3f9   : > { %23029 = vst [vmem:[#allocation11_spill] sm:$0xff] %v19890_v18  ;;  %23030 = vst [vmem:[#allocation12_spill] sm:$0xff] %v19902_v51  ;;  %v19916_v46 = vsel %vm19147_vm5, %v8621_v54, %v8622_v61  ;;  %v8640_v61 = vrot.slane %v7829_v45, 5  ;;  %v8643_v54 = vrot.slane %v7830_v50, 5  ;;  %v8549_v51 = vld [vmem:[#allocation3 + $0x90] sm:$0xe] }
 0x3fa   : > { %v19906_v58 = vsel %vm19147_vm5, %v8614_v13, %v8615_v16  ;;  %23033 = vst [vmem:[#allocation17_spill] sm:$0xff] %v19916_v46  ;;  %v8628_v35 = vrot.slane %v8626_v1, 4  ;;  %v16636_v13 = vld [vmem:[#allocation3 + $0x24] sm:$0xff]   ;;  %v7845_v46 = vld [vmem:[#allocation3 + $0x98] sm:$0x1] }
 0x3fb   : > { %23031 = vst [vmem:[#allocation13_spill] sm:$0xff] %v19906_v58  ;;  %v7833_v16 = vld [vmem:[#allocation3 + $0x68] sm:$0x1]  ;;  %v7836_v58 = vld [vmem:[#allocation3 + $0x74] sm:$0x1]  ;;  %v19942_v50 = vsel %vm19147_vm5, %v14687_v29, %v8640_v61 }
 0x3fc   : > { %23037 = vst [vmem:[#allocation21_spill] sm:$0xff] %v19942_v50  ;;  %v8650_v11 = vrot.slane %v7833_v16, 5  ;;  %v7841_v29 = vld [vmem:[#allocation3 + $0x88] sm:$0xf]  ;;  %v8654_v16 = vrot.slane %v7835_v21, 5  ;;  %v16637_v21 = vld [vmem:[#allocation3 + $0x30] sm:$0xff]  }
 0x3fd   : > { %v8668_v32 = vrot.slane %v7841_v29, 5  ;;  %v7847_v18 = vld [vmem:[#allocation3 + $0xa0] sm:$0xf] }
 0x3fe   : > { %15562 = vmatmul.mubr.msk.bf16.gmra.mrb[28].mxu1 %vm600_vm1, %v23025_v49  ;;  %v7824_v49 = vld [vmem:[#allocation3 + $0x44] sm:$0x1] }
 0x3ff   : > { %15565 = vmatprep.mubr.msk.bf16.mxu1 %vm600_vm1, %v23027_v28  ;;  %v8542_v28 = vld [vmem:[#allocation3 + $0x3c] sm:$0xe]  ;;  %v8629_v42 = vrot.slane %v7824_v49, 5  ;;  %v8633_v49 = vrot.slane %v7826_v41, 5  ;;  %v7839_v41 = vld [vmem:[#allocation3 + $0x80] sm:$0x1] }
 0x401   : > { %v19926_v60 = vsel %vm19147_vm5, %v8628_v35, %v8629_v42  ;;  %v8635_v63 = vrot.slane %v8633_v49, 4  ;;  %v19938_v45 = vsel %vm19147_vm5, %v14686_v9, %v8633_v49  ;;  %v8642_v42 = vrot.slane %v8640_v61, 4  ;;  %v8547_v35 = vld [vmem:[#allocation3 + $0x78] sm:$0xe]  ;;  %v8548_v61 = vld [vmem:[#allocation3 + $0x84] sm:$0xe] }
 0x402   : > { %23035 = vst [vmem:[#allocation18_spill] sm:$0xff] %v19926_v60  ;;  %23036 = vst [vmem:[#allocation19_spill] sm:$0xff] %v19938_v45  ;;  %v7844_v60 = vld [vmem:[#allocation3 + $0x94] sm:$0xf]  ;;  %v14691_v45 = vrot.slane %v8548_v61, 9 }
 0x406   : > { %15566 = vmatmul.mubr.msk.bf16.gmra.mrb[32].mxu1 %vm600_vm1, %v14484_v59  ;;  %v14685_v59 = vrot.slane %v8542_v28, 9 }
 0x407   : > { %15571 = vmatprep.mubr.msk.bf16.mxu1 %vm600_vm1, %v16634_v20  ;;  %v7832_v20 = vld [vmem:[#allocation3 + $0x64] sm:$0xf] }
 0x408   : > { %v19920_v28 = vsel %vm19147_vm5, %v14685_v59, %v8626_v1  ;;  %v8546_v59 = vld [vmem:[#allocation3 + $0x6c] sm:$0xe]  ;;  %v19931_v1 = vld [vmem:[%s22620_s4 + $0xa] sm:$0x3]  ;;  %v8647_v33 = vrot.slane %v7832_v20, 5  ;;  %v19947_v20 = vsel %vm19147_vm5, %v8635_v63, %v8636_v31  ;;  %v8657_v31 = vrot.slane %v7836_v58, 5 }
 0x409   : > { %23034 = vst [vmem:[#allocation15_spill] sm:$0xff] %v19920_v28  ;;  %23038 = vst [vmem:[#allocation20_spill] sm:$0xff] %v19947_v20  ;;  %v14689_v49 = vrot.slane %v8546_v59, 9  ;;  %v7842_v63 = vld [vmem:[#allocation3 + $0x8c] sm:$0x1]  ;;  %v8661_v28 = vrot.slane %v7838_v12, 5 }
 0x40a   : > { %v8649_v9 = vrot.slane %v8647_v33, 4  ;;  %v4446_v58 = vld [vmem:[#allocation3 + $0xc0] sm:$0xf] }
 0x40b   : > { %v8663_v20 = vrot.slane %v8661_v28, 4 }
 0x40c   : > { %v19965_v59 = vsel %vm19147_vm5, %v8649_v9, %v8650_v11  ;;  %v19971_v11 = vsel %vm19147_vm5, %v14689_v49, %v8654_v16  ;;  %v8675_v9 = vrot.slane %v7844_v60, 5 }
 0x40d   : > { %23041 = vst [vmem:[#allocation24_spill] sm:$0xff] %v19965_v59  ;;  %23042 = vst [vmem:[#allocation5_spill] sm:$0xff] %v19971_v11  ;;  %v7851_v59 = vld [vmem:[#allocation3 + $0xb0] sm:$0x1] }
 0x40e   : > { %15572 = vmatmul.mubr.msk.bf16.vlgmr.msra.gmra.mrb[4].mxu1 %vm600_vm1, %v16635_v38  ;;  %v19951_v38 = vsel %vm19147_vm5, %v14688_v4, %v8647_v33  ;;  %v14690_v33 = vrot.slane %v8547_v35, 9  ;;  %v7848_v4 = vld [vmem:[#allocation3 + $0xa4] sm:$0x1]  ;;  %v8671_v35 = vrot.slane %v7842_v63, 5  ;;  %v8677_v63 = vrot.slane %v8675_v9, 4 }
 0x40f   : > { %15604 = vmatpush3.bf16.msra.mxu1 %v6789_v56  ;;  %15575 = vmatprep.mubr.msk.bf16.mxu1 %vm600_vm1, %v16636_v13  ;;  %23039 = vst [vmem:[#allocation23_spill] sm:$0xff] %v19951_v38  ;;  %v19959_v13 = vsel %vm19147_vm5, %v8642_v42, %v8643_v54  ;;  %v8656_v54 = vrot.slane %v8654_v16, 4  ;;  %v8664_v42 = vrot.slane %v7839_v41, 5  ;;  %v16638_v56 = vld [vmem:[#allocation3 + $0x3c] sm:$0xff]   ;;  %v7850_v41 = vld [vmem:[#allocation3 + $0xac] sm:$0xf] }
 0x410   : > { %16600 = vmatprep.subr.msk.bf16.mxu1 %vm613_vm0, %v19931_v1  ;;  %23040 = vst [vmem:[#allocation22_spill] sm:$0xff] %v19959_v13  ;;  %v19981_v29 = vsel %vm19147_vm5, %v14690_v33, %v8661_v28  ;;  %v8670_v16 = vrot.slane %v8668_v32, 4  ;;  %v8550_v38 = vld [vmem:[#allocation3 + $0x9c] sm:$0xe]  ;;  %v7854_v28 = vld [vmem:[#allocation3 + $0xbc] sm:$0x1]  ;;  %v19993_v33 = vsel %vm19147_vm5, %v14691_v45, %v8668_v32 }
 0x411   : > { %v19975_v12 = vsel %vm19147_vm5, %v8656_v54, %v8657_v31  ;;  %23044 = vst [vmem:[#allocation27_spill] sm:$0xff] %v19981_v29  ;;  %v19985_v49 = vsel %vm19147_vm5, %v8663_v20, %v8664_v42  ;;  %v14692_v31 = vrot.slane %v8549_v51, 9  ;;  %v8678_v54 = vrot.slane %v7845_v46, 5  ;;  %23046 = vst [vmem:[#allocation28_spill] sm:$0xff] %v19993_v33  ;;  %v8551_v45 = vld [vmem:[#allocation3 + $0xa8] sm:$0xe] }
 0x412   : > { %23043 = vst [vmem:[#allocation25_spill] sm:$0xff] %v19975_v12  ;;  %23045 = vst [vmem:[#allocation26_spill] sm:$0xff] %v19985_v49  ;;  %v7853_v12 = vld [vmem:[#allocation3 + $0xb8] sm:$0xf]  ;;  %v19997_v20 = vsel %vm19147_vm5, %v8670_v16, %v8671_v35  ;;  %v8682_v42 = vrot.slane %v7847_v18, 5  ;;  %v8689_v16 = vrot.slane %v7850_v41, 5 }
 0x413   : > { %23047 = vst [vmem:[#allocation29_spill] sm:$0xff] %v19997_v20  ;;  %v20009_v32 = vsel %vm19147_vm5, %v8677_v63, %v8678_v54  ;;  %v8696_v60 = vrot.slane %v7853_v12, 5  ;;  %v8699_v46 = vrot.slane %v7854_v28, 5  ;;  %v14694_v63 = vrot.slane %v8551_v45, 9 }
 0x414   : > { %23050 = vst [vmem:[#allocation31_spill] sm:$0xff] %v20009_v32  ;;  %v8684_v35 = vrot.slane %v8682_v42, 4  ;;  %v8691_v54 = vrot.slane %v8689_v16, 4  ;;  %v16640_v32 = vld [vmem:[#allocation3 + $0x54] sm:$0xff]  }
 0x415   : > { %v8698_v41 = vrot.slane %v8696_v60, 4  ;;  %v20025_v12 = vsel %vm19147_vm5, %v14694_v63, %v8689_v16  ;;  %v16641_v63 = vld [vmem:[#allocation3 + $0x60] sm:$0xff]  }
 0x416   : > { %15576 = vmatmul.mubr.msk.bf16.gmra.mrb[8].mxu1 %vm600_vm1, %v16637_v21  ;;  %v8685_v21 = vrot.slane %v7848_v4, 5  ;;  %v14693_v4 = vrot.slane %v8550_v38, 9  ;;  %23053 = vst [vmem:[#allocation34_spill] sm:$0xff] %v20025_v12  ;;  %v20063_v12 = vld [vmem:[#allocation3 + $0x28] sm:$0xf] }
 0x417   : > { %15579 = vmatprep.mubr.msk.bf16.mxu1 %vm600_vm1, %v16638_v56  ;;  %v4283_v61 = vpop.permute.xlu1 %4282  ;;  %v20005_v56 = vsel %vm19147_vm5, %v14692_v31, %v8675_v9  ;;  %v20040_v45 = vsel %vm19147_vm5, %v8698_v41, %v8699_v46  ;;  %v6258_v46 = vld [vmem:[#allocation3 + $0xc] sm:$0xf]  ;;  %v6364_v29 = vshll.u32 %v20063_v12, 16  ;;  %v6368_v11 = vshrl.u32 %v20063_v12, 16 }
 0x418   : > { %v4447_v51 = vsel %vm18857_vm15, %v4283_v61, %v4446_v58  ;;  %23049 = vst [vmem:[#allocation30_spill] sm:$0xff] %v20005_v56  ;;  %v8552_v58 = vld [vmem:[#allocation3 + $0xb4] sm:$0xe]  ;;  %v8692_v61 = vrot.slane %v7851_v59, 5  ;;  %v20015_v9 = vsel %vm19147_vm5, %v14693_v4, %v8682_v42  ;;  %v20019_v31 = vsel %vm19147_vm5, %v8684_v35, %v8685_v21  ;;  %v4450_v59 = vld [vmem:[#allocation3 + $0xc8] sm:$0x1]  ;;  %vm23142_vm15 = vmmov %vm23135_vm6 }
 0x419   : > { %4448 = vst [vmem:[#allocation3 + $0xc0] sm:$0xf] %v4447_v51  ;;  %23051 = vst [vmem:[#allocation32_spill] sm:$0xff] %v20015_v9  ;;  %v16639_v51 = vld [vmem:[#allocation3 + $0x48] sm:$0xff]   ;;  %v14695_v18 = vrot.slane %v8552_v58, 9  ;;  %v6307_v41 = vshrl.u32 %v6258_v46, 16 }
 0x41a   : > { %23052 = vst [vmem:[#allocation33_spill] sm:$0xff] %v20019_v31  ;;  %v20029_v28 = vsel %vm19147_vm5, %v8691_v54, %v8692_v61  ;;  %23056 = vst [vmem:[#allocation51_spill] sm:$0xff] %v20040_v45  ;;  %v20058_v35 = vld [vmem:[#allocation3 + $0x14] sm:$0x1]  ;;  %v20083_v50 = vrot.slane %v6364_v29, 5  ;;  %v6370_v55 = vrot.slane %v6368_v11, 4 }
 0x41b   : > { %23054 = vst [vmem:[#allocation9_spill] sm:$0xff] %v20029_v28  ;;  %v20036_v21 = vsel %vm19147_vm5, %v14695_v18, %v8696_v60  ;;  %v16642_v18 = vld [vmem:[#allocation3 + $0x6c] sm:$0xff]  }
 0x41c   : > { %23055 = vst [vmem:[#allocation50_spill] sm:$0xff] %v20036_v21  ;;  %v20049_v60 = vld [vmem:[#allocation3 + $0x10] sm:$0xf] }
 0x41d   : > { %v6320_v54 = vshrl.u32 %v20049_v60, 16 }
 0x41e   : > { %15580 = vmatmul.mubr.msk.bf16.gmra.mrb[12].mxu1 %vm600_vm1, %v16639_v51  ;;  %v16643_v51 = vld [vmem:[#allocation3 + $0x78] sm:$0xff]  }
 0x41f   : > { %15583 = vmatprep.mubr.msk.bf16.mxu1 %vm600_vm1, %v16640_v32  ;;  %v4287_v4 = vpop.permute.xlu1 %4286  ;;  %v6316_v32 = vshll.u32 %v20049_v60, 16 }
 0x420   : > { %v4451_v58 = vsel %vm18877_vm14, %v4287_v4, %v4450_v59  ;;  %v4285_v61 = vpop.permute.xlu0 %4284  ;;  %v16644_v59 = vld [vmem:[#allocation3 + $0x84] sm:$0xff]   ;;  %v6310_v4 = vshll.u32 %v6258_v46, 16  ;;  %vm23140_vm14 = vmmov %vm23135_vm6 }
 0x421   : > { %4452 = vst [vmem:[#allocation3 + $0xc8] sm:$0x1] %v4451_v58  ;;  %4449 = vst.msk [vmem:[#allocation3 + $0xc4] sm:$0xf] %vm4336_vm9, %v4285_v61  ;;  %v6318_v16 = vrot.slane %v6316_v32, 5  ;;  %v6322_v58 = vrot.slane %v6320_v54, 4 }
 0x422   : > { %v6261_v61 = vld [vmem:[#allocation3 + $0x18] sm:$0xf]  ;;  %v6312_v42 = vrot.slane %v6310_v4, 5  ;;  %v6326_v32 = vshll.u32 %v20058_v35, 16  ;;  %v6264_v54 = vld [vmem:[#allocation3 + $0x24] sm:$0xf]  ;;  %vm23141_vm9 = vmmov %vm23135_vm6 }
 0x423   : > { %v6323_v38 = vor.u32 %v6322_v58, %v6318_v16  ;;  %v6331_v45 = vshrl.u32 %v6261_v61, 16  ;;  %v6334_v21 = vshll.u32 %v6261_v61, 16  ;;  %v6355_v61 = vshrl.u32 %v6264_v54, 16  ;;  %vm23146_vm6 = vmmov %vm23143_vm2 }
 0x424   : > { %v6358_v33 = vshll.u32 %v6264_v54, 16  ;;  %v6328_v49 = vrot.slane %v6326_v32, 5 }
 0x425   : > { %v6324_v9 = vrot.slane %v6323_v38, 4  ;;  %v6333_v56 = vrot.slane %v6331_v45, 4  ;;  %v6336_v20 = vrot.slane %v6334_v21, 5  ;;  %v20073_v38 = vld [vmem:[#allocation3 + $0x34] sm:$0xf]  ;;  %v6357_v32 = vrot.slane %v6355_v61, 4 }
 0x426   : > { %15584 = vmatmul.mubr.msk.bf16.gmra.mrb[16].mxu1 %vm600_vm1, %v16641_v63  ;;  %v20056_v63 = vld [vmem:[#allocation3 + $0x1c] sm:$0xf]  ;;  %v16648_v61 = vld [vmem:[#allocation3 + $0xb4] sm:$0xff]  }
 0x427   : > { %15587 = vmatprep.mubr.msk.bf16.mxu1 %vm600_vm1, %v16642_v18  ;;  %v6309_v18 = vrot.slane %v6307_v41, 4  ;;  %v6340_v28 = vshll.u32 %v20056_v63, 16  ;;  %v6344_v46 = vshrl.u32 %v20056_v63, 16  ;;  %v20066_v41 = vld [vmem:[#allocation3 + $0x20] sm:$0x1]  ;;  %v6329_v45 = vsel %vm18638_vm7, %v6324_v9, %v6328_v49  ;;  %v16647_v49 = vld [vmem:[#allocation3 + $0xa8] sm:$0xff]  }
 0x428   : > { %v20103_v43 = vld [vmem:[#allocation3 + $0xc8] sm:$0x1] }
 0x429   : > { %v6313_v31 = vor.u32 %v6312_v42, %v6309_v18  ;;  %v20068_v4 = vrot.slane %v6340_v28, 5  ;;  %v6346_v58 = vrot.slane %v6344_v46, 4  ;;  %v6267_v42 = vld [vmem:[#allocation3 + $0x30] sm:$0xf]  ;;  %v6337_v18 = vor.u32 %v6336_v20, %v6333_v56  ;;  %v20078_v46 = vld [vmem:[#allocation3 + $0x40] sm:$0xf] }
 0x42a   : > { %v6350_v28 = vshll.u32 %v20066_v41, 16  ;;  %v6379_v13 = vshrl.u32 %v6267_v42, 16  ;;  %v6382_v3 = vshll.u32 %v6267_v42, 16  ;;  %v6392_v56 = vshrl.u32 %v20073_v38, 16  ;;  %v6273_v42 = vld [vmem:[#allocation3 + $0x48] sm:$0xf] }
 0x42b   : > { %v6314_v21 = vrot.slane %v6313_v31, 4  ;;  %v6347_v54 = vor.u32 %v6346_v58, %v20068_v4  ;;  %v6388_v31 = vshll.u32 %v20073_v38, 16  ;;  %v6412_v9 = vshll.u32 %v20078_v46, 16  ;;  %v20090_v58 = vld [vmem:[#allocation3 + $0xc4] sm:$0xf] }
 0x42c   : > { %v20092_v27 = vrot.slane %v6337_v18, 4  ;;  %v20094_v29 = vrot.slane %v6350_v28, 5  ;;  %v6416_v11 = vshrl.u32 %v20078_v46, 16  ;;  %v6381_v34 = vrot.slane %v6379_v13, 4 }
 0x42d   : > { %v6319_v20 = vsel %vm18638_vm7, %v6314_v21, %v6318_v16  ;;  %v20100_v16 = vrot.slane %v6347_v54, 4  ;;  %v6384_v18 = vrot.slane %v6382_v3, 5  ;;  %v20107_v28 = vrot.slane %v6388_v31, 5 }
 0x42e   : > { %15588 = vmatmul.mubr.msk.bf16.gmra.mrb[20].mxu1 %vm600_vm1, %v16643_v51  ;;  %v16645_v51 = vld [vmem:[#allocation3 + $0x90] sm:$0xff]   ;;  %v7155_v36 = vrot.slane %v20090_v58, 5  ;;  %v6394_v23 = vrot.slane %v6392_v56, 4  ;;  %v6406_v54 = vshll.u32 %v6270_v24, 16  ;;  %v20110_v19 = vrot.slane %v6412_v9, 5 }
 0x42f   : > { %15591 = vmatprep.mubr.msk.bf16.mxu1 %vm600_vm1, %v16644_v59  ;;  %v16646_v59 = vld [vmem:[#allocation3 + $0x9c] sm:$0xff]   ;;  %v6418_v13 = vrot.slane %v6416_v11, 4  ;;  %v6427_v6 = vshrl.u32 %v6273_v42, 16  ;;  %v6436_v3 = vshll.u32 %v20097_v52, 16  ;;  %v6440_v31 = vshrl.u32 %v20097_v52, 16 }
 0x430   : > { %v7157_v2 = vrot.slane %v7155_v36, 4  ;;  %v20117_v56 = vld [vmem:[#allocation3 + $0x44] sm:$0x1]  ;;  %v6385_v7 = vor.u32 %v6384_v18, %v6381_v34  ;;  %v6408_v52 = vrot.slane %v6406_v54, 5  ;;  %v6451_v54 = vshrl.u32 %v6276_v5, 16 }
 0x431   : > { %23059 = vst [vmem:[#allocation52_spill] sm:$0xff] %v20117_v56  ;;  %v16649_v11 = vld [vmem:[#allocation3 + $0xc0] sm:$0xff]   ;;  %v6442_v34 = vrot.slane %v6440_v31, 4  ;;  %v6422_v18 = vshll.u32 %v20117_v56, 16 }
 0x436   : > { %15592 = vmatmul.mubr.msk.bf16.gmra.mrb[24].mxu1 %vm600_vm1, %v16645_v51  ;;  %v20081_v51 = vld [vmem:[#allocation3 + $0x2c] sm:$0x1] }
 0x437   : > { %15595 = vmatprep.mubr.msk.bf16.mxu1 %vm600_vm1, %v16646_v59  ;;  %v6360_v59 = vrot.slane %v6358_v33, 5  ;;  %v14535_v33 = vcombine.low %v6319_v20, %v6329_v45  ;;  %v6374_v22 = vshll.u32 %v20081_v51, 16  ;;  %v6371_v45 = vor.u32 %v6370_v55, %v20083_v50  ;;  %v6999_v20 = vld [vmem:[#allocation3 + $0xc0] sm:$0xe] }
 0x438   : > { %v6430_v55 = vshll.u32 %v6273_v42, 16 }
 0x439   : > { %v6361_v21 = vor.u32 %v6360_v59, %v6357_v32  ;;  %v20112_v32 = vld [vmem:[#allocation3 + $0x38] sm:$0x1]  ;;  %v14582_v59 = vrot.slane %v6999_v20, 9  ;;  %v6376_v62 = vrot.slane %v6374_v22, 5  ;;  %v6372_v20 = vrot.slane %v6371_v45, 4 }
 0x43a   : > { %v6398_v42 = vshll.u32 %v20112_v32, 16  ;;  %v6395_v22 = vor.u32 %v6394_v23, %v20107_v28  ;;  %v20135_v45 = vrot.slane %v6436_v3, 5  ;;  %v6343_v23 = vsel %vm18638_vm7, %v20092_v27, %v20068_v4 }
 0x43b   : > { %v6362_v37 = vrot.slane %v6361_v21, 4  ;;  %v6386_v3 = vrot.slane %v6385_v7, 4  ;;  %v7259_v7 = vsel %vm613_vm0, %v19931_v1, 0 }
 0x43c   : > { %v6396_v27 = vrot.slane %v6395_v22, 4  ;;  %v6400_v4 = vrot.slane %v6398_v42, 5 }
 0x43e   : > { %15596 = vmatmul.mubr.msk.bf16.gmra.mrb[28].mxu1 %vm600_vm1, %v16647_v49  ;;  %v6403_v49 = vshrl.u32 %v6270_v24, 16  ;;  %v20121_v24 = vsel %vm19147_vm5, %v14582_v59, %v7155_v36  ;;  %v6419_v36 = vor.u32 %v6418_v13, %v20110_v19  ;;  %v20133_v59 = vld [vmem:[#allocation3 + $0x50] sm:$0x1]  ;;  %v6454_v13 = vshll.u32 %v6276_v5, 16 }
 0x43f   : > { %15599 = vmatprep.mubr.msk.bf16.mxu1 %vm600_vm1, %v16648_v61  ;;  %v7158_v61 = vrot.slane %v20103_v43, 5  ;;  %23060 = vst [vmem:[#allocation53_spill] sm:$0xff] %v20121_v24  ;;  %v6443_v5 = vor.u32 %v6442_v34, %v20135_v45 }
 0x440   : > { %v6405_v26 = vrot.slane %v6403_v49, 4  ;;  %v20143_v49 = vld [vmem:[#allocation3 + $0x58] sm:$0xf]  ;;  %v6456_v56 = vrot.slane %v6454_v13, 5  ;;  %v6508_v13 = vshll.u32 %v19693_v40, 16 }
 0x441   : > { %v20125_v9 = vsel %vm19147_vm5, %v7157_v2, %v7158_v61  ;;  %v6429_v2 = vrot.slane %v6427_v6, 4  ;;  %v6432_v61 = vrot.slane %v6430_v55, 5  ;;  %v6353_v6 = vsel %vm18638_vm7, %v20100_v16, %v20094_v29 }
 0x442   : > { %23061 = vst [vmem:[#allocation54_spill] sm:$0xff] %v20125_v9  ;;  %v6377_v55 = vsel %vm18638_vm7, %v6372_v20, %v6376_v62  ;;  %v6409_v31 = vor.u32 %v6408_v52, %v6405_v26  ;;  %v6446_v9 = vshll.u32 %v20133_v59, 16  ;;  %v6460_v24 = vshll.u32 %v20143_v49, 16  ;;  %v20160_v20 = vld [vmem:[#allocation3 + $0x5c] sm:$0x1] }
 0x443   : > { %v6433_v21 = vor.u32 %v6432_v61, %v6429_v2  ;;  %v6424_v29 = vrot.slane %v6422_v18, 5  ;;  %v6453_v16 = vrot.slane %v6451_v54, 4  ;;  %v6391_v26 = vsel %vm18638_vm7, %v6386_v3, %v20107_v28  ;;  %v20172_v2 = vld [vmem:[%s22620_s4 + $0xc] sm:$0x3] }
 0x444   : > { %v6401_v52 = vsel %vm18638_vm7, %v6396_v27, %v6400_v4  ;;  %v6410_v42 = vrot.slane %v6409_v31, 4  ;;  %v6444_v61 = vrot.slane %v6443_v5, 4  ;;  %v6448_v34 = vrot.slane %v6446_v9, 5  ;;  %v6282_v28 = vld [vmem:[#allocation3 + $0x6c] sm:$0xf] }
 0x445   : > { %v6434_v1 = vrot.slane %v6433_v21, 4  ;;  %v6457_v18 = vor.u32 %v6456_v56, %v6453_v16  ;;  %v6484_v3 = vshll.u32 %v19684_v14, 16  ;;  %v6488_v21 = vshrl.u32 %v19684_v14, 16 }
 0x446   : > { %15600 = vmatmul.mubr.msk.bf16.gmra.mrb[32].mxu1 %vm600_vm1, %v16649_v11  ;;  %v6420_v11 = vrot.slane %v6419_v36, 4  ;;  %v6279_v36 = vld [vmem:[#allocation3 + $0x60] sm:$0xf]  ;;  %v6470_v56 = vshll.u32 %v20160_v20, 16  ;;  %v6499_v9 = vshrl.u32 %v6282_v28, 16  ;;  %v6502_v27 = vshll.u32 %v6282_v28, 16 }
 0x447   : > { %15605 = vmatprep.mubr.msk.bf16.mxu1 %vm600_vm1, %v14535_v33  ;;  %v6367_v33 = vsel %vm18638_vm7, %v6362_v37, %v20083_v50  ;;  %v6464_v37 = vshrl.u32 %v20143_v49, 16  ;;  %v14536_v50 = vcombine.low %v6343_v23, %v6353_v6  ;;  %v20175_v23 = vrot.slane %v6460_v24, 5 }
 0x448   : > { %v14537_v62 = vcombine.low %v6367_v33, %v6377_v55  ;;  %v6425_v22 = vsel %vm18638_vm7, %v6420_v11, %v6424_v29  ;;  %v6512_v6 = vshrl.u32 %v19693_v40, 16  ;;  %v6475_v33 = vshrl.u32 %v6279_v36, 16 }
 0x449   : > { %v6466_v54 = vrot.slane %v6464_v37, 4  ;;  %v6478_v55 = vshll.u32 %v6279_v36, 16  ;;  %v6415_v24 = vsel %vm18638_vm7, %v6410_v42, %v20110_v19  ;;  %v14538_v4 = vcombine.low %v6391_v26, %v6401_v52  ;;  %v6285_v19 = vld [vmem:[#allocation3 + $0x78] sm:$0xf] }
 0x44a   : > { %v14539_v31 = vcombine.low %v6415_v24, %v6425_v22  ;;  %v6439_v40 = vsel %vm18638_vm7, %v6434_v1, %v20135_v45  ;;  %v6449_v14 = vsel %vm18638_vm7, %v6444_v61, %v6448_v34  ;;  %v6458_v11 = vrot.slane %v6457_v18, 4 }
 0x44b   : > { %v6467_v5 = vor.u32 %v6466_v54, %v20175_v23  ;;  %v20194_v29 = vrot.slane %v6508_v13, 5  ;;  %v6514_v16 = vrot.slane %v6512_v6, 4  ;;  %v6477_v37 = vrot.slane %v6475_v33, 4  ;;  %v6288_v6 = vld [vmem:[#allocation3 + $0x84] sm:$0xf] }
 0x44c   : > { %v6472_v26 = vrot.slane %v6470_v56, 5  ;;  %v6494_v52 = vshll.u32 %v19691_v15, 16  ;;  %v6501_v42 = vrot.slane %v6499_v9, 4  ;;  %v6504_v22 = vrot.slane %v6502_v27, 5 }
 0x44d   : > { %v6518_v45 = vshll.u32 %v19695_v0, 16  ;;  %v6523_v36 = vshrl.u32 %v6285_v19, 16  ;;  %v6526_v1 = vshll.u32 %v6285_v19, 16  ;;  %v6532_v61 = vshll.u32 %v19697_v25, 16 }
 0x44e   : > { %15606 = vmatmul.mubr.msk.bf16.vlgmr.msra.gmra.mrb[4].mxu1 %vm600_vm1, %v14536_v50  ;;  %v6480_v50 = vrot.slane %v6478_v55, 5  ;;  %v14540_v34 = vcombine.low %v6439_v40, %v6449_v14  ;;  %v6468_v28 = vrot.slane %v6467_v5, 4  ;;  %v6515_v18 = vor.u32 %v6514_v16, %v20194_v29 }
 0x44f   : > { %15638 = vmatpush3.bf16.msra.mxu1 %v7259_v7  ;;  %15609 = vmatprep.mubr.msk.bf16.mxu1 %vm600_vm1, %v14537_v62  ;;  %v6486_v7 = vrot.slane %v6484_v3, 5  ;;  %v6490_v62 = vrot.slane %v6488_v21, 4  ;;  %v6536_v54 = vshrl.u32 %v19697_v25, 16  ;;  %v6556_v33 = vshll.u32 %v19702_v47, 16 }
 0x450   : > { %16601 = vmatprep.subr.msk.bf16.mxu1 %vm613_vm0, %v20172_v2  ;;  %v6481_v13 = vor.u32 %v6480_v50, %v6477_v37  ;;  %v6560_v55 = vshrl.u32 %v19702_v47, 16  ;;  %v6463_v0 = vsel %vm18638_vm7, %v6458_v11, %v20175_v23  ;;  %v6473_v3 = vsel %vm18638_vm7, %v6468_v28, %v6472_v26 }
 0x451   : > { %v6491_v15 = vor.u32 %v6490_v62, %v6486_v7  ;;  %v6496_v21 = vrot.slane %v6494_v52, 5  ;;  %v6505_v24 = vor.u32 %v6504_v22, %v6501_v42  ;;  %v6520_v56 = vrot.slane %v6518_v45, 5 }
 0x452   : > { %v6525_v9 = vrot.slane %v6523_v36, 4  ;;  %v6528_v27 = vrot.slane %v6526_v1, 5  ;;  %v20210_v25 = vrot.slane %v6532_v61, 5  ;;  %v6547_v40 = vshrl.u32 %v6288_v6, 16  ;;  %v6291_v61 = vld [vmem:[#allocation3 + $0x90] sm:$0xf] }
 0x453   : > { %v6550_v14 = vshll.u32 %v6288_v6, 16  ;;  %v6482_v5 = vrot.slane %v6481_v13, 4  ;;  %v6492_v47 = vrot.slane %v6491_v15, 4  ;;  %v20212_v16 = vrot.slane %v6556_v33, 5 }
 0x454   : > { %v6562_v19 = vrot.slane %v6560_v55, 4  ;;  %v14541_v23 = vcombine.low %v6463_v0, %v6473_v3  ;;  %v6506_v11 = vrot.slane %v6505_v24, 4  ;;  %v6529_v50 = vor.u32 %v6528_v27, %v6525_v9 }
 0x455   : > { %v6497_v37 = vsel %vm18638_vm7, %v6492_v47, %v6496_v21  ;;  %v6542_v62 = vshll.u32 %v19700_v8, 16  ;;  %v6549_v42 = vrot.slane %v6547_v40, 4  ;;  %v6552_v22 = vrot.slane %v6550_v14, 5 }
 0x456   : > { %15610 = vmatmul.mubr.msk.bf16.gmra.mrb[8].mxu1 %vm600_vm1, %v14538_v4  ;;  %v6516_v4 = vrot.slane %v6515_v18, 4  ;;  %v6487_v45 = vsel %vm18638_vm7, %v6482_v5, %v6486_v7  ;;  %v6563_v36 = vor.u32 %v6562_v19, %v20212_v16  ;;  %v6566_v1 = vshll.u32 %v19707_v48, 16  ;;  %v6294_v18 = vld [vmem:[#allocation3 + $0x9c] sm:$0xf]  ;;  %v16711_v19 = vld [vmem:[#allocation3 + $0x98] sm:$0x1] }
 0x457   : > { %15613 = vmatprep.mubr.msk.bf16.mxu1 %vm600_vm1, %v14539_v31  ;;  %v6538_v31 = vrot.slane %v6536_v54, 4  ;;  %v6511_v8 = vsel %vm18638_vm7, %v6506_v11, %v20194_v29  ;;  %v6584_v28 = vshrl.u32 %v19711_v57, 16  ;;  %v6604_v54 = vshll.u32 %v19741_v30, 16 }
 0x458   : > { %v6521_v26 = vsel %vm18638_vm7, %v6516_v4, %v6520_v56  ;;  %v6608_v13 = vshrl.u32 %v19741_v30, 16  ;;  %v14542_v15 = vcombine.low %v6487_v45, %v6497_v37  ;;  %v6530_v6 = vrot.slane %v6529_v50, 4 }
 0x459   : > { %v6539_v52 = vor.u32 %v6538_v31, %v20210_v25  ;;  %v14543_v7 = vcombine.low %v6511_v8, %v6521_v26  ;;  %v6544_v33 = vrot.slane %v6542_v62, 5  ;;  %v6553_v48 = vor.u32 %v6552_v22, %v6549_v42  ;;  %v6300_v8 = vld [vmem:[#allocation3 + $0xb4] sm:$0xf] }
 0x45a   : > { %v6571_v0 = vshrl.u32 %v6291_v61, 16  ;;  %v6574_v3 = vshll.u32 %v6291_v61, 16  ;;  %v6564_v21 = vrot.slane %v6563_v36, 4  ;;  %v6568_v24 = vrot.slane %v6566_v1, 5  ;;  %v16712_v1 = vld [vmem:[#allocation3 + $0xac] sm:$0xf] }
 0x45b   : > { %v6540_v55 = vrot.slane %v6539_v52, 4  ;;  %v6595_v29 = vshrl.u32 %v6294_v18, 16  ;;  %v6586_v9 = vrot.slane %v6584_v28, 4  ;;  %v20235_v27 = vrot.slane %v6604_v54, 5  ;;  %v6297_v52 = vld [vmem:[#allocation3 + $0xa8] sm:$0xf] }
 0x45c   : > { %v6610_v4 = vrot.slane %v6608_v13, 4  ;;  %v6554_v31 = vrot.slane %v6553_v48, 4  ;;  %v6573_v40 = vrot.slane %v6571_v0, 4  ;;  %v6576_v14 = vrot.slane %v6574_v3, 5 }
 0x45d   : > { %v6545_v30 = vsel %vm18638_vm7, %v6540_v55, %v6544_v33  ;;  %v6535_v5 = vsel %vm18638_vm7, %v6530_v6, %v20210_v25  ;;  %v6569_v47 = vsel %vm18638_vm7, %v6564_v21, %v6568_v24  ;;  %v6597_v11 = vrot.slane %v6595_v29, 4 }
 0x45e   : > { %15614 = vmatmul.mubr.msk.bf16.gmra.mrb[12].mxu1 %vm600_vm1, %v14540_v34  ;;  %v6580_v34 = vshll.u32 %v19711_v57, 16  ;;  %v6598_v57 = vshll.u32 %v6294_v18, 16  ;;  %v6611_v62 = vor.u32 %v6610_v4, %v20235_v27  ;;  %v6614_v26 = vshll.u32 %v19743_v17, 16 }
 0x45f   : > { %15617 = vmatprep.mubr.msk.bf16.mxu1 %vm600_vm1, %v14541_v23  ;;  %v6590_v23 = vshll.u32 %v16711_v19, 16  ;;  %v14544_v42 = vcombine.low %v6535_v5, %v6545_v30  ;;  %v6652_v22 = vshll.u32 %v19760_v53, 16  ;;  %v6656_v45 = vshrl.u32 %v19760_v53, 16  ;;  %v16714_v19 = vld [vmem:[#allocation3 + $0xbc] sm:$0x1] }
 0x460   : > { %v20233_v56 = vrot.slane %v6580_v34, 5  ;;  %v6600_v50 = vrot.slane %v6598_v57, 5  ;;  %v6559_v25 = vsel %vm18638_vm7, %v6554_v31, %v20212_v16  ;;  %v6577_v36 = vor.u32 %v6576_v14, %v6573_v40 }
 0x461   : > { %v6628_v61 = vshll.u32 %v16712_v1, 16  ;;  %v6632_v34 = vshrl.u32 %v16712_v1, 16  ;;  %v14545_v28 = vcombine.low %v6559_v25, %v6569_v47  ;;  %v6592_v18 = vrot.slane %v6590_v23, 5 }
 0x462   : > { %v6587_v37 = vor.u32 %v6586_v9, %v20233_v56  ;;  %v6619_v54 = vshrl.u32 %v6297_v52, 16  ;;  %v6622_v13 = vshll.u32 %v6297_v52, 16  ;;  %v6616_v6 = vrot.slane %v6614_v26, 5  ;;  %v16713_v9 = vld [vmem:[#allocation3 + $0xb0] sm:$0x1] }
 0x463   : > { %v6643_v53 = vshrl.u32 %v6300_v8, 16  ;;  %v6646_v33 = vshll.u32 %v6300_v8, 16  ;;  %v6654_v55 = vrot.slane %v6652_v22, 5  ;;  %v6658_v48 = vrot.slane %v6656_v45, 4 }
 0x464   : > { %v6588_v17 = vrot.slane %v6587_v37, 4  ;;  %v6578_v16 = vrot.slane %v6577_v36, 4  ;;  %v6630_v0 = vrot.slane %v6628_v61, 5  ;;  %v6634_v3 = vrot.slane %v6632_v34, 4 }
 0x465   : > { %v6621_v24 = vrot.slane %v6619_v54, 4  ;;  %v6624_v29 = vrot.slane %v6622_v13, 5  ;;  %v6638_v57 = vshll.u32 %v16713_v9, 16  ;;  %v6676_v31 = vshll.u32 %v20090_v58, 16 }
 0x466   : > { %15618 = vmatmul.mubr.msk.bf16.gmra.mrb[16].mxu1 %vm600_vm1, %v14542_v15  ;;  %v6601_v15 = vor.u32 %v6600_v50, %v6597_v11  ;;  %v6593_v21 = vsel %vm18638_vm7, %v6588_v17, %v6592_v18  ;;  %v6680_v40 = vshrl.u32 %v20090_v58, 16  ;;  %v6645_v14 = vrot.slane %v6643_v53, 4  ;;  %v6303_v11 = vld [vmem:[#allocation3 + $0xc0] sm:$0xf] }
 0x467   : > { %15621 = vmatprep.mubr.msk.bf16.mxu1 %vm600_vm1, %v14543_v7  ;;  %v6612_v7 = vrot.slane %v6611_v62, 4  ;;  %v6648_v5 = vrot.slane %v6646_v33, 5  ;;  %v6659_v47 = vor.u32 %v6658_v48, %v6654_v55  ;;  %v6662_v23 = vshll.u32 %v16714_v19, 16 }
 0x468   : > { %v6602_v4 = vrot.slane %v6601_v15, 4  ;;  %v6583_v37 = vsel %vm18638_vm7, %v6578_v16, %v20233_v56  ;;  %v6635_v62 = vor.u32 %v6634_v3, %v6630_v0  ;;  %v6640_v22 = vrot.slane %v6638_v57, 5 }
 0x469   : > { %v6617_v30 = vsel %vm18638_vm7, %v6612_v7, %v6616_v6  ;;  %v14546_v26 = vcombine.low %v6583_v37, %v6593_v21  ;;  %v6667_v58 = vshrl.u32 %v6303_v11, 16  ;;  %v6670_v45 = vshll.u32 %v6303_v11, 16  ;;  %v6986_v11 = vld [vmem:[#allocation3 + $0x24] sm:$0xe] }
 0x46a   : > { %v6607_v50 = vsel %vm18638_vm7, %v6602_v4, %v20235_v27  ;;  %v6678_v25 = vrot.slane %v6676_v31, 5  ;;  %v6682_v36 = vrot.slane %v6680_v40, 4  ;;  %v6649_v1 = vor.u32 %v6648_v5, %v6645_v14 }
 0x46b   : > { %v14547_v52 = vcombine.low %v6607_v50, %v6617_v30  ;;  %v6660_v61 = vrot.slane %v6659_v47, 4  ;;  %v6664_v34 = vrot.slane %v6662_v23, 5  ;;  %v6636_v56 = vrot.slane %v6635_v62, 4 }
 0x46c   : > { %v6672_v18 = vrot.slane %v6670_v45, 5  ;;  %v6683_v54 = vor.u32 %v6682_v36, %v6678_v25  ;;  %v6650_v13 = vrot.slane %v6649_v1, 4  ;;  %v7050_v15 = vrot.slane %v20049_v60, 5  ;;  %v390_v60 = vld [vmem:[#allocation3 + $0xcc] sm:$0x1] }
 0x46d   : > { %v6641_v27 = vsel %vm18638_vm7, %v6636_v56, %v6640_v22  ;;  %v6665_v17 = vsel %vm18638_vm7, %v6660_v61, %v6664_v34  ;;  %v6686_v6 = vshll.u32 %v20103_v43, 16  ;;  %v7053_v9 = vrot.slane %v20058_v35, 5  ;;  %v14649_v36 = vld [vmem:[%s22620_s4 + $0xe] sm:$0x3]  ;;  %v6988_v61 = vld [vmem:[#allocation3 + $0x3c] sm:$0xe] }
 0x46e   : > { %15622 = vmatmul.mubr.msk.bf16.gmra.mrb[20].mxu1 %vm600_vm1, %v14544_v42  ;;  %v6625_v42 = vor.u32 %v6624_v29, %v6621_v24  ;;  %v6655_v33 = vsel %vm18638_vm7, %v6650_v13, %v6654_v55  ;;  %v6684_v3 = vrot.slane %v6683_v54, 4  ;;  %v7052_v21 = vrot.slane %v7050_v15, 4  ;;  %v6984_v29 = vld [vmem:[#allocation3 + $0xc] sm:$0xe] }
 0x46f   : > { %15625 = vmatprep.mubr.msk.bf16.mxu1 %vm600_vm1, %v14545_v28  ;;  %v6669_v28 = vrot.slane %v6667_v58, 4  ;;  %v14549_v48 = vcombine.low %v6655_v33, %v6665_v17  ;;  %v6688_v24 = vrot.slane %v6686_v6, 5  ;;  %v391_v43 = vsel %vm18039_vm10, 0, %v390_v60  ;;  %v6989_v33 = vld [vmem:[#allocation3 + $0x48] sm:$0xe] }
 0x470   : > { %v6626_v8 = vrot.slane %v6625_v42, 4  ;;  %v7057_v57 = vrot.slane %v20056_v63, 5  ;;  %392 = vst [vmem:[#allocation3 + $0xcc] sm:$0x1] %v391_v43  ;;  %v14567_v4 = vrot.slane %v6984_v29, 9  ;;  %v7054_v30 = vsel %vm19147_vm5, %v7052_v21, %v7053_v9  ;;  %v23064_v43 = vld [vmem:[#allocation16_spill] sm:$0xff] }
 0x471   : > { %v6673_v16 = vor.u32 %v6672_v18, %v6669_v28  ;;  %v6689_v55 = vsel %vm18638_vm7, %v6684_v3, %v6688_v24  ;;  %v7064_v31 = vrot.slane %v20063_v12, 5  ;;  %v7060_v19 = vrot.slane %v20066_v41, 5  ;;  %v6985_v63 = vld [vmem:[#allocation3 + $0x18] sm:$0xe] }
 0x472   : > { %v6631_v7 = vsel %vm18638_vm7, %v6626_v8, %v6630_v0  ;;  %v7051_v14 = vsel %vm19147_vm5, %v14567_v4, %v7050_v15  ;;  %v7059_v47 = vrot.slane %v7057_v57, 4  ;;  %v7067_v12 = vrot.slane %v20081_v51, 5  ;;  %v23063_v8 = vld [vmem:[#allocation8_spill] sm:$0xff]  ;;  %v23068_v4 = vld [vmem:[#allocation37_spill] sm:$0xff] }
 0x473   : > { %v14548_v53 = vcombine.low %v6631_v7, %v6641_v27  ;;  %v6674_v0 = vrot.slane %v6673_v16, 4  ;;  %v14584_v5 = vcombine.low %v7051_v14, %v7054_v30  ;;  %v7066_v23 = vrot.slane %v7064_v31, 4  ;;  %v6990_v16 = vld [vmem:[#allocation3 + $0x54] sm:$0xe]  ;;  %v23073_v14 = vld [vmem:[#allocation40_spill] sm:$0xff] }
 0x474   : > { %v14568_v37 = vrot.slane %v6985_v63, 9  ;;  %v7061_v50 = vsel %vm19147_vm5, %v7059_v47, %v7060_v19  ;;  %v7071_v62 = vrot.slane %v20073_v38, 5  ;;  %v7078_v41 = vrot.slane %v20078_v46, 5  ;;  %v6987_v46 = vld [vmem:[#allocation3 + $0x30] sm:$0xe]  ;;  %v23076_v19 = vld [vmem:[#allocation42_spill] sm:$0xff] }
 0x475   : > { %v6679_v40 = vsel %vm18638_vm7, %v6674_v0, %v6678_v25  ;;  %v7618_v58 = vsel %vm613_vm0, %v20172_v2, 0  ;;  %v7074_v38 = vrot.slane %v20112_v32, 5  ;;  %v23062_v2 = vld [vmem:[#allocation52_spill] sm:$0xff]  ;;  %v14570_v56 = vrot.slane %v6987_v46, 9  ;;  %v23065_v0 = vld [vmem:[#allocation35_spill] sm:$0xff] }
 0x476   : > { %15626 = vmatmul.mubr.msk.bf16.gmra.mrb[24].mxu1 %vm600_vm1, %v14546_v26  ;;  %v14550_v35 = vcombine.low %v6679_v40, %v6689_v55  ;;  %v14569_v26 = vrot.slane %v6986_v11, 9  ;;  %v7058_v42 = vsel %vm19147_vm5, %v14568_v37, %v7057_v57  ;;  %v7073_v25 = vrot.slane %v7071_v62, 4  ;;  %v23067_v57 = vld [vmem:[#allocation36_spill] sm:$0xff]  ;;  %v23071_v40 = vld [vmem:[#allocation39_spill] sm:$0xff] }
 0x477   : > { %15629 = vmatprep.mubr.msk.bf16.mxu1 %vm600_vm1, %v14547_v52  ;;  %v7068_v52 = vsel %vm19147_vm5, %v7066_v23, %v7067_v12  ;;  %v14585_v22 = vcombine.low %v7058_v42, %v7061_v50  ;;  %v7080_v1 = vrot.slane %v7078_v41, 4  ;;  %v7081_v34 = vrot.slane %v23062_v2, 5  ;;  %v23077_v63 = vld [vmem:[#allocation43_spill] sm:$0xff]  ;;  %v23079_v11 = vld [vmem:[#allocation44_spill] sm:$0xff]  ;;  %v23080_v12 = vld [vmem:[#allocation45_spill] sm:$0xff] }
 0x478   : > { %v7065_v51 = vsel %vm19147_vm5, %v14569_v26, %v7064_v31  ;;  %v7075_v32 = vsel %vm19147_vm5, %v7073_v25, %v7074_v38  ;;  %v7085_v27 = vrot.slane %v23063_v8, 5  ;;  %v14571_v28 = vrot.slane %v6988_v61, 9  ;;  %v23070_v31 = vld [vmem:[#allocation38_spill] sm:$0xff]  ;;  %v20367_v50 = vld [vmem:[#allocation3 + $0xc4] sm:$0xf] }
 0x479   : > { %v14586_v45 = vcombine.low %v7065_v51, %v7068_v52  ;;  %v7082_v18 = vsel %vm19147_vm5, %v7080_v1, %v7081_v34  ;;  %v7072_v54 = vsel %vm19147_vm5, %v14570_v56, %v7071_v62  ;;  %v7092_v15 = vrot.slane %v20143_v49, 5  ;;  %v20369_v62 = vld [vmem:[#allocation3 + $0xc8] sm:$0x1]  ;;  %v8553_v26 = vld [vmem:[#allocation3 + $0xc0] sm:$0xe]  ;;  %v16650_v8 = vld [vmem:[#allocation3 + $0x18] sm:$0xff]  }
 0x47a   : > { %v14587_v13 = vcombine.low %v7072_v54, %v7075_v32  ;;  %v7079_v17 = vsel %vm19147_vm5, %v14571_v28, %v7078_v41  ;;  %v7087_v6 = vrot.slane %v7085_v27, 4  ;;  %v14572_v21 = vrot.slane %v6989_v33, 9  ;;  %v23082_v41 = vld [vmem:[#allocation46_spill] sm:$0xff]  ;;  %v23083_v42 = vld [vmem:[#allocation47_spill] sm:$0xff]  ;;  %v23085_v51 = vld [vmem:[#allocation48_spill] sm:$0xff] }
 0x47b   : > { %v14588_v7 = vcombine.low %v7079_v17, %v7082_v18  ;;  %v7094_v3 = vrot.slane %v7092_v15, 4  ;;  %v14573_v29 = vrot.slane %v6990_v16, 9  ;;  %v23066_v55 = vcombine.low %v23064_v43, %v23065_v0  ;;  %v446_v38 = vld [vmem:[#allocation3 + $0xd4] sm:$0x1]  ;;  %v23090_v28 = vld [vmem:[#allocation54_spill] sm:$0xff]  ;;  %v16651_v54 = vld [vmem:[#allocation3 + $0x24] sm:$0xff]  }
 0x47c   : > { %v23069_v30 = vcombine.low %v23067_v57, %v23068_v4  ;;  %v23078_v23 = vcombine.low %v23076_v19, %v23077_v63  ;;  %v23081_v37 = vcombine.low %v23079_v11, %v23080_v12  ;;  %v8703_v52 = vrot.slane %v20367_v50, 5  ;;  %v16652_v17 = vld [vmem:[#allocation3 + $0x30] sm:$0xff]   ;;  %v16659_v16 = vld [vmem:[#allocation3 + $0x84] sm:$0xff]   ;;  %v16718_v11 = vld [vmem:[#allocation3 + $0x20] sm:$0x1] }
 0x47d   : > { %v7093_v9 = vsel %vm19147_vm5, %v14573_v29, %v7092_v15  ;;  %v14696_v46 = vrot.slane %v8553_v26, 9  ;;  %v8706_v1 = vrot.slane %v20369_v62, 5  ;;  %v447_v2 = vsel %vm18077_vm11, 0, %v446_v38  ;;  %v20402_v15 = vld [vmem:[%s22620_s4 + $0x10] sm:$0x3] }
 0x47e   : > { %15630 = vmatmul.mubr.msk.bf16.gmra.mrb[28].mxu1 %vm600_vm1, %v14548_v53  ;;  %v7088_v53 = vrot.slane %v20133_v59, 5  ;;  %v7086_v59 = vsel %vm19147_vm5, %v14572_v21, %v7085_v27  ;;  %448 = vst [vmem:[#allocation3 + $0xd4] sm:$0x1] %v447_v2  ;;  %v23089_v27 = vld [vmem:[#allocation53_spill] sm:$0xff]  ;;  %v7881_v12 = vshll.u32 %v16718_v11, 16 }
 0x47f   : > { %15633 = vmatprep.mubr.msk.bf16.mxu1 %vm600_vm1, %v14549_v48  ;;  %v7095_v48 = vrot.slane %v20160_v20, 5  ;;  %v20385_v34 = vsel %vm19147_vm5, %v14696_v46, %v8703_v52  ;;  %v23091_v18 = vcombine.low %v23089_v27, %v23090_v28  ;;  %v16657_v33 = vld [vmem:[#allocation3 + $0x6c] sm:$0xff]   ;;  %v7822_v38 = vld [vmem:[#allocation3 + $0x3c] sm:$0xf] }
 0x480   : > { %v7089_v24 = vsel %vm19147_vm5, %v7087_v6, %v7088_v53  ;;  %v16654_v6 = vld [vmem:[#allocation3 + $0x48] sm:$0xff]   ;;  %v16656_v53 = vld [vmem:[#allocation3 + $0x60] sm:$0xff]   ;;  %v16660_v21 = vld [vmem:[#allocation3 + $0x90] sm:$0xff]  }
 0x481   : > { %v7096_v49 = vsel %vm19147_vm5, %v7094_v3, %v7095_v48  ;;  %v14589_v60 = vcombine.low %v7086_v59, %v7089_v24  ;;  %v16658_v48 = vld [vmem:[#allocation3 + $0x78] sm:$0xff]   ;;  %v7816_v59 = vld [vmem:[#allocation3 + $0x24] sm:$0xf]  ;;  %v16719_v46 = vld [vmem:[#allocation3 + $0x2c] sm:$0x1] }
 0x482   : > { %v14590_v20 = vcombine.low %v7093_v9, %v7096_v49  ;;  %v7813_v3 = vld [vmem:[#allocation3 + $0x18] sm:$0xf]  ;;  %v16715_v24 = vld [vmem:[#allocation3 + $0x1c] sm:$0xf]  ;;  %v7886_v4 = vshrl.u32 %v7816_v59, 16 }
 0x483   : > { %v7871_v29 = vshll.u32 %v16715_v24, 16  ;;  %v7875_v49 = vshrl.u32 %v16715_v24, 16  ;;  %v7862_v43 = vshrl.u32 %v7813_v3, 16  ;;  %v7865_v0 = vshll.u32 %v7813_v3, 16  ;;  %v16664_v24 = vld [vmem:[#allocation3 + $0xc0] sm:$0xff]  }
 0x484   : > { %v16722_v11 = vld [vmem:[#allocation3 + $0x4c] sm:$0xf] }
 0x485   : > { %v7877_v57 = vrot.slane %v7875_v49, 4 }
 0x486   : > { %15634 = vmatmul.mubr.msk.bf16.gmra.mrb[32].mxu1 %vm600_vm1, %v14550_v35  ;;  %v23072_v35 = vcombine.low %v23070_v31, %v23071_v40 }
 0x487   : > { %15639 = vmatprep.mubr.msk.bf16.mxu1 %vm600_vm1, %v14584_v5  ;;  %v23074_v5 = vld [vmem:[#allocation41_spill] sm:$0xff] }
 0x488   : > { %v23075_v47 = vcombine.low %v23073_v14, %v23074_v5  ;;  %v7864_v14 = vrot.slane %v7862_v43, 4  ;;  %v7867_v5 = vrot.slane %v7865_v0, 5 }
 0x48e   : > { %15640 = vmatmul.mubr.msk.bf16.vlgmr.msra.gmra.mrb[4].mxu1 %vm600_vm1, %v14585_v22  ;;  %v23084_v22 = vcombine.low %v23082_v41, %v23083_v42 }
 0x48f   : > { %15672 = vmatpush3.bf16.msra.mxu1 %v7618_v58  ;;  %15643 = vmatprep.mubr.msk.bf16.mxu1 %vm600_vm1, %v14586_v45  ;;  %v8705_v58 = vrot.slane %v8703_v52, 4  ;;  %v23086_v45 = vld [vmem:[#allocation49_spill] sm:$0xff]  ;;  %v7888_v52 = vrot.slane %v7886_v4, 4 }
 0x490   : > { %16602 = vmatprep.subr.msk.bf16.mxu1 %vm613_vm0, %v14649_v36  ;;  %v23087_v25 = vcombine.low %v23085_v51, %v23086_v45  ;;  %v7868_v51 = vor.u32 %v7867_v5, %v7864_v14  ;;  %v20437_v4 = vld [vmem:[#allocation3 + $0xd4] sm:$0x1] }
 0x491   : > { %v20389_v56 = vsel %vm19147_vm5, %v8705_v58, %v8706_v1  ;;  %v7905_v1 = vshll.u32 %v16719_v46, 16  ;;  %v8713_v14 = vrot.slane %v20437_v4, 5 }
 0x492   : > { %v14713_v32 = vcombine.low %v20385_v34, %v20389_v56  ;;  %v468_v56 = vld [vmem:[#allocation4 + $0x30] sm:$0x1] }
 0x496   : > { %15644 = vmatmul.mubr.msk.bf16.gmra.mrb[8].mxu1 %vm600_vm1, %v14587_v13  ;;  %v8344_v13 = vsel %vm613_vm0, %v14649_v36, 0  ;;  %v16655_v36 = vld [vmem:[#allocation3 + $0x54] sm:$0xff]  }
 0x497   : > { %15647 = vmatprep.mubr.msk.bf16.mxu1 %vm600_vm1, %v14588_v7  ;;  %v16653_v7 = vld [vmem:[#allocation3 + $0x3c] sm:$0xff]  }
 0x49e   : > { %15648 = vmatmul.mubr.msk.bf16.gmra.mrb[12].mxu1 %vm600_vm1, %v14589_v60  ;;  %v16716_v60 = vld [vmem:[#allocation3 + $0x28] sm:$0xf] }
 0x49f   : > { %15651 = vmatprep.mubr.msk.bf16.mxu1 %vm600_vm1, %v14590_v20  ;;  %v7895_v9 = vshll.u32 %v16716_v60, 16  ;;  %v7899_v20 = vshrl.u32 %v16716_v60, 16  ;;  %v7825_v60 = vld [vmem:[#allocation3 + $0x48] sm:$0xf] }
 0x4a1   : > { %v20418_v31 = vrot.slane %v7895_v9, 5  ;;  %v7901_v40 = vrot.slane %v7899_v20, 4 }
 0x4a6   : > { %15652 = vmatmul.mubr.msk.bf16.gmra.mrb[16].mxu1 %vm600_vm1, %v23066_v55  ;;  %v20416_v55 = vrot.slane %v7871_v29, 5 }
 0x4a7   : > { %15655 = vmatprep.mubr.msk.bf16.mxu1 %vm600_vm1, %v23069_v30  ;;  %v7889_v30 = vshll.u32 %v7816_v59, 16 }
 0x4a8   : > { %v7878_v26 = vor.u32 %v7877_v57, %v20416_v55  ;;  %v20435_v57 = vld [vmem:[#allocation3 + $0xd0] sm:$0xf] }
 0x4a9   : > { %v7891_v41 = vrot.slane %v7889_v30, 5 }
 0x4aa   : > { %v7879_v2 = vrot.slane %v7878_v26, 4 }
 0x4ab   : > { %v7892_v27 = vor.u32 %v7891_v41, %v7888_v52  ;;  %v16665_v52 = vld [vmem:[#allocation3 + $0xcc] sm:$0xff]  }
 0x4ad   : > { %v7893_v59 = vrot.slane %v7892_v27, 4 }
 0x4ae   : > { %15656 = vmatmul.mubr.msk.bf16.gmra.mrb[20].mxu1 %vm600_vm1, %v23072_v35  ;;  %v7819_v35 = vld [vmem:[#allocation3 + $0x30] sm:$0xf] }
 0x4af   : > { %15659 = vmatprep.mubr.msk.bf16.mxu1 %vm600_vm1, %v23075_v47  ;;  %v16717_v47 = vld [vmem:[#allocation3 + $0x34] sm:$0xf]  ;;  %v7910_v42 = vshrl.u32 %v7819_v35, 16  ;;  %v7913_v58 = vshll.u32 %v7819_v35, 16  ;;  %v8710_v35 = vrot.slane %v20435_v57, 5 }
 0x4b0   : > { %v7919_v19 = vshll.u32 %v16717_v47, 16  ;;  %v7923_v63 = vshrl.u32 %v16717_v47, 16 }
 0x4b1   : > { %v7912_v28 = vrot.slane %v7910_v42, 4  ;;  %v8712_v26 = vrot.slane %v8710_v35, 4  ;;  %v7898_v42 = vsel %vm18638_vm7, %v7893_v59, %v20418_v31 }
 0x4b2   : > { %v20424_v45 = vrot.slane %v7919_v19, 5  ;;  %v7958_v19 = vshrl.u32 %v7825_v60, 16 }
 0x4b6   : > { %15660 = vmatmul.mubr.msk.bf16.gmra.mrb[24].mxu1 %vm600_vm1, %v23078_v23  ;;  %v16661_v23 = vld [vmem:[#allocation3 + $0x9c] sm:$0xff]  }
 0x4b7   : > { %15663 = vmatprep.mubr.msk.bf16.mxu1 %vm600_vm1, %v23081_v37  ;;  %v16662_v37 = vld [vmem:[#allocation3 + $0xa8] sm:$0xff]  }
 0x4be   : > { %15664 = vmatmul.mubr.msk.bf16.gmra.mrb[28].mxu1 %vm600_vm1, %v23084_v22  ;;  %v7902_v22 = vor.u32 %v7901_v40, %v20418_v31  ;;  %v8554_v40 = vld [vmem:[#allocation3 + $0xcc] sm:$0xe] }
 0x4bf   : > { %15667 = vmatprep.mubr.msk.bf16.mxu1 %vm600_vm1, %v23087_v25  ;;  %v7925_v25 = vrot.slane %v7923_v63, 4  ;;  %v14697_v63 = vrot.slane %v8554_v40, 9 }
 0x4c6   : > { %15668 = vmatmul.mubr.msk.bf16.gmra.mrb[32].mxu1 %vm600_vm1, %v23091_v18  ;;  %v7903_v18 = vrot.slane %v7902_v22, 4 }
 0x4c7   : > { %15673 = vmatprep.mubr.msk.bf16.mxu1 %vm600_vm1, %v16650_v8  ;;  %v7883_v8 = vrot.slane %v7881_v12, 5  ;;  %v7967_v12 = vshll.u32 %v16722_v11, 16 }
 0x4c9   : > { %v7884_v49 = vsel %vm18638_vm7, %v7879_v2, %v7883_v8  ;;  %v20453_v2 = vsel %vm19147_vm5, %v8712_v26, %v8713_v14  ;;  %v8814_v26 = vsel %vm613_vm0, %v20402_v15, 0 }
 0x4ce   : > { %15674 = vmatmul.mubr.msk.bf16.vlgmr.msra.gmra.mrb[4].mxu1 %vm600_vm1, %v16651_v54  ;;  %v7915_v54 = vrot.slane %v7913_v58, 5  ;;  %v20449_v58 = vsel %vm19147_vm5, %v14697_v63, %v8710_v35 }
 0x4cf   : > { %15706 = vmatpush3.bf16.msra.mxu1 %v8344_v13  ;;  %15677 = vmatprep.mubr.msk.bf16.mxu1 %vm600_vm1, %v16652_v17  ;;  %v16720_v13 = vld [vmem:[#allocation3 + $0x38] sm:$0x1] }
 0x4d0   : > { %16603 = vmatprep.subr.msk.bf16.mxu1 %vm613_vm0, %v20402_v15  ;;  %v7929_v17 = vshll.u32 %v16720_v13, 16  ;;  %v7916_v20 = vor.u32 %v7915_v54, %v7912_v28  ;;  %v14714_v28 = vcombine.low %v20449_v58, %v20453_v2  ;;  %v20463_v13 = vrot.slane %v7967_v12, 5  ;;  %v16729_v15 = vld [vmem:[#allocation3 + $0x68] sm:$0x1]  ;;  %v465_v58 = vld [vmem:[#allocation4 + $0x24] sm:$0x1] }
 0x4d1   : > { %v466_v2 = vsel %vm18039_vm10, 0, %v465_v58 }
 0x4d2   : > { %v7931_v43 = vrot.slane %v7929_v17, 5  ;;  %v7917_v22 = vrot.slane %v7916_v20, 4  ;;  %467 = vst [vmem:[#allocation4 + $0x24] sm:$0x1] %v466_v2 }
 0x4d4   : > { %v7922_v8 = vsel %vm18638_vm7, %v7917_v22, %v20424_v45 }
 0x4d6   : > { %15678 = vmatmul.mubr.msk.bf16.gmra.mrb[8].mxu1 %vm600_vm1, %v16653_v7  ;;  %v7934_v7 = vshrl.u32 %v7822_v38, 16 }
 0x4d7   : > { %15681 = vmatprep.mubr.msk.bf16.mxu1 %vm600_vm1, %v16654_v6  ;;  %v7869_v6 = vrot.slane %v7868_v51, 4 }
 0x4d8   : > { %v7936_v0 = vrot.slane %v7934_v7, 4  ;;  %v7831_v7 = vld [vmem:[#allocation3 + $0x60] sm:$0xf] }
 0x4d9   : > { %v7874_v29 = vsel %vm18638_vm7, %v7869_v6, %v20416_v55  ;;  %v16724_v6 = vld [vmem:[#allocation3 + $0x50] sm:$0x1]  ;;  %v8009_v40 = vshll.u32 %v7831_v7, 16 }
 0x4da   : > { %v14650_v41 = vcombine.low %v7874_v29, %v7884_v49 }
 0x4de   : > { %15682 = vmatmul.mubr.msk.bf16.gmra.mrb[12].mxu1 %vm600_vm1, %v16655_v36  ;;  %v7926_v36 = vor.u32 %v7925_v25, %v20424_v45 }
 0x4df   : > { %15685 = vmatprep.mubr.msk.bf16.mxu1 %vm600_vm1, %v16656_v53  ;;  %v7937_v53 = vshll.u32 %v7822_v38, 16  ;;  %v16723_v38 = vld [vmem:[#allocation3 + $0x44] sm:$0x1] }
 0x4e0   : > { %v7927_v55 = vrot.slane %v7926_v36, 4  ;;  %v7953_v46 = vshll.u32 %v16723_v38, 16  ;;  %v7977_v36 = vshll.u32 %v16724_v6, 16 }
 0x4e1   : > { %v7939_v30 = vrot.slane %v7937_v53, 5 }
 0x4e2   : > { %v7932_v31 = vsel %vm18638_vm7, %v7927_v55, %v7931_v43  ;;  %v7834_v43 = vld [vmem:[#allocation3 + $0x6c] sm:$0xf]  ;;  %v7979_v35 = vrot.slane %v7977_v36, 5 }
 0x4e3   : > { %v7940_v25 = vor.u32 %v7939_v30, %v7936_v0  ;;  %v8006_v30 = vshrl.u32 %v7831_v7, 16  ;;  %v8030_v63 = vshrl.u32 %v7834_v43, 16 }
 0x4e5   : > { %v8008_v38 = vrot.slane %v8006_v30, 4 }
 0x4e6   : > { %15686 = vmatmul.mubr.msk.bf16.gmra.mrb[16].mxu1 %vm600_vm1, %v16657_v33  ;;  %v16663_v33 = vld [vmem:[#allocation3 + $0xb4] sm:$0xff]  }
 0x4e7   : > { %15689 = vmatprep.mubr.msk.bf16.mxu1 %vm600_vm1, %v16658_v48  ;;  %v7907_v48 = vrot.slane %v7905_v1, 5  ;;  %v7828_v1 = vld [vmem:[#allocation3 + $0x54] sm:$0xf] }
 0x4e8   : > { %v7982_v53 = vshrl.u32 %v7828_v1, 16  ;;  %v7985_v45 = vshll.u32 %v7828_v1, 16 }
 0x4e9   : > { %v7908_v9 = vsel %vm18638_vm7, %v7903_v18, %v7907_v48  ;;  %v7960_v18 = vrot.slane %v7958_v19, 4 }
 0x4ea   : > { %v14651_v51 = vcombine.low %v7898_v42, %v7908_v9  ;;  %v7984_v14 = vrot.slane %v7982_v53, 4 }
 0x4ee   : > { %15690 = vmatmul.mubr.msk.bf16.gmra.mrb[20].mxu1 %vm600_vm1, %v16659_v16  ;;  %v16721_v16 = vld [vmem:[#allocation3 + $0x40] sm:$0xf] }
 0x4ef   : > { %15693 = vmatprep.mubr.msk.bf16.mxu1 %vm600_vm1, %v16660_v21  ;;  %v7943_v3 = vshll.u32 %v16721_v16, 16  ;;  %v7947_v21 = vshrl.u32 %v16721_v16, 16  ;;  %v462_v16 = vld [vmem:[#allocation4 + $0x18] sm:$0x1] }
 0x4f0   : > { %v463_v29 = vsel %vm18039_vm10, 0, %v462_v16 }
 0x4f1   : > { %v20442_v5 = vrot.slane %v7943_v3, 5  ;;  %v7949_v47 = vrot.slane %v7947_v21, 4  ;;  %v14652_v3 = vcombine.low %v7922_v8, %v7932_v31  ;;  %v7941_v21 = vrot.slane %v7940_v25, 4  ;;  %464 = vst [vmem:[#allocation4 + $0x18] sm:$0x1] %v463_v29 }
 0x4f2   : > { %v16728_v31 = vld [vmem:[#allocation3 + $0x5c] sm:$0x1] }
 0x4f3   : > { %v7950_v27 = vor.u32 %v7949_v47, %v20442_v5  ;;  %v7987_v47 = vrot.slane %v7985_v45, 5  ;;  %v7946_v1 = vsel %vm18638_vm7, %v7941_v21, %v20442_v5 }
 0x4f5   : > { %v7951_v49 = vrot.slane %v7950_v27, 4  ;;  %v7988_v8 = vor.u32 %v7987_v47, %v7984_v14  ;;  %v8001_v27 = vshll.u32 %v16728_v31, 16 }
 0x4f6   : > { %15694 = vmatmul.mubr.msk.bf16.gmra.mrb[24].mxu1 %vm600_vm1, %v16661_v23  ;;  %v7961_v23 = vshll.u32 %v7825_v60, 16  ;;  %v16726_v60 = vld [vmem:[#allocation3 + $0x64] sm:$0xf] }
 0x4f7   : > { %15697 = vmatprep.mubr.msk.bf16.mxu1 %vm600_vm1, %v16662_v37  ;;  %v7971_v37 = vshrl.u32 %v16722_v11, 16  ;;  %v8015_v9 = vshll.u32 %v16726_v60, 16  ;;  %v8019_v20 = vshrl.u32 %v16726_v60, 16  ;;  %v16727_v11 = vld [vmem:[#allocation3 + $0x70] sm:$0xf]  ;;  %v8003_v29 = vrot.slane %v8001_v27, 5 }
 0x4f8   : > { %v7963_v54 = vrot.slane %v7961_v23, 5  ;;  %v8033_v23 = vshll.u32 %v7834_v43, 16  ;;  %v8039_v12 = vshll.u32 %v16727_v11, 16  ;;  %v16731_v43 = vld [vmem:[#allocation3 + $0x7c] sm:$0xf] }
 0x4f9   : > { %v7973_v17 = vrot.slane %v7971_v37, 4  ;;  %v8043_v37 = vshrl.u32 %v16727_v11, 16  ;;  %v8021_v42 = vrot.slane %v8019_v20, 4 }
 0x4fa   : > { %v7964_v0 = vor.u32 %v7963_v54, %v7960_v18  ;;  %v8025_v18 = vshll.u32 %v16729_v15, 16  ;;  %v7837_v54 = vld [vmem:[#allocation3 + $0x78] sm:$0xf]  ;;  %v8035_v7 = vrot.slane %v8033_v23, 5  ;;  %v20483_v6 = vrot.slane %v8039_v12, 5 }
 0x4fb   : > { %v7974_v55 = vor.u32 %v7973_v17, %v20463_v13  ;;  %v8032_v17 = vrot.slane %v8030_v63, 4  ;;  %v8045_v36 = vrot.slane %v8043_v37, 4  ;;  %v8054_v16 = vshrl.u32 %v7837_v54, 16  ;;  %v7840_v23 = vld [vmem:[#allocation3 + $0x84] sm:$0xf] }
 0x4fc   : > { %v8057_v21 = vshll.u32 %v7837_v54, 16  ;;  %v16732_v37 = vld [vmem:[#allocation3 + $0x88] sm:$0xf]  ;;  %v8078_v31 = vshrl.u32 %v7840_v23, 16  ;;  %v8081_v27 = vshll.u32 %v7840_v23, 16 }
 0x4fd   : > { %v7975_v25 = vrot.slane %v7974_v55, 4  ;;  %v8046_v60 = vor.u32 %v8045_v36, %v20483_v6  ;;  %v16734_v54 = vld [vmem:[#allocation3 + $0x94] sm:$0xf] }
 0x4fe   : > { %15698 = vmatmul.mubr.msk.bf16.gmra.mrb[28].mxu1 %vm600_vm1, %v16663_v33  ;;  %v16725_v33 = vld [vmem:[#allocation3 + $0x58] sm:$0xf]  ;;  %v8059_v63 = vrot.slane %v8057_v21, 5 }
 0x4ff   : > { %15701 = vmatprep.mubr.msk.bf16.mxu1 %vm600_vm1, %v16664_v24  ;;  %v7991_v48 = vshll.u32 %v16725_v33, 16  ;;  %v7955_v24 = vrot.slane %v7953_v46, 5  ;;  %v7995_v59 = vshrl.u32 %v16725_v33, 16  ;;  %v8011_v46 = vrot.slane %v8009_v40, 5 }
 0x500   : > { %v7980_v33 = vsel %vm18638_vm7, %v7975_v25, %v7979_v35  ;;  %v8067_v35 = vshrl.u32 %v16731_v43, 16 }
 0x501   : > { %v20470_v19 = vrot.slane %v7991_v48, 5  ;;  %v7956_v22 = vsel %vm18638_vm7, %v7951_v49, %v7955_v24  ;;  %v8012_v48 = vor.u32 %v8011_v46, %v8008_v38  ;;  %v7989_v24 = vrot.slane %v7988_v8, 4  ;;  %v7843_v38 = vld [vmem:[#allocation3 + $0x90] sm:$0xf] }
 0x502   : > { %v14653_v53 = vcombine.low %v7946_v1, %v7956_v22  ;;  %v8027_v49 = vrot.slane %v8025_v18, 5  ;;  %v8047_v22 = vrot.slane %v8046_v60, 4  ;;  %v8069_v46 = vrot.slane %v8067_v35, 4  ;;  %v16733_v1 = vld [vmem:[#allocation3 + $0x80] sm:$0x1] }
 0x503   : > { %v7994_v14 = vsel %vm18638_vm7, %v7989_v24, %v20470_v19  ;;  %v8013_v47 = vrot.slane %v8012_v48, 4  ;;  %v8073_v8 = vshll.u32 %v16733_v1, 16  ;;  %v8083_v24 = vrot.slane %v8081_v27, 5 }
 0x505   : > { %v8075_v21 = vrot.slane %v8073_v8, 5 }
 0x506   : > { %15702 = vmatmul.mubr.msk.bf16.gmra.mrb[32].mxu1 %vm600_vm1, %v16665_v52  ;;  %v7997_v52 = vrot.slane %v7995_v59, 4  ;;  %v8036_v59 = vor.u32 %v8035_v7, %v8032_v17  ;;  %v8111_v17 = vshll.u32 %v16734_v54, 16  ;;  %v8115_v7 = vshrl.u32 %v16734_v54, 16 }
 0x507   : > { %15707 = vmatprep.mubr.msk.bf16.mxu1 %vm600_vm1, %v14650_v41  ;;  %v20474_v41 = vrot.slane %v8015_v9, 5  ;;  %v16730_v9 = vld [vmem:[#allocation3 + $0x74] sm:$0x1] }
 0x508   : > { %v7998_v45 = vor.u32 %v7997_v52, %v20470_v19  ;;  %v8049_v20 = vshll.u32 %v16730_v9, 16  ;;  %v8091_v52 = vshrl.u32 %v16732_v37, 16  ;;  %v8113_v9 = vrot.slane %v8111_v17, 5 }
 0x509   : > { %v8022_v5 = vor.u32 %v8021_v42, %v20474_v41  ;;  %v8037_v42 = vrot.slane %v8036_v59, 4  ;;  %v8018_v15 = vsel %vm18638_vm7, %v8013_v47, %v20474_v41  ;;  %v16735_v59 = vld [vmem:[#allocation3 + $0x8c] sm:$0x1] }
 0x50a   : > { %v7999_v30 = vrot.slane %v7998_v45, 4  ;;  %v8051_v19 = vrot.slane %v8049_v20, 5  ;;  %v8105_v45 = vshll.u32 %v7843_v38, 16  ;;  %v8097_v60 = vshll.u32 %v16735_v59, 16 }
 0x50b   : > { %v8023_v40 = vrot.slane %v8022_v5, 4  ;;  %v8042_v48 = vsel %vm18638_vm7, %v8037_v42, %v20483_v6  ;;  %v8117_v20 = vrot.slane %v8115_v7, 4 }
 0x50c   : > { %v8004_v11 = vsel %vm18638_vm7, %v7999_v30, %v8003_v29  ;;  %v7846_v29 = vld [vmem:[#allocation3 + $0x9c] sm:$0xf]  ;;  %v8107_v6 = vrot.slane %v8105_v45, 5 }
 0x50d   : > { %v8028_v12 = vsel %vm18638_vm7, %v8023_v40, %v8027_v49  ;;  %v14655_v5 = vcombine.low %v7994_v14, %v8004_v11  ;;  %v8126_v40 = vshrl.u32 %v7846_v29, 16  ;;  %v8129_v35 = vshll.u32 %v7846_v29, 16  ;;  %v16737_v14 = vld [vmem:[#allocation3 + $0xa0] sm:$0xf] }
 0x50e   : > { %15708 = vmatmul.mubr.msk.bf16.vlgmr.msra.gmra.mrb[4].mxu1 %vm600_vm1, %v14651_v51  ;;  %v7965_v51 = vrot.slane %v7964_v0, 4  ;;  %v8063_v0 = vshll.u32 %v16731_v43, 16  ;;  %v8135_v47 = vshll.u32 %v16737_v14, 16 }
 0x50f   : > { %15740 = vmatpush3.bf16.msra.mxu1 %v8814_v26  ;;  %15711 = vmatprep.mubr.msk.bf16.mxu1 %vm600_vm1, %v14652_v3  ;;  %v8087_v26 = vshll.u32 %v16732_v37, 16  ;;  %v8099_v37 = vrot.slane %v8097_v60, 5  ;;  %v8131_v1 = vrot.slane %v8129_v35, 5  ;;  %v7852_v60 = vld [vmem:[#allocation3 + $0xb4] sm:$0xf] }
 0x510   : > { %v7970_v3 = vsel %vm18638_vm7, %v7965_v51, %v20463_v13  ;;  %v8056_v13 = vrot.slane %v8054_v16, 4  ;;  %v20502_v25 = vrot.slane %v8063_v0, 5  ;;  %v8102_v51 = vshrl.u32 %v7843_v38, 16 }
 0x511   : > { %v14654_v55 = vcombine.low %v7970_v3, %v7980_v33  ;;  %v20507_v36 = vrot.slane %v8087_v26, 5  ;;  %v14656_v33 = vcombine.low %v8018_v15, %v8028_v12  ;;  %v8052_v16 = vsel %vm18638_vm7, %v8047_v22, %v8051_v19 }
 0x512   : > { %v8060_v18 = vor.u32 %v8059_v63, %v8056_v13  ;;  %v8070_v41 = vor.u32 %v8069_v46, %v20502_v25  ;;  %v8080_v3 = vrot.slane %v8078_v31, 4  ;;  %v8104_v0 = vrot.slane %v8102_v51, 4 }
 0x513   : > { %v8139_v13 = vshrl.u32 %v16737_v14, 16  ;;  %v14657_v63 = vcombine.low %v8042_v48, %v8052_v16  ;;  %v8118_v26 = vor.u32 %v8117_v20, %v8113_v9  ;;  %v8128_v46 = vrot.slane %v8126_v40, 4  ;;  %v16739_v16 = vld [vmem:[#allocation3 + $0xa4] sm:$0x1]  ;;  %v16741_v20 = vld [vmem:[#allocation3 + $0xb8] sm:$0xf] }
 0x514   : > { %v8061_v49 = vrot.slane %v8060_v18, 4  ;;  %v8071_v23 = vrot.slane %v8070_v41, 4  ;;  %v8084_v12 = vor.u32 %v8083_v24, %v8080_v3  ;;  %v8108_v19 = vor.u32 %v8107_v6, %v8104_v0  ;;  %v16738_v18 = vld [vmem:[#allocation3 + $0xac] sm:$0xf] }
 0x515   : > { %v20523_v8 = vrot.slane %v8135_v47, 5  ;;  %v8141_v31 = vrot.slane %v8139_v13, 4  ;;  %v8159_v54 = vshll.u32 %v16738_v18, 16  ;;  %v8119_v7 = vrot.slane %v8118_v26, 4  ;;  %v7858_v26 = vld [vmem:[#allocation3 + $0xcc] sm:$0xf] }
 0x516   : > { %15712 = vmatmul.mubr.msk.bf16.gmra.mrb[8].mxu1 %vm600_vm1, %v14653_v53  ;;  %v8093_v53 = vrot.slane %v8091_v52, 4  ;;  %v8066_v11 = vsel %vm18638_vm7, %v8061_v49, %v20502_v25  ;;  %v7849_v52 = vld [vmem:[#allocation3 + $0xa8] sm:$0xf]  ;;  %v8076_v42 = vsel %vm18638_vm7, %v8071_v23, %v8075_v21  ;;  %v8163_v25 = vshrl.u32 %v16738_v18, 16  ;;  %v16740_v49 = vld [vmem:[#allocation3 + $0xb0] sm:$0x1] }
 0x517   : > { %15715 = vmatprep.mubr.msk.bf16.mxu1 %vm600_vm1, %v14654_v55  ;;  %v16736_v55 = vld [vmem:[#allocation3 + $0x98] sm:$0x1]  ;;  %v8150_v27 = vshrl.u32 %v7849_v52, 16  ;;  %v8153_v15 = vshll.u32 %v7849_v52, 16  ;;  %v14658_v17 = vcombine.low %v8066_v11, %v8076_v42  ;;  %v8109_v45 = vrot.slane %v8108_v19, 4 }
 0x518   : > { %v8094_v43 = vor.u32 %v8093_v53, %v20507_v36  ;;  %v8121_v30 = vshll.u32 %v16736_v55, 16  ;;  %v8085_v53 = vrot.slane %v8084_v12, 4  ;;  %v8142_v48 = vor.u32 %v8141_v31, %v20523_v8 }
 0x519   : > { %v8145_v41 = vshll.u32 %v16739_v16, 16  ;;  %v8152_v21 = vrot.slane %v8150_v27, 4  ;;  %v8155_v3 = vrot.slane %v8153_v15, 5  ;;  %v8161_v24 = vrot.slane %v8159_v54, 5 }
 0x51a   : > { %v8095_v22 = vrot.slane %v8094_v43, 4  ;;  %v8123_v38 = vrot.slane %v8121_v30, 5  ;;  %v8165_v29 = vrot.slane %v8163_v25, 4  ;;  %v8169_v59 = vshll.u32 %v16740_v49, 16 }
 0x51b   : > { %v8183_v43 = vshll.u32 %v16741_v20, 16  ;;  %v8187_v0 = vshrl.u32 %v16741_v20, 16  ;;  %v8090_v6 = vsel %vm18638_vm7, %v8085_v53, %v20507_v36  ;;  %v8114_v55 = vsel %vm18638_vm7, %v8109_v45, %v8113_v9 }
 0x51c   : > { %v8100_v51 = vsel %vm18638_vm7, %v8095_v22, %v8099_v37  ;;  %v8207_v30 = vshll.u32 %v20367_v50, 16  ;;  %v8211_v40 = vshrl.u32 %v20367_v50, 16  ;;  %v8147_v13 = vrot.slane %v8145_v41, 5 }
 0x51d   : > { %v14659_v35 = vcombine.low %v8090_v6, %v8100_v51  ;;  %v8143_v23 = vrot.slane %v8142_v48, 4  ;;  %v8156_v11 = vor.u32 %v8155_v3, %v8152_v21  ;;  %v8166_v12 = vor.u32 %v8165_v29, %v8161_v24  ;;  %v16742_v51 = vld [vmem:[#allocation3 + $0xbc] sm:$0x1] }
 0x51e   : > { %15716 = vmatmul.mubr.msk.bf16.gmra.mrb[12].mxu1 %vm600_vm1, %v14655_v5  ;;  %v8124_v5 = vsel %vm18638_vm7, %v8119_v7, %v8123_v38  ;;  %v8174_v37 = vshrl.u32 %v7852_v60, 16  ;;  %v8171_v52 = vrot.slane %v8169_v59, 5  ;;  %v8177_v42 = vshll.u32 %v7852_v60, 16 }
 0x51f   : > { %15719 = vmatprep.mubr.msk.bf16.mxu1 %vm600_vm1, %v14656_v33  ;;  %v8132_v33 = vor.u32 %v8131_v1, %v8128_v46  ;;  %v14660_v14 = vcombine.low %v8114_v55, %v8124_v5  ;;  %v8185_v36 = vrot.slane %v8183_v43, 5  ;;  %v8189_v22 = vrot.slane %v8187_v0, 4 }
 0x520   : > { %v8209_v38 = vrot.slane %v8207_v30, 5  ;;  %v8213_v50 = vrot.slane %v8211_v40, 4  ;;  %v8222_v46 = vshrl.u32 %v7858_v26, 16  ;;  %v8225_v1 = vshll.u32 %v7858_v26, 16 }
 0x521   : > { %v8133_v47 = vrot.slane %v8132_v33, 4  ;;  %v8231_v31 = vshll.u32 %v20435_v57, 16  ;;  %v8235_v27 = vshrl.u32 %v20435_v57, 16  ;;  %v8148_v18 = vsel %vm18638_vm7, %v8143_v23, %v8147_v13 }
 0x522   : > { %v8167_v54 = vrot.slane %v8166_v12, 4  ;;  %v8176_v25 = vrot.slane %v8174_v37, 4  ;;  %v8179_v7 = vrot.slane %v8177_v42, 5  ;;  %v8190_v53 = vor.u32 %v8189_v22, %v8185_v36  ;;  %v23093_v22 = vld [vmem:[#allocation11_spill] sm:$0xff] }
 0x523   : > { %v8138_v15 = vsel %vm18638_vm7, %v8133_v47, %v20523_v8  ;;  %v8193_v45 = vshll.u32 %v16742_v51, 16  ;;  %v8214_v57 = vor.u32 %v8213_v50, %v8209_v38  ;;  %v8224_v16 = vrot.slane %v8222_v46, 4  ;;  %v23098_v46 = vld [vmem:[#allocation14_spill] sm:$0xff] }
 0x524   : > { %v8172_v5 = vsel %vm18638_vm7, %v8167_v54, %v8171_v52  ;;  %v8227_v41 = vrot.slane %v8225_v1, 5  ;;  %v8233_v21 = vrot.slane %v8231_v31, 5  ;;  %v8237_v8 = vrot.slane %v8235_v27, 4  ;;  %v23099_v1 = vld [vmem:[#allocation17_spill] sm:$0xff]  ;;  %v23101_v27 = vld [vmem:[#allocation15_spill] sm:$0xff] }
 0x525   : > { %v14661_v3 = vcombine.low %v8138_v15, %v8148_v18  ;;  %v8217_v49 = vshll.u32 %v20369_v62, 16  ;;  %v8180_v60 = vor.u32 %v8179_v7, %v8176_v25  ;;  %v8191_v20 = vrot.slane %v8190_v53, 4  ;;  %v23102_v15 = vld [vmem:[#allocation18_spill] sm:$0xff]  ;;  %v23104_v54 = vld [vmem:[#allocation19_spill] sm:$0xff]  ;;  %v23105_v25 = vld [vmem:[#allocation20_spill] sm:$0xff] }
 0x526   : > { %15720 = vmatmul.mubr.msk.bf16.gmra.mrb[16].mxu1 %vm600_vm1, %v14657_v63  ;;  %v7855_v63 = vld [vmem:[#allocation3 + $0xc0] sm:$0xf]  ;;  %v8195_v43 = vrot.slane %v8193_v45, 5  ;;  %v8215_v6 = vrot.slane %v8214_v57, 4  ;;  %v8228_v55 = vor.u32 %v8227_v41, %v8224_v16  ;;  %v8238_v30 = vor.u32 %v8237_v8, %v8233_v21  ;;  %v23107_v7 = vld [vmem:[#allocation21_spill] sm:$0xff]  ;;  %v23108_v53 = vld [vmem:[#allocation22_spill] sm:$0xff] }
 0x527   : > { %15723 = vmatprep.mubr.msk.bf16.mxu1 %vm600_vm1, %v14658_v17  ;;  %v8198_v9 = vshrl.u32 %v7855_v63, 16  ;;  %v8201_v19 = vshll.u32 %v7855_v63, 16  ;;  %v8157_v17 = vrot.slane %v8156_v11, 4  ;;  %v8241_v40 = vshll.u32 %v20437_v4, 16  ;;  %v23110_v45 = vld [vmem:[#allocation23_spill] sm:$0xff]  ;;  %v23114_v57 = vld [vmem:[#allocation25_spill] sm:$0xff] }
 0x528   : > { %v8229_v63 = vrot.slane %v8228_v55, 4  ;;  %v8239_v23 = vrot.slane %v8238_v30, 4  ;;  %v23100_v31 = vcombine.low %v23098_v46, %v23099_v1  ;;  %v23103_v18 = vcombine.low %v23101_v27, %v23102_v15  ;;  %v23116_v41 = vld [vmem:[#allocation27_spill] sm:$0xff]  ;;  %v23128_v55 = vld [vmem:[#allocation34_spill] sm:$0xff]  ;;  %v23129_v30 = vld [vmem:[#allocation9_spill] sm:$0xff] }
 0x529   : > { %v8200_v33 = vrot.slane %v8198_v9, 4  ;;  %v8203_v48 = vrot.slane %v8201_v19, 5  ;;  %v8162_v29 = vsel %vm18638_vm7, %v8157_v17, %v8161_v24  ;;  %v8196_v24 = vsel %vm18638_vm7, %v8191_v20, %v8195_v43  ;;  %v23095_v19 = vld [vmem:[#allocation12_spill] sm:$0xff]  ;;  %v534_v1 = vld [vmem:[#allocation4 + $0x68] sm:$0x1] }
 0x52a   : > { %v14662_v59 = vcombine.low %v8162_v29, %v8172_v5  ;;  %v8243_v11 = vrot.slane %v8241_v40, 5  ;;  %v8234_v26 = vsel %vm18638_vm7, %v8229_v63, %v8233_v21  ;;  %v23106_v17 = vcombine.low %v23104_v54, %v23105_v25  ;;  %v23111_v5 = vld [vmem:[#allocation24_spill] sm:$0xff]  ;;  %v23117_v21 = vld [vmem:[#allocation26_spill] sm:$0xff]  ;;  %v23120_v29 = vld [vmem:[#allocation29_spill] sm:$0xff] }
 0x52b   : > { %v8204_v0 = vor.u32 %v8203_v48, %v8200_v33  ;;  %v23109_v51 = vcombine.low %v23107_v7, %v23108_v53  ;;  %v23112_v33 = vcombine.low %v23110_v45, %v23111_v5  ;;  %v23113_v48 = vld [vmem:[#allocation5_spill] sm:$0xff]  ;;  %v23118_v8 = vcombine.low %v23116_v41, %v23117_v21  ;;  %v23125_v43 = vld [vmem:[#allocation32_spill] sm:$0xff]  ;;  %v483_v53 = vld [vmem:[#allocation4 + $0x6c] sm:$0x1] }
 0x52c   : > { %v8244_v52 = vsel %vm18638_vm7, %v8239_v23, %v8243_v11  ;;  %v23115_v16 = vcombine.low %v23113_v48, %v23114_v57  ;;  %v23130_v40 = vcombine.low %v23128_v55, %v23129_v30  ;;  %v513_v23 = vld [vmem:[#allocation4 + $0x14] sm:$0x1]  ;;  %v535_v27 = vsel %vm18077_vm11, 0, %v534_v1  ;;  %v531_v15 = vld [vmem:[#allocation4 + $0x5c] sm:$0x1] }
 0x52d   : > { %v8205_v62 = vrot.slane %v8204_v0, 4  ;;  %v14665_v42 = vcombine.low %v8234_v26, %v8244_v52  ;;  %v23126_v0 = vld [vmem:[#allocation33_spill] sm:$0xff]  ;;  %v514_v34 = vsel %vm18077_vm11, 0, %v513_v23  ;;  %v477_v46 = vld [vmem:[#allocation4 + $0x54] sm:$0x1]  ;;  %v532_v25 = vsel %vm18077_vm11, 0, %v531_v15 }
 0x52e   : > { %15724 = vmatmul.mubr.msk.bf16.gmra.mrb[20].mxu1 %vm600_vm1, %v14659_v35  ;;  %v8219_v35 = vrot.slane %v8217_v49, 5  ;;  %515 = vst [vmem:[#allocation4 + $0x14] sm:$0x1] %v514_v34  ;;  %v471_v52 = vld [vmem:[#allocation4 + $0x3c] sm:$0x1]  ;;  %v484_v45 = vsel %vm18039_vm10, 0, %v483_v53 }
 0x52f   : > { %15727 = vmatprep.mubr.msk.bf16.mxu1 %vm600_vm1, %v14660_v14  ;;  %v8181_v14 = vrot.slane %v8180_v60, 4  ;;  %v8210_v37 = vsel %vm18638_vm7, %v8205_v62, %v8209_v38  ;;  %v23096_v38 = vld [vmem:[#allocation13_spill] sm:$0xff]  ;;  %v23123_v60 = vld [vmem:[#allocation31_spill] sm:$0xff]  ;;  %536 = vst [vmem:[#allocation4 + $0x68] sm:$0x1] %v535_v27 }
 0x530   : > { %v8220_v47 = vsel %vm18638_vm7, %v8215_v6, %v8219_v35  ;;  %v23097_v50 = vcombine.low %v23095_v19, %v23096_v38  ;;  %v23127_v6 = vcombine.low %v23125_v43, %v23126_v0  ;;  %v23131_v35 = vld [vmem:[#allocation50_spill] sm:$0xff]  ;;  %v459_v62 = vld [vmem:[#allocation4 + $0xc] sm:$0x1]  ;;  %v486_v54 = vld [vmem:[#allocation4 + $0x78] sm:$0x1] }
 0x531   : > { %v8186_v13 = vsel %vm18638_vm7, %v8181_v14, %v8185_v36  ;;  %v14664_v4 = vcombine.low %v8210_v37, %v8220_v47  ;;  %v23092_v36 = vld [vmem:[#allocation10_spill] sm:$0xff]  ;;  %v23132_v14 = vld [vmem:[#allocation51_spill] sm:$0xff]  ;;  %v460_v47 = vsel %vm18039_vm10, 0, %v459_v62  ;;  %v487_v7 = vsel %vm18039_vm10, 0, %v486_v54  ;;  %533 = vst [vmem:[#allocation4 + $0x5c] sm:$0x1] %v532_v25 }
 0x532   : > { %v14663_v12 = vcombine.low %v8186_v13, %v8196_v24  ;;  %v23094_v9 = vcombine.low %v23092_v36, %v23093_v22  ;;  %v23133_v24 = vcombine.low %v23131_v35, %v23132_v14  ;;  %v516_v13 = vld [vmem:[#allocation4 + $0x20] sm:$0x1]  ;;  %461 = vst [vmem:[#allocation4 + $0xc] sm:$0x1] %v460_v47  ;;  %v474_v37 = vld [vmem:[#allocation4 + $0x48] sm:$0x1] }
 0x533   : > { %v517_v63 = vsel %vm18077_vm11, 0, %v516_v13  ;;  %v475_v26 = vsel %vm18039_vm10, 0, %v474_v37  ;;  %v528_v36 = vld [vmem:[#allocation4 + $0x50] sm:$0x1]  ;;  %v480_v38 = vld [vmem:[#allocation4 + $0x60] sm:$0x1] }
 0x534   : > { %518 = vst [vmem:[#allocation4 + $0x20] sm:$0x1] %v517_v63  ;;  %476 = vst [vmem:[#allocation4 + $0x48] sm:$0x1] %v475_v26  ;;  %v529_v22 = vsel %vm18077_vm11, 0, %v528_v36 }
 0x535   : > { %530 = vst [vmem:[#allocation4 + $0x50] sm:$0x1] %v529_v22  ;;  %488 = vst [vmem:[#allocation4 + $0x78] sm:$0x1] %v487_v7  ;;  %v456_v48 = vld [vmem:[#allocation4] sm:$0x1] }
 0x536   : > { %15728 = vmatmul.mubr.msk.bf16.gmra.mrb[24].mxu1 %vm600_vm1, %v14661_v3  ;;  %v23119_v3 = vld [vmem:[#allocation28_spill] sm:$0xff]  ;;  %485 = vst [vmem:[#allocation4 + $0x6c] sm:$0x1] %v484_v45  ;;  %v510_v57 = vld [vmem:[#allocation4 + $0x8] sm:$0x1]  ;;  %v457_v41 = vsel %vm18039_vm10, 0, %v456_v48 }
 0x537   : > { %15731 = vmatprep.mubr.msk.bf16.mxu1 %vm600_vm1, %v14662_v59  ;;  %v23121_v49 = vcombine.low %v23119_v3, %v23120_v29  ;;  %v23122_v59 = vld [vmem:[#allocation30_spill] sm:$0xff]  ;;  %v511_v21 = vsel %vm18077_vm11, 0, %v510_v57  ;;  %458 = vst [vmem:[#allocation4] sm:$0x1] %v457_v41  ;;  %v546_v23 = vld [vmem:[#allocation4 + $0x98] sm:$0x1] }
 0x538   : > { %v23124_v20 = vcombine.low %v23122_v59, %v23123_v60  ;;  %512 = vst [vmem:[#allocation4 + $0x8] sm:$0x1] %v511_v21  ;;  %v489_v63 = vld [vmem:[#allocation4 + $0x84] sm:$0x1]  ;;  %v498_v37 = vld [vmem:[#allocation4 + $0xa8] sm:$0x1] }
 0x539   : > { %v490_v34 = vsel %vm18039_vm10, 0, %v489_v63  ;;  %v495_v26 = vld [vmem:[#allocation4 + $0x9c] sm:$0x1]  ;;  %v549_v22 = vld [vmem:[#allocation4 + $0xa4] sm:$0x1] }
 0x53a   : > { %491 = vst [vmem:[#allocation4 + $0x84] sm:$0x1] %v490_v34  ;;  %v558_v1 = vld [vmem:[#allocation4 + $0xc8] sm:$0x1] }
 0x53b   : > { %v559_v27 = vsel %vm18077_vm11, 0, %v558_v1 }
 0x53c   : > { %560 = vst [vmem:[#allocation4 + $0xc8] sm:$0x1] %v559_v27 }
 0x53e   : > { %15732 = vmatmul.mubr.msk.bf16.gmra.mrb[28].mxu1 %vm600_vm1, %v14663_v12  ;;  %v519_v12 = vld [vmem:[#allocation4 + $0x2c] sm:$0x1]  ;;  %v9611_v43 = vld [vmem:[#allocation4] sm:$0xf] }
 0x53f   : > { %15735 = vmatprep.mubr.msk.bf16.mxu1 %vm600_vm1, %v14664_v4  ;;  %v520_v4 = vsel %vm18077_vm11, 0, %v519_v12  ;;  %v9644_v0 = vld [vmem:[#allocation4 + $0x8] sm:$0x1]  ;;  %v9664_v55 = vshll.u32 %v9611_v43, 16 }
 0x540   : > { %521 = vst [vmem:[#allocation4 + $0x2c] sm:$0x1] %v520_v4  ;;  %v9680_v30 = vshll.u32 %v9644_v0, 16  ;;  %v499_v4 = vsel %vm18039_vm10, 0, %v498_v37 }
 0x541   : > { %500 = vst [vmem:[#allocation4 + $0xa8] sm:$0x1] %v499_v4 }
 0x542   : > { %v9682_v47 = vrot.slane %v9680_v30, 5 }
 0x546   : > { %15736 = vmatmul.mubr.msk.bf16.gmra.mrb[32].mxu1 %vm600_vm1, %v14665_v42  ;;  %v472_v42 = vsel %vm18039_vm10, 0, %v471_v52  ;;  %v552_v52 = vld [vmem:[#allocation4 + $0xb0] sm:$0x1] }
 0x547   : > { %15741 = vmatprep.mubr.msk.bf16.mxu1 %vm600_vm1, %v23094_v9  ;;  %473 = vst [vmem:[#allocation4 + $0x3c] sm:$0x1] %v472_v42  ;;  %v525_v9 = vld [vmem:[#allocation4 + $0x44] sm:$0x1]  ;;  %v496_v42 = vsel %vm18039_vm10, 0, %v495_v26  ;;  %v553_v36 = vsel %vm18077_vm11, 0, %v552_v52 }
 0x548   : > { %v526_v19 = vsel %vm18077_vm11, 0, %v525_v9  ;;  %497 = vst [vmem:[#allocation4 + $0x9c] sm:$0x1] %v496_v42  ;;  %554 = vst [vmem:[#allocation4 + $0xb0] sm:$0x1] %v553_v36  ;;  %v550_v9 = vsel %vm18077_vm11, 0, %v549_v22 }
 0x549   : > { %527 = vst [vmem:[#allocation4 + $0x44] sm:$0x1] %v526_v19  ;;  %551 = vst [vmem:[#allocation4 + $0xa4] sm:$0x1] %v550_v9  ;;  %v504_v19 = vld [vmem:[#allocation4 + $0xc0] sm:$0x1] }
 0x54a   : > { %v9503_v36 = vld [vmem:[#allocation4 + $0x14] sm:$0x1] }
 0x54e   : > { %15742 = vmatmul.mubr.msk.bf16.vlgmr.msra.gmra.mrb[4].mxu1 %vm600_vm1, %v23097_v50  ;;  %v481_v50 = vsel %vm18039_vm10, 0, %v480_v38  ;;  %v505_v38 = vsel %vm18039_vm10, 0, %v504_v19 }
 0x54f   : > { %15745 = vmatprep.mubr.msk.bf16.mxu1 %vm600_vm1, %v23100_v31  ;;  %482 = vst [vmem:[#allocation4 + $0x60] sm:$0x1] %v481_v50  ;;  %v478_v31 = vsel %vm18039_vm10, 0, %v477_v46  ;;  %506 = vst [vmem:[#allocation4 + $0xc0] sm:$0x1] %v505_v38 }
 0x550   : > { %479 = vst [vmem:[#allocation4 + $0x54] sm:$0x1] %v478_v31  ;;  %v501_v50 = vld [vmem:[#allocation4 + $0xb4] sm:$0x1]  ;;  %v555_v31 = vld [vmem:[#allocation4 + $0xbc] sm:$0x1] }
 0x551   : > { %v502_v46 = vsel %vm18039_vm10, 0, %v501_v50  ;;  %v556_v15 = vsel %vm18077_vm11, 0, %v555_v31 }
 0x552   : > { %503 = vst [vmem:[#allocation4 + $0xb4] sm:$0x1] %v502_v46  ;;  %557 = vst [vmem:[#allocation4 + $0xbc] sm:$0x1] %v556_v15 }
 0x556   : > { %15746 = vmatmul.mubr.msk.bf16.gmra.mrb[8].mxu1 %vm600_vm1, %v23103_v18  ;;  %v14764_v18 = vld [vmem:[%s22622_s6 + $0x2] sm:$0x3] }
 0x557   : > { %15749 = vmatprep.mubr.msk.bf16.mxu1 %vm600_vm1, %v23106_v17  ;;  %16604 = vmatprep.subr.msk.bf16.mxu0 %vm613_vm0, %v14764_v18  ;;  %v10143_v17 = vsel %vm613_vm0, %v14764_v18, 0  ;;  %v20721_v18 = vld [vmem:[%s22621_s5] ss:$0 sm:$0xff] }
 0x558   : > { %15774 = vmatpush3.bf16.msra.mxu0 %v10143_v17 }
 0x55e   : > { %15750 = vmatmul.mubr.msk.bf16.gmra.mrb[12].mxu1 %vm600_vm1, %v23109_v51  ;;  %v540_v51 = vld [vmem:[#allocation4 + $0x80] sm:$0x1] }
 0x55f   : > { %15753 = vmatprep.mubr.msk.bf16.mxu1 %vm600_vm1, %v23112_v33  ;;  %v541_v5 = vsel %vm18077_vm11, 0, %v540_v51  ;;  %v537_v33 = vld [vmem:[#allocation4 + $0x74] sm:$0x1] }
 0x560   : > { %542 = vst [vmem:[#allocation4 + $0x80] sm:$0x1] %v541_v5 }
 0x566   : > { %15754 = vmatmul.mubr.msk.bf16.gmra.mrb[16].mxu1 %vm600_vm1, %v23115_v16  ;;  %v538_v16 = vsel %vm18077_vm11, 0, %v537_v33 }
 0x567   : > { %15757 = vmatprep.mubr.msk.bf16.mxu1 %vm600_vm1, %v23118_v8  ;;  %v9612_v8 = vld [vmem:[#allocation4 + $0x4] sm:$0xf]  ;;  %539 = vst [vmem:[#allocation4 + $0x74] sm:$0x1] %v538_v16 }
 0x568   : > { %v9670_v3 = vshll.u32 %v9612_v8, 16  ;;  %v9674_v29 = vshrl.u32 %v9612_v8, 16 }
 0x56a   : > { %v9672_v59 = vrot.slane %v9670_v3, 5  ;;  %v9676_v60 = vrot.slane %v9674_v29, 4 }
 0x56e   : > { %15758 = vmatmul.mubr.msk.bf16.gmra.mrb[20].mxu1 %vm600_vm1, %v23121_v49  ;;  %v20685_v49 = vld [vmem:[%s22622_s6] sm:$0x3] }
 0x56f   : > { %15761 = vmatprep.mubr.msk.bf16.mxu1 %vm600_vm1, %v23124_v20  ;;  %16605 = vmatprep.subr.msk.bf16.mxu0 %vm613_vm0, %v20685_v49  ;;  %v9677_v20 = vor.u32 %v9676_v60, %v9672_v59 }
 0x571   : > { %v9678_v62 = vrot.slane %v9677_v20, 4 }
 0x573   : > { %v9683_v2 = vsel %vm18638_vm7, %v9678_v62, %v9682_v47 }
 0x576   : > { %15762 = vmatmul.mubr.msk.bf16.gmra.mrb[24].mxu1 %vm600_vm1, %v23127_v6  ;;  %v9661_v6 = vshrl.u32 %v9611_v43, 16 }
 0x577   : > { %15765 = vmatprep.mubr.msk.bf16.mxu1 %vm600_vm1, %v23130_v40  ;;  %v492_v40 = vld [vmem:[#allocation4 + $0x90] sm:$0x1] }
 0x578   : > { %v493_v35 = vsel %vm18039_vm10, 0, %v492_v40  ;;  %v9663_v14 = vrot.slane %v9661_v6, 4 }
 0x579   : > { %494 = vst [vmem:[#allocation4 + $0x90] sm:$0x1] %v493_v35 }
 0x57e   : > { %15766 = vmatmul.mubr.msk.bf16.gmra.mrb[28].mxu1 %vm600_vm1, %v23133_v24  ;;  %v9666_v24 = vrot.slane %v9664_v55, 5 }
 0x57f   : > { %15769 = vmatprep.mubr.msk.bf16.mxu1 %vm600_vm1, %v14713_v32  ;;  %v469_v32 = vsel %vm18039_vm10, 0, %v468_v56  ;;  %v547_v56 = vsel %vm18077_vm11, 0, %v546_v23 }
 0x580   : > { %470 = vst [vmem:[#allocation4 + $0x30] sm:$0x1] %v469_v32  ;;  %v9667_v13 = vor.u32 %v9666_v24, %v9663_v14  ;;  %v543_v32 = vld [vmem:[#allocation4 + $0x8c] sm:$0x1]  ;;  %548 = vst [vmem:[#allocation4 + $0x98] sm:$0x1] %v547_v56 }
 0x581   : > { %v9506_v14 = vld [vmem:[#allocation4 + $0x18] sm:$0xf]  ;;  %v9499_v56 = vld [vmem:[#allocation4 + $0xc] sm:$0xf] }
 0x582   : > { %v9668_v58 = vrot.slane %v9667_v13, 4 }
 0x586   : > { %15770 = vmatmul.mubr.msk.bf16.gmra.mrb[32].mxu1 %vm600_vm1, %v14714_v28  ;;  %v522_v28 = vld [vmem:[#allocation4 + $0x38] sm:$0x1] }
 0x587   : > { %v523_v11 = vsel %vm18077_vm11, 0, %v522_v28  ;;  %v544_v28 = vsel %vm18077_vm11, 0, %v543_v32 }
 0x588   : > { %524 = vst [vmem:[#allocation4 + $0x38] sm:$0x1] %v523_v11  ;;  %545 = vst [vmem:[#allocation4 + $0x8c] sm:$0x1] %v544_v28  ;;  %v9673_v11 = vsel %vm18638_vm7, %v9668_v58, %v9672_v59 }
 0x589   : > { %v14765_v12 = vcombine.low %v9673_v11, %v9683_v2 }
 0x58b   : > { %15775 = vmatprep.mubr.msk.bf16.mxu0 %vm600_vm1, %v14765_v12  ;;  %v9510_v12 = vld [vmem:[#allocation4 + $0x20] sm:$0x1] }
 0x621   : > { %v15743_v54 = vpop.f32.mrb[4].mxu1 }
 0x622   : > { %v9018_v25 = vadd.f32 %v15743_v54, %v20721_v18  ;;  %v8850_v17 = vpop.f32.mrb[5].mxu1 }
 0x623   : > { %v9016_v7 = vadd.f32 %v20721_v18, %v8850_v17  ;;  %v15744_v53 = vpop.f32.mrb[6].mxu1 }
 0x624   : > { %v9050_v51 = vmax.f32 %v9018_v25, 0.0  ;;  %v9019_v45 = vadd.f32 %v15744_v53, %v20721_v18  ;;  %v8853_v5 = vpop.f32.mrb[7].mxu1 }
 0x625   : > { %v9048_v33 = vmax.f32 %v9016_v7, 0.0  ;;  %v9017_v48 = vadd.f32 %v20721_v18, %v8853_v5 }
 0x626   : > { %v15116_v57 = vpack.c.bf16 %v9050_v51, %v9050_v51  ;;  %v9051_v16 = vmax.f32 %v9019_v45, 0.0 }
 0x627   : > { %v15114_v41 = vpack.c.bf16 %v9048_v33, %v9048_v33  ;;  %v9049_v21 = vmax.f32 %v9017_v48, 0.0  ;;  %v9520_v48 = vld [vmem:[#allocation4 + $0x30] sm:$0xf] }
 0x628   : > { %v9194_v8 = vshrl.u32 %v15116_v57, 16  ;;  %v15117_v3 = vpack.c.bf16 %v9051_v16, %v9051_v16  ;;  %v9197_v29 = vshll.u32 %v15116_v57, 16 }
 0x629   : > { %v9177_v59 = vshrl.u32 %v15114_v41, 16  ;;  %v9180_v60 = vshll.u32 %v15114_v41, 16  ;;  %v15115_v20 = vpack.c.bf16 %v9049_v21, %v9049_v21  ;;  %v15747_v43 = vpop.f32.mrb[8].mxu1 }
 0x62a   : > { %v9196_v0 = vrot.slane %v9194_v8, 7  ;;  %v9202_v6 = vshrl.u32 %v15117_v3, 16  ;;  %v9205_v55 = vshll.u32 %v15117_v3, 16  ;;  %v9022_v30 = vadd.f32 %v15747_v43, %v20721_v18  ;;  %v8866_v40 = vpop.f32.mrb[9].mxu1 }
 0x62b   : > { %v9179_v24 = vrot.slane %v9177_v59, 7  ;;  %v9185_v62 = vshrl.u32 %v15115_v20, 16  ;;  %v9188_v47 = vshll.u32 %v15115_v20, 16  ;;  %v9020_v13 = vadd.f32 %v20721_v18, %v8866_v40  ;;  %v15748_v63 = vpop.f32.mrb[10].mxu1 }
 0x62c   : > { %v9199_v23 = vor.u32 %v9197_v29, %v9196_v0  ;;  %v9200_v34 = vrot.slane %v9196_v0, 4  ;;  %v9204_v32 = vrot.slane %v9202_v6, 7  ;;  %v9054_v58 = vmax.f32 %v9022_v30, 0.0  ;;  %v8869_v2 = vpop.f32.mrb[11].mxu1  ;;  %v9513_v29 = vld [vmem:[#allocation4 + $0x24] sm:$0xf] }
 0x62d   : > { %v9182_v28 = vor.u32 %v9180_v60, %v9179_v24  ;;  %v9183_v11 = vrot.slane %v9179_v24, 4  ;;  %v9187_v37 = vrot.slane %v9185_v62, 7  ;;  %v9052_v4 = vmax.f32 %v9020_v13, 0.0 }
 0x62e   : > { %v9507_v26 = vsel %vm20730_vm12, %v9199_v23, %v9506_v14  ;;  %v9207_v52 = vor.u32 %v9205_v55, %v9204_v32  ;;  %v9209_v42 = vrot.slane %v9204_v32, 4  ;;  %v15120_v22 = vpack.c.bf16 %v9054_v58, %v9054_v58  ;;  %v9524_v58 = vld [vmem:[#allocation4 + $0x38] sm:$0x1] }
 0x62f   : > { %9508 = vst [vmem:[#allocation4 + $0x18] sm:$0xf] %v9507_v26  ;;  %v9500_v9 = vsel %vm20730_vm12, %v9182_v28, %v9499_v56  ;;  %v9190_v19 = vor.u32 %v9188_v47, %v9187_v37  ;;  %v9192_v38 = vrot.slane %v9187_v37, 4  ;;  %v15118_v50 = vpack.c.bf16 %v9052_v4, %v9052_v4 }
 0x630   : > { %9501 = vst [vmem:[#allocation4 + $0xc] sm:$0xf] %v9500_v9  ;;  %v9208_v1 = vsel %vm18027_vm8, %v9200_v34, %v9207_v52  ;;  %v9511_v31 = vsel %vm18039_vm10, %v9209_v42, %v9510_v12  ;;  %v9228_v27 = vshrl.u32 %v15120_v22, 16  ;;  %v9231_v25 = vshll.u32 %v15120_v22, 16 }
 0x631   : > { %9509 = vst.msk [vmem:[#allocation4 + $0x1c] sm:$0xf] %vm23139_vm13, %v9208_v1  ;;  %9512 = vst [vmem:[#allocation4 + $0x20] sm:$0x1] %v9511_v31  ;;  %v9191_v15 = vsel %vm18027_vm8, %v9183_v11, %v9190_v19  ;;  %v9504_v54 = vsel %vm18039_vm10, %v9192_v38, %v9503_v36  ;;  %v9211_v17 = vshrl.u32 %v15118_v50, 16  ;;  %v15751_v7 = vpop.f32.mrb[12].mxu1  ;;  %v9023_v51 = vadd.f32 %v15748_v63, %v20721_v18 }
 0x632   : > { %9502 = vst.msk [vmem:[#allocation4 + $0x10] sm:$0xf] %vm23140_vm14, %v9191_v15  ;;  %9505 = vst [vmem:[#allocation4 + $0x14] sm:$0x1] %v9504_v54  ;;  %v20749_v53 = vrot.slane %v9228_v27, 7  ;;  %v9021_v45 = vadd.f32 %v20721_v18, %v8869_v2  ;;  %v9026_v5 = vadd.f32 %v15751_v7, %v20721_v18  ;;  %v8882_v33 = vpop.f32.mrb[13].mxu1 }
 0x633   : > { %v9213_v57 = vrot.slane %v9211_v17, 7  ;;  %v9214_v16 = vshll.u32 %v15118_v50, 16  ;;  %v9024_v41 = vadd.f32 %v20721_v18, %v8882_v33  ;;  %v15752_v21 = vpop.f32.mrb[14].mxu1  ;;  %v9055_v59 = vmax.f32 %v9023_v51, 0.0  ;;  %v9517_v2 = vld [vmem:[#allocation4 + $0x2c] sm:$0x1]  ;;  %vm23147_vm13 = vmmov %vm23143_vm2 }
 0x634   : > { %v9233_v8 = vor.u32 %v9231_v25, %v20749_v53  ;;  %v9234_v3 = vrot.slane %v20749_v53, 4  ;;  %v9053_v60 = vmax.f32 %v9021_v45, 0.0  ;;  %v8885_v20 = vpop.f32.mrb[15].mxu1  ;;  %v9058_v6 = vmax.f32 %v9026_v5, 0.0  ;;  %v9534_v19 = vld [vmem:[#allocation4 + $0x48] sm:$0xf]  ;;  %vm23148_vm14 = vmmov %vm23143_vm2 }
 0x635   : > { %v9216_v43 = vor.u32 %v9214_v16, %v9213_v57  ;;  %v9217_v0 = vrot.slane %v9213_v57, 4  ;;  %v9056_v55 = vmax.f32 %v9024_v41, 0.0  ;;  %v15121_v40 = vpack.c.bf16 %v9055_v59, %v9055_v59  ;;  %v9527_v17 = vld [vmem:[#allocation4 + $0x3c] sm:$0xf] }
 0x636   : > { %v9521_v30 = vsel %vm20730_vm12, %v9233_v8, %v9520_v48  ;;  %v15119_v14 = vpack.c.bf16 %v9053_v60, %v9053_v60  ;;  %v9027_v24 = vadd.f32 %v15752_v21, %v20721_v18  ;;  %v15124_v47 = vpack.c.bf16 %v9058_v6, %v9058_v6 }
 0x637   : > { %9522 = vst [vmem:[#allocation4 + $0x30] sm:$0xf] %v9521_v30  ;;  %v9514_v62 = vsel %vm20730_vm12, %v9216_v43, %v9513_v29  ;;  %v15122_v13 = vpack.c.bf16 %v9056_v55, %v9056_v55  ;;  %v9025_v63 = vadd.f32 %v20721_v18, %v8885_v20  ;;  %v9236_v23 = vshrl.u32 %v15121_v40, 16 }
 0x638   : > { %9515 = vst [vmem:[#allocation4 + $0x24] sm:$0xf] %v9514_v62  ;;  %v9239_v34 = vshll.u32 %v15121_v40, 16  ;;  %v9219_v56 = vshrl.u32 %v15119_v14, 16  ;;  %v9222_v32 = vshll.u32 %v15119_v14, 16  ;;  %v9262_v28 = vshrl.u32 %v15124_v47, 16 }
 0x639   : > { %v9265_v11 = vshll.u32 %v15124_v47, 16  ;;  %v9245_v12 = vshrl.u32 %v15122_v13, 16  ;;  %v9248_v37 = vshll.u32 %v15122_v13, 16  ;;  %v15755_v4 = vpop.f32.mrb[16].mxu1  ;;  %v9238_v26 = vrot.slane %v9236_v23, 7 }
 0x63a   : > { %v9221_v52 = vrot.slane %v9219_v56, 7  ;;  %v9059_v42 = vmax.f32 %v9027_v24, 0.0  ;;  %v9057_v36 = vmax.f32 %v9025_v63, 0.0  ;;  %v8898_v22 = vpop.f32.mrb[17].mxu1  ;;  %v20763_v9 = vrot.slane %v9262_v28, 7 }
 0x63b   : > { %v20765_v38 = vrot.slane %v9245_v12, 7  ;;  %v9030_v50 = vadd.f32 %v15755_v4, %v20721_v18  ;;  %v9028_v1 = vadd.f32 %v20721_v18, %v8898_v22  ;;  %v15756_v31 = vpop.f32.mrb[18].mxu1  ;;  %v9241_v27 = vor.u32 %v9239_v34, %v9238_v26  ;;  %v9538_v40 = vld [vmem:[#allocation4 + $0x50] sm:$0x1]  ;;  %v9531_v34 = vld [vmem:[#allocation4 + $0x44] sm:$0x1] }
 0x63c   : > { %v9243_v15 = vrot.slane %v9238_v26, 4  ;;  %v9224_v54 = vor.u32 %v9222_v32, %v9221_v52  ;;  %v9226_v25 = vrot.slane %v9221_v52, 4  ;;  %v8901_v7 = vpop.f32.mrb[19].mxu1  ;;  %v9267_v53 = vor.u32 %v9265_v11, %v20763_v9 }
 0x63d   : > { %v9268_v51 = vrot.slane %v20763_v9, 4  ;;  %v9250_v45 = vor.u32 %v9248_v37, %v20765_v38  ;;  %v9251_v5 = vrot.slane %v20765_v38, 4  ;;  %v9242_v33 = vsel %vm18027_vm8, %v9234_v3, %v9241_v27  ;;  %v9548_v27 = vld [vmem:[#allocation4 + $0x60] sm:$0xf] }
 0x63e   : > { %v9525_v48 = vsel %vm18039_vm10, %v9243_v15, %v9524_v58  ;;  %v9225_v57 = vsel %vm18027_vm8, %v9217_v0, %v9224_v54  ;;  %v9518_v16 = vsel %vm18039_vm10, %v9226_v25, %v9517_v2  ;;  %9523 = vst.msk [vmem:[#allocation4 + $0x34] sm:$0xf] %vm23141_vm9, %v9242_v33  ;;  %v9535_v41 = vsel %vm20730_vm12, %v9267_v53, %v9534_v19  ;;  %v9541_v15 = vld [vmem:[#allocation4 + $0x54] sm:$0xf]  ;;  %v9613_v53 = vld [vmem:[#allocation4 + $0xc] sm:$0xf]  ;;  %vm23149_vm9 = vmmov %vm23143_vm2 }
 0x63f   : > { %9526 = vst [vmem:[#allocation4 + $0x38] sm:$0x1] %v9525_v48  ;;  %9516 = vst.msk [vmem:[#allocation4 + $0x28] sm:$0xf] %vm23142_vm15, %v9225_v57  ;;  %v9528_v21 = vsel %vm20730_vm12, %v9250_v45, %v9527_v17  ;;  %v15125_v8 = vpack.c.bf16 %v9059_v42, %v9059_v42  ;;  %v15123_v3 = vpack.c.bf16 %v9057_v36, %v9057_v36  ;;  %v9062_v29 = vmax.f32 %v9030_v50, 0.0 }
 0x640   : > { %9519 = vst [vmem:[#allocation4 + $0x2c] sm:$0x1] %v9518_v16  ;;  %9536 = vst [vmem:[#allocation4 + $0x48] sm:$0xf] %v9535_v41  ;;  %v9060_v59 = vmax.f32 %v9028_v1, 0.0  ;;  %v9031_v60 = vadd.f32 %v15756_v31, %v20721_v18  ;;  %v9029_v20 = vadd.f32 %v20721_v18, %v8901_v7 }
 0x641   : > { %9529 = vst [vmem:[#allocation4 + $0x3c] sm:$0xf] %v9528_v21  ;;  %v9270_v43 = vshrl.u32 %v15125_v8, 16  ;;  %v9273_v0 = vshll.u32 %v15125_v8, 16  ;;  %v9253_v6 = vshrl.u32 %v15123_v3, 16  ;;  %v9256_v55 = vshll.u32 %v15123_v3, 16  ;;  %vm23150_vm15 = vmmov %vm23143_vm2 }
 0x642   : > { %v15759_v30 = vpop.f32.mrb[20].mxu1  ;;  %v15128_v14 = vpack.c.bf16 %v9062_v29, %v9062_v29  ;;  %v15126_v24 = vpack.c.bf16 %v9060_v59, %v9060_v59  ;;  %v9063_v62 = vmax.f32 %v9031_v60, 0.0  ;;  %v9061_v47 = vmax.f32 %v9029_v20, 0.0  ;;  %v9552_v41 = vld [vmem:[#allocation4 + $0x68] sm:$0x1] }
 0x643   : > { %v8914_v13 = vpop.f32.mrb[21].mxu1  ;;  %v9272_v63 = vrot.slane %v9270_v43, 7  ;;  %v9255_v23 = vrot.slane %v9253_v6, 7  ;;  %v9034_v56 = vadd.f32 %v15759_v30, %v20721_v18  ;;  %v9545_v21 = vld [vmem:[#allocation4 + $0x5c] sm:$0x1] }
 0x644   : > { %v9032_v32 = vadd.f32 %v20721_v18, %v8914_v13  ;;  %v15760_v58 = vpop.f32.mrb[22].mxu1  ;;  %v9296_v2 = vshrl.u32 %v15128_v14, 16  ;;  %v9299_v28 = vshll.u32 %v15128_v14, 16  ;;  %v9279_v11 = vshrl.u32 %v15126_v24, 16  ;;  %v9614_v30 = vld [vmem:[#allocation4 + $0x10] sm:$0xf] }
 0x645   : > { %v9282_v12 = vshll.u32 %v15126_v24, 16  ;;  %v8917_v37 = vpop.f32.mrb[23].mxu1  ;;  %v9275_v4 = vor.u32 %v9273_v0, %v9272_v63  ;;  %v9277_v26 = vrot.slane %v9272_v63, 4  ;;  %v9258_v52 = vor.u32 %v9256_v55, %v9255_v23 }
 0x646   : > { %v9260_v42 = vrot.slane %v9255_v23, 4  ;;  %v9298_v36 = vrot.slane %v9296_v2, 7  ;;  %v9281_v22 = vrot.slane %v9279_v11, 7  ;;  %v15129_v9 = vpack.c.bf16 %v9063_v62, %v9063_v62 }
 0x647   : > { %v15127_v19 = vpack.c.bf16 %v9061_v47, %v9061_v47  ;;  %v9276_v38 = vsel %vm18027_vm8, %v9268_v51, %v9275_v4  ;;  %v9539_v50 = vsel %vm18039_vm10, %v9277_v26, %v9538_v40  ;;  %v9259_v1 = vsel %vm18027_vm8, %v9251_v5, %v9258_v52 }
 0x648   : > { %v9532_v31 = vsel %vm18039_vm10, %v9260_v42, %v9531_v34  ;;  %9537 = vst.msk [vmem:[#allocation4 + $0x4c] sm:$0xf] %vm23143_vm2, %v9276_v38  ;;  %9540 = vst [vmem:[#allocation4 + $0x50] sm:$0x1] %v9539_v50  ;;  %v9301_v54 = vor.u32 %v9299_v28, %v9298_v36  ;;  %v9302_v25 = vrot.slane %v9298_v36, 4  ;;  %v9284_v17 = vor.u32 %v9282_v12, %v9281_v22 }
 0x649   : > { %9530 = vst.msk [vmem:[#allocation4 + $0x40] sm:$0xf] %vm23144_vm3, %v9259_v1  ;;  %9533 = vst [vmem:[#allocation4 + $0x44] sm:$0x1] %v9532_v31  ;;  %v9285_v7 = vrot.slane %v9281_v22, 4  ;;  %v9304_v51 = vshrl.u32 %v15129_v9, 16  ;;  %v9035_v20 = vadd.f32 %v15760_v58, %v20721_v18  ;;  %v9033_v43 = vadd.f32 %v20721_v18, %v8917_v37 }
 0x64a   : > { %v9307_v45 = vshll.u32 %v15129_v9, 16  ;;  %v9287_v33 = vshrl.u32 %v15127_v19, 16  ;;  %v9290_v5 = vshll.u32 %v15127_v19, 16  ;;  %v20801_v48 = vpop.f32.mrb[24].mxu1  ;;  %v9549_v57 = vsel %vm20730_vm12, %v9301_v54, %v9548_v27  ;;  %v9562_v12 = vld [vmem:[#allocation4 + $0x78] sm:$0xf]  ;;  %vm23151_vm3 = vmmov %vm23143_vm2 }
 0x64b   : > { %v9542_v16 = vsel %vm20730_vm12, %v9284_v17, %v9541_v15  ;;  %v9066_v8 = vmax.f32 %v9034_v56, 0.0  ;;  %v9064_v3 = vmax.f32 %v9032_v32, 0.0  ;;  %v20807_v29 = vpop.f32.mrb[25].mxu1  ;;  %9550 = vst [vmem:[#allocation4 + $0x60] sm:$0xf] %v9549_v57  ;;  %v9306_v59 = vrot.slane %v9304_v51, 7 }
 0x64c   : > { %9543 = vst [vmem:[#allocation4 + $0x54] sm:$0xf] %v9542_v16  ;;  %v9289_v60 = vrot.slane %v9287_v33, 7  ;;  %v20811_v0 = vpop.f32.mrb[26].mxu1  ;;  %v9685_v40 = vshrl.u32 %v9613_v53, 16  ;;  %v9688_v14 = vshll.u32 %v9613_v53, 16 }
 0x64d   : > { %v15132_v6 = vpack.c.bf16 %v9066_v8, %v9066_v8  ;;  %v15130_v55 = vpack.c.bf16 %v9064_v3, %v9064_v3  ;;  %v20813_v24 = vpop.f32.mrb[27].mxu1  ;;  %v9309_v62 = vor.u32 %v9307_v45, %v9306_v59  ;;  %v9311_v47 = vrot.slane %v9306_v59, 4  ;;  %v9555_v37 = vld [vmem:[#allocation4 + $0x6c] sm:$0xf]  ;;  %v9645_v36 = vld [vmem:[#allocation4 + $0x14] sm:$0x1] }
 0x64e   : > { %v9292_v13 = vor.u32 %v9290_v5, %v9289_v60  ;;  %v9294_v63 = vrot.slane %v9289_v60, 4  ;;  %v9067_v52 = vmax.f32 %v9035_v20, 0.0  ;;  %v9065_v42 = vmax.f32 %v9033_v43, 0.0  ;;  %v9615_v54 = vld [vmem:[#allocation4 + $0x18] sm:$0xf] }
 0x64f   : > { %v9330_v23 = vshrl.u32 %v15132_v6, 16  ;;  %v9333_v34 = vshll.u32 %v15132_v6, 16  ;;  %v9313_v56 = vshrl.u32 %v15130_v55, 16  ;;  %v9316_v32 = vshll.u32 %v15130_v55, 16  ;;  %v9616_v45 = vld [vmem:[#allocation4 + $0x1c] sm:$0xf] }
 0x650   : > { %v9310_v58 = vsel %vm18027_vm8, %v9302_v25, %v9309_v62  ;;  %v9553_v2 = vsel %vm18039_vm10, %v9311_v47, %v9552_v41  ;;  %v9293_v28 = vsel %vm18027_vm8, %v9285_v7, %v9292_v13  ;;  %v9546_v11 = vsel %vm18039_vm10, %v9294_v63, %v9545_v21  ;;  %v9559_v47 = vld [vmem:[#allocation4 + $0x74] sm:$0x1] }
 0x651   : > { %9551 = vst.msk [vmem:[#allocation4 + $0x64] sm:$0xf] %vm23145_vm4, %v9310_v58  ;;  %9554 = vst [vmem:[#allocation4 + $0x68] sm:$0x1] %v9553_v2  ;;  %v9332_v4 = vrot.slane %v9330_v23, 7  ;;  %v9315_v26 = vrot.slane %v9313_v56, 7  ;;  %v15133_v17 = vpack.c.bf16 %v9067_v52, %v9067_v52  ;;  %v15131_v7 = vpack.c.bf16 %v9065_v42, %v9065_v42 }
 0x652   : > { %9544 = vst.msk [vmem:[#allocation4 + $0x58] sm:$0xf] %vm23146_vm6, %v9293_v28  ;;  %9547 = vst [vmem:[#allocation4 + $0x5c] sm:$0x1] %v9546_v11  ;;  %v9687_v22 = vrot.slane %v9685_v40, 4  ;;  %v9690_v9 = vrot.slane %v9688_v14, 5 }
 0x653   : > { %v9694_v19 = vshll.u32 %v9614_v30, 16  ;;  %v9698_v38 = vshrl.u32 %v9614_v30, 16  ;;  %v20825_v50 = vpop.f32.mrb[28].mxu1  ;;  %v9335_v1 = vor.u32 %v9333_v34, %v9332_v4  ;;  %v9336_v31 = vrot.slane %v9332_v4, 4  ;;  %v9566_v30 = vld [vmem:[#allocation4 + $0x80] sm:$0x1]  ;;  %vm23152_vm4 = vmmov %vm23143_vm2 }
 0x654   : > { %v9318_v27 = vor.u32 %v9316_v32, %v9315_v26  ;;  %v20829_v15 = vsel %vm613_vm0, %v20685_v49, 0  ;;  %v20831_v25 = vpop.f32.mrb[29].mxu1  ;;  %v9691_v53 = vor.u32 %v9690_v9, %v9687_v22  ;;  %v9704_v41 = vshll.u32 %v9645_v36, 16  ;;  %v9646_v28 = vld [vmem:[#allocation4 + $0x20] sm:$0x1] }
 0x655   : > { %v9696_v51 = vrot.slane %v9694_v19, 5  ;;  %v20833_v33 = vpop.f32.mrb[30].mxu1  ;;  %v9563_v5 = vsel %vm20730_vm12, %v9335_v1, %v9562_v12  ;;  %v9700_v16 = vrot.slane %v9698_v38, 4  ;;  %v9319_v21 = vrot.slane %v9315_v26, 4  ;;  %v20847_v52 = vld [vmem:[#allocation4 + $0x24] sm:$0xf] }
 0x656   : > { %v9556_v57 = vsel %vm20730_vm12, %v9318_v27, %v9555_v37  ;;  %v20839_v49 = vpop.f32.mrb[31].mxu1  ;;  %9564 = vst [vmem:[#allocation4 + $0x78] sm:$0xf] %v9563_v5  ;;  %v9338_v8 = vshrl.u32 %v15133_v17, 16  ;;  %v9341_v3 = vshll.u32 %v15133_v17, 16  ;;  %v9321_v59 = vshrl.u32 %v15131_v7, 16 }
 0x657   : > { %9557 = vst [vmem:[#allocation4 + $0x6c] sm:$0xf] %v9556_v57  ;;  %v9324_v60 = vshll.u32 %v15131_v7, 16  ;;  %v9692_v20 = vrot.slane %v9691_v53, 4  ;;  %v9701_v43 = vor.u32 %v9700_v16, %v9696_v51  ;;  %v9706_v6 = vrot.slane %v9704_v41, 5 }
 0x658   : > { %v9340_v55 = vrot.slane %v9338_v8, 7  ;;  %v9323_v40 = vrot.slane %v9321_v59, 7  ;;  %v9709_v14 = vshrl.u32 %v9615_v54, 16  ;;  %v9712_v62 = vshll.u32 %v9615_v54, 16  ;;  %v20868_v7 = vld [vmem:[%s22622_s6 + $0x4] sm:$0x3] }
 0x659   : > { %v9697_v13 = vsel %vm18638_vm7, %v9692_v20, %v9696_v51  ;;  %v9702_v63 = vrot.slane %v9701_v43, 4  ;;  %v9718_v23 = vshll.u32 %v9616_v45, 16  ;;  %v9722_v34 = vshrl.u32 %v9616_v45, 16  ;;  %v20843_v11 = vpop.f32.mrb[32].mxu1  ;;  %v20878_v57 = vld [vmem:[#allocation4 + $0x28] sm:$0xf] }
 0x65a   : > { %v9343_v56 = vor.u32 %v9341_v3, %v9340_v55  ;;  %v9345_v32 = vrot.slane %v9340_v55, 4  ;;  %v9326_v58 = vor.u32 %v9324_v60, %v9323_v40  ;;  %v9328_v2 = vrot.slane %v9323_v40, 4  ;;  %v20849_v42 = vpop.f32.mrb[33].mxu1 }
 0x65b   : > { %v9707_v12 = vsel %vm18638_vm7, %v9702_v63, %v9706_v6  ;;  %v9711_v37 = vrot.slane %v9709_v14, 4  ;;  %v9714_v4 = vrot.slane %v9712_v62, 5  ;;  %v9720_v26 = vrot.slane %v9718_v23, 5  ;;  %v20859_v38 = vpop.f32.mrb[34].mxu1 }
 0x65c   : > { %v9344_v36 = vsel %vm18027_vm8, %v9336_v31, %v9343_v56  ;;  %v9567_v22 = vsel %vm18039_vm10, %v9345_v32, %v9566_v30  ;;  %v9327_v9 = vsel %vm18027_vm8, %v9319_v21, %v9326_v58  ;;  %v9560_v19 = vsel %vm18039_vm10, %v9328_v2, %v9559_v47  ;;  %v20863_v17 = vpop.f32.mrb[35].mxu1  ;;  %v9569_v32 = vld [vmem:[#allocation4 + $0x84] sm:$0xf] }
 0x65d   : > { %9565 = vst.msk [vmem:[#allocation4 + $0x7c] sm:$0xf] %vm23147_vm13, %v9344_v36  ;;  %9568 = vst [vmem:[#allocation4 + $0x80] sm:$0x1] %v9567_v22  ;;  %v14766_v1 = vcombine.low %v9697_v13, %v9707_v12  ;;  %v9715_v27 = vor.u32 %v9714_v4, %v9711_v37  ;;  %v9724_v31 = vrot.slane %v9722_v34, 4  ;;  %v9728_v54 = vshll.u32 %v9646_v28, 16 }
 0x65e   : > { %9558 = vst.msk [vmem:[#allocation4 + $0x70] sm:$0xf] %vm23148_vm14, %v9327_v9  ;;  %9561 = vst [vmem:[#allocation4 + $0x74] sm:$0x1] %v9560_v19  ;;  %v9038_v53 = vadd.f32 %v20801_v48, %v20721_v18  ;;  %v9036_v51 = vadd.f32 %v20721_v18, %v20807_v29  ;;  %v9039_v45 = vadd.f32 %v20811_v0, %v20721_v18  ;;  %v9733_v8 = vshrl.u32 %v20847_v52, 16 }
 0x65f   : > { %v9037_v5 = vadd.f32 %v20721_v18, %v20813_v24  ;;  %15776 = vmatmul.mubr.msk.bf16.vlgmr.msra.gmra.mrb[4].mxu0 %vm600_vm1, %v14766_v1  ;;  %v9716_v16 = vrot.slane %v9715_v27, 4  ;;  %v9725_v41 = vor.u32 %v9724_v31, %v9720_v26  ;;  %v9730_v21 = vrot.slane %v9728_v54, 5  ;;  %v9576_v34 = vld [vmem:[#allocation4 + $0x90] sm:$0xf]  ;;  %v9580_v4 = vld [vmem:[#allocation4 + $0x98] sm:$0x1] }
 0x660   : > { %15808 = vmatpush3.bf16.msra.mxu0 %v20829_v15  ;;  %v9070_v48 = vmax.f32 %v9038_v53, 0.0  ;;  %v9068_v3 = vmax.f32 %v9036_v51, 0.0  ;;  %v9071_v29 = vmax.f32 %v9039_v45, 0.0  ;;  %v9735_v24 = vrot.slane %v9733_v8, 4  ;;  %v9573_v36 = vld [vmem:[#allocation4 + $0x8c] sm:$0x1] }
 0x661   : > { %v9069_v59 = vmax.f32 %v9037_v5, 0.0  ;;  %v9721_v0 = vsel %vm18638_vm7, %v9716_v16, %v9720_v26  ;;  %v9726_v60 = vrot.slane %v9725_v41, 4  ;;  %v9736_v20 = vshll.u32 %v20847_v52, 16  ;;  %16606 = vmatprep.subr.msk.bf16.mxu0 %vm613_vm0, %v20868_v7  ;;  %v9647_v1 = vld [vmem:[#allocation4 + $0x2c] sm:$0x1] }
 0x662   : > { %v15136_v43 = vpack.c.bf16 %v9070_v48, %v9070_v48  ;;  %v15134_v6 = vpack.c.bf16 %v9068_v3, %v9068_v3  ;;  %v15137_v55 = vpack.c.bf16 %v9071_v29, %v9071_v29  ;;  %v9742_v14 = vshll.u32 %v20878_v57, 16  ;;  %v20893_v54 = vld [vmem:[#allocation4 + $0x30] sm:$0xf]  ;;  %v20895_v16 = vld [vmem:[#allocation4 + $0x34] sm:$0xf] }
 0x663   : > { %v15135_v30 = vpack.c.bf16 %v9069_v59, %v9069_v59  ;;  %v9731_v15 = vsel %vm18638_vm7, %v9726_v60, %v9730_v21  ;;  %v9738_v40 = vrot.slane %v9736_v20, 5  ;;  %v9746_v62 = vshrl.u32 %v20878_v57, 16  ;;  %v9648_v41 = vld [vmem:[#allocation4 + $0x38] sm:$0x1] }
 0x664   : > { %v14767_v47 = vcombine.low %v9721_v0, %v9731_v15  ;;  %v9364_v13 = vshrl.u32 %v15136_v43, 16  ;;  %v9367_v63 = vshll.u32 %v15136_v43, 16  ;;  %v9347_v23 = vshrl.u32 %v15134_v6, 16 }
 0x665   : > { %v9350_v56 = vshll.u32 %v15134_v6, 16  ;;  %v9372_v58 = vshrl.u32 %v15137_v55, 16  ;;  %v9375_v2 = vshll.u32 %v15137_v55, 16  ;;  %v9355_v28 = vshrl.u32 %v15135_v30, 16 }
 0x666   : > { %15779 = vmatprep.mubr.msk.bf16.mxu0 %vm600_vm1, %v14767_v47  ;;  %v9366_v12 = vrot.slane %v9364_v13, 7  ;;  %v9349_v37 = vrot.slane %v9347_v23, 7  ;;  %v9358_v26 = vshll.u32 %v15135_v30, 16  ;;  %v9739_v22 = vor.u32 %v9738_v40, %v9735_v24 }
 0x667   : > { %v9374_v9 = vrot.slane %v9372_v58, 7  ;;  %v9357_v19 = vrot.slane %v9355_v28, 7  ;;  %v9744_v27 = vrot.slane %v9742_v14, 5  ;;  %v9748_v31 = vrot.slane %v9746_v62, 4 }
 0x668   : > { %v9369_v53 = vor.u32 %v9367_v63, %v9366_v12  ;;  %v9370_v51 = vrot.slane %v9366_v12, 4  ;;  %v9352_v45 = vor.u32 %v9350_v56, %v9349_v37  ;;  %v9353_v5 = vrot.slane %v9349_v37, 4  ;;  %v20921_v12 = vld [vmem:[#allocation4 + $0x3c] sm:$0xf] }
 0x669   : > { %v9377_v21 = vor.u32 %v9375_v2, %v9374_v9  ;;  %v9379_v8 = vrot.slane %v9374_v9, 4  ;;  %v9360_v48 = vor.u32 %v9358_v26, %v9357_v19  ;;  %v9362_v3 = vrot.slane %v9357_v19, 4 }
 0x66a   : > { %v9577_v29 = vsel %vm20730_vm12, %v9369_v53, %v9576_v34  ;;  %v9570_v59 = vsel %vm20730_vm12, %v9352_v45, %v9569_v32  ;;  %v9740_v0 = vrot.slane %v9739_v22, 4  ;;  %v9749_v60 = vor.u32 %v9748_v31, %v9744_v27 }
 0x66b   : > { %9578 = vst [vmem:[#allocation4 + $0x90] sm:$0xf] %v9577_v29  ;;  %9571 = vst [vmem:[#allocation4 + $0x84] sm:$0xf] %v9570_v59  ;;  %v9378_v24 = vsel %vm18027_vm8, %v9370_v51, %v9377_v21  ;;  %v9581_v20 = vsel %vm18039_vm10, %v9379_v8, %v9580_v4  ;;  %v9361_v43 = vsel %vm18027_vm8, %v9353_v5, %v9360_v48  ;;  %v9752_v15 = vshll.u32 %v9647_v1, 16 }
 0x66c   : > { %v9574_v6 = vsel %vm18039_vm10, %v9362_v3, %v9573_v36  ;;  %9579 = vst.msk [vmem:[#allocation4 + $0x94] sm:$0xf] %vm23149_vm9, %v9378_v24  ;;  %9582 = vst [vmem:[#allocation4 + $0x98] sm:$0x1] %v9581_v20  ;;  %v9745_v55 = vsel %vm18638_vm7, %v9740_v0, %v9744_v27  ;;  %v9750_v30 = vrot.slane %v9749_v60, 4  ;;  %v9757_v40 = vshrl.u32 %v20893_v54, 16 }
 0x66d   : > { %9572 = vst.msk [vmem:[#allocation4 + $0x88] sm:$0xf] %vm23150_vm15, %v9361_v43  ;;  %9575 = vst [vmem:[#allocation4 + $0x8c] sm:$0x1] %v9574_v6  ;;  %v9760_v14 = vshll.u32 %v20893_v54, 16  ;;  %v9766_v62 = vshll.u32 %v20895_v16, 16  ;;  %v9042_v34 = vadd.f32 %v20825_v50, %v20721_v18  ;;  %v9040_v56 = vadd.f32 %v20721_v18, %v20831_v25 }
 0x66e   : > { %v9770_v47 = vshrl.u32 %v20895_v16, 16  ;;  %v9776_v13 = vshll.u32 %v9648_v41, 16  ;;  %v9754_v63 = vrot.slane %v9752_v15, 5  ;;  %v9759_v23 = vrot.slane %v9757_v40, 4  ;;  %v9583_v3 = vld [vmem:[#allocation4 + $0x9c] sm:$0xf] }
 0x66f   : > { %v9762_v32 = vrot.slane %v9760_v14, 5  ;;  %v9768_v58 = vrot.slane %v9766_v62, 5  ;;  %v9074_v4 = vmax.f32 %v9042_v34, 0.0  ;;  %v9072_v26 = vmax.f32 %v9040_v56, 0.0  ;;  %v20936_v0 = vld [vmem:[#allocation4 + $0x40] sm:$0xf] }
 0x670   : > { %v9772_v2 = vrot.slane %v9770_v47, 4  ;;  %v9778_v28 = vrot.slane %v9776_v13, 5  ;;  %v9755_v37 = vsel %vm18638_vm7, %v9750_v30, %v9754_v63  ;;  %v9043_v36 = vadd.f32 %v20833_v33, %v20721_v18  ;;  %v20938_v60 = vld [vmem:[#allocation4 + $0x44] sm:$0x1]  ;;  %v9594_v63 = vld [vmem:[#allocation4 + $0xb0] sm:$0x1] }
 0x671   : > { %v14768_v22 = vcombine.low %v9745_v55, %v9755_v37  ;;  %v9763_v9 = vor.u32 %v9762_v32, %v9759_v23  ;;  %v9041_v25 = vadd.f32 %v20721_v18, %v20839_v49  ;;  %v15140_v19 = vpack.c.bf16 %v9074_v4, %v9074_v4  ;;  %v9590_v49 = vld [vmem:[#allocation4 + $0xa8] sm:$0xf]  ;;  %v9587_v23 = vld [vmem:[#allocation4 + $0xa4] sm:$0x1] }
 0x672   : > { %v9773_v50 = vor.u32 %v9772_v2, %v9768_v58  ;;  %v15138_v1 = vpack.c.bf16 %v9072_v26, %v9072_v26  ;;  %v9075_v27 = vmax.f32 %v9043_v36, 0.0  ;;  %v9781_v31 = vshrl.u32 %v20921_v12, 16  ;;  %v20942_v2 = vld [vmem:[#allocation4 + $0x48] sm:$0xf]  ;;  %v20950_v36 = vld [vmem:[#allocation4 + $0x4c] sm:$0xf] }
 0x673   : > { %15780 = vmatmul.mubr.msk.bf16.gmra.mrb[8].mxu0 %vm600_vm1, %v14768_v22  ;;  %v9764_v53 = vrot.slane %v9763_v9, 4  ;;  %v9073_v45 = vmax.f32 %v9041_v25, 0.0  ;;  %v9784_v5 = vshll.u32 %v20921_v12, 16  ;;  %v9398_v41 = vshrl.u32 %v15140_v19, 16  ;;  %v20952_v22 = vld [vmem:[#allocation4 + $0x50] sm:$0x1] }
 0x674   : > { %v9774_v51 = vrot.slane %v9773_v50, 4  ;;  %v9401_v33 = vshll.u32 %v15140_v19, 16  ;;  %v9381_v21 = vshrl.u32 %v15138_v1, 16  ;;  %v9384_v8 = vshll.u32 %v15138_v1, 16 }
 0x675   : > { %v9769_v48 = vsel %vm18638_vm7, %v9764_v53, %v9768_v58  ;;  %v15141_v29 = vpack.c.bf16 %v9075_v27, %v9075_v27  ;;  %v15139_v59 = vpack.c.bf16 %v9073_v45, %v9073_v45  ;;  %v9400_v20 = vrot.slane %v9398_v41, 7 }
 0x676   : > { %v9779_v18 = vsel %vm18638_vm7, %v9774_v51, %v9778_v28  ;;  %v9383_v43 = vrot.slane %v9381_v21, 7  ;;  %v9783_v6 = vrot.slane %v9781_v31, 4  ;;  %v9786_v32 = vrot.slane %v9784_v5, 5 }
 0x677   : > { %v14769_v24 = vcombine.low %v9769_v48, %v9779_v18  ;;  %v9406_v55 = vshrl.u32 %v15141_v29, 16  ;;  %v9409_v30 = vshll.u32 %v15141_v29, 16  ;;  %v9389_v15 = vshrl.u32 %v15139_v59, 16  ;;  %v16743_v29 = vld [vmem:[%s22621_s5] ss:$0 sm:$0xff] }
 0x678   : > { %v9392_v40 = vshll.u32 %v15139_v59, 16  ;;  %v9403_v14 = vor.u32 %v9401_v33, %v9400_v20  ;;  %v9404_v62 = vrot.slane %v9400_v20, 4  ;;  %v9386_v47 = vor.u32 %v9384_v8, %v9383_v43 }
 0x679   : > { %15783 = vmatprep.mubr.msk.bf16.mxu0 %vm600_vm1, %v14769_v24  ;;  %v9387_v13 = vrot.slane %v9383_v43, 4  ;;  %v9408_v34 = vrot.slane %v9406_v55, 7  ;;  %v9391_v56 = vrot.slane %v9389_v15, 7  ;;  %v9790_v58 = vshll.u32 %v20936_v0, 16 }
 0x67a   : > { %v9591_v28 = vsel %vm20730_vm12, %v9403_v14, %v9590_v49  ;;  %v9584_v37 = vsel %vm20730_vm12, %v9386_v47, %v9583_v3  ;;  %v9794_v4 = vshrl.u32 %v20936_v0, 16  ;;  %v9800_v26 = vshll.u32 %v20938_v60, 16  ;;  %v20975_v14 = vld [vmem:[#allocation4 + $0x54] sm:$0xf] }
 0x67b   : > { %9592 = vst [vmem:[#allocation4 + $0xa8] sm:$0xf] %v9591_v28  ;;  %9585 = vst [vmem:[#allocation4 + $0x9c] sm:$0xf] %v9584_v37  ;;  %v9411_v9 = vor.u32 %v9409_v30, %v9408_v34  ;;  %v9413_v50 = vrot.slane %v9408_v34, 4  ;;  %v9394_v25 = vor.u32 %v9392_v40, %v9391_v56  ;;  %v9396_v19 = vrot.slane %v9391_v56, 4 }
 0x67c   : > { %v9787_v1 = vor.u32 %v9786_v32, %v9783_v6  ;;  %v9792_v27 = vrot.slane %v9790_v58, 5  ;;  %v9796_v31 = vrot.slane %v9794_v4, 4  ;;  %v9802_v53 = vrot.slane %v9800_v26, 5 }
 0x67d   : > { %v9412_v51 = vsel %vm18027_vm8, %v9404_v62, %v9411_v9  ;;  %v9595_v45 = vsel %vm18039_vm10, %v9413_v50, %v9594_v63  ;;  %v9395_v5 = vsel %vm18027_vm8, %v9387_v13, %v9394_v25  ;;  %v9588_v41 = vsel %vm18039_vm10, %v9396_v19, %v9587_v23 }
 0x67e   : > { %9593 = vst.msk [vmem:[#allocation4 + $0xac] sm:$0xf] %vm23143_vm2, %v9412_v51  ;;  %9596 = vst [vmem:[#allocation4 + $0xb0] sm:$0x1] %v9595_v45  ;;  %v9788_v33 = vrot.slane %v9787_v1, 4  ;;  %v9797_v21 = vor.u32 %v9796_v31, %v9792_v27  ;;  %v9805_v8 = vshrl.u32 %v20942_v2, 16  ;;  %v9046_v59 = vadd.f32 %v16743_v29, %v20843_v11 }
 0x67f   : > { %9586 = vst.msk [vmem:[#allocation4 + $0xa0] sm:$0xf] %vm23151_vm3, %v9395_v5  ;;  %9589 = vst [vmem:[#allocation4 + $0xa4] sm:$0x1] %v9588_v41  ;;  %v9808_v48 = vshll.u32 %v20942_v2, 16  ;;  %v9814_v18 = vshll.u32 %v20950_v36, 16  ;;  %v9044_v13 = vadd.f32 %v16743_v29, %v20849_v42  ;;  %v9047_v11 = vadd.f32 %v16743_v29, %v20859_v38 }
 0x680   : > { %v9818_v49 = vshrl.u32 %v20950_v36, 16  ;;  %v9824_v3 = vshll.u32 %v20952_v22, 16  ;;  %v9793_v24 = vsel %vm18638_vm7, %v9788_v33, %v9792_v27  ;;  %v9798_v20 = vrot.slane %v9797_v21, 4  ;;  %v9604_v38 = vld [vmem:[#allocation4 + $0xc0] sm:$0xf] }
 0x681   : > { %v9807_v43 = vrot.slane %v9805_v8, 4  ;;  %v9810_v6 = vrot.slane %v9808_v48, 5  ;;  %v9816_v55 = vrot.slane %v9814_v18, 5  ;;  %v9078_v40 = vmax.f32 %v9046_v59, 0.0  ;;  %v9597_v48 = vld [vmem:[#allocation4 + $0xb4] sm:$0xf] }
 0x682   : > { %v9820_v30 = vrot.slane %v9818_v49, 4  ;;  %v9826_v15 = vrot.slane %v9824_v3, 5  ;;  %v9803_v62 = vsel %vm18638_vm7, %v9798_v20, %v9802_v53  ;;  %v9045_v56 = vadd.f32 %v16743_v29, %v20863_v17  ;;  %v20988_v53 = vld [vmem:[#allocation4 + $0x58] sm:$0xf]  ;;  %v9608_v49 = vld [vmem:[#allocation4 + $0xc8] sm:$0x1] }
 0x683   : > { %v9811_v47 = vor.u32 %v9810_v6, %v9807_v43  ;;  %v14770_v63 = vcombine.low %v9793_v24, %v9803_v62  ;;  %v15144_v34 = vpack.c.bf16 %v9078_v40, %v9078_v40  ;;  %v9076_v58 = vmax.f32 %v9044_v13, 0.0  ;;  %v9601_v20 = vld [vmem:[#allocation4 + $0xbc] sm:$0x1] }
 0x684   : > { %v9821_v23 = vor.u32 %v9820_v30, %v9816_v55  ;;  %v9079_v28 = vmax.f32 %v9047_v11, 0.0  ;;  %v9829_v37 = vshrl.u32 %v20975_v14, 16  ;;  %v9077_v50 = vmax.f32 %v9045_v56, 0.0  ;;  %v20992_v43 = vld [vmem:[#allocation4 + $0x5c] sm:$0x1] }
 0x685   : > { %v9812_v32 = vrot.slane %v9811_v47, 4  ;;  %15784 = vmatmul.mubr.msk.bf16.gmra.mrb[12].mxu0 %vm600_vm1, %v14770_v63  ;;  %v9432_v26 = vshrl.u32 %v15144_v34, 16  ;;  %v9435_v9 = vshll.u32 %v15144_v34, 16  ;;  %v15142_v25 = vpack.c.bf16 %v9076_v58, %v9076_v58  ;;  %v21000_v58 = vld [vmem:[#allocation4 + $0x64] sm:$0xf] }
 0x686   : > { %v9822_v4 = vrot.slane %v9821_v23, 4  ;;  %v15145_v19 = vpack.c.bf16 %v9079_v28, %v9079_v28  ;;  %v9831_v1 = vrot.slane %v9829_v37, 4  ;;  %v15143_v31 = vpack.c.bf16 %v9077_v50, %v9077_v50 }
 0x687   : > { %v9817_v42 = vsel %vm18638_vm7, %v9812_v32, %v9816_v55  ;;  %v9434_v27 = vrot.slane %v9432_v26, 7  ;;  %v9832_v51 = vshll.u32 %v20975_v14, 16  ;;  %v9415_v5 = vshrl.u32 %v15142_v25, 16  ;;  %v20998_v32 = vld [vmem:[#allocation4 + $0x60] sm:$0xf] }
 0x688   : > { %v9827_v17 = vsel %vm18638_vm7, %v9822_v4, %v9826_v15  ;;  %v9418_v41 = vshll.u32 %v15142_v25, 16  ;;  %v9440_v33 = vshrl.u32 %v15145_v19, 16  ;;  %v9443_v18 = vshll.u32 %v15145_v19, 16 }
 0x689   : > { %v14771_v45 = vcombine.low %v9817_v42, %v9827_v17  ;;  %v9437_v21 = vor.u32 %v9435_v9, %v9434_v27  ;;  %v9438_v8 = vrot.slane %v9434_v27, 4  ;;  %v9423_v3 = vshrl.u32 %v15143_v31, 16  ;;  %v21008_v9 = vld [vmem:[#allocation4 + $0x68] sm:$0x1]  ;;  %v21020_v27 = vld [vmem:[#allocation4 + $0x6c] sm:$0xf] }
 0x68a   : > { %v9417_v29 = vrot.slane %v9415_v5, 7  ;;  %v9442_v59 = vrot.slane %v9440_v33, 7  ;;  %v9426_v24 = vshll.u32 %v15143_v31, 16  ;;  %v9834_v6 = vrot.slane %v9832_v51, 5  ;;  %v21026_v5 = vld [vmem:[#allocation4 + $0x70] sm:$0xf] }
 0x68b   : > { %15787 = vmatprep.mubr.msk.bf16.mxu0 %vm600_vm1, %v14771_v45  ;;  %v9605_v55 = vsel %vm20730_vm12, %v9437_v21, %v9604_v38  ;;  %v9425_v30 = vrot.slane %v9423_v3, 7  ;;  %v9838_v15 = vshll.u32 %v20988_v53, 16  ;;  %v9842_v40 = vshrl.u32 %v20988_v53, 16 }
 0x68c   : > { %9606 = vst [vmem:[#allocation4 + $0xc0] sm:$0xf] %v9605_v55  ;;  %v9420_v62 = vor.u32 %v9418_v41, %v9417_v29  ;;  %v9421_v47 = vrot.slane %v9417_v29, 4  ;;  %v9445_v13 = vor.u32 %v9443_v18, %v9442_v59  ;;  %v9447_v11 = vrot.slane %v9442_v59, 4  ;;  %v21036_v55 = vld [vmem:[#allocation4 + $0x78] sm:$0xf] }
 0x68d   : > { %v9428_v63 = vor.u32 %v9426_v24, %v9425_v30  ;;  %v9430_v23 = vrot.slane %v9425_v30, 4  ;;  %v9835_v34 = vor.u32 %v9834_v6, %v9831_v1  ;;  %v9840_v56 = vrot.slane %v9838_v15, 5 }
 0x68e   : > { %v9598_v28 = vsel %vm20730_vm12, %v9420_v62, %v9597_v48  ;;  %v9446_v37 = vsel %vm18027_vm8, %v9438_v8, %v9445_v13  ;;  %v9609_v4 = vsel %vm18039_vm10, %v9447_v11, %v9608_v49  ;;  %v9844_v26 = vrot.slane %v9842_v40, 4  ;;  %vm23153_vm12 = vmmov %vm23143_vm2  ;;  %v21028_v48 = vld [vmem:[#allocation4 + $0x74] sm:$0x1] }
 0x68f   : > { %9599 = vst [vmem:[#allocation4 + $0xb4] sm:$0xf] %v9598_v28  ;;  %9607 = vst.msk [vmem:[#allocation4 + $0xc4] sm:$0xf] %vm23152_vm4, %v9446_v37  ;;  %v9429_v50 = vsel %vm18027_vm8, %v9421_v47, %v9428_v63  ;;  %v9602_v35 = vsel %vm18039_vm10, %v9430_v23, %v9601_v20  ;;  %v9836_v42 = vrot.slane %v9835_v34, 4  ;;  %v9848_v38 = vshll.u32 %v20992_v43, 16 }
 0x690   : > { %9610 = vst [vmem:[#allocation4 + $0xc8] sm:$0x1] %v9609_v4  ;;  %9600 = vst.msk [vmem:[#allocation4 + $0xb8] sm:$0xf] %vm23153_vm12, %v9429_v50  ;;  %v9845_v25 = vor.u32 %v9844_v26, %v9840_v56  ;;  %v9853_v19 = vshrl.u32 %v20998_v32, 16  ;;  %v9856_v1 = vshll.u32 %v20998_v32, 16 }
 0x691   : > { %9603 = vst [vmem:[#allocation4 + $0xbc] sm:$0x1] %v9602_v35  ;;  %v9862_v17 = vshll.u32 %v21000_v58, 16  ;;  %v9841_v46 = vsel %vm18638_vm7, %v9836_v42, %v9840_v56  ;;  %v9850_v31 = vrot.slane %v9848_v38, 5  ;;  %v9866_v51 = vshrl.u32 %v21000_v58, 16 }
 0x692   : > { %v9872_v45 = vshll.u32 %v21008_v9, 16  ;;  %v9846_v41 = vrot.slane %v9845_v25, 4  ;;  %v9855_v33 = vrot.slane %v9853_v19, 4  ;;  %v9858_v21 = vrot.slane %v9856_v1, 5  ;;  %v21038_v47 = vld [vmem:[#allocation4 + $0x7c] sm:$0xf] }
 0x693   : > { %v9864_v8 = vrot.slane %v9862_v17, 5  ;;  %v9868_v18 = vrot.slane %v9866_v51, 4  ;;  %v9877_v3 = vshrl.u32 %v21020_v27, 16  ;;  %v9880_v29 = vshll.u32 %v21020_v27, 16  ;;  %v21042_v28 = vld [vmem:[#allocation4 + $0x80] sm:$0x1] }
 0x694   : > { %v9874_v49 = vrot.slane %v9872_v45, 5  ;;  %v9851_v59 = vsel %vm18638_vm7, %v9846_v41, %v9850_v31  ;;  %v9859_v24 = vor.u32 %v9858_v21, %v9855_v33  ;;  %v9886_v20 = vshll.u32 %v21026_v5, 16  ;;  %v21049_v38 = vld [vmem:[#allocation4 + $0x84] sm:$0xf]  ;;  %v21056_v33 = vld [vmem:[#allocation4 + $0x8c] sm:$0x1] }
 0x695   : > { %v9890_v6 = vshrl.u32 %v21026_v5, 16  ;;  %v14772_v30 = vcombine.low %v9841_v46, %v9851_v59  ;;  %v9869_v15 = vor.u32 %v9868_v18, %v9864_v8  ;;  %v9879_v40 = vrot.slane %v9877_v3, 4  ;;  %v21053_v46 = vld [vmem:[#allocation4 + $0x88] sm:$0xf]  ;;  %v21058_v21 = vld [vmem:[#allocation4 + $0x90] sm:$0xf] }
 0x696   : > { %v9882_v62 = vrot.slane %v9880_v29, 5  ;;  %v9860_v13 = vrot.slane %v9859_v24, 4  ;;  %v9888_v11 = vrot.slane %v9886_v20, 5  ;;  %v9896_v23 = vshll.u32 %v21028_v48, 16  ;;  %v21064_v29 = vld [vmem:[#allocation4 + $0x94] sm:$0xf] }
 0x697   : > { %v9892_v63 = vrot.slane %v9890_v6, 4  ;;  %15788 = vmatmul.mubr.msk.bf16.gmra.mrb[16].mxu0 %vm600_vm1, %v14772_v30  ;;  %v9870_v34 = vrot.slane %v9869_v15, 4  ;;  %v9901_v37 = vshrl.u32 %v21036_v55, 16  ;;  %v9904_v4 = vshll.u32 %v21036_v55, 16 }
 0x698   : > { %v9883_v56 = vor.u32 %v9882_v62, %v9879_v40  ;;  %v9865_v26 = vsel %vm18638_vm7, %v9860_v13, %v9864_v8  ;;  %v9898_v35 = vrot.slane %v9896_v23, 5  ;;  %v9910_v42 = vshll.u32 %v21038_v47, 16 }
 0x699   : > { %v9893_v50 = vor.u32 %v9892_v63, %v9888_v11  ;;  %v9875_v25 = vsel %vm18638_vm7, %v9870_v34, %v9874_v49  ;;  %v9903_v1 = vrot.slane %v9901_v37, 4  ;;  %v9906_v17 = vrot.slane %v9904_v4, 5 }
 0x69a   : > { %v9884_v19 = vrot.slane %v9883_v56, 4  ;;  %v14773_v31 = vcombine.low %v9865_v26, %v9875_v25  ;;  %v9912_v45 = vrot.slane %v9910_v42, 5  ;;  %v9914_v41 = vshrl.u32 %v21038_v47, 16  ;;  %v21078_v42 = vld [vmem:[#allocation4 + $0x98] sm:$0x1] }
 0x69b   : > { %v9894_v51 = vrot.slane %v9893_v50, 4  ;;  %v9907_v18 = vor.u32 %v9906_v17, %v9903_v1  ;;  %v9920_v49 = vshll.u32 %v21042_v28, 16  ;;  %v9925_v3 = vshrl.u32 %v21049_v38, 16 }
 0x69c   : > { %v9889_v8 = vsel %vm18638_vm7, %v9884_v19, %v9888_v11  ;;  %15791 = vmatprep.mubr.msk.bf16.mxu0 %vm600_vm1, %v14773_v31  ;;  %v9916_v24 = vrot.slane %v9914_v41, 4  ;;  %v9928_v20 = vshll.u32 %v21049_v38, 16  ;;  %v9934_v6 = vshll.u32 %v21053_v46, 16 }
 0x69d   : > { %v9899_v59 = vsel %vm18638_vm7, %v9894_v51, %v9898_v35  ;;  %v9908_v15 = vrot.slane %v9907_v18, 4  ;;  %v9922_v40 = vrot.slane %v9920_v49, 5  ;;  %v9927_v62 = vrot.slane %v9925_v3, 4  ;;  %v21082_v51 = vld [vmem:[#allocation4 + $0x9c] sm:$0xf] }
 0x69e   : > { %v14774_v30 = vcombine.low %v9889_v8, %v9899_v59  ;;  %v9917_v13 = vor.u32 %v9916_v24, %v9912_v45  ;;  %v9930_v11 = vrot.slane %v9928_v20, 5  ;;  %v9936_v63 = vrot.slane %v9934_v6, 5  ;;  %v21086_v49 = vld [vmem:[#allocation4 + $0xa0] sm:$0xf] }
 0x69f   : > { %v9938_v23 = vshrl.u32 %v21053_v46, 16  ;;  %v9913_v34 = vsel %vm18638_vm7, %v9908_v15, %v9912_v45  ;;  %v9944_v56 = vshll.u32 %v21056_v33, 16  ;;  %v9949_v37 = vshrl.u32 %v21058_v21, 16 }
 0x6a0   : > { %15792 = vmatmul.mubr.msk.bf16.gmra.mrb[20].mxu0 %vm600_vm1, %v14774_v30  ;;  %v9952_v4 = vshll.u32 %v21058_v21, 16  ;;  %v9918_v26 = vrot.slane %v9917_v13, 4  ;;  %v9931_v50 = vor.u32 %v9930_v11, %v9927_v62  ;;  %v9958_v25 = vshll.u32 %v21064_v29, 16  ;;  %v21093_v13 = vld [vmem:[#allocation4 + $0xa8] sm:$0xf] }
 0x6a1   : > { %v9940_v35 = vrot.slane %v9938_v23, 4  ;;  %v9946_v19 = vrot.slane %v9944_v56, 5  ;;  %v9951_v1 = vrot.slane %v9949_v37, 4  ;;  %v9962_v31 = vshrl.u32 %v21064_v29, 16 }
 0x6a2   : > { %v9954_v17 = vrot.slane %v9952_v4, 5  ;;  %v9923_v45 = vsel %vm18638_vm7, %v9918_v26, %v9922_v40  ;;  %v9932_v41 = vrot.slane %v9931_v50, 4  ;;  %v9960_v18 = vrot.slane %v9958_v25, 5  ;;  %v21102_v50 = vld [vmem:[#allocation4 + $0xac] sm:$0xf] }
 0x6a3   : > { %v9941_v8 = vor.u32 %v9940_v35, %v9936_v63  ;;  %v14775_v3 = vcombine.low %v9913_v34, %v9923_v45  ;;  %v9964_v24 = vrot.slane %v9962_v31, 4  ;;  %v9968_v20 = vshll.u32 %v21078_v42, 16  ;;  %v21096_v34 = vld [vmem:[#allocation4 + $0xa4] sm:$0x1] }
 0x6a4   : > { %v9955_v59 = vor.u32 %v9954_v17, %v9951_v1  ;;  %v9937_v6 = vsel %vm18638_vm7, %v9932_v41, %v9936_v63  ;;  %v9973_v15 = vshrl.u32 %v21082_v51, 16  ;;  %v9976_v62 = vshll.u32 %v21082_v51, 16 }
 0x6a5   : > { %v9942_v30 = vrot.slane %v9941_v8, 4  ;;  %15795 = vmatprep.mubr.msk.bf16.mxu0 %vm600_vm1, %v14775_v3  ;;  %v9965_v11 = vor.u32 %v9964_v24, %v9960_v18  ;;  %v9970_v23 = vrot.slane %v9968_v20, 5  ;;  %v9982_v56 = vshll.u32 %v21086_v49, 16  ;;  %v21107_v8 = vld [vmem:[#allocation4 + $0xb0] sm:$0x1] }
 0x6a6   : > { %v9956_v40 = vrot.slane %v9955_v59, 4  ;;  %v9975_v63 = vrot.slane %v9973_v15, 4  ;;  %v9978_v4 = vrot.slane %v9976_v62, 5  ;;  %v9986_v26 = vshrl.u32 %v21086_v49, 16  ;;  %v21116_v20 = vld [vmem:[#allocation4 + $0xb4] sm:$0xf] }
 0x6a7   : > { %v9947_v37 = vsel %vm18638_vm7, %v9942_v30, %v9946_v19  ;;  %v9966_v1 = vrot.slane %v9965_v11, 4  ;;  %v9984_v17 = vrot.slane %v9982_v56, 5  ;;  %v9992_v41 = vshll.u32 %v21096_v34, 16 }
 0x6a8   : > { %v14776_v35 = vcombine.low %v9937_v6, %v9947_v37  ;;  %v9961_v25 = vsel %vm18638_vm7, %v9956_v40, %v9960_v18  ;;  %v9979_v31 = vor.u32 %v9978_v4, %v9975_v63  ;;  %v9988_v45 = vrot.slane %v9986_v26, 4  ;;  %v21118_v40 = vld [vmem:[#allocation4 + $0xb8] sm:$0xf] }
 0x6a9   : > { %v9997_v19 = vshrl.u32 %v21093_v13, 16  ;;  %v9971_v3 = vsel %vm18638_vm7, %v9966_v1, %v9970_v23  ;;  %v10000_v59 = vshll.u32 %v21093_v13, 16  ;;  %v10006_v24 = vshll.u32 %v21102_v50, 16 }
 0x6aa   : > { %15796 = vmatmul.mubr.msk.bf16.gmra.mrb[24].mxu0 %vm600_vm1, %v14776_v35  ;;  %v10010_v18 = vshrl.u32 %v21102_v50, 16  ;;  %v14777_v6 = vcombine.low %v9961_v25, %v9971_v3  ;;  %v9980_v30 = vrot.slane %v9979_v31, 4  ;;  %v9989_v15 = vor.u32 %v9988_v45, %v9984_v17  ;;  %v21125_v31 = vld [vmem:[#allocation4 + $0xbc] sm:$0x1] }
 0x6ab   : > { %v9994_v62 = vrot.slane %v9992_v41, 5  ;;  %v9999_v11 = vrot.slane %v9997_v19, 4  ;;  %v10002_v56 = vrot.slane %v10000_v59, 5  ;;  %v10008_v37 = vrot.slane %v10006_v24, 5 }
 0x6ac   : > { %v10012_v63 = vrot.slane %v10010_v18, 4  ;;  %15799 = vmatprep.mubr.msk.bf16.mxu0 %vm600_vm1, %v14777_v6  ;;  %v9985_v23 = vsel %vm18638_vm7, %v9980_v30, %v9984_v17  ;;  %v9990_v4 = vrot.slane %v9989_v15, 4  ;;  %v10016_v26 = vshll.u32 %v21107_v8, 16 }
 0x6ad   : > { %v10021_v35 = vshrl.u32 %v21116_v20, 16  ;;  %v10003_v25 = vor.u32 %v10002_v56, %v9999_v11  ;;  %v10024_v45 = vshll.u32 %v21116_v20, 16  ;;  %v10030_v41 = vshll.u32 %v21118_v40, 16 }
 0x6ae   : > { %v10013_v1 = vor.u32 %v10012_v63, %v10008_v37  ;;  %v9995_v19 = vsel %vm18638_vm7, %v9990_v4, %v9994_v62  ;;  %v10018_v3 = vrot.slane %v10016_v26, 5  ;;  %v10034_v17 = vshrl.u32 %v21118_v40, 16 }
 0x6af   : > { %v10023_v59 = vrot.slane %v10021_v35, 4  ;;  %v14778_v24 = vcombine.low %v9985_v23, %v9995_v19  ;;  %v10004_v18 = vrot.slane %v10003_v25, 4  ;;  %v10026_v30 = vrot.slane %v10024_v45, 5  ;;  %v16745_v45 = vld [vmem:[#allocation4] sm:$0xf] }
 0x6b0   : > { %v10014_v6 = vrot.slane %v10013_v1, 4  ;;  %v10032_v15 = vrot.slane %v10030_v41, 5  ;;  %v10036_v11 = vrot.slane %v10034_v17, 4  ;;  %v10040_v56 = vshll.u32 %v21125_v31, 16  ;;  %v21139_v1 = vld [vmem:[#allocation4 + $0x4] sm:$0xf] }
 0x6b1   : > { %v10009_v63 = vsel %vm18638_vm7, %v10004_v18, %v10008_v37  ;;  %v10027_v4 = vor.u32 %v10026_v30, %v10023_v59  ;;  %v14797_v41 = vcombine.low %v16745_v45, %v21139_v1  ;;  %v14804_v19 = vcombine.low %v20975_v14, %v20988_v53  ;;  %v10605_v45 = vld [vmem:[#allocation4 + $0x54] sm:$0xe] }
 0x6b2   : > { %15800 = vmatmul.mubr.msk.bf16.gmra.mrb[28].mxu0 %vm600_vm1, %v14778_v24  ;;  %v10019_v62 = vsel %vm18638_vm7, %v10014_v6, %v10018_v3  ;;  %v10037_v35 = vor.u32 %v10036_v11, %v10032_v15  ;;  %v10042_v25 = vrot.slane %v10040_v56, 5  ;;  %v14805_v3 = vcombine.low %v20998_v32, %v21000_v58  ;;  %v16746_v56 = vld [vmem:[#allocation4 + $0xc] sm:$0xf]  ;;  %v10610_v6 = vld [vmem:[#allocation4 + $0x90] sm:$0xe] }
 0x6b3   : > { %v14779_v26 = vcombine.low %v10009_v63, %v10019_v62  ;;  %v10028_v61 = vrot.slane %v10027_v4, 4  ;;  %v14806_v59 = vcombine.low %v21020_v27, %v21026_v5  ;;  %v21166_v63 = vld [vmem:[#allocation4 + $0x10] sm:$0xf]  ;;  %v10857_v4 = vsel %vm613_vm0, %v20868_v7, 0 }
 0x6b4   : > { %v10038_v23 = vrot.slane %v10037_v35, 4  ;;  %v14798_v62 = vcombine.low %v16746_v56, %v21166_v63  ;;  %v21171_v35 = vld [vmem:[#allocation4 + $0x1c] sm:$0xf]  ;;  %v14836_v7 = vrot.slane %v10605_v45, 9  ;;  %v10700_v11 = vrot.slane %v20992_v43, 5 }
 0x6b5   : > { %15803 = vmatprep.mubr.msk.bf16.mxu0 %vm600_vm1, %v14779_v26  ;;  %v10033_v37 = vsel %vm18638_vm7, %v10028_v61, %v10032_v15  ;;  %v16748_v26 = vld [vmem:[#allocation4 + $0x18] sm:$0xf]  ;;  %v10609_v61 = vld [vmem:[#allocation4 + $0x84] sm:$0xe]  ;;  %v10735_v43 = vrot.slane %v21078_v42, 5  ;;  %v10742_v18 = vrot.slane %v21096_v34, 5  ;;  %v23155_v14 = vcombine.low %v21049_v38, %v21053_v46 }
 0x6b6   : > { %v10043_v24 = vsel %vm18638_vm7, %v10038_v23, %v10042_v25  ;;  %v14799_v23 = vcombine.low %v16748_v26, %v21171_v35  ;;  %v21177_v25 = vld [vmem:[%s22622_s6 + $0x6] sm:$0x3]  ;;  %v10704_v26 = vrot.slane %v21000_v58, 5  ;;  %v10608_v15 = vld [vmem:[#allocation4 + $0x78] sm:$0xe]  ;;  %v10753_v34 = vrot.slane %v21118_v40, 5 }
 0x6b7   : > { %v14780_v30 = vcombine.low %v10033_v37, %v10043_v24  ;;  %v10697_v37 = vrot.slane %v20988_v53, 5  ;;  %v14800_v24 = vcombine.low %v20847_v52, %v20878_v57  ;;  %v23156_v53 = vcombine.low %v21058_v21, %v21064_v29  ;;  %v10598_v58 = vld [vmem:[#allocation4] sm:$0xe] }
 0x6b8   : > { %v10706_v57 = vrot.slane %v10704_v26, 4  ;;  %v10648_v32 = vrot.slane %v21139_v1, 5  ;;  %v14829_v27 = vrot.slane %v10598_v58, 9  ;;  %v10655_v21 = vrot.slane %v21166_v63, 5 }
 0x6b9   : > { %v10699_v45 = vrot.slane %v10697_v37, 4 }
 0x6ba   : > { %15804 = vmatmul.mubr.msk.bf16.gmra.mrb[32].mxu0 %vm600_vm1, %v14780_v30  ;;  %v14801_v30 = vcombine.low %v20893_v54, %v20895_v16  ;;  %v10707_v54 = vrot.slane %v21008_v9, 5  ;;  %v10711_v16 = vrot.slane %v21026_v5, 5  ;;  %v14839_v9 = vrot.slane %v10608_v15, 9 }
 0x6bb   : > { %15809 = vmatprep.mubr.msk.bf16.mxu0 %vm600_vm1, %v14797_v41  ;;  %v10606_v41 = vld [vmem:[#allocation4 + $0x60] sm:$0xe]  ;;  %v10650_v5 = vrot.slane %v10648_v32, 4  ;;  %v10649_v38 = vsel %vm19147_vm5, %v14829_v27, %v10648_v32 }
 0x6bc   : > { %v14837_v56 = vrot.slane %v10606_v41, 9 }
 0x6be   : > { %v21198_v52 = vsel %vm19147_vm5, %v14837_v56, %v10704_v26  ;;  %v21212_v56 = vsel %vm19147_vm5, %v10706_v57, %v10707_v54  ;;  %v10713_v26 = vrot.slane %v10711_v16, 4  ;;  %v14840_v54 = vrot.slane %v10609_v61, 9  ;;  %v10612_v61 = vld [vmem:[#allocation4 + $0xa8] sm:$0xe] }
 0x6c2   : > { %15810 = vmatmul.mubr.msk.bf16.vlgmr.msra.gmra.mrb[4].mxu0 %vm600_vm1, %v14798_v62  ;;  %v10607_v62 = vld [vmem:[#allocation4 + $0x6c] sm:$0xe] }
 0x6c3   : > { %15842 = vmatpush3.bf16.msra.mxu0 %v10857_v4  ;;  %15813 = vmatprep.mubr.msk.bf16.mxu0 %vm600_vm1, %v14799_v23  ;;  %v14802_v4 = vcombine.low %v20921_v12, %v20936_v0  ;;  %v21193_v23 = vsel %vm19147_vm5, %v14836_v7, %v10697_v37  ;;  %v21204_v12 = vsel %vm19147_vm5, %v10699_v45, %v10700_v11  ;;  %v14838_v41 = vrot.slane %v10607_v62, 9 }
 0x6c4   : > { %16607 = vmatprep.subr.msk.bf16.mxu0 %vm613_vm0, %v21177_v25  ;;  %v10714_v7 = vrot.slane %v21028_v48, 5  ;;  %v10718_v37 = vrot.slane %v21038_v47, 5  ;;  %v14803_v11 = vcombine.low %v20942_v2, %v20950_v36  ;;  %v10721_v45 = vrot.slane %v21042_v28, 5 }
 0x6c5   : > { %v21223_v57 = vsel %vm19147_vm5, %v14838_v41, %v10711_v16  ;;  %v10732_v16 = vrot.slane %v21064_v29, 5  ;;  %v10611_v41 = vld [vmem:[#allocation4 + $0x9c] sm:$0xe]  ;;  %v10662_v29 = vrot.slane %v21171_v35, 5  ;;  %v16753_v35 = vld [vmem:[#allocation4 + $0x28] sm:$0xf] }
 0x6c6   : > { %v10720_v62 = vrot.slane %v10718_v37, 4  ;;  %v21227_v15 = vsel %vm19147_vm5, %v10713_v26, %v10714_v7  ;;  %v21231_v2 = vsel %vm19147_vm5, %v14839_v9, %v10718_v37  ;;  %v10728_v37 = vrot.slane %v21056_v33, 5 }
 0x6c7   : > { %v14841_v9 = vrot.slane %v10610_v6, 9  ;;  %v10734_v28 = vrot.slane %v10732_v16, 4  ;;  %v14842_v33 = vrot.slane %v10611_v41, 9  ;;  %v10746_v6 = vrot.slane %v21102_v50, 5  ;;  %v10613_v41 = vld [vmem:[#allocation4 + $0xb4] sm:$0xe] }
 0x6c9   : > { %v21256_v7 = vsel %vm19147_vm5, %v14841_v9, %v10732_v16  ;;  %v21263_v42 = vsel %vm19147_vm5, %v10734_v28, %v10735_v43  ;;  %v10748_v17 = vrot.slane %v10746_v6, 4  ;;  %v10749_v16 = vrot.slane %v21107_v8, 5 }
 0x6ca   : > { %15814 = vmatmul.mubr.msk.bf16.gmra.mrb[8].mxu0 %vm600_vm1, %v14800_v24  ;;  %v10725_v24 = vrot.slane %v21053_v46, 5 }
 0x6cb   : > { %15817 = vmatprep.mubr.msk.bf16.mxu0 %vm600_vm1, %v14801_v30  ;;  %v21238_v30 = vsel %vm19147_vm5, %v10720_v62, %v10721_v45  ;;  %v10739_v62 = vrot.slane %v21086_v49, 5 }
 0x6cc   : > { %v10727_v26 = vrot.slane %v10725_v24, 4  ;;  %v21246_v48 = vsel %vm19147_vm5, %v14840_v54, %v10725_v24 }
 0x6cd   : > { %v10741_v54 = vrot.slane %v10739_v62, 4  ;;  %v21272_v9 = vsel %vm19147_vm5, %v14842_v33, %v10739_v62  ;;  %v10756_v33 = vrot.slane %v21125_v31, 5  ;;  %v23154_v31 = vcombine.low %v21036_v55, %v21038_v47 }
 0x6ce   : > { %v21252_v45 = vsel %vm19147_vm5, %v10727_v26, %v10728_v37  ;;  %v14843_v37 = vrot.slane %v10612_v61, 9  ;;  %v10755_v61 = vrot.slane %v10753_v34, 4  ;;  %v23157_v55 = vcombine.low %v21082_v51, %v21086_v49  ;;  %v10599_v49 = vld [vmem:[#allocation4 + $0xc] sm:$0xe]  ;;  %v12147_v26 = vld [vmem:[#allocation4 + $0x90] sm:$0xe] }
 0x6cf   : > { %v14857_v24 = vcombine.low %v21246_v48, %v21252_v45  ;;  %v21276_v43 = vsel %vm19147_vm5, %v10741_v54, %v10742_v18  ;;  %v14844_v18 = vrot.slane %v10613_v41, 9  ;;  %v23158_v47 = vcombine.low %v21093_v13, %v21102_v50  ;;  %v16751_v50 = vld [vmem:[#allocation4 + $0x14] sm:$0x1]  ;;  %v21545_v45 = vld [vmem:[#allocation4 + $0xa4] sm:$0x1] }
 0x6d0   : > { %v21284_v8 = vsel %vm19147_vm5, %v14843_v37, %v10746_v6  ;;  %v21299_v54 = vsel %vm19147_vm5, %v10755_v61, %v10756_v33  ;;  %v23159_v51 = vcombine.low %v21116_v20, %v21118_v40  ;;  %v10664_v13 = vrot.slane %v10662_v29, 4  ;;  %v10600_v37 = vld [vmem:[#allocation4 + $0x18] sm:$0xe]  ;;  %v16754_v40 = vld [vmem:[#allocation4 + $0x34] sm:$0xf] }
 0x6d1   : > { %v14831_v61 = vrot.slane %v10600_v37, 9  ;;  %v10676_v33 = vrot.slane %v16754_v40, 5  ;;  %v23179_v48 = vcombine.low %v21256_v7, %v21263_v42 }
 0x6d2   : > { %15818 = vmatmul.mubr.msk.bf16.gmra.mrb[12].mxu0 %vm600_vm1, %v14802_v4  ;;  %v21288_v4 = vsel %vm19147_vm5, %v10748_v17, %v10749_v16  ;;  %v10658_v17 = vrot.slane %v16751_v50, 5  ;;  %v16752_v16 = vld [vmem:[#allocation4 + $0x20] sm:$0x1] }
 0x6d3   : > { %15821 = vmatprep.mubr.msk.bf16.mxu0 %vm600_vm1, %v14803_v11  ;;  %v21295_v11 = vsel %vm19147_vm5, %v14844_v18, %v10753_v34  ;;  %v10665_v41 = vrot.slane %v16752_v16, 5  ;;  %v14830_v34 = vrot.slane %v10599_v49, 9  ;;  %v10669_v18 = vrot.slane %v16753_v35, 5 }
 0x6d4   : > { %v10663_v32 = vsel %vm19147_vm5, %v14831_v61, %v10662_v29  ;;  %v10690_v49 = vrot.slane %v20950_v36, 5  ;;  %v10693_v36 = vrot.slane %v20952_v22, 5  ;;  %v12138_v22 = vld [vmem:[#allocation4 + $0x24] sm:$0xe] }
 0x6d5   : > { %v10666_v20 = vsel %vm19147_vm5, %v10664_v13, %v10665_v41  ;;  %v10671_v27 = vrot.slane %v10669_v18, 4  ;;  %v10603_v41 = vld [vmem:[#allocation4 + $0x3c] sm:$0xe] }
 0x6d6   : > { %v14848_v58 = vcombine.low %v10663_v32, %v10666_v20  ;;  %v14834_v35 = vrot.slane %v10603_v41, 9  ;;  %v21396_v32 = vld [vmem:[#allocation4 + $0x2c] sm:$0x1] }
 0x6da   : > { %15822 = vmatmul.mubr.msk.bf16.gmra.mrb[16].mxu0 %vm600_vm1, %v14804_v19  ;;  %v16750_v19 = vld [vmem:[#allocation4 + $0x8] sm:$0x1] }
 0x6db   : > { %15825 = vmatprep.mubr.msk.bf16.mxu0 %vm600_vm1, %v14805_v3  ;;  %v10651_v3 = vrot.slane %v16750_v19, 5  ;;  %v10601_v19 = vld [vmem:[#allocation4 + $0x24] sm:$0xe] }
 0x6dd   : > { %v10652_v46 = vsel %vm19147_vm5, %v10650_v5, %v10651_v3  ;;  %v21360_v5 = vld [vmem:[%s22622_s6 + $0x8] sm:$0x3]  ;;  %v10678_v3 = vrot.slane %v10676_v33, 4 }
 0x6de   : > { %v14846_v1 = vcombine.low %v10649_v38, %v10652_v46  ;;  %v16756_v38 = vld [vmem:[#allocation4 + $0x38] sm:$0x1] }
 0x6df   : > { %v10679_v46 = vrot.slane %v16756_v38, 5  ;;  %v21411_v38 = vld [vmem:[#allocation4 + $0x44] sm:$0x1] }
 0x6e2   : > { %15826 = vmatmul.mubr.msk.bf16.gmra.mrb[20].mxu0 %vm600_vm1, %v14806_v59  ;;  %v10657_v59 = vrot.slane %v10655_v21, 4 }
 0x6e3   : > { %15829 = vmatprep.mubr.msk.bf16.mxu0 %vm600_vm1, %v23154_v31  ;;  %v10656_v31 = vsel %vm19147_vm5, %v14830_v34, %v10655_v21  ;;  %v14832_v21 = vrot.slane %v10601_v19, 9  ;;  %v10692_v34 = vrot.slane %v10690_v49, 4  ;;  %v23161_v19 = vcombine.low %v21198_v52, %v21212_v56 }
 0x6e4   : > { %v10659_v63 = vsel %vm19147_vm5, %v10657_v59, %v10658_v17 }
 0x6e5   : > { %v10670_v13 = vsel %vm19147_vm5, %v14832_v21, %v10669_v18  ;;  %v10694_v20 = vsel %vm19147_vm5, %v10692_v34, %v10693_v36  ;;  %v12142_v36 = vld [vmem:[#allocation4 + $0x54] sm:$0xe] }
 0x6ea   : > { %15830 = vmatmul.mubr.msk.bf16.gmra.mrb[24].mxu0 %vm600_vm1, %v23155_v14  ;;  %v14847_v14 = vcombine.low %v10656_v31, %v10659_v63  ;;  %v10604_v63 = vld [vmem:[#allocation4 + $0x48] sm:$0xe] }
 0x6eb   : > { %15833 = vmatprep.mubr.msk.bf16.mxu0 %vm600_vm1, %v23156_v53  ;;  %v11215_v53 = vsel %vm613_vm0, %v21177_v25, 0  ;;  %v10602_v25 = vld [vmem:[#allocation4 + $0x30] sm:$0xe]  ;;  %v14835_v61 = vrot.slane %v10604_v63, 9 }
 0x6ec   : > { %v14833_v59 = vrot.slane %v10602_v25, 9  ;;  %v21409_v25 = vld [vmem:[#allocation4 + $0x40] sm:$0xf] }
 0x6ed   : > { %v10691_v31 = vsel %vm19147_vm5, %v14835_v61, %v10690_v49  ;;  %v21423_v49 = vld [vmem:[#allocation4 + $0x5c] sm:$0x1] }
 0x6ee   : > { %v10677_v17 = vsel %vm19147_vm5, %v14833_v59, %v10676_v33 }
 0x6f2   : > { %15834 = vmatmul.mubr.msk.bf16.gmra.mrb[28].mxu0 %vm600_vm1, %v23157_v55  ;;  %v16755_v55 = vld [vmem:[#allocation4 + $0x2c] sm:$0x1] }
 0x6f3   : > { %15837 = vmatprep.mubr.msk.bf16.mxu0 %vm600_vm1, %v23158_v47  ;;  %v10672_v47 = vrot.slane %v16755_v55, 5 }
 0x6f5   : > { %v10673_v29 = vsel %vm19147_vm5, %v10671_v27, %v10672_v47  ;;  %v21400_v27 = vld [vmem:[#allocation4 + $0x38] sm:$0x1]  ;;  %v12139_v47 = vld [vmem:[#allocation4 + $0x30] sm:$0xe] }
 0x6f6   : > { %v14849_v50 = vcombine.low %v10670_v13, %v10673_v29  ;;  %v12219_v29 = vrot.slane %v21396_v32, 5  ;;  %v14947_v56 = vrot.slane %v12139_v47, 9  ;;  %v23168_v47 = vcombine.low %v21231_v2, %v21238_v30  ;;  %v21477_v2 = vld [vmem:[#allocation4 + $0x80] sm:$0x1]  ;;  %v21507_v30 = vld [vmem:[#allocation4 + $0x8c] sm:$0x1] }
 0x6f7   : > { %v12268_v62 = vrot.slane %v21477_v2, 5 }
 0x6fa   : > { %15838 = vmatmul.mubr.msk.bf16.gmra.mrb[32].mxu0 %vm600_vm1, %v23159_v51  ;;  %v10680_v51 = vsel %vm19147_vm5, %v10678_v3, %v10679_v46  ;;  %v21406_v3 = vld [vmem:[#allocation4 + $0x4c] sm:$0xf]  ;;  %v21413_v46 = vld [vmem:[#allocation4 + $0x50] sm:$0x1] }
 0x6fb   : > { %15843 = vmatprep.mubr.msk.bf16.mxu0 %vm600_vm1, %v14846_v1  ;;  %v10683_v1 = vrot.slane %v20936_v0, 5  ;;  %v14850_v37 = vcombine.low %v10677_v17, %v10680_v51  ;;  %v10686_v0 = vrot.slane %v20938_v60, 5  ;;  %v21390_v60 = vld [vmem:[#allocation4 + $0x28] sm:$0xf]  ;;  %v12237_v63 = vrot.slane %v21406_v3, 5 }
 0x6fc   : > { %v12216_v55 = vrot.slane %v21390_v60, 5  ;;  %v12141_v51 = vld [vmem:[#allocation4 + $0x48] sm:$0xe] }
 0x6fd   : > { %v10685_v16 = vrot.slane %v10683_v1, 4  ;;  %v10684_v40 = vsel %vm19147_vm5, %v14834_v35, %v10683_v1  ;;  %v21416_v1 = vld [vmem:[#allocation4 + $0x58] sm:$0xf]  ;;  %v21437_v35 = vld [vmem:[#allocation4 + $0x68] sm:$0x1] }
 0x6fe   : > { %v12218_v21 = vrot.slane %v12216_v55, 4 }
 0x6ff   : > { %v10687_v18 = vsel %vm19147_vm5, %v10685_v16, %v10686_v0  ;;  %v21431_v16 = vld [vmem:[#allocation4 + $0x64] sm:$0xf]  ;;  %v12233_v0 = vrot.slane %v21411_v38, 5 }
 0x700   : > { %v14851_v33 = vcombine.low %v10684_v40, %v10687_v18  ;;  %v21427_v13 = vsel %vm19147_vm5, %v12218_v21, %v12219_v29  ;;  %v14949_v40 = vrot.slane %v12141_v51, 9  ;;  %v14950_v21 = vrot.slane %v12142_v36, 9  ;;  %v12144_v29 = vld [vmem:[#allocation4 + $0x6c] sm:$0xe]  ;;  %v12146_v36 = vld [vmem:[#allocation4 + $0x84] sm:$0xe] }
 0x701   : > { %23163 = vst [vmem:[#allocation8_spill] sm:$0xff] %v21427_v13 }
 0x702   : > { %15844 = vmatmul.mubr.msk.bf16.vlgmr.msra.gmra.mrb[4].mxu0 %vm600_vm1, %v14847_v14  ;;  %v14852_v14 = vcombine.low %v10691_v31, %v10694_v20  ;;  %v23166_v31 = vcombine.low %v21223_v57, %v21227_v15  ;;  %v21509_v57 = vld [vmem:[#allocation4 + $0x98] sm:$0x1] }
 0x703   : > { %15876 = vmatpush3.bf16.msra.mxu0 %v11215_v53  ;;  %15847 = vmatprep.mubr.msk.bf16.mxu0 %vm600_vm1, %v14848_v58  ;;  %v23160_v53 = vcombine.low %v21193_v23, %v21204_v12  ;;  %v21398_v58 = vld [vmem:[#allocation4 + $0x34] sm:$0xf]  ;;  %v14946_v23 = vrot.slane %v12138_v22, 9  ;;  %v12140_v12 = vld [vmem:[#allocation4 + $0x3c] sm:$0xe] }
 0x704   : > { %16608 = vmatprep.subr.msk.bf16.mxu0 %vm613_vm0, %v21360_v5  ;;  %v12223_v59 = vrot.slane %v21398_v58, 5  ;;  %v14948_v17 = vrot.slane %v12140_v12, 9  ;;  %v21473_v12 = vsel %vm19147_vm5, %v14949_v40, %v12237_v63 }
 0x705   : > { %v21420_v52 = vsel %vm19147_vm5, %v14946_v23, %v12216_v55  ;;  %v12244_v55 = vrot.slane %v21416_v1, 5  ;;  %v21463_v23 = vld [vmem:[#allocation4 + $0x70] sm:$0xf]  ;;  %23170 = vst [vmem:[#allocation38_spill] sm:$0xff] %v21473_v12 }
 0x706   : > { %23162 = vst [vmem:[#allocation52_spill] sm:$0xff] %v21420_v52  ;;  %v12225_v34 = vrot.slane %v12223_v59, 4  ;;  %v21441_v18 = vsel %vm19147_vm5, %v14947_v56, %v12223_v59  ;;  %v21475_v56 = vld [vmem:[#allocation4 + $0x74] sm:$0x1]  ;;  %v11564_v52 = vshll.u32 %v21409_v25, 16 }
 0x707   : > { %23164 = vst [vmem:[#allocation16_spill] sm:$0xff] %v21441_v18  ;;  %v12246_v51 = vrot.slane %v12244_v55, 4 }
 0x70a   : > { %15848 = vmatmul.mubr.msk.bf16.gmra.mrb[8].mxu0 %vm600_vm1, %v14849_v50  ;;  %v12226_v50 = vrot.slane %v21400_v27, 5 }
 0x70b   : > { %15851 = vmatprep.mubr.msk.bf16.mxu0 %vm600_vm1, %v14850_v37  ;;  %v12230_v37 = vrot.slane %v21409_v25, 5 }
 0x70c   : > { %v21455_v22 = vsel %vm19147_vm5, %v12225_v34, %v12226_v50  ;;  %v12247_v50 = vrot.slane %v21423_v49, 5 }
 0x70d   : > { %v21445_v61 = vsel %vm19147_vm5, %v14948_v17, %v12230_v37  ;;  %v12232_v20 = vrot.slane %v12230_v37, 4  ;;  %23167 = vst [vmem:[#allocation36_spill] sm:$0xff] %v21455_v22  ;;  %v21490_v37 = vsel %vm19147_vm5, %v14950_v21, %v12244_v55  ;;  %v12261_v21 = vrot.slane %v21475_v56, 5  ;;  %v16682_v22 = vld [vmem:[#allocation4 + $0x60] sm:$0xff]  }
 0x70e   : > { %23165 = vst [vmem:[#allocation35_spill] sm:$0xff] %v21445_v61  ;;  %23172 = vst [vmem:[#allocation40_spill] sm:$0xff] %v21490_v37  ;;  %v21497_v40 = vsel %vm19147_vm5, %v12246_v51, %v12247_v50  ;;  %v16681_v37 = vld [vmem:[#allocation4 + $0x54] sm:$0xff]  }
 0x70f   : > { %v21469_v15 = vsel %vm19147_vm5, %v12232_v20, %v12233_v0  ;;  %v12251_v0 = vrot.slane %v21431_v16, 5  ;;  %v21493_v20 = vld [vmem:[#allocation4 + $0x88] sm:$0xf]  ;;  %23173 = vst [vmem:[#allocation41_spill] sm:$0xff] %v21497_v40 }
 0x710   : > { %23169 = vst [vmem:[#allocation37_spill] sm:$0xff] %v21469_v15  ;;  %v12272_v28 = vrot.slane %v21493_v20, 5 }
 0x711   : > { %v12253_v55 = vrot.slane %v12251_v0, 4 }
 0x712   : > { %15852 = vmatmul.mubr.msk.bf16.gmra.mrb[12].mxu0 %vm600_vm1, %v14851_v33  ;;  %v12143_v33 = vld [vmem:[#allocation4 + $0x60] sm:$0xe] }
 0x713   : > { %15855 = vmatprep.mubr.msk.bf16.mxu0 %vm600_vm1, %v14852_v14  ;;  %v21451_v14 = vld [vmem:[#allocation4 + $0x7c] sm:$0xf]  ;;  %v14951_v34 = vrot.slane %v12143_v33, 9 }
 0x714   : > { %v12265_v17 = vrot.slane %v21451_v14, 5 }
 0x715   : > { %v21513_v51 = vsel %vm19147_vm5, %v14951_v34, %v12251_v0  ;;  %v21529_v34 = vld [vmem:[#allocation4 + $0xa0] sm:$0xf]  ;;  %v21565_v0 = vld [vmem:[#allocation4 + $0xb8] sm:$0xf] }
 0x716   : > { %23174 = vst [vmem:[#allocation42_spill] sm:$0xff] %v21513_v51  ;;  %v12267_v6 = vrot.slane %v12265_v17, 4  ;;  %v21587_v51 = vld [vmem:[#allocation4 + $0xc4] sm:$0xf]  ;;  %v12300_v40 = vrot.slane %v21565_v0, 5 }
 0x71a   : > { %15856 = vmatmul.mubr.msk.bf16.gmra.mrb[16].mxu0 %vm600_vm1, %v23160_v53  ;;  %v12239_v53 = vrot.slane %v12237_v63, 4  ;;  %v12145_v63 = vld [vmem:[#allocation4 + $0x78] sm:$0xe] }
 0x71b   : > { %15859 = vmatprep.mubr.msk.bf16.mxu0 %vm600_vm1, %v23161_v19  ;;  %v12240_v19 = vrot.slane %v21413_v46, 5  ;;  %v14953_v41 = vrot.slane %v12145_v63, 9 }
 0x71d   : > { %v21483_v59 = vsel %vm19147_vm5, %v12239_v53, %v12240_v19  ;;  %v14952_v53 = vrot.slane %v12144_v29, 9  ;;  %v12258_v19 = vrot.slane %v21463_v23, 5 }
 0x71e   : > { %23171 = vst [vmem:[#allocation39_spill] sm:$0xff] %v21483_v59 }
 0x71f   : > { %v21517_v29 = vsel %vm19147_vm5, %v14952_v53, %v12258_v19  ;;  %v12260_v50 = vrot.slane %v12258_v19, 4  ;;  %v14954_v53 = vrot.slane %v12146_v36, 9  ;;  %v12148_v19 = vld [vmem:[#allocation4 + $0x9c] sm:$0xe]  ;;  %v21556_v36 = vld [vmem:[#allocation4 + $0xb0] sm:$0x1] }
 0x720   : > { %23175 = vst [vmem:[#allocation43_spill] sm:$0xff] %v21517_v29  ;;  %v12286_v29 = vrot.slane %v21529_v34, 5 }
 0x721   : > { %v21535_v63 = vsel %vm19147_vm5, %v12260_v50, %v12261_v21  ;;  %v21553_v21 = vsel %vm19147_vm5, %v12267_v6, %v12268_v62  ;;  %v21562_v42 = vsel %vm19147_vm5, %v14954_v53, %v12272_v28  ;;  %v14955_v50 = vrot.slane %v12147_v26, 9 }
 0x722   : > { %15860 = vmatmul.mubr.msk.bf16.gmra.mrb[20].mxu0 %vm600_vm1, %v23166_v31  ;;  %v12254_v31 = vrot.slane %v21437_v35, 5  ;;  %23177 = vst [vmem:[#allocation45_spill] sm:$0xff] %v21535_v63  ;;  %23180 = vst [vmem:[#allocation47_spill] sm:$0xff] %v21553_v21  ;;  %v12282_v6 = vrot.slane %v21509_v57, 5  ;;  %v14956_v63 = vrot.slane %v12148_v19, 9  ;;  %v12289_v26 = vrot.slane %v21545_v45, 5 }
 0x723   : > { %15863 = vmatprep.mubr.msk.bf16.mxu0 %vm600_vm1, %v23168_v47  ;;  %v21501_v47 = vld [vmem:[#allocation4 + $0x94] sm:$0xf]  ;;  %23181 = vst [vmem:[#allocation48_spill] sm:$0xff] %v21562_v42  ;;  %v12296_v42 = vrot.slane %v21556_v36, 5 }
 0x724   : > { %v21521_v33 = vsel %vm19147_vm5, %v12253_v55, %v12254_v31  ;;  %v21539_v31 = vsel %vm19147_vm5, %v14953_v41, %v12265_v17  ;;  %v12274_v41 = vrot.slane %v12272_v28, 4  ;;  %v12275_v17 = vrot.slane %v21507_v30, 5  ;;  %v12149_v55 = vld [vmem:[#allocation4 + $0xa8] sm:$0xe]  ;;  %v12150_v21 = vld [vmem:[#allocation4 + $0xb4] sm:$0xe] }
 0x725   : > { %23176 = vst [vmem:[#allocation44_spill] sm:$0xff] %v21521_v33  ;;  %23178 = vst [vmem:[#allocation46_spill] sm:$0xff] %v21539_v31  ;;  %v21577_v31 = vld [vmem:[#allocation4 + $0xbc] sm:$0x1]  ;;  %v21585_v19 = vsel %vm19147_vm5, %v14956_v63, %v12286_v29  ;;  %v14957_v33 = vrot.slane %v12149_v55, 9  ;;  %v14958_v55 = vrot.slane %v12150_v21, 9  ;;  %v23190_v21 = vcombine.low %v21284_v8, %v21288_v4 }
 0x726   : > { %v21569_v62 = vsel %vm19147_vm5, %v12274_v41, %v12275_v17  ;;  %23184 = vst [vmem:[#allocation54_spill] sm:$0xff] %v21585_v19  ;;  %v12288_v17 = vrot.slane %v12286_v29, 4 }
 0x727   : > { %23182 = vst [vmem:[#allocation49_spill] sm:$0xff] %v21569_v62 }
 0x728   : > { %v21599_v63 = vsel %vm19147_vm5, %v12288_v17, %v12289_v26  ;;  %v12302_v26 = vrot.slane %v12300_v40, 4  ;;  %v12303_v17 = vrot.slane %v21577_v31, 5 }
 0x729   : > { %23186 = vst [vmem:[#allocation11_spill] sm:$0xff] %v21599_v63 }
 0x72a   : > { %15864 = vmatmul.mubr.msk.bf16.gmra.mrb[24].mxu0 %vm600_vm1, %v14857_v24  ;;  %v21547_v24 = vld [vmem:[#allocation4 + $0xac] sm:$0xf] }
 0x72b   : > { %15867 = vmatprep.mubr.msk.bf16.mxu0 %vm600_vm1, %v23179_v48  ;;  %v12279_v48 = vrot.slane %v21501_v47, 5  ;;  %v12293_v53 = vrot.slane %v21547_v24, 5 }
 0x72d   : > { %v12281_v28 = vrot.slane %v12279_v48, 4  ;;  %v21581_v41 = vsel %vm19147_vm5, %v14955_v50, %v12279_v48  ;;  %v12295_v62 = vrot.slane %v12293_v53, 4  ;;  %v21603_v29 = vsel %vm19147_vm5, %v14957_v33, %v12293_v53  ;;  %v12151_v33 = vld [vmem:[#allocation4 + $0xc0] sm:$0xe] }
 0x72e   : > { %23183 = vst [vmem:[#allocation53_spill] sm:$0xff] %v21581_v41  ;;  %23187 = vst [vmem:[#allocation12_spill] sm:$0xff] %v21603_v29  ;;  %v23188_v48 = vcombine.low %v21272_v9, %v21276_v43  ;;  %v12307_v43 = vrot.slane %v21587_v51, 5  ;;  %v21627_v53 = vsel %vm19147_vm5, %v14958_v55, %v12300_v40  ;;  %v16675_v55 = vld [vmem:[#allocation4 + $0xc] sm:$0xff]   ;;  %v21664_v40 = vld [vmem:[#allocation4 + $0x1c] sm:$0xf] }
 0x72f   : > { %v21591_v7 = vsel %vm19147_vm5, %v12281_v28, %v12282_v6  ;;  %v21609_v6 = vld [vmem:[#allocation4 + $0xc8] sm:$0x1]  ;;  %v21615_v50 = vsel %vm19147_vm5, %v12295_v62, %v12296_v42  ;;  %23191 = vst [vmem:[#allocation14_spill] sm:$0xff] %v21627_v53  ;;  %v21631_v42 = vsel %vm19147_vm5, %v12302_v26, %v12303_v17  ;;  %v23195_v26 = vcombine.low %v21295_v11, %v21299_v54  ;;  %v16676_v17 = vld [vmem:[#allocation4 + $0x18] sm:$0xff]   ;;  %v11410_v11 = vld [vmem:[#allocation4 + $0xc] sm:$0xf] }
 0x730   : > { %23185 = vst [vmem:[#allocation10_spill] sm:$0xff] %v21591_v7  ;;  %23189 = vst [vmem:[#allocation13_spill] sm:$0xff] %v21615_v50  ;;  %v12309_v8 = vrot.slane %v12307_v43, 4  ;;  %v12310_v4 = vrot.slane %v21609_v6, 5  ;;  %v16678_v54 = vld [vmem:[#allocation4 + $0x30] sm:$0xff]   ;;  %v11492_v28 = vshll.u32 %v21664_v40, 16 }
 0x731   : > { %23192 = vst [vmem:[#allocation17_spill] sm:$0xff] %v21631_v42  ;;  %23196 = vst [vmem:[#allocation19_spill] sm:$0xff] %v21664_v40  ;;  %v11416_v53 = vld [vmem:[#allocation4 + $0x24] sm:$0xf] }
 0x732   : > { %15868 = vmatmul.mubr.msk.bf16.gmra.mrb[28].mxu0 %vm600_vm1, %v23188_v48  ;;  %v14959_v48 = vrot.slane %v12151_v33, 9  ;;  %v21642_v9 = vsel %vm19147_vm5, %v12309_v8, %v12310_v4  ;;  %v11941_v33 = vsel %vm613_vm0, %v21360_v5, 0  ;;  %v21662_v8 = vld [vmem:[#allocation4 + $0x10] sm:$0xf]  ;;  %v11413_v4 = vld [vmem:[#allocation4 + $0x18] sm:$0xf] }
 0x733   : > { %15871 = vmatprep.mubr.msk.bf16.mxu0 %vm600_vm1, %v23190_v21  ;;  %23194 = vst [vmem:[#allocation18_spill] sm:$0xff] %v21642_v9  ;;  %v16679_v5 = vld [vmem:[#allocation4 + $0x3c] sm:$0xff]   ;;  %v11486_v62 = vshll.u32 %v11413_v4, 16  ;;  %v11496_v9 = vshrl.u32 %v21664_v40, 16  ;;  %v21676_v19 = vrot.slane %v11492_v28, 5  ;;  %v11507_v41 = vshrl.u32 %v11416_v53, 16 }
 0x734   : > { %v21638_v21 = vsel %vm19147_vm5, %v14959_v48, %v12307_v43  ;;  %v16677_v43 = vld [vmem:[#allocation4 + $0x24] sm:$0xff]   ;;  %v21656_v48 = vld [vmem:[%s22622_s6 + $0xa] sm:$0x3]  ;;  %v21849_v40 = vld [vmem:[#allocation4 + $0x5c] sm:$0x1] }
 0x735   : > { %23193 = vst [vmem:[#allocation15_spill] sm:$0xff] %v21638_v21  ;;  %v11488_v63 = vrot.slane %v11486_v62, 5  ;;  %v11498_v7 = vrot.slane %v11496_v9, 4  ;;  %23210 = vst [vmem:[#allocation32_spill] sm:$0xff] %v21849_v40 }
 0x737   : > { %v11499_v9 = vor.u32 %v11498_v7, %v21676_v19 }
 0x73a   : > { %15872 = vmatmul.mubr.msk.bf16.gmra.mrb[32].mxu0 %vm600_vm1, %v23195_v26  ;;  %v11462_v26 = vshll.u32 %v11410_v11, 16 }
 0x73b   : > { %15877 = vmatprep.mubr.msk.bf16.mxu0 %vm600_vm1, %v16675_v55  ;;  %v11459_v55 = vshrl.u32 %v11410_v11, 16  ;;  %v16680_v11 = vld [vmem:[#allocation4 + $0x48] sm:$0xff]  }
 0x73c   : > { %v11464_v42 = vrot.slane %v11462_v26, 5  ;;  %v11516_v26 = vshll.u32 %v21390_v60, 16 }
 0x73d   : > { %v11461_v21 = vrot.slane %v11459_v55, 4  ;;  %v21679_v55 = vld [vmem:[#allocation4 + $0x20] sm:$0x1] }
 0x73e   : > { %23197 = vst [vmem:[#allocation20_spill] sm:$0xff] %v21679_v55  ;;  %v21688_v12 = vrot.slane %v11516_v26, 5  ;;  %v11568_v26 = vshrl.u32 %v21409_v25, 16 }
 0x73f   : > { %v11465_v59 = vor.u32 %v11464_v42, %v11461_v21  ;;  %v11502_v21 = vshll.u32 %v21679_v55, 16 }
 0x741   : > { %v11466_v42 = vrot.slane %v11465_v59, 4  ;;  %v11504_v59 = vrot.slane %v11502_v21, 5 }
 0x742   : > { %15878 = vmatmul.mubr.msk.bf16.vlgmr.msra.gmra.mrb[4].mxu0 %vm600_vm1, %v16676_v17  ;;  %v11468_v17 = vshll.u32 %v21662_v8, 16 }
 0x743   : > { %15910 = vmatpush3.bf16.msra.mxu0 %v11941_v33  ;;  %15881 = vmatprep.mubr.msk.bf16.mxu0 %vm600_vm1, %v16677_v43  ;;  %v11472_v33 = vshrl.u32 %v21662_v8, 16  ;;  %v11483_v43 = vshrl.u32 %v11413_v4, 16  ;;  %v11510_v4 = vshll.u32 %v11416_v53, 16  ;;  %v11509_v53 = vrot.slane %v11507_v41, 4  ;;  %v11422_v41 = vld [vmem:[#allocation4 + $0x3c] sm:$0xf] }
 0x744   : > { %16609 = vmatprep.subr.msk.bf16.mxu0 %vm613_vm0, %v21656_v48  ;;  %v21672_v50 = vrot.slane %v11468_v17, 5  ;;  %v11520_v17 = vshrl.u32 %v21390_v60, 16  ;;  %v11540_v60 = vshll.u32 %v21398_v58, 16  ;;  %v11558_v25 = vshll.u32 %v11422_v41, 16 }
 0x745   : > { %v11474_v29 = vrot.slane %v11472_v33, 4 }
 0x746   : > { %v11522_v15 = vrot.slane %v11520_v17, 4  ;;  %v11560_v55 = vrot.slane %v11558_v25, 5 }
 0x747   : > { %v11475_v62 = vor.u32 %v11474_v29, %v21672_v50 }
 0x748   : > { %v11523_v17 = vor.u32 %v11522_v15, %v21688_v12 }
 0x749   : > { %v11476_v61 = vrot.slane %v11475_v62, 4  ;;  %v21699_v62 = vrot.slane %v11540_v60, 5  ;;  %v21711_v60 = vrot.slane %v11564_v52, 5  ;;  %v16685_v52 = vld [vmem:[#allocation4 + $0x84] sm:$0xff]  }
 0x74a   : > { %15882 = vmatmul.mubr.msk.bf16.gmra.mrb[8].mxu0 %vm600_vm1, %v16678_v54  ;;  %v11485_v54 = vrot.slane %v11483_v43, 4  ;;  %v11512_v43 = vrot.slane %v11510_v4, 5  ;;  %v16683_v4 = vld [vmem:[#allocation4 + $0x6c] sm:$0xff]  }
 0x74b   : > { %15885 = vmatprep.mubr.msk.bf16.mxu0 %vm600_vm1, %v16679_v5  ;;  %v21674_v5 = vld [vmem:[#allocation4 + $0x14] sm:$0x1] }
 0x74c   : > { %v11478_v28 = vshll.u32 %v21674_v5, 16  ;;  %v11489_v33 = vor.u32 %v11488_v63, %v11485_v54  ;;  %v11500_v63 = vrot.slane %v11499_v9, 4  ;;  %v11513_v54 = vor.u32 %v11512_v43, %v11509_v53  ;;  %v11425_v43 = vld [vmem:[#allocation4 + $0x48] sm:$0xf] }
 0x74d   : > { %v11526_v9 = vshll.u32 %v21396_v32, 16  ;;  %v11555_v53 = vshrl.u32 %v11422_v41, 16  ;;  %v11582_v41 = vshll.u32 %v11425_v43, 16 }
 0x74e   : > { %v11480_v29 = vrot.slane %v11478_v28, 5  ;;  %v11490_v18 = vrot.slane %v11489_v33, 4  ;;  %v11505_v15 = vsel %vm18638_vm7, %v11500_v63, %v11504_v59  ;;  %v16684_v63 = vld [vmem:[#allocation4 + $0x78] sm:$0xff]  }
 0x750   : > { %v11481_v33 = vsel %vm18638_vm7, %v11476_v61, %v11480_v29  ;;  %v11570_v61 = vrot.slane %v11568_v26, 4  ;;  %v11579_v29 = vshrl.u32 %v11425_v43, 16 }
 0x752   : > { %15886 = vmatmul.mubr.msk.bf16.gmra.mrb[12].mxu0 %vm600_vm1, %v16680_v11  ;;  %v11419_v11 = vld [vmem:[#allocation4 + $0x30] sm:$0xf] }
 0x753   : > { %15889 = vmatprep.mubr.msk.bf16.mxu0 %vm600_vm1, %v16681_v37  ;;  %v11544_v37 = vshrl.u32 %v21398_v58, 16  ;;  %v11531_v7 = vshrl.u32 %v11419_v11, 16  ;;  %v11534_v13 = vshll.u32 %v11419_v11, 16  ;;  %v11471_v58 = vsel %vm18638_vm7, %v11466_v42, %v21672_v50 }
 0x754   : > { %v11514_v50 = vrot.slane %v11513_v54, 4  ;;  %v11550_v11 = vshll.u32 %v21400_v27, 16  ;;  %v21716_v54 = vcombine.low %v11471_v58, %v11481_v33  ;;  %v11528_v27 = vrot.slane %v11526_v9, 5  ;;  %v11431_v9 = vld [vmem:[#allocation4 + $0x60] sm:$0xf] }
 0x755   : > { %v11546_v28 = vrot.slane %v11544_v37, 4  ;;  %v11533_v42 = vrot.slane %v11531_v7, 4  ;;  %v11536_v21 = vrot.slane %v11534_v13, 5  ;;  %v11524_v37 = vrot.slane %v11523_v17, 4 }
 0x756   : > { %v11519_v7 = vsel %vm18638_vm7, %v11514_v50, %v21688_v12  ;;  %v11552_v26 = vrot.slane %v11550_v11, 5  ;;  %v11571_v17 = vor.u32 %v11570_v61, %v21711_v60  ;;  %v11574_v58 = vshll.u32 %v21411_v38, 16 }
 0x757   : > { %v11547_v32 = vor.u32 %v11546_v28, %v21699_v62  ;;  %v11537_v59 = vor.u32 %v11536_v21, %v11533_v42  ;;  %v11428_v28 = vld [vmem:[#allocation4 + $0x54] sm:$0xf]  ;;  %v11581_v33 = vrot.slane %v11579_v29, 4  ;;  %v11612_v42 = vshll.u32 %v21416_v1, 16 }
 0x758   : > { %v11606_v50 = vshll.u32 %v11428_v28, 16  ;;  %v11616_v21 = vshrl.u32 %v21416_v1, 16  ;;  %v11572_v61 = vrot.slane %v11571_v17, 4  ;;  %v11630_v38 = vshll.u32 %v11431_v9, 16 }
 0x759   : > { %v11548_v25 = vrot.slane %v11547_v32, 4  ;;  %v11538_v11 = vrot.slane %v11537_v59, 4  ;;  %v11576_v29 = vrot.slane %v11574_v58, 5  ;;  %v11640_v32 = vshrl.u32 %v21431_v16, 16 }
 0x75a   : > { %15890 = vmatmul.mubr.msk.bf16.gmra.mrb[16].mxu0 %vm600_vm1, %v16682_v22  ;;  %v11495_v22 = vsel %vm18638_vm7, %v11490_v18, %v21676_v19  ;;  %v11588_v18 = vshll.u32 %v21406_v3, 16  ;;  %v11592_v19 = vshrl.u32 %v21406_v3, 16  ;;  %v11529_v3 = vsel %vm18638_vm7, %v11524_v37, %v11528_v27  ;;  %v16686_v27 = vld [vmem:[#allocation4 + $0x90] sm:$0xff]  }
 0x75b   : > { %15893 = vmatprep.mubr.msk.bf16.mxu0 %vm600_vm1, %v16683_v4  ;;  %v11557_v4 = vrot.slane %v11555_v53, 4  ;;  %v21718_v13 = vcombine.low %v11495_v22, %v11505_v15  ;;  %v11584_v53 = vrot.slane %v11582_v41, 5  ;;  %v11603_v15 = vshrl.u32 %v11428_v28, 16  ;;  %v16687_v28 = vld [vmem:[#allocation4 + $0x9c] sm:$0xff]  }
 0x75c   : > { %v21729_v12 = vrot.slane %v11588_v18, 5  ;;  %v11594_v22 = vrot.slane %v11592_v19, 4  ;;  %v11627_v37 = vshrl.u32 %v11431_v9, 16  ;;  %v11598_v19 = vshll.u32 %v21413_v46, 16 }
 0x75d   : > { %v11561_v43 = vor.u32 %v11560_v55, %v11557_v4  ;;  %v11585_v41 = vor.u32 %v11584_v53, %v11581_v33  ;;  %v11553_v55 = vsel %vm18638_vm7, %v11548_v25, %v11552_v26  ;;  %v11605_v1 = vrot.slane %v11603_v15, 4 }
 0x75e   : > { %v11595_v18 = vor.u32 %v11594_v22, %v21729_v12  ;;  %v21739_v59 = vrot.slane %v11612_v42, 5  ;;  %v11618_v17 = vrot.slane %v11616_v21, 4  ;;  %v21741_v58 = vcombine.low %v11519_v7, %v11529_v3 }
 0x75f   : > { %v11562_v4 = vrot.slane %v11561_v43, 4  ;;  %v11629_v33 = vrot.slane %v11627_v37, 4  ;;  %v11632_v53 = vrot.slane %v11630_v38, 5  ;;  %v11543_v46 = vsel %vm18638_vm7, %v11538_v11, %v21699_v62  ;;  %v11434_v43 = vld [vmem:[#allocation4 + $0x6c] sm:$0xf] }
 0x760   : > { %v11586_v26 = vrot.slane %v11585_v41, 4  ;;  %v11642_v25 = vrot.slane %v11640_v32, 4  ;;  %v21752_v7 = vcombine.low %v11543_v46, %v11553_v55  ;;  %v11596_v22 = vrot.slane %v11595_v18, 4  ;;  %v11437_v11 = vld [vmem:[#allocation4 + $0x78] sm:$0xf] }
 0x761   : > { %v11567_v3 = vsel %vm18638_vm7, %v11562_v4, %v21711_v60  ;;  %v11600_v15 = vrot.slane %v11598_v19, 5  ;;  %v11619_v62 = vor.u32 %v11618_v17, %v21739_v59  ;;  %v11622_v21 = vshll.u32 %v21423_v49, 16  ;;  %v21768_v55 = vld [vmem:[#allocation4 + $0x1c] sm:$0xf]  ;;  %v21773_v19 = vld [vmem:[#allocation4 + $0x28] sm:$0xf] }
 0x762   : > { %15894 = vmatmul.mubr.msk.bf16.gmra.mrb[20].mxu0 %vm600_vm1, %v16684_v63  ;;  %v11636_v63 = vshll.u32 %v21431_v16, 16  ;;  %v11577_v16 = vsel %vm18638_vm7, %v11572_v61, %v11576_v29  ;;  %v11633_v61 = vor.u32 %v11632_v53, %v11629_v33  ;;  %v11646_v37 = vshll.u32 %v21437_v35, 16  ;;  %23198 = vst [vmem:[#allocation21_spill] sm:$0xff] %v21768_v55  ;;  %23199 = vst [vmem:[#allocation22_spill] sm:$0xff] %v21773_v19 }
 0x763   : > { %15897 = vmatprep.mubr.msk.bf16.mxu0 %vm600_vm1, %v16685_v52  ;;  %v11608_v52 = vrot.slane %v11606_v50, 5  ;;  %v21757_v50 = vcombine.low %v11567_v3, %v11577_v16  ;;  %v11651_v38 = vshrl.u32 %v11434_v43, 16  ;;  %v11654_v29 = vshll.u32 %v11434_v43, 16  ;;  %v21776_v16 = vld [vmem:[#allocation4 + $0x20] sm:$0x1] }
 0x764   : > { %v21749_v9 = vrot.slane %v11636_v63, 5  ;;  %v11591_v41 = vsel %vm18638_vm7, %v11586_v26, %v21729_v12  ;;  %v11660_v63 = vshll.u32 %v21463_v23, 16  ;;  %v11664_v32 = vshrl.u32 %v21463_v23, 16  ;;  %23200 = vst [vmem:[#allocation23_spill] sm:$0xff] %v21776_v16  ;;  %v16689_v23 = vld [vmem:[#allocation4 + $0xb4] sm:$0xff]  }
 0x765   : > { %v11609_v42 = vor.u32 %v11608_v52, %v11605_v1  ;;  %v11601_v49 = vsel %vm18638_vm7, %v11596_v22, %v11600_v15  ;;  %v11675_v4 = vshrl.u32 %v11437_v11, 16  ;;  %v11678_v18 = vshll.u32 %v11437_v11, 16  ;;  %v16688_v1 = vld [vmem:[#allocation4 + $0xa8] sm:$0xff]   ;;  %v21796_v15 = vld [vmem:[#allocation4 + $0x34] sm:$0xf] }
 0x766   : > { %v11643_v60 = vor.u32 %v11642_v25, %v21749_v9  ;;  %v11684_v35 = vshll.u32 %v21451_v14, 16  ;;  %v11620_v52 = vrot.slane %v11619_v62, 4  ;;  %v11624_v17 = vrot.slane %v11622_v21, 5  ;;  %v21794_v22 = vld [vmem:[#allocation4 + $0x2c] sm:$0x1] }
 0x767   : > { %v11610_v12 = vrot.slane %v11609_v42, 4  ;;  %v21778_v33 = vrot.slane %v11633_v61, 4  ;;  %v21780_v53 = vrot.slane %v11646_v37, 5  ;;  %v21782_v46 = vrot.slane %v11651_v38, 4  ;;  %23201 = vst [vmem:[#allocation24_spill] sm:$0xff] %v21794_v22 }
 0x768   : > { %v21784_v26 = vrot.slane %v11654_v29, 5  ;;  %v21787_v25 = vrot.slane %v11643_v60, 4  ;;  %v21789_v43 = vrot.slane %v11660_v63, 5  ;;  %v21791_v3 = vrot.slane %v11664_v32, 4  ;;  %v13692_v61 = vld [vmem:[#allocation4 + $0x24] sm:$0xe] }
 0x769   : > { %v21799_v42 = vrot.slane %v11675_v4, 4  ;;  %v21801_v62 = vrot.slane %v11678_v18, 5  ;;  %v21803_v21 = vrot.slane %v11684_v35, 5  ;;  %v13757_v11 = vrot.slane %v21768_v55, 5  ;;  %v21809_v29 = vld [vmem:[#allocation4 + $0x38] sm:$0x1] }
 0x76a   : > { %15898 = vmatmul.mubr.msk.bf16.gmra.mrb[24].mxu0 %vm600_vm1, %v16686_v27  ;;  %v13691_v27 = vld [vmem:[#allocation4 + $0x18] sm:$0xe]  ;;  %23202 = vst [vmem:[#allocation5_spill] sm:$0xff] %v21809_v29  ;;  %v13764_v63 = vrot.slane %v21773_v19, 5  ;;  %v21812_v32 = vcombine.low %v11591_v41, %v11601_v49  ;;  %v11625_v4 = vsel %vm18638_vm7, %v11620_v52, %v11624_v17  ;;  %v21816_v18 = vld [vmem:[#allocation4 + $0x40] sm:$0xf] }
 0x76b   : > { %15901 = vmatprep.mubr.msk.bf16.mxu0 %vm600_vm1, %v16687_v28  ;;  %v11688_v28 = vshrl.u32 %v21451_v14, 16  ;;  %v15059_v60 = vrot.slane %v13691_v27, 9  ;;  %23203 = vst [vmem:[#allocation25_spill] sm:$0xff] %v21816_v18  ;;  %v13759_v35 = vrot.slane %v13757_v11, 4  ;;  %v21823_v27 = vld [vmem:[#allocation4 + $0x44] sm:$0x1] }
 0x76c   : > { %23204 = vst [vmem:[#allocation27_spill] sm:$0xff] %v21823_v27  ;;  %v21825_v14 = vld [vmem:[#allocation4 + $0x4c] sm:$0xf]  ;;  %v15060_v49 = vrot.slane %v13692_v61, 9  ;;  %v16690_v52 = vld [vmem:[#allocation4 + $0xc0] sm:$0xff]   ;;  %v13767_v19 = vrot.slane %v21794_v22, 5 }
 0x76d   : > { %v21806_v37 = vrot.slane %v11688_v28, 4  ;;  %v11615_v28 = vsel %vm18638_vm7, %v11610_v12, %v21739_v59  ;;  %23205 = vst [vmem:[#allocation26_spill] sm:$0xff] %v21825_v14  ;;  %v21829_v41 = vsel %vm19147_vm5, %v15059_v60, %v13757_v11  ;;  %v13771_v59 = vrot.slane %v21796_v15, 5  ;;  %v13694_v12 = vld [vmem:[#allocation4 + $0x3c] sm:$0xe] }
 0x76e   : > { %23206 = vst [vmem:[#allocation28_spill] sm:$0xff] %v21829_v41  ;;  %v21839_v38 = vsel %vm613_vm0, %v21656_v48, 0  ;;  %v21841_v55 = vcombine.low %v11615_v28, %v11625_v4  ;;  %v21843_v11 = vld [vmem:[#allocation4 + $0x50] sm:$0x1]  ;;  %v21853_v22 = vsel %vm19147_vm5, %v15060_v49, %v13764_v63  ;;  %v13774_v28 = vrot.slane %v21809_v29, 5 }
 0x76f   : > { %23208 = vst [vmem:[#allocation30_spill] sm:$0xff] %v21843_v11  ;;  %23211 = vst [vmem:[#allocation33_spill] sm:$0xff] %v21853_v22  ;;  %v13773_v4 = vrot.slane %v13771_v59, 4  ;;  %v21861_v61 = vld [vmem:[#allocation4 + $0x64] sm:$0xf]  ;;  %v13778_v49 = vrot.slane %v21816_v18, 5 }
 0x770   : > { %23213 = vst [vmem:[#allocation9_spill] sm:$0xff] %v21861_v61  ;;  %v13696_v41 = vld [vmem:[#allocation4 + $0x54] sm:$0xe]  ;;  %v21884_v18 = vld [vmem:[#allocation4 + $0x70] sm:$0xf] }
 0x771   : > { %v21886_v29 = vld [vmem:[#allocation4 + $0x74] sm:$0x1] }
 0x772   : > { %15902 = vmatmul.mubr.msk.bf16.gmra.mrb[28].mxu0 %vm600_vm1, %v16688_v1  ;;  %v13760_v1 = vrot.slane %v21776_v16, 5  ;;  %v13766_v16 = vrot.slane %v13764_v63, 4  ;;  %v15062_v63 = vrot.slane %v13694_v12, 9  ;;  %v13780_v12 = vrot.slane %v13778_v49, 4  ;;  %23217 = vst [vmem:[#allocation55_spill] sm:$0xff] %v21886_v29 }
 0x773   : > { %15905 = vmatprep.mubr.msk.bf16.mxu0 %vm600_vm1, %v16689_v23  ;;  %v13693_v23 = vld [vmem:[#allocation4 + $0x30] sm:$0xe] }
 0x774   : > { %v21833_v17 = vsel %vm19147_vm5, %v13759_v35, %v13760_v1  ;;  %v15061_v60 = vrot.slane %v13693_v23, 9  ;;  %v13695_v35 = vld [vmem:[#allocation4 + $0x48] sm:$0xe]  ;;  %v21847_v1 = vld [vmem:[#allocation4 + $0x58] sm:$0xf]  ;;  %v21857_v48 = vsel %vm19147_vm5, %v13766_v16, %v13767_v19  ;;  %v21876_v16 = vsel %vm19147_vm5, %v13773_v4, %v13774_v28 }
 0x775   : > { %23207 = vst [vmem:[#allocation29_spill] sm:$0xff] %v21833_v17  ;;  %23209 = vst [vmem:[#allocation31_spill] sm:$0xff] %v21847_v1  ;;  %v21872_v19 = vld [vmem:[#allocation4 + $0x68] sm:$0x1]  ;;  %v15063_v23 = vrot.slane %v13695_v35, 9  ;;  %v13792_v22 = vrot.slane %v21847_v1, 5  ;;  %v21890_v4 = vsel %vm19147_vm5, %v15062_v63, %v13778_v49 }
 0x776   : > { %23212 = vst [vmem:[#allocation34_spill] sm:$0xff] %v21857_v48  ;;  %v21867_v17 = vsel %vm19147_vm5, %v15061_v60, %v13771_v59  ;;  %23215 = vst [vmem:[#allocation51_spill] sm:$0xff] %v21872_v19  ;;  %v13785_v48 = vrot.slane %v21825_v14, 5  ;;  %v13788_v60 = vrot.slane %v21843_v11, 5  ;;  %v15064_v59 = vrot.slane %v13696_v41, 9 }
 0x777   : > { %23214 = vst [vmem:[#allocation50_spill] sm:$0xff] %v21867_v17  ;;  %23216 = vst [vmem:[#allocation6_spill] sm:$0xff] %v21876_v16  ;;  %v13794_v17 = vrot.slane %v13792_v22, 4  ;;  %v13795_v11 = vrot.slane %v21849_v40, 5  ;;  %v13698_v1 = vld [vmem:[#allocation4 + $0x6c] sm:$0xe] }
 0x778   : > { %23218 = vst [vmem:[#allocation56_spill] sm:$0xff] %v21890_v4  ;;  %v21894_v35 = vsel %vm19147_vm5, %v15063_v23, %v13785_v48  ;;  %v13787_v28 = vrot.slane %v13785_v48, 4  ;;  %v21902_v14 = vld [vmem:[#allocation4 + $0x7c] sm:$0xf]  ;;  %v21904_v63 = vld [vmem:[#allocation4 + $0x80] sm:$0x1]  ;;  %v21914_v48 = vsel %vm19147_vm5, %v15064_v59, %v13792_v22 }
 0x779   : > { %23219 = vst [vmem:[#allocation57_spill] sm:$0xff] %v21894_v35  ;;  %23221 = vst [vmem:[#allocation59_spill] sm:$0xff] %v21902_v14  ;;  %v13802_v23 = vrot.slane %v21872_v19, 5  ;;  %v21930_v22 = vld [vmem:[%s22622_s6 + $0xc] sm:$0x3]  ;;  %v13813_v59 = vrot.slane %v21902_v14, 5 }
 0x77a   : > { %15906 = vmatmul.mubr.msk.bf16.gmra.mrb[32].mxu0 %vm600_vm1, %v16690_v52  ;;  %v13781_v52 = vrot.slane %v21823_v27, 5  ;;  %v13799_v27 = vrot.slane %v21861_v61, 5  ;;  %23222 = vst [vmem:[#allocation60_spill] sm:$0xff] %v21904_v63  ;;  %v21910_v41 = vsel %vm19147_vm5, %v13787_v28, %v13788_v60  ;;  %23224 = vst [vmem:[#allocation62_spill] sm:$0xff] %v21914_v48  ;;  %v21922_v61 = vsel %vm19147_vm5, %v13794_v17, %v13795_v11  ;;  %v13700_v17 = vld [vmem:[#allocation4 + $0x84] sm:$0xe] }
 0x77b   : > { %15911 = vmatprep.mubr.msk.bf16.mxu0 %vm600_vm1, %v21716_v54  ;;  %v13697_v54 = vld [vmem:[#allocation4 + $0x60] sm:$0xe]  ;;  %23223 = vst [vmem:[#allocation61_spill] sm:$0xff] %v21910_v41  ;;  %23226 = vst [vmem:[#allocation64_spill] sm:$0xff] %v21922_v61  ;;  %v13806_v28 = vrot.slane %v21884_v18, 5  ;;  %v15068_v35 = vrot.slane %v13700_v17, 9 }
 0x77c   : > { %v21898_v16 = vsel %vm19147_vm5, %v13780_v12, %v13781_v52  ;;  %v15065_v49 = vrot.slane %v13697_v54, 9  ;;  %v21916_v52 = vld [vmem:[#allocation4 + $0x88] sm:$0xf]  ;;  %v13801_v40 = vrot.slane %v13799_v27, 4  ;;  %v15066_v54 = vrot.slane %v13698_v1, 9 }
 0x77d   : > { %23220 = vst [vmem:[#allocation58_spill] sm:$0xff] %v21898_v16  ;;  %23225 = vst [vmem:[#allocation63_spill] sm:$0xff] %v21916_v52  ;;  %v13699_v16 = vld [vmem:[#allocation4 + $0x78] sm:$0xe]  ;;  %v21937_v11 = vld [vmem:[#allocation4 + $0x8c] sm:$0x1] }
 0x77e   : > { %23227 = vst [vmem:[#allocation65_spill] sm:$0xff] %v21937_v11  ;;  %v21939_v12 = vld [vmem:[#allocation4 + $0x94] sm:$0xf]  ;;  %v21943_v60 = vsel %vm19147_vm5, %v15065_v49, %v13799_v27  ;;  %v21947_v41 = vsel %vm19147_vm5, %v13801_v40, %v13802_v23  ;;  %v13809_v1 = vrot.slane %v21886_v29, 5  ;;  %v13808_v61 = vrot.slane %v13806_v28, 4 }
 0x77f   : > { %23228 = vst [vmem:[#allocation66_spill] sm:$0xff] %v21939_v12  ;;  %23229 = vst [vmem:[#allocation67_spill] sm:$0xff] %v21943_v60  ;;  %v15067_v48 = vrot.slane %v13699_v16, 9  ;;  %v13816_v27 = vrot.slane %v21904_v63, 5  ;;  %v13701_v49 = vld [vmem:[#allocation4 + $0x90] sm:$0xe]  ;;  %v21963_v23 = vsel %vm19147_vm5, %v15066_v54, %v13806_v28 }
 0x780   : > { %23230 = vst [vmem:[#allocation68_spill] sm:$0xff] %v21947_v41  ;;  %v21959_v40 = vld [vmem:[#allocation4 + $0x98] sm:$0x1]  ;;  %23231 = vst [vmem:[#allocation69_spill] sm:$0xff] %v21963_v23  ;;  %v21966_v4 = vld [vmem:[#allocation4 + $0xa0] sm:$0xf]  ;;  %v21972_v16 = vsel %vm19147_vm5, %v13808_v61, %v13809_v1 }
 0x781   : > { %23232 = vst [vmem:[#allocation70_spill] sm:$0xff] %v21972_v16  ;;  %v21976_v41 = vsel %vm19147_vm5, %v15067_v48, %v13813_v59  ;;  %v13823_v60 = vrot.slane %v21937_v11, 5  ;;  %v13827_v54 = vrot.slane %v21939_v12, 5  ;;  %v21980_v28 = vld [vmem:[#allocation4 + $0xac] sm:$0xf]  ;;  %v15069_v61 = vrot.slane %v13701_v49, 9 }
 0x782   : > { %15912 = vmatmul.mubr.msk.bf16.vlgmr.msra.gmra.mrb[4].mxu0 %vm600_vm1, %v21718_v13  ;;  %v21968_v13 = vld [vmem:[#allocation4 + $0xa4] sm:$0x1]  ;;  %23233 = vst [vmem:[#allocation71_spill] sm:$0xff] %v21976_v41  ;;  %v13702_v1 = vld [vmem:[#allocation4 + $0x9c] sm:$0xe]  ;;  %v11667_v48 = vor.u32 %v21791_v3, %v21789_v43  ;;  %v13830_v29 = vrot.slane %v21959_v40, 5 }
 0x783   : > { %15944 = vmatpush3.bf16.msra.mxu0 %v21839_v38  ;;  %15915 = vmatprep.mubr.msk.bf16.mxu0 %vm600_vm1, %v21741_v58  ;;  %v13815_v38 = vrot.slane %v13813_v59, 4  ;;  %v13820_v58 = vrot.slane %v21916_v52, 5  ;;  %v13003_v59 = vld [vmem:[#allocation4 + $0xb0] sm:$0x1]  ;;  %v13829_v12 = vrot.slane %v13827_v54, 4  ;;  %v22005_v3 = vsel %vm19147_vm5, %v15069_v61, %v13827_v54 }
 0x784   : > { %16610 = vmatprep.subr.msk.bf16.mxu0 %vm613_vm0, %v21930_v22  ;;  %v13703_v14 = vld [vmem:[#allocation4 + $0xa8] sm:$0xe]  ;;  %v21993_v19 = vld [vmem:[#allocation4 + $0xb8] sm:$0xf]  ;;  %v13006_v17 = vld [vmem:[#allocation4 + $0xbc] sm:$0x1] }
 0x785   : > { %v21986_v63 = vsel %vm19147_vm5, %v13815_v38, %v13816_v27  ;;  %v13822_v52 = vrot.slane %v13820_v58, 4  ;;  %23235 = vst [vmem:[#allocation73_spill] sm:$0xff] %v21993_v19  ;;  %v21997_v27 = vsel %vm19147_vm5, %v15068_v35, %v13820_v58  ;;  %23238 = vst [vmem:[#allocation76_spill] sm:$0xff] %v22005_v3  ;;  %v13834_v38 = vrot.slane %v21966_v4, 5  ;;  %v22008_v11 = vld [vmem:[#allocation4 + $0xc4] sm:$0xf] }
 0x786   : > { %23234 = vst [vmem:[#allocation72_spill] sm:$0xff] %v21986_v63  ;;  %23236 = vst [vmem:[#allocation74_spill] sm:$0xff] %v21997_v27  ;;  %v22014_v41 = vsel %vm19147_vm5, %v13829_v12, %v13830_v29  ;;  %v15070_v35 = vrot.slane %v13702_v1, 9  ;;  %v13841_v58 = vrot.slane %v21980_v28, 5  ;;  %v13837_v16 = vrot.slane %v21968_v13, 5  ;;  %v23318_v39 = vld [vmem:[#allocation56_spill] sm:$0xff] }
 0x787   : > { %v22001_v49 = vsel %vm19147_vm5, %v13822_v52, %v13823_v60  ;;  %23239 = vst [vmem:[#allocation77_spill] sm:$0xff] %v22014_v41  ;;  %v13704_v52 = vld [vmem:[#allocation4 + $0xb4] sm:$0xe]  ;;  %v13009_v60 = vld [vmem:[#allocation4 + $0xc8] sm:$0x1]  ;;  %v13836_v61 = vrot.slane %v13834_v38, 4 }
 0x788   : > { %23237 = vst [vmem:[#allocation75_spill] sm:$0xff] %v22001_v49  ;;  %v15071_v23 = vrot.slane %v13703_v14, 9  ;;  %v22026_v29 = vsel %vm19147_vm5, %v15070_v35, %v13834_v38  ;;  %v13843_v12 = vrot.slane %v13841_v58, 4  ;;  %v13844_v1 = vrot.slane %v13003_v59, 5  ;;  %v11440_v49 = vld [vmem:[#allocation4 + $0x84] sm:$0xf] }
 0x789   : > { %v13848_v63 = vrot.slane %v21993_v19, 5  ;;  %v22031_v54 = vsel %vm19147_vm5, %v13836_v61, %v13837_v16  ;;  %v15072_v41 = vrot.slane %v13704_v52, 9  ;;  %v13851_v3 = vrot.slane %v13006_v17, 5 }
 0x78a   : > { %15916 = vmatmul.mubr.msk.bf16.gmra.mrb[8].mxu0 %vm600_vm1, %v21752_v7  ;;  %v13705_v7 = vld [vmem:[#allocation4 + $0xc0] sm:$0xe]  ;;  %v22035_v14 = vsel %vm19147_vm5, %v15071_v23, %v13841_v58  ;;  %v22042_v59 = vsel %vm19147_vm5, %v13843_v12, %v13844_v1  ;;  %v13858_v19 = vrot.slane %v13009_v60, 5  ;;  %v11699_v23 = vshrl.u32 %v11440_v49, 16 }
 0x78b   : > { %15919 = vmatprep.mubr.msk.bf16.mxu0 %vm600_vm1, %v21757_v50  ;;  %v13855_v50 = vrot.slane %v22008_v11, 5  ;;  %v13850_v35 = vrot.slane %v13848_v63, 4  ;;  %v15088_v16 = vcombine.low %v22035_v14, %v22042_v59  ;;  %v15073_v61 = vrot.slane %v13705_v7, 9 }
 0x78c   : > { %v11702_v58 = vshll.u32 %v11440_v49, 16  ;;  %v22048_v52 = vsel %vm19147_vm5, %v15072_v41, %v13848_v63  ;;  %v11668_v12 = vrot.slane %v11667_v48, 4  ;;  %v11639_v63 = vsel %vm18638_vm7, %v21778_v33, %v21749_v9  ;;  %v11443_v49 = vld [vmem:[#allocation4 + $0x90] sm:$0xf] }
 0x78d   : > { %v13857_v27 = vrot.slane %v13855_v50, 4  ;;  %v22052_v38 = vsel %vm19147_vm5, %v13850_v35, %v13851_v3  ;;  %v22058_v1 = vsel %vm19147_vm5, %v15073_v61, %v13855_v50  ;;  %v11649_v41 = vsel %vm18638_vm7, %v21787_v25, %v21780_v53 }
 0x78e   : > { %v11691_v48 = vor.u32 %v21806_v37, %v21803_v21  ;;  %v23241_v9 = vshll.u32 %v21475_v56, 16  ;;  %v23242_v7 = vshll.u32 %v21493_v20, 16  ;;  %v23243_v25 = vshrl.u32 %v21493_v20, 16 }
 0x78f   : > { %v22062_v60 = vsel %vm19147_vm5, %v13857_v27, %v13858_v19  ;;  %v23240_v19 = vor.u32 %v21784_v26, %v21782_v46  ;;  %v11681_v50 = vor.u32 %v21801_v62, %v21799_v42  ;;  %v11701_v35 = vrot.slane %v11699_v23, 4 }
 0x790   : > { %v11672_v33 = vrot.slane %v23241_v9, 5  ;;  %v11710_v53 = vrot.slane %v23242_v7, 5  ;;  %v11714_v37 = vrot.slane %v23243_v25, 4  ;;  %v11704_v46 = vrot.slane %v11702_v58, 5  ;;  %v11446_v25 = vld [vmem:[#allocation4 + $0x9c] sm:$0xf] }
 0x791   : > { %v11658_v27 = vrot.slane %v23240_v19, 4  ;;  %v14919_v26 = vcombine.low %v11639_v63, %v11649_v41  ;;  %v11723_v61 = vshrl.u32 %v11443_v49, 16  ;;  %v11692_v19 = vrot.slane %v11691_v48, 4 }
 0x792   : > { %15920 = vmatmul.mubr.msk.bf16.gmra.mrb[12].mxu0 %vm600_vm1, %v21812_v32  ;;  %v11694_v32 = vshll.u32 %v21477_v2, 16  ;;  %v11673_v56 = vsel %vm18638_vm7, %v11668_v12, %v11672_v33  ;;  %v11726_v9 = vshll.u32 %v11443_v49, 16  ;;  %v11732_v20 = vshll.u32 %v21501_v47, 16 }
 0x793   : > { %15923 = vmatprep.mubr.msk.bf16.mxu0 %vm600_vm1, %v21841_v55  ;;  %v11736_v7 = vshrl.u32 %v21501_v47, 16  ;;  %v11663_v55 = vsel %vm18638_vm7, %v11658_v27, %v21789_v43  ;;  %v11715_v42 = vor.u32 %v11714_v37, %v11710_v53  ;;  %v11756_v2 = vshll.u32 %v21529_v34, 16 }
 0x794   : > { %v11760_v62 = vshrl.u32 %v21529_v34, 16  ;;  %v14920_v23 = vcombine.low %v11663_v55, %v11673_v56  ;;  %v11682_v58 = vrot.slane %v11681_v50, 4  ;;  %v11696_v12 = vrot.slane %v11694_v32, 5 }
 0x795   : > { %v11705_v63 = vor.u32 %v11704_v46, %v11701_v35  ;;  %v11718_v41 = vshll.u32 %v21507_v30, 16  ;;  %v11725_v48 = vrot.slane %v11723_v61, 4  ;;  %v11747_v49 = vshrl.u32 %v11446_v25, 16  ;;  %v11449_v61 = vld [vmem:[#allocation4 + $0xa8] sm:$0xf] }
 0x796   : > { %v11750_v33 = vshll.u32 %v11446_v25, 16  ;;  %v11697_v47 = vsel %vm18638_vm7, %v11692_v19, %v11696_v12  ;;  %v11728_v3 = vrot.slane %v11726_v9, 5  ;;  %v11734_v17 = vrot.slane %v11732_v20, 5 }
 0x797   : > { %v11738_v43 = vrot.slane %v11736_v7, 4  ;;  %v11716_v27 = vrot.slane %v11715_v42, 4  ;;  %v11758_v37 = vrot.slane %v11756_v2, 5  ;;  %v11762_v34 = vrot.slane %v11760_v62, 4  ;;  %v11452_v7 = vld [vmem:[#allocation4 + $0xb4] sm:$0xf] }
 0x798   : > { %v11687_v30 = vsel %vm18638_vm7, %v11682_v58, %v21803_v21  ;;  %v11706_v50 = vrot.slane %v11705_v63, 4  ;;  %v11720_v35 = vrot.slane %v11718_v41, 5  ;;  %v11749_v46 = vrot.slane %v11747_v49, 4 }
 0x799   : > { %v14921_v32 = vcombine.low %v11687_v30, %v11697_v47  ;;  %v11752_v56 = vrot.slane %v11750_v33, 5  ;;  %v11729_v19 = vor.u32 %v11728_v3, %v11725_v48  ;;  %v11739_v9 = vor.u32 %v11738_v43, %v11734_v17 }
 0x79a   : > { %15924 = vmatmul.mubr.msk.bf16.gmra.mrb[16].mxu0 %vm600_vm1, %v14919_v26  ;;  %v11780_v20 = vshll.u32 %v21547_v24, 16  ;;  %v11784_v26 = vshrl.u32 %v21547_v24, 16  ;;  %v11721_v25 = vsel %vm18638_vm7, %v11716_v27, %v11720_v35  ;;  %v11763_v55 = vor.u32 %v11762_v34, %v11758_v37 }
 0x79b   : > { %15927 = vmatprep.mubr.msk.bf16.mxu0 %vm600_vm1, %v14920_v23  ;;  %v11804_v42 = vshll.u32 %v21565_v0, 16  ;;  %v11808_v21 = vshrl.u32 %v21565_v0, 16  ;;  %v11711_v2 = vsel %vm18638_vm7, %v11706_v50, %v11710_v53  ;;  %v11742_v62 = vshll.u32 %v21509_v57, 16 }
 0x79c   : > { %v11771_v3 = vshrl.u32 %v11449_v61, 16  ;;  %v11774_v23 = vshll.u32 %v11449_v61, 16  ;;  %v11753_v58 = vor.u32 %v11752_v56, %v11749_v46  ;;  %v11766_v12 = vshll.u32 %v21545_v45, 16  ;;  %v11455_v46 = vld [vmem:[#allocation4 + $0xc0] sm:$0xf] }
 0x79d   : > { %v11795_v24 = vshrl.u32 %v11452_v7, 16  ;;  %v11798_v63 = vshll.u32 %v11452_v7, 16  ;;  %v14922_v41 = vcombine.low %v11711_v2, %v11721_v25  ;;  %v11740_v48 = vrot.slane %v11739_v9, 4 }
 0x79e   : > { %v11782_v49 = vrot.slane %v11780_v20, 5  ;;  %v11786_v33 = vrot.slane %v11784_v26, 4  ;;  %v11730_v47 = vrot.slane %v11729_v19, 4  ;;  %v11764_v0 = vrot.slane %v11763_v55, 4 }
 0x79f   : > { %v11806_v43 = vrot.slane %v11804_v42, 5  ;;  %v11810_v27 = vrot.slane %v11808_v21, 4  ;;  %v11744_v57 = vrot.slane %v11742_v62, 5  ;;  %v11773_v53 = vrot.slane %v11771_v3, 4 }
 0x7a0   : > { %v11776_v34 = vrot.slane %v11774_v23, 5  ;;  %v11754_v30 = vrot.slane %v11753_v58, 4  ;;  %v11768_v50 = vrot.slane %v11766_v12, 5  ;;  %v11797_v45 = vrot.slane %v11795_v24, 4 }
 0x7a1   : > { %v11800_v35 = vrot.slane %v11798_v63, 5  ;;  %v11745_v56 = vsel %vm18638_vm7, %v11740_v48, %v11744_v57  ;;  %v11787_v61 = vor.u32 %v11786_v33, %v11782_v49  ;;  %v11832_v19 = vshrl.u32 %v21587_v51, 16 }
 0x7a2   : > { %15928 = vmatmul.mubr.msk.bf16.gmra.mrb[20].mxu0 %vm600_vm1, %v14921_v32  ;;  %v11828_v32 = vshll.u32 %v21587_v51, 16  ;;  %v11735_v9 = vsel %vm18638_vm7, %v11730_v47, %v11734_v17  ;;  %v11769_v20 = vsel %vm18638_vm7, %v11764_v0, %v11768_v50  ;;  %v11811_v26 = vor.u32 %v11810_v27, %v11806_v43 }
 0x7a3   : > { %15931 = vmatprep.mubr.msk.bf16.mxu0 %vm600_vm1, %v14922_v41  ;;  %v11777_v7 = vor.u32 %v11776_v34, %v11773_v53  ;;  %v11790_v25 = vshll.u32 %v21556_v36, 16  ;;  %v11819_v55 = vshrl.u32 %v11455_v46, 16  ;;  %v11822_v42 = vshll.u32 %v11455_v46, 16 }
 0x7a4   : > { %v14923_v21 = vcombine.low %v11735_v9, %v11745_v56  ;;  %v11759_v2 = vsel %vm18638_vm7, %v11754_v30, %v11758_v37  ;;  %v11801_v62 = vor.u32 %v11800_v35, %v11797_v45  ;;  %v11814_v3 = vshll.u32 %v21577_v31, 16 }
 0x7a5   : > { %v14924_v51 = vcombine.low %v11759_v2, %v11769_v20  ;;  %v11788_v23 = vrot.slane %v11787_v61, 4  ;;  %v11830_v58 = vrot.slane %v11828_v32, 5  ;;  %v11834_v17 = vrot.slane %v11832_v19, 4  ;;  %v507_v61 = vld [vmem:[#allocation4 + $0xcc] sm:$0x1] }
 0x7a6   : > { %v11812_v12 = vrot.slane %v11811_v26, 4  ;;  %v11778_v24 = vrot.slane %v11777_v7, 4  ;;  %v11792_v36 = vrot.slane %v11790_v25, 5  ;;  %v11821_v63 = vrot.slane %v11819_v55, 4  ;;  %v12137_v55 = vld [vmem:[#allocation4 + $0x18] sm:$0xe] }
 0x7a7   : > { %v11824_v41 = vrot.slane %v11822_v42, 5  ;;  %v11802_v48 = vrot.slane %v11801_v62, 4  ;;  %v11816_v33 = vrot.slane %v11814_v3, 5  ;;  %v11835_v47 = vor.u32 %v11834_v17, %v11830_v58  ;;  %v23245_v42 = vld [vmem:[#allocation20_spill] sm:$0xff] }
 0x7a8   : > { %v11793_v37 = vsel %vm18638_vm7, %v11788_v23, %v11792_v36  ;;  %v12202_v0 = vrot.slane %v21662_v8, 5  ;;  %v11783_v27 = vsel %vm18638_vm7, %v11778_v24, %v11782_v49  ;;  %v11838_v53 = vshll.u32 %v21609_v6, 16  ;;  %v12136_v8 = vld [vmem:[#allocation4 + $0xc] sm:$0xe]  ;;  %v23246_v17 = vld [vmem:[#allocation52_spill] sm:$0xff] }
 0x7a9   : > { %v11817_v31 = vsel %vm18638_vm7, %v11812_v12, %v11816_v33  ;;  %v11825_v57 = vor.u32 %v11824_v41, %v11821_v63  ;;  %v14925_v34 = vcombine.low %v11783_v27, %v11793_v37  ;;  %v11807_v30 = vsel %vm18638_vm7, %v11802_v48, %v11806_v43  ;;  %v23244_v43 = vld [vmem:[#allocation19_spill] sm:$0xff]  ;;  %v23247_v12 = vld [vmem:[#allocation8_spill] sm:$0xff]  ;;  %v23253_v48 = vld [vmem:[#allocation37_spill] sm:$0xff] }
 0x7aa   : > { %15932 = vmatmul.mubr.msk.bf16.gmra.mrb[24].mxu0 %vm600_vm1, %v14923_v21  ;;  %v14926_v50 = vcombine.low %v11807_v30, %v11817_v31  ;;  %v11836_v45 = vrot.slane %v11835_v47, 4  ;;  %v12204_v35 = vrot.slane %v12202_v0, 4  ;;  %v11840_v56 = vrot.slane %v11838_v53, 5  ;;  %v23249_v36 = vld [vmem:[#allocation16_spill] sm:$0xff]  ;;  %v23255_v37 = vld [vmem:[#allocation38_spill] sm:$0xff]  ;;  %v23256_v47 = vld [vmem:[#allocation39_spill] sm:$0xff] }
 0x7ab   : > { %15935 = vmatprep.mubr.msk.bf16.mxu0 %vm600_vm1, %v14924_v51  ;;  %v11826_v46 = vrot.slane %v11825_v57, 4  ;;  %v12205_v49 = vrot.slane %v21674_v5, 5  ;;  %v508_v6 = vsel %vm18039_vm10, 0, %v507_v61  ;;  %v12209_v19 = vrot.slane %v23244_v43, 5  ;;  %v23250_v63 = vld [vmem:[#allocation36_spill] sm:$0xff]  ;;  %v23259_v27 = vld [vmem:[#allocation41_spill] sm:$0xff] }
 0x7ac   : > { %v11841_v32 = vsel %vm18638_vm7, %v11836_v45, %v11840_v56  ;;  %509 = vst [vmem:[#allocation4 + $0xcc] sm:$0x1] %v508_v6  ;;  %v14944_v9 = vrot.slane %v12136_v8, 9  ;;  %v12212_v21 = vrot.slane %v23245_v42, 5  ;;  %v14945_v2 = vrot.slane %v12137_v55, 9  ;;  %v23261_v53 = vld [vmem:[#allocation42_spill] sm:$0xff] }
 0x7ad   : > { %v12206_v20 = vsel %vm19147_vm5, %v12204_v35, %v12205_v49  ;;  %v11831_v26 = vsel %vm18638_vm7, %v11826_v46, %v11830_v58  ;;  %v12211_v44 = vrot.slane %v12209_v19, 4  ;;  %v12770_v23 = vsel %vm613_vm0, %v21930_v22, 0  ;;  %v15026_v58 = vld [vmem:[%s22622_s6 + $0xe] sm:$0x3]  ;;  %v23252_v22 = vld [vmem:[#allocation35_spill] sm:$0xff]  ;;  %v23265_v45 = vld [vmem:[#allocation45_spill] sm:$0xff] }
 0x7ae   : > { %v14927_v7 = vcombine.low %v11831_v26, %v11841_v32  ;;  %v12203_v5 = vsel %vm19147_vm5, %v14944_v9, %v12202_v0  ;;  %v12210_v3 = vsel %vm19147_vm5, %v14945_v2, %v12209_v19  ;;  %v23248_v24 = vcombine.low %v23246_v17, %v23247_v12  ;;  %v23258_v0 = vld [vmem:[#allocation40_spill] sm:$0xff]  ;;  %v23267_v46 = vld [vmem:[#allocation46_spill] sm:$0xff]  ;;  %v23268_v56 = vld [vmem:[#allocation47_spill] sm:$0xff] }
 0x7af   : > { %v14961_v25 = vcombine.low %v12203_v5, %v12206_v20  ;;  %v12213_v62 = vsel %vm19147_vm5, %v12211_v44, %v12212_v21  ;;  %v23251_v41 = vcombine.low %v23249_v36, %v23250_v63  ;;  %v23254_v33 = vcombine.low %v23252_v22, %v23253_v48  ;;  %v23270_v61 = vld [vmem:[#allocation48_spill] sm:$0xff]  ;;  %v23271_v49 = vld [vmem:[#allocation49_spill] sm:$0xff]  ;;  %v23274_v43 = vld [vmem:[#allocation10_spill] sm:$0xff] }
 0x7b0   : > { %v14962_v51 = vcombine.low %v12210_v3, %v12213_v62  ;;  %v23257_v31 = vcombine.low %v23255_v37, %v23256_v47  ;;  %v23260_v57 = vcombine.low %v23258_v0, %v23259_v27  ;;  %v23269_v8 = vcombine.low %v23267_v46, %v23268_v56  ;;  %v23273_v32 = vld [vmem:[#allocation53_spill] sm:$0xff]  ;;  %v23276_v9 = vld [vmem:[#allocation54_spill] sm:$0xff]  ;;  %v23277_v20 = vld [vmem:[#allocation11_spill] sm:$0xff] }
 0x7b1   : > { %v23272_v6 = vcombine.low %v23270_v61, %v23271_v49  ;;  %v23275_v19 = vcombine.low %v23273_v32, %v23274_v43  ;;  %v23278_v26 = vcombine.low %v23276_v9, %v23277_v20  ;;  %v23280_v5 = vld [vmem:[#allocation13_spill] sm:$0xff]  ;;  %v23282_v44 = vld [vmem:[#allocation14_spill] sm:$0xff]  ;;  %v561_v21 = vld [vmem:[#allocation4 + $0xd4] sm:$0x1]  ;;  %v13075_v2 = vshrl.u32 %v21796_v15, 16 }
 0x7b2   : > { %15936 = vmatmul.mubr.msk.bf16.gmra.mrb[28].mxu0 %vm600_vm1, %v14925_v34  ;;  %v23262_v34 = vld [vmem:[#allocation44_spill] sm:$0xff]  ;;  %v23283_v55 = vld [vmem:[#allocation17_spill] sm:$0xff]  ;;  %v562_v62 = vsel %vm18077_vm11, 0, %v561_v21  ;;  %v16692_v12 = vld [vmem:[#allocation4 + $0x24] sm:$0xff]   ;;  %v13071_v21 = vshll.u32 %v21796_v15, 16 }
 0x7b3   : > { %15939 = vmatprep.mubr.msk.bf16.mxu0 %vm600_vm1, %v14926_v50  ;;  %v23263_v30 = vcombine.low %v23261_v53, %v23262_v34  ;;  %v23264_v50 = vld [vmem:[#allocation43_spill] sm:$0xff]  ;;  %v23284_v42 = vcombine.low %v23282_v44, %v23283_v55  ;;  %563 = vst [vmem:[#allocation4 + $0xd4] sm:$0x1] %v562_v62  ;;  %v16691_v3 = vld [vmem:[#allocation4 + $0x18] sm:$0xff]   ;;  %v16693_v36 = vld [vmem:[#allocation4 + $0x30] sm:$0xff]  }
 0x7b4   : > { %v23266_v35 = vcombine.low %v23264_v50, %v23265_v45  ;;  %v22236_v63 = vld [vmem:[%s22622_s6 + $0x10] sm:$0x3]  ;;  %v16695_v22 = vld [vmem:[#allocation4 + $0x48] sm:$0xff]   ;;  %v16697_v48 = vld [vmem:[#allocation4 + $0x60] sm:$0xff]  }
 0x7b5   : > { %v16699_v37 = vld [vmem:[#allocation4 + $0x78] sm:$0xff]   ;;  %v12968_v50 = vld [vmem:[#allocation4 + $0x24] sm:$0xf]  ;;  %v16703_v44 = vld [vmem:[#allocation4 + $0xa8] sm:$0xff]  }
 0x7b6   : > { %v12965_v47 = vld [vmem:[#allocation4 + $0x18] sm:$0xf]  ;;  %v13041_v61 = vshll.u32 %v12968_v50, 16  ;;  %v23290_v49 = vld [vmem:[#allocation22_spill] sm:$0xff] }
 0x7b7   : > { %v13014_v53 = vshrl.u32 %v12965_v47, 16  ;;  %v13017_v34 = vshll.u32 %v12965_v47, 16  ;;  %v13051_v32 = vshrl.u32 %v23290_v49, 16  ;;  %v16702_v9 = vld [vmem:[#allocation4 + $0x9c] sm:$0xff]  }
 0x7b9   : > { %v13016_v46 = vrot.slane %v13014_v53, 4  ;;  %v13019_v56 = vrot.slane %v13017_v34, 5 }
 0x7ba   : > { %15940 = vmatmul.mubr.msk.bf16.gmra.mrb[32].mxu0 %vm600_vm1, %v14927_v7  ;;  %v23279_v7 = vld [vmem:[#allocation12_spill] sm:$0xff] }
 0x7bb   : > { %15945 = vmatprep.mubr.msk.bf16.mxu0 %vm600_vm1, %v14961_v25  ;;  %v23281_v25 = vcombine.low %v23279_v7, %v23280_v5  ;;  %v13020_v20 = vor.u32 %v13019_v56, %v13016_v46  ;;  %v23294_v56 = vld [vmem:[#allocation25_spill] sm:$0xff] }
 0x7c2   : > { %15946 = vmatmul.mubr.msk.bf16.vlgmr.msra.gmra.mrb[4].mxu0 %vm600_vm1, %v14962_v51  ;;  %v23286_v51 = vld [vmem:[#allocation15_spill] sm:$0xff] }
 0x7c3   : > { %15978 = vmatpush3.bf16.msra.mxu0 %v12770_v23  ;;  %15949 = vmatprep.mubr.msk.bf16.mxu0 %vm600_vm1, %v23248_v24  ;;  %v23287_v23 = vld [vmem:[#allocation18_spill] sm:$0xff]  ;;  %v13496_v24 = vsel %vm613_vm0, %v15026_v58, 0 }
 0x7c4   : > { %16611 = vmatprep.subr.msk.bf16.mxu0 %vm613_vm0, %v15026_v58  ;;  %v23288_v17 = vcombine.low %v23286_v51, %v23287_v23  ;;  %v16696_v58 = vld [vmem:[#allocation4 + $0x54] sm:$0xff]   ;;  %v13021_v23 = vrot.slane %v13020_v20, 4 }
 0x7c5   : > { %v22277_v20 = vld [vmem:[#allocation4 + $0xd4] sm:$0x1] }
 0x7ca   : > { %15950 = vmatmul.mubr.msk.bf16.gmra.mrb[8].mxu0 %vm600_vm1, %v23251_v41  ;;  %v16694_v41 = vld [vmem:[#allocation4 + $0x3c] sm:$0xff]  }
 0x7cb   : > { %15953 = vmatprep.mubr.msk.bf16.mxu0 %vm600_vm1, %v23254_v33  ;;  %v16698_v33 = vld [vmem:[#allocation4 + $0x6c] sm:$0xff]  }
 0x7d2   : > { %15954 = vmatmul.mubr.msk.bf16.gmra.mrb[12].mxu0 %vm600_vm1, %v23257_v31  ;;  %v23289_v31 = vld [vmem:[#allocation21_spill] sm:$0xff] }
 0x7d3   : > { %15957 = vmatprep.mubr.msk.bf16.mxu0 %vm600_vm1, %v23260_v57  ;;  %v13023_v0 = vshll.u32 %v23289_v31, 16  ;;  %v13027_v27 = vshrl.u32 %v23289_v31, 16  ;;  %v16700_v57 = vld [vmem:[#allocation4 + $0x84] sm:$0xff]  }
 0x7d5   : > { %v13025_v45 = vrot.slane %v13023_v0, 5 }
 0x7da   : > { %15958 = vmatmul.mubr.msk.bf16.gmra.mrb[16].mxu0 %vm600_vm1, %v23263_v30  ;;  %v16701_v30 = vld [vmem:[#allocation4 + $0x90] sm:$0xff]  }
 0x7db   : > { %15961 = vmatprep.mubr.msk.bf16.mxu0 %vm600_vm1, %v23266_v35  ;;  %v13029_v35 = vrot.slane %v13027_v27, 4  ;;  %v16704_v27 = vld [vmem:[#allocation4 + $0xb4] sm:$0xff]  }
 0x7dd   : > { %v13030_v43 = vor.u32 %v13029_v35, %v13025_v45 }
 0x7df   : > { %v13031_v51 = vrot.slane %v13030_v43, 4 }
 0x7e2   : > { %15962 = vmatmul.mubr.msk.bf16.gmra.mrb[20].mxu0 %vm600_vm1, %v23269_v8  ;;  %v13038_v8 = vshrl.u32 %v12968_v50, 16  ;;  %v16705_v50 = vld [vmem:[#allocation4 + $0xc0] sm:$0xff]  }
 0x7e3   : > { %15965 = vmatprep.mubr.msk.bf16.mxu0 %vm600_vm1, %v23272_v6  ;;  %v13047_v6 = vshll.u32 %v23290_v49, 16  ;;  %v12977_v49 = vld [vmem:[#allocation4 + $0x48] sm:$0xf] }
 0x7e4   : > { %v13040_v5 = vrot.slane %v13038_v8, 4  ;;  %v13095_v8 = vshll.u32 %v23294_v56, 16 }
 0x7e5   : > { %v22255_v55 = vrot.slane %v13047_v6, 5 }
 0x7ea   : > { %15966 = vmatmul.mubr.msk.bf16.gmra.mrb[24].mxu0 %vm600_vm1, %v23275_v19  ;;  %v12971_v19 = vld [vmem:[#allocation4 + $0x30] sm:$0xf] }
 0x7eb   : > { %15969 = vmatprep.mubr.msk.bf16.mxu0 %vm600_vm1, %v23278_v26  ;;  %v23291_v26 = vld [vmem:[#allocation23_spill] sm:$0xff]  ;;  %v13062_v62 = vshrl.u32 %v12971_v19, 16 }
 0x7ec   : > { %v13033_v7 = vshll.u32 %v23291_v26, 16 }
 0x7f2   : > { %15970 = vmatmul.mubr.msk.bf16.gmra.mrb[28].mxu0 %vm600_vm1, %v23281_v25  ;;  %v13043_v25 = vrot.slane %v13041_v61, 5  ;;  %v13099_v61 = vshrl.u32 %v23294_v56, 16 }
 0x7f3   : > { %15973 = vmatprep.mubr.msk.bf16.mxu0 %vm600_vm1, %v23284_v42  ;;  %v13053_v42 = vrot.slane %v13051_v32, 4 }
 0x7fa   : > { %15974 = vmatmul.mubr.msk.bf16.gmra.mrb[32].mxu0 %vm600_vm1, %v23288_v17  ;;  %v13044_v17 = vor.u32 %v13043_v25, %v13040_v5  ;;  %v13706_v5 = vld [vmem:[#allocation4 + $0xcc] sm:$0xe] }
 0x7fb   : > { %15979 = vmatprep.mubr.msk.bf16.mxu0 %vm600_vm1, %v16691_v3  ;;  %v13065_v3 = vshll.u32 %v12971_v19, 16  ;;  %v23295_v19 = vld [vmem:[#allocation26_spill] sm:$0xff] }
 0x7fc   : > { %v13045_v53 = vrot.slane %v13044_v17, 4  ;;  %v22285_v17 = vrot.slane %v13095_v8, 5 }
 0x7fd   : > { %v13067_v15 = vrot.slane %v13065_v3, 5 }
 0x802   : > { %15980 = vmatmul.mubr.msk.bf16.vlgmr.msra.gmra.mrb[4].mxu0 %vm600_vm1, %v16692_v12  ;;  %v23292_v12 = vld [vmem:[#allocation24_spill] sm:$0xff] }
 0x803   : > { %16012 = vmatpush3.bf16.msra.mxu0 %v13496_v24  ;;  %15983 = vmatprep.mubr.msk.bf16.mxu0 %vm600_vm1, %v16693_v36  ;;  %v13057_v24 = vshll.u32 %v23292_v12, 16  ;;  %v12974_v36 = vld [vmem:[#allocation4 + $0x3c] sm:$0xf]  ;;  %v13101_v12 = vrot.slane %v13099_v61, 4  ;;  %v23297_v61 = vld [vmem:[#allocation27_spill] sm:$0xff] }
 0x804   : > { %16612 = vmatprep.subr.msk.bf16.mxu0 %vm613_vm0, %v22236_v63  ;;  %v13086_v0 = vshrl.u32 %v12974_v36, 16  ;;  %v13105_v10 = vshll.u32 %v23297_v61, 16 }
 0x805   : > { %v13059_v34 = vrot.slane %v13057_v24, 5 }
 0x806   : > { %v13088_v26 = vrot.slane %v13086_v0, 4 }
 0x80a   : > { %15984 = vmatmul.mubr.msk.bf16.gmra.mrb[8].mxu0 %vm600_vm1, %v16694_v41  ;;  %v13035_v41 = vrot.slane %v13033_v7, 5  ;;  %v13123_v7 = vshrl.u32 %v23295_v19, 16 }
 0x80b   : > { %15987 = vmatprep.mubr.msk.bf16.mxu0 %vm600_vm1, %v16695_v22  ;;  %v13054_v22 = vor.u32 %v13053_v42, %v22255_v55 }
 0x80c   : > { %v13036_v31 = vsel %vm18638_vm7, %v13031_v51, %v13035_v41  ;;  %v15074_v51 = vrot.slane %v13706_v5, 9  ;;  %v13110_v41 = vshrl.u32 %v12977_v49, 16 }
 0x80d   : > { %v13055_v35 = vrot.slane %v13054_v22, 4  ;;  %v13113_v22 = vshll.u32 %v12977_v49, 16 }
 0x80f   : > { %v13060_v56 = vsel %vm18638_vm7, %v13055_v35, %v13059_v34 }
 0x812   : > { %15988 = vmatmul.mubr.msk.bf16.gmra.mrb[12].mxu0 %vm600_vm1, %v16696_v58  ;;  %v22263_v58 = vrot.slane %v13071_v21, 5  ;;  %v12980_v21 = vld [vmem:[#allocation4 + $0x54] sm:$0xf] }
 0x813   : > { %15991 = vmatprep.mubr.msk.bf16.mxu0 %vm600_vm1, %v16697_v48  ;;  %v13077_v48 = vrot.slane %v13075_v2, 4  ;;  %v23296_v2 = vld [vmem:[#allocation31_spill] sm:$0xff] }
 0x814   : > { %v13147_v3 = vshrl.u32 %v23296_v2, 16 }
 0x815   : > { %v13078_v46 = vor.u32 %v13077_v48, %v22263_v58 }
 0x81a   : > { %15992 = vmatmul.mubr.msk.bf16.gmra.mrb[16].mxu0 %vm600_vm1, %v16698_v33  ;;  %v13064_v33 = vrot.slane %v13062_v62, 4  ;;  %v13143_v62 = vshll.u32 %v23296_v2, 16 }
 0x81b   : > { %15995 = vmatprep.mubr.msk.bf16.mxu0 %vm600_vm1, %v16699_v37  ;;  %v23293_v37 = vld [vmem:[#allocation5_spill] sm:$0xff] }
 0x81c   : > { %v13081_v47 = vshll.u32 %v23293_v37, 16  ;;  %v13068_v32 = vor.u32 %v13067_v15, %v13064_v33  ;;  %v13125_v15 = vrot.slane %v13123_v7, 4  ;;  %v13134_v37 = vshrl.u32 %v12980_v21, 16 }
 0x81e   : > { %v13083_v43 = vrot.slane %v13081_v47, 5  ;;  %v13137_v47 = vshll.u32 %v12980_v21, 16  ;;  %v13069_v0 = vrot.slane %v13068_v32, 4  ;;  %v13102_v32 = vor.u32 %v13101_v12, %v22285_v17  ;;  %v23298_v21 = vld [vmem:[#allocation30_spill] sm:$0xff] }
 0x81f   : > { %v13129_v2 = vshll.u32 %v23298_v21, 16 }
 0x820   : > { %v13074_v35 = vsel %vm18638_vm7, %v13069_v0, %v22263_v58 }
 0x822   : > { %15996 = vmatmul.mubr.msk.bf16.gmra.mrb[20].mxu0 %vm600_vm1, %v16700_v57  ;;  %v13026_v57 = vsel %vm18638_vm7, %v13021_v23, %v13025_v45  ;;  %v22275_v45 = vld [vmem:[#allocation4 + $0xd0] sm:$0xf]  ;;  %v13079_v23 = vrot.slane %v13078_v46, 4  ;;  %v13050_v46 = vsel %vm18638_vm7, %v13045_v53, %v22255_v55  ;;  %v13136_v55 = vrot.slane %v13134_v37, 4 }
 0x823   : > { %15999 = vmatprep.mubr.msk.bf16.mxu0 %vm600_vm1, %v16701_v30  ;;  %v13089_v30 = vshll.u32 %v12974_v36, 16  ;;  %v15027_v6 = vcombine.low %v13026_v57, %v13036_v31  ;;  %v13862_v25 = vrot.slane %v22275_v45, 5  ;;  %v16706_v36 = vld [vmem:[#allocation4 + $0xcc] sm:$0xff]   ;;  %v13149_v57 = vrot.slane %v13147_v3, 4 }
 0x824   : > { %v13084_v49 = vsel %vm18638_vm7, %v13079_v23, %v13083_v43  ;;  %v13139_v53 = vrot.slane %v13137_v47, 5  ;;  %v15028_v34 = vcombine.low %v13050_v46, %v13060_v56  ;;  %v23299_v3 = vld [vmem:[#allocation32_spill] sm:$0xff]  ;;  %v23300_v23 = vld [vmem:[#allocation9_spill] sm:$0xff]  ;;  %v13191_v46 = vshll.u32 %v21884_v18, 16 }
 0x825   : > { %v13091_v42 = vrot.slane %v13089_v30, 5  ;;  %v13864_v24 = vrot.slane %v13862_v25, 4  ;;  %v22291_v33 = vsel %vm19147_vm5, %v15074_v51, %v13862_v25  ;;  %v12983_v30 = vld [vmem:[#allocation4 + $0x60] sm:$0xf]  ;;  %v15029_v43 = vcombine.low %v13074_v35, %v13084_v49 }
 0x826   : > { %v13158_v5 = vshrl.u32 %v12983_v30, 16  ;;  %v13161_v25 = vshll.u32 %v12983_v30, 16  ;;  %v13153_v51 = vshll.u32 %v23299_v3, 16  ;;  %v13167_v12 = vshll.u32 %v23300_v23, 16 }
 0x827   : > { %v13092_v8 = vor.u32 %v13091_v42, %v13088_v26  ;;  %v13107_v42 = vrot.slane %v13105_v10, 5  ;;  %v13131_v30 = vrot.slane %v13129_v2, 5  ;;  %v13195_v56 = vshrl.u32 %v21884_v18, 16 }
 0x828   : > { %v13160_v58 = vrot.slane %v13158_v5, 4  ;;  %v13163_v47 = vrot.slane %v13161_v25, 5  ;;  %v22329_v61 = vrot.slane %v13167_v12, 5 }
 0x829   : > { %v13197_v35 = vrot.slane %v13195_v56, 4  ;;  %v23304_v56 = vld [vmem:[#allocation63_spill] sm:$0xff] }
 0x82a   : > { %16000 = vmatmul.mubr.msk.bf16.gmra.mrb[24].mxu0 %vm600_vm1, %v16702_v9  ;;  %v13119_v9 = vshll.u32 %v23295_v19, 16  ;;  %v13112_v19 = vrot.slane %v13110_v41, 4 }
 0x82b   : > { %16003 = vmatprep.mubr.msk.bf16.mxu0 %vm600_vm1, %v16703_v44  ;;  %v13865_v44 = vrot.slane %v22277_v20, 5 }
 0x82c   : > { %v22287_v48 = vrot.slane %v13119_v9, 5  ;;  %v13115_v9 = vrot.slane %v13113_v22, 5  ;;  %v13140_v22 = vor.u32 %v13139_v53, %v13136_v55  ;;  %v23301_v55 = vld [vmem:[#allocation51_spill] sm:$0xff] }
 0x82d   : > { %v22295_v31 = vsel %vm19147_vm5, %v13864_v24, %v13865_v44  ;;  %v13093_v44 = vrot.slane %v13092_v8, 4  ;;  %v13171_v24 = vshrl.u32 %v23300_v23, 16  ;;  %v13155_v8 = vrot.slane %v13153_v51, 5 }
 0x82e   : > { %v13126_v7 = vor.u32 %v13125_v15, %v22287_v48  ;;  %v13966_v15 = vsel %vm613_vm0, %v22236_v63, 0  ;;  %v12989_v63 = vld [vmem:[#allocation4 + $0x78] sm:$0xf]  ;;  %v13177_v53 = vshll.u32 %v23301_v55, 16 }
 0x82f   : > { %v13173_v10 = vrot.slane %v13171_v24, 4  ;;  %v13209_v25 = vshll.u32 %v12989_v63, 16 }
 0x830   : > { %v13127_v41 = vrot.slane %v13126_v7, 4  ;;  %v13164_v7 = vor.u32 %v13163_v47, %v13160_v58  ;;  %v13179_v24 = vrot.slane %v13177_v53, 5  ;;  %v12995_v47 = vld [vmem:[#allocation4 + $0x90] sm:$0xf] }
 0x832   : > { %16004 = vmatmul.mubr.msk.bf16.gmra.mrb[28].mxu0 %vm600_vm1, %v16704_v27  ;;  %v22297_v27 = vrot.slane %v13143_v62, 5  ;;  %v12986_v62 = vld [vmem:[#allocation4 + $0x6c] sm:$0xf]  ;;  %v13165_v12 = vrot.slane %v13164_v7, 4 }
 0x833   : > { %16007 = vmatprep.mubr.msk.bf16.mxu0 %vm600_vm1, %v16705_v50  ;;  %v15091_v50 = vcombine.low %v22291_v33, %v22295_v31  ;;  %v13182_v0 = vshrl.u32 %v12986_v62, 16  ;;  %v13185_v49 = vshll.u32 %v12986_v62, 16 }
 0x834   : > { %v13150_v26 = vor.u32 %v13149_v57, %v22297_v27  ;;  %v13098_v57 = vsel %vm18638_vm7, %v13093_v44, %v22285_v17 }
 0x835   : > { %v13184_v5 = vrot.slane %v13182_v0, 4  ;;  %v13187_v44 = vrot.slane %v13185_v49, 5  ;;  %v13254_v49 = vshrl.u32 %v12995_v47, 16 }
 0x836   : > { %v13151_v37 = vrot.slane %v13150_v26, 4  ;;  %v13206_v26 = vshrl.u32 %v12989_v63, 16  ;;  %v13257_v63 = vshll.u32 %v12995_v47, 16 }
 0x838   : > { %v13156_v18 = vsel %vm18638_vm7, %v13151_v37, %v13155_v8  ;;  %v13211_v37 = vrot.slane %v13209_v25, 5  ;;  %v13239_v8 = vshll.u32 %v23304_v56, 16 }
 0x83a   : > { %16008 = vmatmul.mubr.msk.bf16.gmra.mrb[32].mxu0 %vm600_vm1, %v16706_v36  ;;  %v13116_v36 = vor.u32 %v13115_v9, %v13112_v19  ;;  %v13132_v19 = vsel %vm18638_vm7, %v13127_v41, %v13131_v30  ;;  %v13141_v9 = vrot.slane %v13140_v22, 4  ;;  %v23303_v22 = vld [vmem:[#allocation55_spill] sm:$0xff] }
 0x83b   : > { %16013 = vmatprep.mubr.msk.bf16.mxu0 %vm600_vm1, %v15027_v6  ;;  %v13103_v6 = vrot.slane %v13102_v32, 4  ;;  %v13201_v58 = vshll.u32 %v23303_v22, 16 }
 0x83c   : > { %v13117_v17 = vrot.slane %v13116_v36, 4  ;;  %v13146_v3 = vsel %vm18638_vm7, %v13141_v9, %v22297_v27  ;;  %v12992_v36 = vld [vmem:[#allocation4 + $0x84] sm:$0xf]  ;;  %v13170_v9 = vsel %vm18638_vm7, %v13165_v12, %v22329_v61 }
 0x83d   : > { %v13108_v32 = vsel %vm18638_vm7, %v13103_v6, %v13107_v42  ;;  %v23302_v42 = vld [vmem:[#allocation59_spill] sm:$0xff]  ;;  %v15032_v23 = vcombine.low %v13146_v3, %v13156_v18  ;;  %v13230_v27 = vshrl.u32 %v12992_v36, 16  ;;  %v13203_v7 = vrot.slane %v13201_v58, 5  ;;  %v12998_v3 = vld [vmem:[#allocation4 + $0x9c] sm:$0xf] }
 0x83e   : > { %v13215_v21 = vshll.u32 %v23302_v42, 16  ;;  %v13219_v2 = vshrl.u32 %v23302_v42, 16  ;;  %v15030_v62 = vcombine.low %v13098_v57, %v13108_v32  ;;  %v13122_v6 = vsel %vm18638_vm7, %v13117_v17, %v22287_v48  ;;  %v23305_v32 = vld [vmem:[#allocation66_spill] sm:$0xff] }
 0x83f   : > { %v15031_v51 = vcombine.low %v13122_v6, %v13132_v19  ;;  %v13188_v48 = vor.u32 %v13187_v44, %v13184_v5  ;;  %v13263_v17 = vshll.u32 %v23305_v32, 16  ;;  %v13267_v19 = vshrl.u32 %v23305_v32, 16 }
 0x840   : > { %v13217_v57 = vrot.slane %v13215_v21, 5  ;;  %v13221_v30 = vrot.slane %v13219_v2, 4  ;;  %v22364_v42 = vrot.slane %v13239_v8, 5  ;;  %v13256_v2 = vrot.slane %v13254_v49, 4  ;;  %v13001_v8 = vld [vmem:[#allocation4 + $0xa8] sm:$0xf] }
 0x841   : > { %v13189_v5 = vrot.slane %v13188_v48, 4  ;;  %v22366_v6 = vrot.slane %v13263_v17, 5  ;;  %v13273_v49 = vshll.u32 %v21959_v40, 16  ;;  %v13315_v32 = vshrl.u32 %v21980_v28, 16 }
 0x842   : > { %16014 = vmatmul.mubr.msk.bf16.vlgmr.msra.gmra.mrb[4].mxu0 %vm600_vm1, %v15028_v34  ;;  %v22339_v34 = vrot.slane %v13191_v46, 5  ;;  %v13233_v46 = vshll.u32 %v12992_v36, 16 }
 0x843   : > { %16046 = vmatpush3.bf16.msra.mxu0 %v13966_v15  ;;  %16017 = vmatprep.mubr.msk.bf16.mxu0 %vm600_vm1, %v15029_v43  ;;  %v13174_v43 = vor.u32 %v13173_v10, %v22329_v61  ;;  %v13208_v15 = vrot.slane %v13206_v26, 4  ;;  %v13243_v10 = vshrl.u32 %v23304_v56, 16  ;;  %v23306_v26 = vld [vmem:[#allocation60_spill] sm:$0xff]  ;;  %v13269_v61 = vrot.slane %v13267_v19, 4 }
 0x844   : > { %v13198_v41 = vor.u32 %v13197_v35, %v22339_v34  ;;  %v13222_v35 = vor.u32 %v13221_v30, %v13217_v57  ;;  %v13225_v25 = vshll.u32 %v23306_v26, 16  ;;  %v13235_v44 = vrot.slane %v13233_v46, 5 }
 0x845   : > { %v13175_v0 = vrot.slane %v13174_v43, 4  ;;  %v13212_v55 = vor.u32 %v13211_v37, %v13208_v15  ;;  %v13232_v43 = vrot.slane %v13230_v27, 4  ;;  %v13245_v21 = vrot.slane %v13243_v10, 4  ;;  %v23307_v27 = vld [vmem:[#allocation65_spill] sm:$0xff] }
 0x846   : > { %v13199_v18 = vrot.slane %v13198_v41, 4  ;;  %v13194_v36 = vsel %vm18638_vm7, %v13189_v5, %v22339_v34  ;;  %v13223_v41 = vrot.slane %v13222_v35, 4  ;;  %v13278_v15 = vshrl.u32 %v12998_v3, 16 }
 0x847   : > { %v13180_v53 = vsel %vm18638_vm7, %v13175_v0, %v13179_v24  ;;  %v13213_v24 = vrot.slane %v13212_v55, 4  ;;  %v13236_v22 = vor.u32 %v13235_v44, %v13232_v43  ;;  %v13246_v58 = vor.u32 %v13245_v21, %v22364_v42 }
 0x848   : > { %v13204_v12 = vsel %vm18638_vm7, %v13199_v18, %v13203_v7  ;;  %v13281_v37 = vshll.u32 %v12998_v3, 16  ;;  %v13227_v0 = vrot.slane %v13225_v25, 5  ;;  %v13270_v30 = vor.u32 %v13269_v61, %v22366_v6 }
 0x849   : > { %v15034_v47 = vcombine.low %v13194_v36, %v13204_v12  ;;  %v13249_v46 = vshll.u32 %v23307_v27, 16  ;;  %v13287_v34 = vshll.u32 %v21966_v4, 16  ;;  %v13291_v56 = vshrl.u32 %v21966_v4, 16  ;;  %v16757_v27 = vld [vmem:[#allocation4 + $0xb0] sm:$0x1] }
 0x84a   : > { %16018 = vmatmul.mubr.msk.bf16.gmra.mrb[8].mxu0 %vm600_vm1, %v15030_v62  ;;  %v13259_v62 = vrot.slane %v13257_v63, 5  ;;  %v13228_v10 = vsel %vm18638_vm7, %v13223_v41, %v13227_v0  ;;  %v13311_v63 = vshll.u32 %v21980_v28, 16  ;;  %v13237_v17 = vrot.slane %v13236_v22, 4  ;;  %v13004_v28 = vld [vmem:[#allocation4 + $0xb4] sm:$0xf]  ;;  %v23308_v41 = vld [vmem:[#allocation73_spill] sm:$0xff] }
 0x84b   : > { %16021 = vmatprep.mubr.msk.bf16.mxu0 %vm600_vm1, %v15031_v51  ;;  %v15033_v51 = vcombine.low %v13170_v9, %v13180_v53  ;;  %v13247_v19 = vrot.slane %v13246_v58, 4  ;;  %v13280_v9 = vrot.slane %v13278_v15, 4  ;;  %v13271_v7 = vrot.slane %v13270_v30, 4  ;;  %v13007_v58 = vld [vmem:[#allocation4 + $0xc0] sm:$0xf] }
 0x84c   : > { %v13260_v48 = vor.u32 %v13259_v62, %v13256_v2  ;;  %v13302_v55 = vshrl.u32 %v13001_v8, 16  ;;  %v13305_v53 = vshll.u32 %v13001_v8, 16  ;;  %v13251_v4 = vrot.slane %v13249_v46, 5  ;;  %v13010_v8 = vld [vmem:[#allocation4 + $0xcc] sm:$0xf] }
 0x84d   : > { %v22387_v35 = vrot.slane %v13287_v34, 5  ;;  %v13293_v26 = vrot.slane %v13291_v56, 4  ;;  %v13275_v40 = vrot.slane %v13273_v49, 5  ;;  %v22390_v25 = vrot.slane %v13311_v63, 5 }
 0x84e   : > { %v13261_v18 = vrot.slane %v13260_v48, 4  ;;  %v13317_v43 = vrot.slane %v13315_v32, 4  ;;  %v13242_v44 = vsel %vm18638_vm7, %v13237_v17, %v22364_v42  ;;  %v13252_v21 = vsel %vm18638_vm7, %v13247_v19, %v13251_v4 }
 0x84f   : > { %v13297_v62 = vshll.u32 %v21968_v13, 16  ;;  %v13276_v3 = vsel %vm18638_vm7, %v13271_v7, %v13275_v40  ;;  %v13307_v12 = vrot.slane %v13305_v53, 5  ;;  %v13326_v36 = vshrl.u32 %v13004_v28, 16 }
 0x850   : > { %v13266_v61 = vsel %vm18638_vm7, %v13261_v18, %v22366_v6  ;;  %v13335_v42 = vshll.u32 %v23308_v41, 16  ;;  %v13339_v22 = vshrl.u32 %v23308_v41, 16  ;;  %v13318_v15 = vor.u32 %v13317_v43, %v22390_v25  ;;  %v16759_v41 = vld [vmem:[#allocation4 + $0xc8] sm:$0x1] }
 0x851   : > { %v13329_v13 = vshll.u32 %v13004_v28, 16  ;;  %v13363_v6 = vshrl.u32 %v22008_v11, 16  ;;  %v15037_v0 = vcombine.low %v13266_v61, %v13276_v3  ;;  %v13299_v30 = vrot.slane %v13297_v62, 5 }
 0x852   : > { %16022 = vmatmul.mubr.msk.bf16.gmra.mrb[12].mxu0 %vm600_vm1, %v15032_v23  ;;  %v13218_v23 = vsel %vm18638_vm7, %v13213_v24, %v13217_v57  ;;  %v13283_v57 = vrot.slane %v13281_v37, 5  ;;  %v13294_v24 = vor.u32 %v13293_v26, %v22387_v35  ;;  %v13359_v37 = vshll.u32 %v22008_v11, 16 }
 0x853   : > { %16025 = vmatprep.mubr.msk.bf16.mxu0 %vm600_vm1, %v15033_v51  ;;  %v15035_v5 = vcombine.low %v13218_v23, %v13228_v10  ;;  %v13304_v51 = vrot.slane %v13302_v55, 4  ;;  %v13321_v46 = vshll.u32 %v16757_v27, 16  ;;  %v13350_v34 = vshrl.u32 %v13007_v58, 16 }
 0x854   : > { %v13284_v2 = vor.u32 %v13283_v57, %v13280_v9  ;;  %v13353_v56 = vshll.u32 %v13007_v58, 16  ;;  %v13295_v10 = vrot.slane %v13294_v24, 4  ;;  %v13328_v49 = vrot.slane %v13326_v36, 4 }
 0x855   : > { %v13308_v23 = vor.u32 %v13307_v12, %v13304_v51  ;;  %v13337_v63 = vrot.slane %v13335_v42, 5  ;;  %v13341_v32 = vrot.slane %v13339_v22, 4  ;;  %v13319_v17 = vrot.slane %v13318_v15, 4 }
 0x856   : > { %v13285_v48 = vrot.slane %v13284_v2, 4  ;;  %v13331_v19 = vrot.slane %v13329_v13, 5  ;;  %v13361_v9 = vrot.slane %v13359_v37, 5  ;;  %v13365_v11 = vrot.slane %v13363_v6, 4  ;;  %v16758_v2 = vld [vmem:[#allocation4 + $0xbc] sm:$0x1] }
 0x857   : > { %v13374_v57 = vshrl.u32 %v13010_v8, 16  ;;  %v13377_v18 = vshll.u32 %v13010_v8, 16  ;;  %v13383_v7 = vshll.u32 %v22275_v45, 16  ;;  %v13387_v55 = vshrl.u32 %v22275_v45, 16 }
 0x858   : > { %v13309_v53 = vrot.slane %v13308_v23, 4  ;;  %v13352_v4 = vrot.slane %v13350_v34, 4  ;;  %v13355_v26 = vrot.slane %v13353_v56, 5  ;;  %v13290_v40 = vsel %vm18638_vm7, %v13285_v48, %v22387_v35 }
 0x859   : > { %v13300_v43 = vsel %vm18638_vm7, %v13295_v10, %v13299_v30  ;;  %v13342_v28 = vor.u32 %v13341_v32, %v13337_v63  ;;  %v13345_v62 = vshll.u32 %v16758_v2, 16  ;;  %v13366_v61 = vor.u32 %v13365_v11, %v13361_v9  ;;  %v23327_v2 = vld [vmem:[#allocation67_spill] sm:$0xff] }
 0x85a   : > { %16026 = vmatmul.mubr.msk.bf16.gmra.mrb[16].mxu0 %vm600_vm1, %v15034_v47  ;;  %v15036_v47 = vcombine.low %v13242_v44, %v13252_v21  ;;  %v13332_v21 = vor.u32 %v13331_v19, %v13328_v49  ;;  %v13376_v45 = vrot.slane %v13374_v57, 4  ;;  %v13379_v3 = vrot.slane %v13377_v18, 5  ;;  %v23310_v19 = vld [vmem:[#allocation29_spill] sm:$0xff]  ;;  %v23313_v57 = vld [vmem:[#allocation34_spill] sm:$0xff] }
 0x85b   : > { %16029 = vmatprep.mubr.msk.bf16.mxu0 %vm600_vm1, %v15035_v5  ;;  %v13323_v5 = vrot.slane %v13321_v46, 5  ;;  %v13385_v51 = vrot.slane %v13383_v7, 5  ;;  %v13389_v12 = vrot.slane %v13387_v55, 4  ;;  %v15038_v24 = vcombine.low %v13290_v40, %v13300_v43  ;;  %v23315_v7 = vld [vmem:[#allocation50_spill] sm:$0xff]  ;;  %v23322_v40 = vld [vmem:[#allocation61_spill] sm:$0xff] }
 0x85c   : > { %v13314_v35 = vsel %vm18638_vm7, %v13309_v53, %v22390_v25  ;;  %v13356_v36 = vor.u32 %v13355_v26, %v13352_v4  ;;  %v13369_v42 = vshll.u32 %v16759_v41, 16  ;;  %v13343_v58 = vrot.slane %v13342_v28, 4  ;;  %v23316_v55 = vld [vmem:[#allocation6_spill] sm:$0xff]  ;;  %v23321_v26 = vld [vmem:[#allocation57_spill] sm:$0xff]  ;;  %v23337_v41 = vld [vmem:[#allocation75_spill] sm:$0xff] }
 0x85d   : > { %v13324_v44 = vsel %vm18638_vm7, %v13319_v17, %v13323_v5  ;;  %v13333_v15 = vrot.slane %v13332_v21, 4  ;;  %v13367_v13 = vrot.slane %v13366_v61, 4  ;;  %v13347_v37 = vrot.slane %v13345_v62, 5  ;;  %v23319_v5 = vld [vmem:[#allocation58_spill] sm:$0xff]  ;;  %v23328_v62 = vld [vmem:[#allocation68_spill] sm:$0xff] }
 0x85e   : > { %v15039_v22 = vcombine.low %v13314_v35, %v13324_v44  ;;  %v13380_v6 = vor.u32 %v13379_v3, %v13376_v45  ;;  %v13357_v48 = vrot.slane %v13356_v36, 4  ;;  %v13371_v30 = vrot.slane %v13369_v42, 5  ;;  %v23324_v28 = vld [vmem:[#allocation62_spill] sm:$0xff]  ;;  %v23325_v44 = vld [vmem:[#allocation64_spill] sm:$0xff]  ;;  %v23330_v45 = vld [vmem:[#allocation69_spill] sm:$0xff] }
 0x85f   : > { %v13348_v25 = vsel %vm18638_vm7, %v13343_v58, %v13347_v37  ;;  %v13338_v27 = vsel %vm18638_vm7, %v13333_v15, %v13337_v63  ;;  %v23309_v63 = vld [vmem:[#allocation28_spill] sm:$0xff]  ;;  %v23317_v53 = vcombine.low %v23315_v7, %v23316_v55  ;;  %v23320_v4 = vcombine.low %v23318_v39, %v23319_v5  ;;  %v23331_v3 = vld [vmem:[#allocation70_spill] sm:$0xff]  ;;  %v23340_v58 = vld [vmem:[#allocation77_spill] sm:$0xff] }
 0x860   : > { %v13372_v23 = vsel %vm18638_vm7, %v13367_v13, %v13371_v30  ;;  %v13381_v46 = vrot.slane %v13380_v6, 4  ;;  %v15040_v8 = vcombine.low %v13338_v27, %v13348_v25  ;;  %v13362_v10 = vsel %vm18638_vm7, %v13357_v48, %v13361_v9  ;;  %v23312_v9 = vld [vmem:[#allocation33_spill] sm:$0xff]  ;;  %v23336_v36 = vld [vmem:[#allocation74_spill] sm:$0xff] }
 0x861   : > { %v15041_v49 = vcombine.low %v13362_v10, %v13372_v23  ;;  %v23311_v11 = vcombine.low %v23309_v63, %v23310_v19  ;;  %v23314_v18 = vcombine.low %v23312_v9, %v23313_v57  ;;  %v23323_v43 = vcombine.low %v23321_v26, %v23322_v40 }
 0x862   : > { %16030 = vmatmul.mubr.msk.bf16.gmra.mrb[20].mxu0 %vm600_vm1, %v15036_v47  ;;  %v13390_v47 = vor.u32 %v13389_v12, %v13385_v51  ;;  %v23326_v21 = vcombine.low %v23324_v28, %v23325_v44  ;;  %v23329_v61 = vcombine.low %v23327_v2, %v23328_v62  ;;  %v23333_v12 = vld [vmem:[#allocation71_spill] sm:$0xff]  ;;  %v23338_v42 = vcombine.low %v23336_v36, %v23337_v41 }
 0x863   : > { %16033 = vmatprep.mubr.msk.bf16.mxu0 %vm600_vm1, %v15037_v0  ;;  %v13393_v0 = vshll.u32 %v22277_v20, 16  ;;  %v13386_v20 = vsel %vm18638_vm7, %v13381_v46, %v13385_v51  ;;  %v23332_v51 = vcombine.low %v23330_v45, %v23331_v3  ;;  %v23342_v13 = vcombine.low %v22026_v29, %v22031_v54  ;;  %v22509_v54 = vld [vmem:[%s22623_s7] ss:$0 sm:$0xff] }
 0x864   : > { %v13391_v34 = vrot.slane %v13390_v47, 4  ;;  %v23343_v37 = vcombine.low %v22048_v52, %v22052_v38  ;;  %v23344_v6 = vcombine.low %v22058_v1, %v22062_v60 }
 0x865   : > { %v13395_v56 = vrot.slane %v13393_v0, 5 }
 0x867   : > { %v13396_v32 = vsel %vm18638_vm7, %v13391_v34, %v13395_v56 }
 0x868   : > { %v15042_v17 = vcombine.low %v13386_v20, %v13396_v32 }
 0x86a   : > { %16034 = vmatmul.mubr.msk.bf16.gmra.mrb[24].mxu0 %vm600_vm1, %v15038_v24  ;;  %v23334_v24 = vld [vmem:[#allocation72_spill] sm:$0xff] }
 0x86b   : > { %16037 = vmatprep.mubr.msk.bf16.mxu0 %vm600_vm1, %v15039_v22  ;;  %v23335_v35 = vcombine.low %v23333_v12, %v23334_v24  ;;  %v23339_v22 = vld [vmem:[#allocation76_spill] sm:$0xff] }
 0x86c   : > { %v23341_v15 = vcombine.low %v23339_v22, %v23340_v58 }
 0x872   : > { %16038 = vmatmul.mubr.msk.bf16.gmra.mrb[28].mxu0 %vm600_vm1, %v15040_v8 }
 0x873   : > { %16041 = vmatprep.mubr.msk.bf16.mxu0 %vm600_vm1, %v15041_v49 }
 0x87a   : > { %16042 = vmatmul.mubr.msk.bf16.gmra.mrb[32].mxu0 %vm600_vm1, %v15042_v17 }
 0x87b   : > { %16047 = vmatprep.mubr.msk.bf16.mxu0 %vm600_vm1, %v23311_v11 }
 0x882   : > { %16048 = vmatmul.mubr.msk.bf16.vlgmr.msra.gmra.mrb[4].mxu0 %vm600_vm1, %v23314_v18 }
 0x883   : > { %16051 = vmatprep.mubr.msk.bf16.mxu0 %vm600_vm1, %v23317_v53 }
 0x88a   : > { %16052 = vmatmul.mubr.msk.bf16.gmra.mrb[8].mxu0 %vm600_vm1, %v23320_v4 }
 0x88b   : > { %16055 = vmatprep.mubr.msk.bf16.mxu0 %vm600_vm1, %v23323_v43 }
 0x892   : > { %16056 = vmatmul.mubr.msk.bf16.gmra.mrb[12].mxu0 %vm600_vm1, %v23326_v21 }
 0x893   : > { %16059 = vmatprep.mubr.msk.bf16.mxu0 %vm600_vm1, %v23329_v61 }
 0x89a   : > { %16060 = vmatmul.mubr.msk.bf16.gmra.mrb[16].mxu0 %vm600_vm1, %v23332_v51 }
 0x89b   : > { %16063 = vmatprep.mubr.msk.bf16.mxu0 %vm600_vm1, %v23335_v35 }
 0x8a2   : > { %16064 = vmatmul.mubr.msk.bf16.gmra.mrb[20].mxu0 %vm600_vm1, %v23338_v42 }
 0x8a3   : > { %16067 = vmatprep.mubr.msk.bf16.mxu0 %vm600_vm1, %v23341_v15 }
 0x8aa   : > { %16068 = vmatmul.mubr.msk.bf16.gmra.mrb[24].mxu0 %vm600_vm1, %v23342_v13 }
 0x8ab   : > { %16071 = vmatprep.mubr.msk.bf16.mxu0 %vm600_vm1, %v15088_v16 }
 0x8b2   : > { %16072 = vmatmul.mubr.msk.bf16.gmra.mrb[28].mxu0 %vm600_vm1, %v23343_v37 }
 0x8b3   : > { %16075 = vmatprep.mubr.msk.bf16.mxu0 %vm600_vm1, %v23344_v6 }
 0x8ba   : > { %16076 = vmatmul.mubr.msk.bf16.gmra.mrb[32].mxu0 %vm600_vm1, %v15091_v50 }
 0x955   : > { %v16049_v29 = vpop.f32.mrb[4].mxu0 }
 0x956   : > { %v14170_v14 = vadd.f32 %v16049_v29, %v22509_v54  ;;  %v14002_v38 = vpop.f32.mrb[5].mxu0 }
 0x957   : > { %v14168_v59 = vadd.f32 %v22509_v54, %v14002_v38  ;;  %v16050_v16 = vpop.f32.mrb[6].mxu0 }
 0x958   : > { %v14202_v52 = vmax.f32 %v14170_v14, 0.0  ;;  %v14171_v1 = vadd.f32 %v16050_v16, %v22509_v54  ;;  %v14005_v60 = vpop.f32.mrb[7].mxu0 }
 0x959   : > { %v14200_v33 = vmax.f32 %v14168_v59, 0.0  ;;  %v14169_v31 = vadd.f32 %v22509_v54, %v14005_v60 }
 0x95a   : > { %14234 = vst.msk [vmem:[%s22516_s10 + $0x10] sm:$0xff] %vm600_vm1, %v14202_v52  ;;  %v14203_v50 = vmax.f32 %v14171_v1, 0.0 }
 0x95b   : > { %14232 = vst.msk [vmem:[%s22516_s10] sm:$0xff] %vm600_vm1, %v14200_v33  ;;  %v14201_v47 = vmax.f32 %v14169_v31, 0.0 }
 0x95c   : > { %14235 = vst.msk [vmem:[%s22516_s10 + $0x18] sm:$0xff] %vm600_vm1, %v14203_v50 }
 0x95d   : > { %14233 = vst.msk [vmem:[%s22516_s10 + $0x8] sm:$0xff] %vm600_vm1, %v14201_v47  ;;  %v16053_v0 = vpop.f32.mrb[8].mxu0 }
 0x95e   : > { %v14174_v48 = vadd.f32 %v16053_v0, %v22509_v54  ;;  %v14018_v30 = vpop.f32.mrb[9].mxu0 }
 0x95f   : > { %v14172_v25 = vadd.f32 %v22509_v54, %v14018_v30  ;;  %v16054_v23 = vpop.f32.mrb[10].mxu0 }
 0x960   : > { %v14206_v27 = vmax.f32 %v14174_v48, 0.0  ;;  %v14175_v46 = vadd.f32 %v16054_v23, %v22509_v54  ;;  %v14021_v34 = vpop.f32.mrb[11].mxu0 }
 0x961   : > { %v14204_v56 = vmax.f32 %v14172_v25, 0.0  ;;  %v14173_v8 = vadd.f32 %v22509_v54, %v14021_v34 }
 0x962   : > { %14238 = vst.msk [vmem:[%s22516_s10 + $0x30] sm:$0xff] %vm600_vm1, %v14206_v27  ;;  %v14207_v10 = vmax.f32 %v14175_v46, 0.0 }
 0x963   : > { %14236 = vst.msk [vmem:[%s22516_s10 + $0x20] sm:$0xff] %vm600_vm1, %v14204_v56  ;;  %v14205_v49 = vmax.f32 %v14173_v8, 0.0 }
 0x964   : > { %14239 = vst.msk [vmem:[%s22516_s10 + $0x38] sm:$0xff] %vm600_vm1, %v14207_v10 }
 0x965   : > { %14237 = vst.msk [vmem:[%s22516_s10 + $0x28] sm:$0xff] %vm600_vm1, %v14205_v49  ;;  %v16057_v20 = vpop.f32.mrb[12].mxu0 }
 0x966   : > { %v14178_v32 = vadd.f32 %v16057_v20, %v22509_v54  ;;  %v14034_v17 = vpop.f32.mrb[13].mxu0 }
 0x967   : > { %v14176_v63 = vadd.f32 %v22509_v54, %v14034_v17  ;;  %v16058_v19 = vpop.f32.mrb[14].mxu0 }
 0x968   : > { %v14210_v11 = vmax.f32 %v14178_v32, 0.0  ;;  %v14179_v9 = vadd.f32 %v16058_v19, %v22509_v54  ;;  %v14037_v57 = vpop.f32.mrb[15].mxu0 }
 0x969   : > { %v14208_v18 = vmax.f32 %v14176_v63, 0.0  ;;  %v14177_v7 = vadd.f32 %v22509_v54, %v14037_v57 }
 0x96a   : > { %14242 = vst.msk [vmem:[%s22516_s10 + $0x50] sm:$0xff] %vm600_vm1, %v14210_v11  ;;  %v14211_v55 = vmax.f32 %v14179_v9, 0.0 }
 0x96b   : > { %14240 = vst.msk [vmem:[%s22516_s10 + $0x40] sm:$0xff] %vm600_vm1, %v14208_v18  ;;  %v14209_v53 = vmax.f32 %v14177_v7, 0.0 }
 0x96c   : > { %14243 = vst.msk [vmem:[%s22516_s10 + $0x58] sm:$0xff] %vm600_vm1, %v14211_v55 }
 0x96d   : > { %14241 = vst.msk [vmem:[%s22516_s10 + $0x48] sm:$0xff] %vm600_vm1, %v14209_v53  ;;  %v16061_v39 = vpop.f32.mrb[16].mxu0 }
 0x96e   : > { %v14182_v5 = vadd.f32 %v16061_v39, %v22509_v54  ;;  %v14050_v4 = vpop.f32.mrb[17].mxu0 }
 0x96f   : > { %v14180_v26 = vadd.f32 %v22509_v54, %v14050_v4  ;;  %v16062_v40 = vpop.f32.mrb[18].mxu0 }
 0x970   : > { %v14214_v43 = vmax.f32 %v14182_v5, 0.0  ;;  %v14183_v28 = vadd.f32 %v16062_v40, %v22509_v54  ;;  %v14053_v44 = vpop.f32.mrb[19].mxu0 }
 0x971   : > { %v14212_v21 = vmax.f32 %v14180_v26, 0.0  ;;  %v14181_v2 = vadd.f32 %v22509_v54, %v14053_v44 }
 0x972   : > { %14246 = vst.msk [vmem:[%s22516_s10 + $0x70] sm:$0xff] %vm600_vm1, %v14214_v43  ;;  %v14215_v62 = vmax.f32 %v14183_v28, 0.0 }
 0x973   : > { %14244 = vst.msk [vmem:[%s22516_s10 + $0x60] sm:$0xff] %vm600_vm1, %v14212_v21  ;;  %v14213_v61 = vmax.f32 %v14181_v2, 0.0 }
 0x974   : > { %14247 = vst.msk [vmem:[%s22516_s10 + $0x78] sm:$0xff] %vm600_vm1, %v14215_v62 }
 0x975   : > { %14245 = vst.msk [vmem:[%s22516_s10 + $0x68] sm:$0xff] %vm600_vm1, %v14213_v61  ;;  %v16065_v45 = vpop.f32.mrb[20].mxu0 }
 0x976   : > { %v14186_v3 = vadd.f32 %v16065_v45, %v22509_v54  ;;  %v14066_v51 = vpop.f32.mrb[21].mxu0 }
 0x977   : > { %v14184_v12 = vadd.f32 %v22509_v54, %v14066_v51  ;;  %v16066_v24 = vpop.f32.mrb[22].mxu0 }
 0x978   : > { %v14218_v35 = vmax.f32 %v14186_v3, 0.0  ;;  %v14187_v36 = vadd.f32 %v16066_v24, %v22509_v54  ;;  %v14069_v41 = vpop.f32.mrb[23].mxu0 }
 0x979   : > { %v14216_v42 = vmax.f32 %v14184_v12, 0.0  ;;  %v14185_v22 = vadd.f32 %v22509_v54, %v14069_v41 }
 0x97a   : > { %14250 = vst.msk [vmem:[%s22516_s10 + $0x90] sm:$0xff] %vm600_vm1, %v14218_v35  ;;  %v14219_v58 = vmax.f32 %v14187_v36, 0.0 }
 0x97b   : > { %14248 = vst.msk [vmem:[%s22516_s10 + $0x80] sm:$0xff] %vm600_vm1, %v14216_v42  ;;  %v14217_v15 = vmax.f32 %v14185_v22, 0.0 }
 0x97c   : > { %14251 = vst.msk [vmem:[%s22516_s10 + $0x98] sm:$0xff] %vm600_vm1, %v14219_v58 }
 0x97d   : > { %14249 = vst.msk [vmem:[%s22516_s10 + $0x88] sm:$0xff] %vm600_vm1, %v14217_v15  ;;  %v16069_v13 = vpop.f32.mrb[24].mxu0 }
 0x97e   : > { %v14190_v37 = vadd.f32 %v16069_v13, %v22509_v54  ;;  %v14082_v6 = vpop.f32.mrb[25].mxu0 }
 0x97f   : > { %v14188_v29 = vadd.f32 %v22509_v54, %v14082_v6  ;;  %v16070_v14 = vpop.f32.mrb[26].mxu0 }
 0x980   : > { %v14222_v38 = vmax.f32 %v14190_v37, 0.0  ;;  %v14191_v59 = vadd.f32 %v16070_v14, %v22509_v54  ;;  %v14085_v16 = vpop.f32.mrb[27].mxu0 }
 0x981   : > { %v14220_v52 = vmax.f32 %v14188_v29, 0.0  ;;  %v14189_v1 = vadd.f32 %v22509_v54, %v14085_v16 }
 0x982   : > { %14254 = vst.msk [vmem:[%s22516_s10 + $0xb0] sm:$0xff] %vm600_vm1, %v14222_v38  ;;  %v14223_v60 = vmax.f32 %v14191_v59, 0.0 }
 0x983   : > { %14252 = vst.msk [vmem:[%s22516_s10 + $0xa0] sm:$0xff] %vm600_vm1, %v14220_v52  ;;  %v14221_v33 = vmax.f32 %v14189_v1, 0.0 }
 0x984   : > { %14255 = vst.msk [vmem:[%s22516_s10 + $0xb8] sm:$0xff] %vm600_vm1, %v14223_v60 }
 0x985   : > { %14253 = vst.msk [vmem:[%s22516_s10 + $0xa8] sm:$0xff] %vm600_vm1, %v14221_v33  ;;  %v16073_v31 = vpop.f32.mrb[28].mxu0 }
 0x986   : > { %v14194_v50 = vadd.f32 %v16073_v31, %v22509_v54  ;;  %v14098_v47 = vpop.f32.mrb[29].mxu0 }
 0x987   : > { %v14192_v0 = vadd.f32 %v22509_v54, %v14098_v47  ;;  %v16074_v48 = vpop.f32.mrb[30].mxu0 }
 0x988   : > { %v14226_v30 = vmax.f32 %v14194_v50, 0.0  ;;  %v14195_v25 = vadd.f32 %v16074_v48, %v22509_v54  ;;  %v14101_v23 = vpop.f32.mrb[31].mxu0 }
 0x989   : > { %v14224_v27 = vmax.f32 %v14192_v0, 0.0  ;;  %v14193_v46 = vadd.f32 %v22509_v54, %v14101_v23 }
 0x98a   : > { %14258 = vst.msk [vmem:[%s22516_s10 + $0xd0] sm:$0xff] %vm600_vm1, %v14226_v30  ;;  %v14227_v34 = vmax.f32 %v14195_v25, 0.0 }
 0x98b   : > { %14256 = vst.msk [vmem:[%s22516_s10 + $0xc0] sm:$0xff] %vm600_vm1, %v14224_v27  ;;  %v14225_v56 = vmax.f32 %v14193_v46, 0.0 }
 0x98c   : > { %14259 = vst.msk [vmem:[%s22516_s10 + $0xd8] sm:$0xff] %vm600_vm1, %v14227_v34 }
 0x98d   : > { %14257 = vst.msk [vmem:[%s22516_s10 + $0xc8] sm:$0xff] %vm600_vm1, %v14225_v56  ;;  %v16077_v8 = vpop.f32.mrb[32].mxu0 }
 0x98e   : > { %v14198_v10 = vadd.f32 %v16077_v8, %v22509_v54  ;;  %v14114_v49 = vpop.f32.mrb[33].mxu0 }
 0x98f   : > { %v14196_v20 = vadd.f32 %v22509_v54, %v14114_v49  ;;  %v16078_v32 = vpop.f32.mrb[34].mxu0 }
 0x990   : > { %v14230_v17 = vmax.f32 %v14198_v10, 0.0  ;;  %v14199_v63 = vadd.f32 %v16078_v32, %v22509_v54  ;;  %v14117_v19 = vpop.f32.mrb[35].mxu0 }
 0x991   : > { %v14228_v11 = vmax.f32 %v14196_v20, 0.0  ;;  %v14197_v9 = vadd.f32 %v22509_v54, %v14117_v19 }
 0x992   : > { %14262 = vst.msk [vmem:[%s22516_s10 + $0xf0] sm:$0xff] %vm600_vm1, %v14230_v17  ;;  %v14231_v57 = vmax.f32 %v14199_v63, 0.0 }
 0x993   : > { %14260 = vst.msk [vmem:[%s22516_s10 + $0xe0] sm:$0xff] %vm600_vm1, %v14228_v11  ;;  %v14229_v18 = vmax.f32 %v14197_v9, 0.0 }
 0x994   : > { %14263 = vst.msk [vmem:[%s22516_s10 + $0xf8] sm:$0xff] %vm600_vm1, %v14231_v57 }
 0x995   : > { %14261 = vst.msk [vmem:[%s22516_s10 + $0xe8] sm:$0xff] %vm600_vm1, %v14229_v18 }
 0x996 PF: > { %s18_s27 = sadd.s32 1, %s16766_s27  }
 0x997   : > { %p15_p4 = scmp.ge.s32.totalorder %s18_s27, 4  }
 0x999   :  { %17 = sbr.rel (!%p15_p4) target bundleno = 1 (0x1), region = 108 }

</bundles_post_ra>
